<compile_context>
chip_gen: v7x
topology: tpu7x:2x2x1
jax: 0.10.0
libtpu: 0.0.40
codegen_flags: <defaults>
</compile_context>

<pallas_src>
import functools

import jax
import jax.numpy as jnp
from jax.experimental import pallas as pl
from jax.experimental.pallas import tpu as pltpu

HEADS = 4                     # TransformerBlock(channels, heads=4)
DIM_HEAD = 32                 # Attention default dim_head
INNER = HEADS * DIM_HEAD      # 128

_SQRT_2_OVER_PI = 0.7978845608028654


def _gelu_tanh(x):
    # tanh-based GELU: the tanh rides the EUP slot; error (~3e-4) is far below the
    # bf16-matmul noise and the test tolerance.
    return 0.5 * x * (1.0 + jnp.tanh(_SQRT_2_OVER_PI * (x + 0.044715 * x * x * x)))


def pos_extraction_kernel(
    x_ref,                                   # (B_TILE, d, p) f32
    w1_ref, b1_ref,                          # FCBNReLU1DRes conv1 (BN1 scale folded) + BN1 bias
    w2_ref, b2_ref,                          # FCBNReLU1DRes conv2 (BN2 scale folded) + BN2 bias
    wqkv_ref,                                # fused to_qkv [d, 3*INNER], q cols pre-scaled
    wo_ref, bo_ref,                          # to_out conv (BN scale folded) + combined bias
    wf_ref, bf_ref,                          # FFN conv (BN scale folded) + BN bias
    o_ref,                                   # (B_TILE, d, p) f32
    *, b_tile, p, d, q_tile,
):
    f32 = jnp.float32
    bf16 = jnp.bfloat16

    # ---- in-kernel layout change: (d, p) -> (p, d) per batch element (XLU) ----
    x_slabs = [jnp.transpose(x_ref[bi]) for bi in range(b_tile)]           # [p, d] f32 each
    x_f = x_slabs[0] if b_tile == 1 else jnp.concatenate(x_slabs, axis=0)  # [rows, d] f32
    x_bf = x_f.astype(bf16)

    # ---- FCBNReLU1DRes (blocks=1): relu(BN2(W2 relu(BN1(W1 x))) + x); BN scales folded ----
    h = jnp.dot(x_bf, w1_ref[...], preferred_element_type=f32) + b1_ref[...]
    h = jnp.maximum(h, 0.0)
    h = jnp.dot(h.astype(bf16), w2_ref[...], preferred_element_type=f32) + b2_ref[...]
    x1 = jnp.maximum(h + x_f, 0.0)                                         # [rows, d] f32
    x1b = x1.astype(bf16)

    # ---- fused qkv projection: one [rows, d] x [d, 384] matmul (q pre-scaled) ----
    qkv = jnp.dot(x1b, wqkv_ref[...], preferred_element_type=f32)          # [rows, 384] f32
    qkv_b = qkv.astype(bf16)

    # Per-head slices of the (BN-folded) output projection, hoisted out of all loops.
    wo_heads = [wo_ref[hh * DIM_HEAD:(hh + 1) * DIM_HEAD, :] for hh in range(HEADS)]

    n_qt = p // q_tile
    att_tiles = []
    for bi in range(b_tile):                                               # static, unrolled
        r0 = bi * p
        # One f32 XLU transpose of k per batch element; heads slice it on sublanes.
        kT = jnp.transpose(qkv[r0:r0 + p, INNER:2 * INNER]).astype(bf16)   # [INNER, p] bf16
        kh_list = [kT[hh * DIM_HEAD:(hh + 1) * DIM_HEAD, :] for hh in range(HEADS)]
        vh_list = [qkv_b[r0:r0 + p,
                         2 * INNER + hh * DIM_HEAD:2 * INNER + (hh + 1) * DIM_HEAD]
                   for hh in range(HEADS)]                                 # [p, 32] bf16 each

        for qt in range(n_qt):                                             # row-tiled softmax
            q0 = r0 + qt * q_tile
            att_acc = None
            for hh in range(HEADS):
                lo = hh * DIM_HEAD
                qh = qkv_b[q0:q0 + q_tile, lo:lo + DIM_HEAD]               # [q_tile, 32] bf16
                dots = jnp.dot(qh, kh_list[hh], preferred_element_type=f32)  # [q_tile, p]
                m = jnp.max(dots, axis=-1, keepdims=True)
                e = jnp.exp(dots - m)
                inv = pl.reciprocal(jnp.sum(e, axis=-1, keepdims=True), approx=True)
                pattn = (e * inv).astype(bf16)
                head = jnp.dot(pattn, vh_list[hh],
                               preferred_element_type=f32).astype(bf16)    # [q_tile, 32]
                # Accumulated per-head output projection (no 32-lane concat).
                contrib = jnp.dot(head, wo_heads[hh], preferred_element_type=f32)
                att_acc = contrib if att_acc is None else att_acc + contrib
            att_tiles.append(att_acc)                                      # [q_tile, d] f32

    att = att_tiles[0] if len(att_tiles) == 1 else jnp.concatenate(att_tiles, axis=0)
    att = att + bo_ref[...]                                                # [rows, d] f32

    # ---- TransformerBlock residuals ----
    att = _gelu_tanh(att + x1)
    ffn = jnp.dot(att.astype(bf16), wf_ref[...], preferred_element_type=f32) + bf_ref[...]
    out = _gelu_tanh(att + ffn)                                            # [rows, d] f32

    # ---- store back in the module's (d, p) layout (p = lane-dense last dim) ----
    for bi in range(b_tile):
        o_ref[bi] = jnp.transpose(out[bi * p:(bi + 1) * p, :]).astype(o_ref.dtype)


def _pick_b_tile(b, max_tile=4):
    """Largest divisor of b (capped) that still leaves >= 2 grid steps (v7x megacore)."""
    candidates = [t for t in range(1, min(b, max_tile) + 1) if b % t == 0]
    multi = [t for t in candidates if b // t >= 2]
    return max(multi) if multi else max(candidates)


def pos_extraction_forward(x, kparams):
    """x: [b, d, p] float32 -> [b, d, p] float32 (matches PyTorch PosExtraction)."""
    b, d, p = x.shape
    assert d % 128 == 0, "channels must be a multiple of 128 (lane-dense tiles)"
    assert p % 8 == 0, "points must be a multiple of 8 (sublane tiles)"

    b_tile = _pick_b_tile(b)
    q_tile = 64 if p % 64 == 0 else p
    assert p % q_tile == 0

    kernel = functools.partial(pos_extraction_kernel,
                               b_tile=b_tile, p=p, d=d, q_tile=q_tile)

    def full(a):
        nd = a.ndim
        return pl.BlockSpec(a.shape, lambda i: (0,) * nd)

    out = pl.pallas_call(
        kernel,
        out_shape=jax.ShapeDtypeStruct((b, d, p), jnp.float32),
        grid_spec=pltpu.PrefetchScalarGridSpec(
            num_scalar_prefetch=0,
            grid=(b // b_tile,),
            in_specs=[pl.BlockSpec((b_tile, d, p), lambda i: (i, 0, 0))]
                     + [full(a) for a in kparams],
            out_specs=pl.BlockSpec((b_tile, d, p), lambda i: (i, 0, 0)),
        ),
        compiler_params=pltpu.CompilerParams(
            dimension_semantics=("parallel",)),                 # v7x: shard over 2 TCs
    )(x, *kparams)

    return out


# ----------------------------- parameters -----------------------------

def init_params(key, channels):
    """Deterministic synthetic parameters with the module's (PyTorch) shapes."""
    d = channels
    keys = jax.random.split(key, 10)

    def w(k, shape, scale=0.05):
        return jax.random.normal(k, shape, jnp.float32) * scale

    def bn(k, c):
        k1, k2, k3 = jax.random.split(k, 3)
        gamma = 1.0 + 0.1 * jax.random.normal(k1, (c,), jnp.float32)
        beta = 0.1 * jax.random.normal(k2, (c,), jnp.float32)
        mean = 0.05 * jax.random.normal(k3, (c,), jnp.float32)
        var = jnp.ones((c,), jnp.float32)
        return (gamma, beta, mean, var)

    W1 = w(keys[0], (d, d));   bn1 = bn(keys[1], d)         # Conv1d(d,d,1,bias=False), BN
    W2 = w(keys[2], (d, d));   bn2 = bn(keys[3], d)         # Conv1d(d,d,1,bias=False), BN
    Wqkv = w(keys[4], (3 * INNER, d))                       # Linear(d, 3*inner, bias=False)
    Wo = w(keys[5], (d, INNER))                             # Conv1d(inner, d, 1) weight
    bo = w(keys[6], (d,))                                   # Conv1d(inner, d, 1) bias
    bn_att = bn(keys[7], d)                                 # to_out BN
    Wf = w(keys[8], (d, d));   bn_ffn = bn(keys[9], d)      # ffn Conv1d(d,d,1,bias=False), BN
    return (W1, bn1, W2, bn2, Wqkv, Wo, bo, bn_att, Wf, bn_ffn)


def fold_params(raw, eps=1e-5):
    """Fold eval-mode BN scales and the attention scale into weights; weights -> bf16."""
    (W1, bn1, W2, bn2, Wqkv, Wo, bo, bn_att, Wf, bn_ffn) = raw

    def affine(bn):
        gamma, beta, mean, var = bn
        s = gamma / jnp.sqrt(var + eps)
        return s, beta - mean * s

    s1, c1 = affine(bn1)
    s2, c2 = affine(bn2)
    sa, ca = affine(bn_att)
    sf, cf = affine(bn_ffn)
    bf16 = jnp.bfloat16

    w1 = (W1.T * s1[None, :]).astype(bf16)
    w2 = (W2.T * s2[None, :]).astype(bf16)

    # Fused qkv projection [d, 3*INNER]; attention scale folded into the q columns.
    wqkv_t = Wqkv.T                                         # [d, 384]
    scale = DIM_HEAD ** -0.5
    wqkv = jnp.concatenate([wqkv_t[:, :INNER] * scale, wqkv_t[:, INNER:]],
                           axis=-1).astype(bf16)

    wo = (Wo.T * sa[None, :]).astype(bf16)                  # [INNER, d], BN scale folded
    bo_full = (bo * sa + ca).reshape(1, -1)                 # conv bias through BN
    wf = (Wf.T * sf[None, :]).astype(bf16)

    return (w1, c1.reshape(1, -1), w2, c2.reshape(1, -1),
            wqkv, wo, bo_full, wf, cf.reshape(1, -1))


# ----------------------------- pure-JAX reference -----------------------------

def pos_extraction_ref(x, raw, eps=1e-5):
    """f32 reference in the original PyTorch layout (eval-mode BN, exact GELU)."""
    (W1, bn1, W2, bn2, Wqkv, Wo, bo, bn_att, Wf, bn_ffn) = raw

    def bn_affine(t, bn):
        gamma, beta, mean, var = bn
        s = gamma / jnp.sqrt(var + eps)
        return t * s + (beta - mean * s)

    xt = jnp.transpose(x, (0, 2, 1))                        # [b, p, d]
    h = jax.nn.relu(bn_affine(xt @ W1.T, bn1))
    h = bn_affine(h @ W2.T, bn2)
    x1 = jax.nn.relu(h + xt)

    qkv = x1 @ Wqkv.T                                       # [b, p, 3*inner]
    q, k, v = jnp.split(qkv, 3, axis=-1)

    def split_heads(t):
        b_, p_, _ = t.shape
        return jnp.transpose(t.reshape(b_, p_, HEADS, DIM_HEAD), (0, 2, 1, 3))

    q, k, v = map(split_heads, (q, k, v))
    dots = jnp.einsum('bhid,bhjd->bhij', q, k) * (DIM_HEAD ** -0.5)
    attn = jax.nn.softmax(dots, axis=-1)
    o = jnp.einsum('bhij,bhjd->bhid', attn, v)
    o = jnp.transpose(o, (0, 2, 1, 3)).reshape(x1.shape[0], x1.shape[1], INNER)
    att = bn_affine(o @ Wo.T + bo, bn_att)
    att = jax.nn.gelu(att + x1, approximate=False)
    ffn = bn_affine(att @ Wf.T, bn_ffn)
    out = jax.nn.gelu(att + ffn, approximate=False)
    return jnp.transpose(out, (0, 2, 1))                    # [b, d, p]


if __name__ == "__main__":
    key = jax.random.PRNGKey(0)
    kx, kp = jax.random.split(key)

    # x: [b batch, d channels, p points]  (PosExtraction: input[b,d,g] -> output[b,d,g])
    b, d, p = 2, 128, 256
    x = jax.random.normal(kx, (b, d, p), jnp.float32)

    raw = init_params(kp, d)
    kparams = fold_params(raw)

    y = jax.jit(pos_extraction_forward)(x, kparams)
    jax.block_until_ready(y)

    assert y.shape == (b, d, p), y.shape
    assert bool(jnp.all(jnp.isfinite(y)))

    # bf16 matmuls with f32 accumulation + tanh-GELU: generous absolute tolerance.
    y_ref = pos_extraction_ref(x, raw)
    err = float(jnp.max(jnp.abs(y - y_ref)))
    assert err < 2e-1, f"max abs err {err}"

    print("KERNEL_OK")
</pallas_src>

<mosaic_0001>
module attributes {stable_mosaic.version = 11 : i64} {
  func.func @pos_extraction_kernel(%arg0: i32, %arg1: memref<1x128x256xf32, #tpu.memory_space<vmem>>, %arg2: memref<128x128xbf16, #tpu.memory_space<vmem>>, %arg3: memref<1x128xf32, #tpu.memory_space<vmem>>, %arg4: memref<128x128xbf16, #tpu.memory_space<vmem>>, %arg5: memref<1x128xf32, #tpu.memory_space<vmem>>, %arg6: memref<128x384xbf16, #tpu.memory_space<vmem>>, %arg7: memref<128x128xbf16, #tpu.memory_space<vmem>>, %arg8: memref<1x128xf32, #tpu.memory_space<vmem>>, %arg9: memref<128x128xbf16, #tpu.memory_space<vmem>>, %arg10: memref<1x128xf32, #tpu.memory_space<vmem>>, %arg11: memref<1x128x256xf32, #tpu.memory_space<vmem>>) attributes {dimension_semantics = [#tpu.dimension_semantics<parallel>], iteration_bounds = array<i64: 2>, scalar_prefetch = 0 : i64, scratch_operands = 0 : i64, tpu.core_type = #tpu.core_type<tc>, window_params = [{transform_indices = @transform_0, window_bounds = array<i64: 1, 128, 256>}, {pipeline_mode = #tpu.pipeline_mode<synchronous>, transform_indices = @transform_1, window_bounds = array<i64: 128, 128>}, {pipeline_mode = #tpu.pipeline_mode<synchronous>, transform_indices = @transform_2, window_bounds = array<i64: 1, 128>}, {pipeline_mode = #tpu.pipeline_mode<synchronous>, transform_indices = @transform_3, window_bounds = array<i64: 128, 128>}, {pipeline_mode = #tpu.pipeline_mode<synchronous>, transform_indices = @transform_4, window_bounds = array<i64: 1, 128>}, {pipeline_mode = #tpu.pipeline_mode<synchronous>, transform_indices = @transform_5, window_bounds = array<i64: 128, 384>}, {pipeline_mode = #tpu.pipeline_mode<synchronous>, transform_indices = @transform_6, window_bounds = array<i64: 128, 128>}, {pipeline_mode = #tpu.pipeline_mode<synchronous>, transform_indices = @transform_7, window_bounds = array<i64: 1, 128>}, {pipeline_mode = #tpu.pipeline_mode<synchronous>, transform_indices = @transform_8, window_bounds = array<i64: 128, 128>}, {pipeline_mode = #tpu.pipeline_mode<synchronous>, transform_indices = @transform_9, window_bounds = array<i64: 1, 128>}, {transform_indices = @transform_10, window_bounds = array<i64: 1, 128, 256>}]} {
    %c0 = arith.constant 0 : index
    %c0_0 = arith.constant 0 : index
    %c0_1 = arith.constant 0 : index
    %0 = vector.load %arg1[%c0, %c0_0, %c0_1] : memref<1x128x256xf32, #tpu.memory_space<vmem>>, vector<1x128x256xf32>
    %1 = vector.shape_cast %0 : vector<1x128x256xf32> to vector<128x256xf32>
    %2 = tpu.transpose %1, [1, 0] : vector<128x256xf32> -> vector<256x128xf32>
    %3 = arith.truncf %2 : vector<256x128xf32> to vector<256x128xbf16>
    %c0_2 = arith.constant 0 : index
    %c0_3 = arith.constant 0 : index
    %4 = vector.load %arg2[%c0_2, %c0_3] : memref<128x128xbf16, #tpu.memory_space<vmem>>, vector<128x128xbf16>
    %cst = arith.constant dense<0.000000e+00> : vector<256x128xf32>
    %5 = tpu.matmul %3, %4, %cst {dimension_numbers = #tpu.dot_dimension_numbers<[1], [0], [0], [1], [0, 0, 1, 1], [], []>} : vector<256x128xbf16>, vector<128x128xbf16>, vector<256x128xf32> -> vector<256x128xf32>
    %c0_4 = arith.constant 0 : index
    %c0_5 = arith.constant 0 : index
    %6 = vector.load %arg3[%c0_4, %c0_5] : memref<1x128xf32, #tpu.memory_space<vmem>>, vector<1x128xf32>
    %7 = vector.broadcast %6 : vector<1x128xf32> to vector<256x128xf32>
    %8 = arith.addf %5, %7 : vector<256x128xf32>
    %cst_6 = arith.constant 0.000000e+00 : f32
    %9 = vector.broadcast %cst_6 : f32 to vector<256x128xf32>
    %10 = arith.maximumf %8, %9 : vector<256x128xf32>
    %11 = arith.truncf %10 : vector<256x128xf32> to vector<256x128xbf16>
    %c0_7 = arith.constant 0 : index
    %c0_8 = arith.constant 0 : index
    %12 = vector.load %arg4[%c0_7, %c0_8] : memref<128x128xbf16, #tpu.memory_space<vmem>>, vector<128x128xbf16>
    %cst_9 = arith.constant dense<0.000000e+00> : vector<256x128xf32>
    %13 = tpu.matmul %11, %12, %cst_9 {dimension_numbers = #tpu.dot_dimension_numbers<[1], [0], [0], [1], [0, 0, 1, 1], [], []>} : vector<256x128xbf16>, vector<128x128xbf16>, vector<256x128xf32> -> vector<256x128xf32>
    %c0_10 = arith.constant 0 : index
    %c0_11 = arith.constant 0 : index
    %14 = vector.load %arg5[%c0_10, %c0_11] : memref<1x128xf32, #tpu.memory_space<vmem>>, vector<1x128xf32>
    %15 = vector.broadcast %14 : vector<1x128xf32> to vector<256x128xf32>
    %16 = arith.addf %13, %15 : vector<256x128xf32>
    %17 = arith.addf %16, %2 : vector<256x128xf32>
    %cst_12 = arith.constant 0.000000e+00 : f32
    %18 = vector.broadcast %cst_12 : f32 to vector<256x128xf32>
    %19 = arith.maximumf %17, %18 : vector<256x128xf32>
    %20 = arith.truncf %19 : vector<256x128xf32> to vector<256x128xbf16>
    %c0_13 = arith.constant 0 : index
    %c0_14 = arith.constant 0 : index
    %21 = vector.load %arg6[%c0_13, %c0_14] : memref<128x384xbf16, #tpu.memory_space<vmem>>, vector<128x384xbf16>
    %cst_15 = arith.constant dense<0.000000e+00> : vector<256x384xf32>
    %22 = tpu.matmul %20, %21, %cst_15 {dimension_numbers = #tpu.dot_dimension_numbers<[1], [0], [0], [1], [0, 0, 1, 1], [], []>} : vector<256x128xbf16>, vector<128x384xbf16>, vector<256x384xf32> -> vector<256x384xf32>
    %23 = arith.truncf %22 : vector<256x384xf32> to vector<256x384xbf16>
    %c0_16 = arith.constant 0 : index
    %c0_17 = arith.constant 0 : index
    %24 = vector.load %arg7[%c0_16, %c0_17] : memref<128x128xbf16, #tpu.memory_space<vmem>>, vector<32x128xbf16>
    %c32 = arith.constant 32 : index
    %c0_18 = arith.constant 0 : index
    %25 = vector.load %arg7[%c32, %c0_18] : memref<128x128xbf16, #tpu.memory_space<vmem>>, vector<32x128xbf16>
    %c64 = arith.constant 64 : index
    %c0_19 = arith.constant 0 : index
    %26 = vector.load %arg7[%c64, %c0_19] : memref<128x128xbf16, #tpu.memory_space<vmem>>, vector<32x128xbf16>
    %c96 = arith.constant 96 : index
    %c0_20 = arith.constant 0 : index
    %27 = vector.load %arg7[%c96, %c0_20] : memref<128x128xbf16, #tpu.memory_space<vmem>>, vector<32x128xbf16>
    %28 = vector.extract_strided_slice %22 {offsets = [0, 128], sizes = [256, 128], strides = [1, 1]} : vector<256x384xf32> to vector<256x128xf32>
    %29 = tpu.transpose %28, [1, 0] : vector<256x128xf32> -> vector<128x256xf32>
    %30 = arith.truncf %29 : vector<128x256xf32> to vector<128x256xbf16>
    %31 = vector.extract_strided_slice %30 {offsets = [0, 0], sizes = [32, 256], strides = [1, 1]} : vector<128x256xbf16> to vector<32x256xbf16>
    %32 = vector.extract_strided_slice %30 {offsets = [32, 0], sizes = [32, 256], strides = [1, 1]} : vector<128x256xbf16> to vector<32x256xbf16>
    %33 = vector.extract_strided_slice %30 {offsets = [64, 0], sizes = [32, 256], strides = [1, 1]} : vector<128x256xbf16> to vector<32x256xbf16>
    %34 = vector.extract_strided_slice %30 {offsets = [96, 0], sizes = [32, 256], strides = [1, 1]} : vector<128x256xbf16> to vector<32x256xbf16>
    %35 = vector.extract_strided_slice %23 {offsets = [0, 256], sizes = [256, 32], strides = [1, 1]} : vector<256x384xbf16> to vector<256x32xbf16>
    %36 = vector.extract_strided_slice %23 {offsets = [0, 288], sizes = [256, 32], strides = [1, 1]} : vector<256x384xbf16> to vector<256x32xbf16>
    %37 = vector.extract_strided_slice %23 {offsets = [0, 320], sizes = [256, 32], strides = [1, 1]} : vector<256x384xbf16> to vector<256x32xbf16>
    %38 = vector.extract_strided_slice %23 {offsets = [0, 352], sizes = [256, 32], strides = [1, 1]} : vector<256x384xbf16> to vector<256x32xbf16>
    %39 = vector.extract_strided_slice %23 {offsets = [0, 0], sizes = [64, 32], strides = [1, 1]} : vector<256x384xbf16> to vector<64x32xbf16>
    %cst_21 = arith.constant dense<0.000000e+00> : vector<64x256xf32>
    %40 = tpu.matmul %39, %31, %cst_21 {dimension_numbers = #tpu.dot_dimension_numbers<[1], [0], [0], [1], [0, 0, 1, 1], [], []>} : vector<64x32xbf16>, vector<32x256xbf16>, vector<64x256xf32> -> vector<64x256xf32>
    %cst_22 = arith.constant dense<0xFF800000> : vector<64xf32>
    %41 = vector.multi_reduction <maximumf>, %40, %cst_22 [1] : vector<64x256xf32> to vector<64xf32>
    %42 = vector.shape_cast %41 : vector<64xf32> to vector<64x1xf32>
    %43 = vector.broadcast %42 : vector<64x1xf32> to vector<64x256xf32>
    %44 = arith.subf %40, %43 : vector<64x256xf32>
    %45 = math.exp %44 : vector<64x256xf32>
    %cst_23 = arith.constant dense<0.000000e+00> : vector<64xf32>
    %46 = vector.multi_reduction <add>, %45, %cst_23 [1] : vector<64x256xf32> to vector<64xf32>
    %47 = vector.shape_cast %46 : vector<64xf32> to vector<64x1xf32>
    %48 = tpu.reciprocal %47 {approx = true} : vector<64x1xf32> -> vector<64x1xf32>
    %49 = vector.broadcast %48 : vector<64x1xf32> to vector<64x256xf32>
    %50 = arith.mulf %45, %49 : vector<64x256xf32>
    %51 = arith.truncf %50 : vector<64x256xf32> to vector<64x256xbf16>
    %cst_24 = arith.constant dense<0.000000e+00> : vector<64x32xf32>
    %52 = tpu.matmul %51, %35, %cst_24 {dimension_numbers = #tpu.dot_dimension_numbers<[1], [0], [0], [1], [0, 0, 1, 1], [], []>} : vector<64x256xbf16>, vector<256x32xbf16>, vector<64x32xf32> -> vector<64x32xf32>
    %53 = arith.truncf %52 : vector<64x32xf32> to vector<64x32xbf16>
    %cst_25 = arith.constant dense<0.000000e+00> : vector<64x128xf32>
    %54 = tpu.matmul %53, %24, %cst_25 {dimension_numbers = #tpu.dot_dimension_numbers<[1], [0], [0], [1], [0, 0, 1, 1], [], []>} : vector<64x32xbf16>, vector<32x128xbf16>, vector<64x128xf32> -> vector<64x128xf32>
    %55 = vector.extract_strided_slice %23 {offsets = [0, 32], sizes = [64, 32], strides = [1, 1]} : vector<256x384xbf16> to vector<64x32xbf16>
    %cst_26 = arith.constant dense<0.000000e+00> : vector<64x256xf32>
    %56 = tpu.matmul %55, %32, %cst_26 {dimension_numbers = #tpu.dot_dimension_numbers<[1], [0], [0], [1], [0, 0, 1, 1], [], []>} : vector<64x32xbf16>, vector<32x256xbf16>, vector<64x256xf32> -> vector<64x256xf32>
    %cst_27 = arith.constant dense<0xFF800000> : vector<64xf32>
    %57 = vector.multi_reduction <maximumf>, %56, %cst_27 [1] : vector<64x256xf32> to vector<64xf32>
    %58 = vector.shape_cast %57 : vector<64xf32> to vector<64x1xf32>
    %59 = vector.broadcast %58 : vector<64x1xf32> to vector<64x256xf32>
    %60 = arith.subf %56, %59 : vector<64x256xf32>
    %61 = math.exp %60 : vector<64x256xf32>
    %cst_28 = arith.constant dense<0.000000e+00> : vector<64xf32>
    %62 = vector.multi_reduction <add>, %61, %cst_28 [1] : vector<64x256xf32> to vector<64xf32>
    %63 = vector.shape_cast %62 : vector<64xf32> to vector<64x1xf32>
    %64 = tpu.reciprocal %63 {approx = true} : vector<64x1xf32> -> vector<64x1xf32>
    %65 = vector.broadcast %64 : vector<64x1xf32> to vector<64x256xf32>
    %66 = arith.mulf %61, %65 : vector<64x256xf32>
    %67 = arith.truncf %66 : vector<64x256xf32> to vector<64x256xbf16>
    %cst_29 = arith.constant dense<0.000000e+00> : vector<64x32xf32>
    %68 = tpu.matmul %67, %36, %cst_29 {dimension_numbers = #tpu.dot_dimension_numbers<[1], [0], [0], [1], [0, 0, 1, 1], [], []>} : vector<64x256xbf16>, vector<256x32xbf16>, vector<64x32xf32> -> vector<64x32xf32>
    %69 = arith.truncf %68 : vector<64x32xf32> to vector<64x32xbf16>
    %cst_30 = arith.constant dense<0.000000e+00> : vector<64x128xf32>
    %70 = tpu.matmul %69, %25, %cst_30 {dimension_numbers = #tpu.dot_dimension_numbers<[1], [0], [0], [1], [0, 0, 1, 1], [], []>} : vector<64x32xbf16>, vector<32x128xbf16>, vector<64x128xf32> -> vector<64x128xf32>
    %71 = arith.addf %54, %70 : vector<64x128xf32>
    %72 = vector.extract_strided_slice %23 {offsets = [0, 64], sizes = [64, 32], strides = [1, 1]} : vector<256x384xbf16> to vector<64x32xbf16>
    %cst_31 = arith.constant dense<0.000000e+00> : vector<64x256xf32>
    %73 = tpu.matmul %72, %33, %cst_31 {dimension_numbers = #tpu.dot_dimension_numbers<[1], [0], [0], [1], [0, 0, 1, 1], [], []>} : vector<64x32xbf16>, vector<32x256xbf16>, vector<64x256xf32> -> vector<64x256xf32>
    %cst_32 = arith.constant dense<0xFF800000> : vector<64xf32>
    %74 = vector.multi_reduction <maximumf>, %73, %cst_32 [1] : vector<64x256xf32> to vector<64xf32>
    %75 = vector.shape_cast %74 : vector<64xf32> to vector<64x1xf32>
    %76 = vector.broadcast %75 : vector<64x1xf32> to vector<64x256xf32>
    %77 = arith.subf %73, %76 : vector<64x256xf32>
    %78 = math.exp %77 : vector<64x256xf32>
    %cst_33 = arith.constant dense<0.000000e+00> : vector<64xf32>
    %79 = vector.multi_reduction <add>, %78, %cst_33 [1] : vector<64x256xf32> to vector<64xf32>
    %80 = vector.shape_cast %79 : vector<64xf32> to vector<64x1xf32>
    %81 = tpu.reciprocal %80 {approx = true} : vector<64x1xf32> -> vector<64x1xf32>
    %82 = vector.broadcast %81 : vector<64x1xf32> to vector<64x256xf32>
    %83 = arith.mulf %78, %82 : vector<64x256xf32>
    %84 = arith.truncf %83 : vector<64x256xf32> to vector<64x256xbf16>
    %cst_34 = arith.constant dense<0.000000e+00> : vector<64x32xf32>
    %85 = tpu.matmul %84, %37, %cst_34 {dimension_numbers = #tpu.dot_dimension_numbers<[1], [0], [0], [1], [0, 0, 1, 1], [], []>} : vector<64x256xbf16>, vector<256x32xbf16>, vector<64x32xf32> -> vector<64x32xf32>
    %86 = arith.truncf %85 : vector<64x32xf32> to vector<64x32xbf16>
    %cst_35 = arith.constant dense<0.000000e+00> : vector<64x128xf32>
    %87 = tpu.matmul %86, %26, %cst_35 {dimension_numbers = #tpu.dot_dimension_numbers<[1], [0], [0], [1], [0, 0, 1, 1], [], []>} : vector<64x32xbf16>, vector<32x128xbf16>, vector<64x128xf32> -> vector<64x128xf32>
    %88 = arith.addf %71, %87 : vector<64x128xf32>
    %89 = vector.extract_strided_slice %23 {offsets = [0, 96], sizes = [64, 32], strides = [1, 1]} : vector<256x384xbf16> to vector<64x32xbf16>
    %cst_36 = arith.constant dense<0.000000e+00> : vector<64x256xf32>
    %90 = tpu.matmul %89, %34, %cst_36 {dimension_numbers = #tpu.dot_dimension_numbers<[1], [0], [0], [1], [0, 0, 1, 1], [], []>} : vector<64x32xbf16>, vector<32x256xbf16>, vector<64x256xf32> -> vector<64x256xf32>
    %cst_37 = arith.constant dense<0xFF800000> : vector<64xf32>
    %91 = vector.multi_reduction <maximumf>, %90, %cst_37 [1] : vector<64x256xf32> to vector<64xf32>
    %92 = vector.shape_cast %91 : vector<64xf32> to vector<64x1xf32>
    %93 = vector.broadcast %92 : vector<64x1xf32> to vector<64x256xf32>
    %94 = arith.subf %90, %93 : vector<64x256xf32>
    %95 = math.exp %94 : vector<64x256xf32>
    %cst_38 = arith.constant dense<0.000000e+00> : vector<64xf32>
    %96 = vector.multi_reduction <add>, %95, %cst_38 [1] : vector<64x256xf32> to vector<64xf32>
    %97 = vector.shape_cast %96 : vector<64xf32> to vector<64x1xf32>
    %98 = tpu.reciprocal %97 {approx = true} : vector<64x1xf32> -> vector<64x1xf32>
    %99 = vector.broadcast %98 : vector<64x1xf32> to vector<64x256xf32>
    %100 = arith.mulf %95, %99 : vector<64x256xf32>
    %101 = arith.truncf %100 : vector<64x256xf32> to vector<64x256xbf16>
    %cst_39 = arith.constant dense<0.000000e+00> : vector<64x32xf32>
    %102 = tpu.matmul %101, %38, %cst_39 {dimension_numbers = #tpu.dot_dimension_numbers<[1], [0], [0], [1], [0, 0, 1, 1], [], []>} : vector<64x256xbf16>, vector<256x32xbf16>, vector<64x32xf32> -> vector<64x32xf32>
    %103 = arith.truncf %102 : vector<64x32xf32> to vector<64x32xbf16>
    %cst_40 = arith.constant dense<0.000000e+00> : vector<64x128xf32>
    %104 = tpu.matmul %103, %27, %cst_40 {dimension_numbers = #tpu.dot_dimension_numbers<[1], [0], [0], [1], [0, 0, 1, 1], [], []>} : vector<64x32xbf16>, vector<32x128xbf16>, vector<64x128xf32> -> vector<64x128xf32>
    %105 = arith.addf %88, %104 : vector<64x128xf32>
    %106 = vector.extract_strided_slice %23 {offsets = [64, 0], sizes = [64, 32], strides = [1, 1]} : vector<256x384xbf16> to vector<64x32xbf16>
    %cst_41 = arith.constant dense<0.000000e+00> : vector<64x256xf32>
    %107 = tpu.matmul %106, %31, %cst_41 {dimension_numbers = #tpu.dot_dimension_numbers<[1], [0], [0], [1], [0, 0, 1, 1], [], []>} : vector<64x32xbf16>, vector<32x256xbf16>, vector<64x256xf32> -> vector<64x256xf32>
    %cst_42 = arith.constant dense<0xFF800000> : vector<64xf32>
    %108 = vector.multi_reduction <maximumf>, %107, %cst_42 [1] : vector<64x256xf32> to vector<64xf32>
    %109 = vector.shape_cast %108 : vector<64xf32> to vector<64x1xf32>
    %110 = vector.broadcast %109 : vector<64x1xf32> to vector<64x256xf32>
    %111 = arith.subf %107, %110 : vector<64x256xf32>
    %112 = math.exp %111 : vector<64x256xf32>
    %cst_43 = arith.constant dense<0.000000e+00> : vector<64xf32>
    %113 = vector.multi_reduction <add>, %112, %cst_43 [1] : vector<64x256xf32> to vector<64xf32>
    %114 = vector.shape_cast %113 : vector<64xf32> to vector<64x1xf32>
    %115 = tpu.reciprocal %114 {approx = true} : vector<64x1xf32> -> vector<64x1xf32>
    %116 = vector.broadcast %115 : vector<64x1xf32> to vector<64x256xf32>
    %117 = arith.mulf %112, %116 : vector<64x256xf32>
    %118 = arith.truncf %117 : vector<64x256xf32> to vector<64x256xbf16>
    %cst_44 = arith.constant dense<0.000000e+00> : vector<64x32xf32>
    %119 = tpu.matmul %118, %35, %cst_44 {dimension_numbers = #tpu.dot_dimension_numbers<[1], [0], [0], [1], [0, 0, 1, 1], [], []>} : vector<64x256xbf16>, vector<256x32xbf16>, vector<64x32xf32> -> vector<64x32xf32>
    %120 = arith.truncf %119 : vector<64x32xf32> to vector<64x32xbf16>
    %cst_45 = arith.constant dense<0.000000e+00> : vector<64x128xf32>
    %121 = tpu.matmul %120, %24, %cst_45 {dimension_numbers = #tpu.dot_dimension_numbers<[1], [0], [0], [1], [0, 0, 1, 1], [], []>} : vector<64x32xbf16>, vector<32x128xbf16>, vector<64x128xf32> -> vector<64x128xf32>
    %122 = vector.extract_strided_slice %23 {offsets = [64, 32], sizes = [64, 32], strides = [1, 1]} : vector<256x384xbf16> to vector<64x32xbf16>
    %cst_46 = arith.constant dense<0.000000e+00> : vector<64x256xf32>
    %123 = tpu.matmul %122, %32, %cst_46 {dimension_numbers = #tpu.dot_dimension_numbers<[1], [0], [0], [1], [0, 0, 1, 1], [], []>} : vector<64x32xbf16>, vector<32x256xbf16>, vector<64x256xf32> -> vector<64x256xf32>
    %cst_47 = arith.constant dense<0xFF800000> : vector<64xf32>
    %124 = vector.multi_reduction <maximumf>, %123, %cst_47 [1] : vector<64x256xf32> to vector<64xf32>
    %125 = vector.shape_cast %124 : vector<64xf32> to vector<64x1xf32>
    %126 = vector.broadcast %125 : vector<64x1xf32> to vector<64x256xf32>
    %127 = arith.subf %123, %126 : vector<64x256xf32>
    %128 = math.exp %127 : vector<64x256xf32>
    %cst_48 = arith.constant dense<0.000000e+00> : vector<64xf32>
    %129 = vector.multi_reduction <add>, %128, %cst_48 [1] : vector<64x256xf32> to vector<64xf32>
    %130 = vector.shape_cast %129 : vector<64xf32> to vector<64x1xf32>
    %131 = tpu.reciprocal %130 {approx = true} : vector<64x1xf32> -> vector<64x1xf32>
    %132 = vector.broadcast %131 : vector<64x1xf32> to vector<64x256xf32>
    %133 = arith.mulf %128, %132 : vector<64x256xf32>
    %134 = arith.truncf %133 : vector<64x256xf32> to vector<64x256xbf16>
    %cst_49 = arith.constant dense<0.000000e+00> : vector<64x32xf32>
    %135 = tpu.matmul %134, %36, %cst_49 {dimension_numbers = #tpu.dot_dimension_numbers<[1], [0], [0], [1], [0, 0, 1, 1], [], []>} : vector<64x256xbf16>, vector<256x32xbf16>, vector<64x32xf32> -> vector<64x32xf32>
    %136 = arith.truncf %135 : vector<64x32xf32> to vector<64x32xbf16>
    %cst_50 = arith.constant dense<0.000000e+00> : vector<64x128xf32>
    %137 = tpu.matmul %136, %25, %cst_50 {dimension_numbers = #tpu.dot_dimension_numbers<[1], [0], [0], [1], [0, 0, 1, 1], [], []>} : vector<64x32xbf16>, vector<32x128xbf16>, vector<64x128xf32> -> vector<64x128xf32>
    %138 = arith.addf %121, %137 : vector<64x128xf32>
    %139 = vector.extract_strided_slice %23 {offsets = [64, 64], sizes = [64, 32], strides = [1, 1]} : vector<256x384xbf16> to vector<64x32xbf16>
    %cst_51 = arith.constant dense<0.000000e+00> : vector<64x256xf32>
    %140 = tpu.matmul %139, %33, %cst_51 {dimension_numbers = #tpu.dot_dimension_numbers<[1], [0], [0], [1], [0, 0, 1, 1], [], []>} : vector<64x32xbf16>, vector<32x256xbf16>, vector<64x256xf32> -> vector<64x256xf32>
    %cst_52 = arith.constant dense<0xFF800000> : vector<64xf32>
    %141 = vector.multi_reduction <maximumf>, %140, %cst_52 [1] : vector<64x256xf32> to vector<64xf32>
    %142 = vector.shape_cast %141 : vector<64xf32> to vector<64x1xf32>
    %143 = vector.broadcast %142 : vector<64x1xf32> to vector<64x256xf32>
    %144 = arith.subf %140, %143 : vector<64x256xf32>
    %145 = math.exp %144 : vector<64x256xf32>
    %cst_53 = arith.constant dense<0.000000e+00> : vector<64xf32>
    %146 = vector.multi_reduction <add>, %145, %cst_53 [1] : vector<64x256xf32> to vector<64xf32>
    %147 = vector.shape_cast %146 : vector<64xf32> to vector<64x1xf32>
    %148 = tpu.reciprocal %147 {approx = true} : vector<64x1xf32> -> vector<64x1xf32>
    %149 = vector.broadcast %148 : vector<64x1xf32> to vector<64x256xf32>
    %150 = arith.mulf %145, %149 : vector<64x256xf32>
    %151 = arith.truncf %150 : vector<64x256xf32> to vector<64x256xbf16>
    %cst_54 = arith.constant dense<0.000000e+00> : vector<64x32xf32>
    %152 = tpu.matmul %151, %37, %cst_54 {dimension_numbers = #tpu.dot_dimension_numbers<[1], [0], [0], [1], [0, 0, 1, 1], [], []>} : vector<64x256xbf16>, vector<256x32xbf16>, vector<64x32xf32> -> vector<64x32xf32>
    %153 = arith.truncf %152 : vector<64x32xf32> to vector<64x32xbf16>
    %cst_55 = arith.constant dense<0.000000e+00> : vector<64x128xf32>
    %154 = tpu.matmul %153, %26, %cst_55 {dimension_numbers = #tpu.dot_dimension_numbers<[1], [0], [0], [1], [0, 0, 1, 1], [], []>} : vector<64x32xbf16>, vector<32x128xbf16>, vector<64x128xf32> -> vector<64x128xf32>
    %155 = arith.addf %138, %154 : vector<64x128xf32>
    %156 = vector.extract_strided_slice %23 {offsets = [64, 96], sizes = [64, 32], strides = [1, 1]} : vector<256x384xbf16> to vector<64x32xbf16>
    %cst_56 = arith.constant dense<0.000000e+00> : vector<64x256xf32>
    %157 = tpu.matmul %156, %34, %cst_56 {dimension_numbers = #tpu.dot_dimension_numbers<[1], [0], [0], [1], [0, 0, 1, 1], [], []>} : vector<64x32xbf16>, vector<32x256xbf16>, vector<64x256xf32> -> vector<64x256xf32>
    %cst_57 = arith.constant dense<0xFF800000> : vector<64xf32>
    %158 = vector.multi_reduction <maximumf>, %157, %cst_57 [1] : vector<64x256xf32> to vector<64xf32>
    %159 = vector.shape_cast %158 : vector<64xf32> to vector<64x1xf32>
    %160 = vector.broadcast %159 : vector<64x1xf32> to vector<64x256xf32>
    %161 = arith.subf %157, %160 : vector<64x256xf32>
    %162 = math.exp %161 : vector<64x256xf32>
    %cst_58 = arith.constant dense<0.000000e+00> : vector<64xf32>
    %163 = vector.multi_reduction <add>, %162, %cst_58 [1] : vector<64x256xf32> to vector<64xf32>
    %164 = vector.shape_cast %163 : vector<64xf32> to vector<64x1xf32>
    %165 = tpu.reciprocal %164 {approx = true} : vector<64x1xf32> -> vector<64x1xf32>
    %166 = vector.broadcast %165 : vector<64x1xf32> to vector<64x256xf32>
    %167 = arith.mulf %162, %166 : vector<64x256xf32>
    %168 = arith.truncf %167 : vector<64x256xf32> to vector<64x256xbf16>
    %cst_59 = arith.constant dense<0.000000e+00> : vector<64x32xf32>
    %169 = tpu.matmul %168, %38, %cst_59 {dimension_numbers = #tpu.dot_dimension_numbers<[1], [0], [0], [1], [0, 0, 1, 1], [], []>} : vector<64x256xbf16>, vector<256x32xbf16>, vector<64x32xf32> -> vector<64x32xf32>
    %170 = arith.truncf %169 : vector<64x32xf32> to vector<64x32xbf16>
    %cst_60 = arith.constant dense<0.000000e+00> : vector<64x128xf32>
    %171 = tpu.matmul %170, %27, %cst_60 {dimension_numbers = #tpu.dot_dimension_numbers<[1], [0], [0], [1], [0, 0, 1, 1], [], []>} : vector<64x32xbf16>, vector<32x128xbf16>, vector<64x128xf32> -> vector<64x128xf32>
    %172 = arith.addf %155, %171 : vector<64x128xf32>
    %173 = vector.extract_strided_slice %23 {offsets = [128, 0], sizes = [64, 32], strides = [1, 1]} : vector<256x384xbf16> to vector<64x32xbf16>
    %cst_61 = arith.constant dense<0.000000e+00> : vector<64x256xf32>
    %174 = tpu.matmul %173, %31, %cst_61 {dimension_numbers = #tpu.dot_dimension_numbers<[1], [0], [0], [1], [0, 0, 1, 1], [], []>} : vector<64x32xbf16>, vector<32x256xbf16>, vector<64x256xf32> -> vector<64x256xf32>
    %cst_62 = arith.constant dense<0xFF800000> : vector<64xf32>
    %175 = vector.multi_reduction <maximumf>, %174, %cst_62 [1] : vector<64x256xf32> to vector<64xf32>
    %176 = vector.shape_cast %175 : vector<64xf32> to vector<64x1xf32>
    %177 = vector.broadcast %176 : vector<64x1xf32> to vector<64x256xf32>
    %178 = arith.subf %174, %177 : vector<64x256xf32>
    %179 = math.exp %178 : vector<64x256xf32>
    %cst_63 = arith.constant dense<0.000000e+00> : vector<64xf32>
    %180 = vector.multi_reduction <add>, %179, %cst_63 [1] : vector<64x256xf32> to vector<64xf32>
    %181 = vector.shape_cast %180 : vector<64xf32> to vector<64x1xf32>
    %182 = tpu.reciprocal %181 {approx = true} : vector<64x1xf32> -> vector<64x1xf32>
    %183 = vector.broadcast %182 : vector<64x1xf32> to vector<64x256xf32>
    %184 = arith.mulf %179, %183 : vector<64x256xf32>
    %185 = arith.truncf %184 : vector<64x256xf32> to vector<64x256xbf16>
    %cst_64 = arith.constant dense<0.000000e+00> : vector<64x32xf32>
    %186 = tpu.matmul %185, %35, %cst_64 {dimension_numbers = #tpu.dot_dimension_numbers<[1], [0], [0], [1], [0, 0, 1, 1], [], []>} : vector<64x256xbf16>, vector<256x32xbf16>, vector<64x32xf32> -> vector<64x32xf32>
    %187 = arith.truncf %186 : vector<64x32xf32> to vector<64x32xbf16>
    %cst_65 = arith.constant dense<0.000000e+00> : vector<64x128xf32>
    %188 = tpu.matmul %187, %24, %cst_65 {dimension_numbers = #tpu.dot_dimension_numbers<[1], [0], [0], [1], [0, 0, 1, 1], [], []>} : vector<64x32xbf16>, vector<32x128xbf16>, vector<64x128xf32> -> vector<64x128xf32>
    %189 = vector.extract_strided_slice %23 {offsets = [128, 32], sizes = [64, 32], strides = [1, 1]} : vector<256x384xbf16> to vector<64x32xbf16>
    %cst_66 = arith.constant dense<0.000000e+00> : vector<64x256xf32>
    %190 = tpu.matmul %189, %32, %cst_66 {dimension_numbers = #tpu.dot_dimension_numbers<[1], [0], [0], [1], [0, 0, 1, 1], [], []>} : vector<64x32xbf16>, vector<32x256xbf16>, vector<64x256xf32> -> vector<64x256xf32>
    %cst_67 = arith.constant dense<0xFF800000> : vector<64xf32>
    %191 = vector.multi_reduction <maximumf>, %190, %cst_67 [1] : vector<64x256xf32> to vector<64xf32>
    %192 = vector.shape_cast %191 : vector<64xf32> to vector<64x1xf32>
    %193 = vector.broadcast %192 : vector<64x1xf32> to vector<64x256xf32>
    %194 = arith.subf %190, %193 : vector<64x256xf32>
    %195 = math.exp %194 : vector<64x256xf32>
    %cst_68 = arith.constant dense<0.000000e+00> : vector<64xf32>
    %196 = vector.multi_reduction <add>, %195, %cst_68 [1] : vector<64x256xf32> to vector<64xf32>
    %197 = vector.shape_cast %196 : vector<64xf32> to vector<64x1xf32>
    %198 = tpu.reciprocal %197 {approx = true} : vector<64x1xf32> -> vector<64x1xf32>
    %199 = vector.broadcast %198 : vector<64x1xf32> to vector<64x256xf32>
    %200 = arith.mulf %195, %199 : vector<64x256xf32>
    %201 = arith.truncf %200 : vector<64x256xf32> to vector<64x256xbf16>
    %cst_69 = arith.constant dense<0.000000e+00> : vector<64x32xf32>
    %202 = tpu.matmul %201, %36, %cst_69 {dimension_numbers = #tpu.dot_dimension_numbers<[1], [0], [0], [1], [0, 0, 1, 1], [], []>} : vector<64x256xbf16>, vector<256x32xbf16>, vector<64x32xf32> -> vector<64x32xf32>
    %203 = arith.truncf %202 : vector<64x32xf32> to vector<64x32xbf16>
    %cst_70 = arith.constant dense<0.000000e+00> : vector<64x128xf32>
    %204 = tpu.matmul %203, %25, %cst_70 {dimension_numbers = #tpu.dot_dimension_numbers<[1], [0], [0], [1], [0, 0, 1, 1], [], []>} : vector<64x32xbf16>, vector<32x128xbf16>, vector<64x128xf32> -> vector<64x128xf32>
    %205 = arith.addf %188, %204 : vector<64x128xf32>
    %206 = vector.extract_strided_slice %23 {offsets = [128, 64], sizes = [64, 32], strides = [1, 1]} : vector<256x384xbf16> to vector<64x32xbf16>
    %cst_71 = arith.constant dense<0.000000e+00> : vector<64x256xf32>
    %207 = tpu.matmul %206, %33, %cst_71 {dimension_numbers = #tpu.dot_dimension_numbers<[1], [0], [0], [1], [0, 0, 1, 1], [], []>} : vector<64x32xbf16>, vector<32x256xbf16>, vector<64x256xf32> -> vector<64x256xf32>
    %cst_72 = arith.constant dense<0xFF800000> : vector<64xf32>
    %208 = vector.multi_reduction <maximumf>, %207, %cst_72 [1] : vector<64x256xf32> to vector<64xf32>
    %209 = vector.shape_cast %208 : vector<64xf32> to vector<64x1xf32>
    %210 = vector.broadcast %209 : vector<64x1xf32> to vector<64x256xf32>
    %211 = arith.subf %207, %210 : vector<64x256xf32>
    %212 = math.exp %211 : vector<64x256xf32>
    %cst_73 = arith.constant dense<0.000000e+00> : vector<64xf32>
    %213 = vector.multi_reduction <add>, %212, %cst_73 [1] : vector<64x256xf32> to vector<64xf32>
    %214 = vector.shape_cast %213 : vector<64xf32> to vector<64x1xf32>
    %215 = tpu.reciprocal %214 {approx = true} : vector<64x1xf32> -> vector<64x1xf32>
    %216 = vector.broadcast %215 : vector<64x1xf32> to vector<64x256xf32>
    %217 = arith.mulf %212, %216 : vector<64x256xf32>
    %218 = arith.truncf %217 : vector<64x256xf32> to vector<64x256xbf16>
    %cst_74 = arith.constant dense<0.000000e+00> : vector<64x32xf32>
    %219 = tpu.matmul %218, %37, %cst_74 {dimension_numbers = #tpu.dot_dimension_numbers<[1], [0], [0], [1], [0, 0, 1, 1], [], []>} : vector<64x256xbf16>, vector<256x32xbf16>, vector<64x32xf32> -> vector<64x32xf32>
    %220 = arith.truncf %219 : vector<64x32xf32> to vector<64x32xbf16>
    %cst_75 = arith.constant dense<0.000000e+00> : vector<64x128xf32>
    %221 = tpu.matmul %220, %26, %cst_75 {dimension_numbers = #tpu.dot_dimension_numbers<[1], [0], [0], [1], [0, 0, 1, 1], [], []>} : vector<64x32xbf16>, vector<32x128xbf16>, vector<64x128xf32> -> vector<64x128xf32>
    %222 = arith.addf %205, %221 : vector<64x128xf32>
    %223 = vector.extract_strided_slice %23 {offsets = [128, 96], sizes = [64, 32], strides = [1, 1]} : vector<256x384xbf16> to vector<64x32xbf16>
    %cst_76 = arith.constant dense<0.000000e+00> : vector<64x256xf32>
    %224 = tpu.matmul %223, %34, %cst_76 {dimension_numbers = #tpu.dot_dimension_numbers<[1], [0], [0], [1], [0, 0, 1, 1], [], []>} : vector<64x32xbf16>, vector<32x256xbf16>, vector<64x256xf32> -> vector<64x256xf32>
    %cst_77 = arith.constant dense<0xFF800000> : vector<64xf32>
    %225 = vector.multi_reduction <maximumf>, %224, %cst_77 [1] : vector<64x256xf32> to vector<64xf32>
    %226 = vector.shape_cast %225 : vector<64xf32> to vector<64x1xf32>
    %227 = vector.broadcast %226 : vector<64x1xf32> to vector<64x256xf32>
    %228 = arith.subf %224, %227 : vector<64x256xf32>
    %229 = math.exp %228 : vector<64x256xf32>
    %cst_78 = arith.constant dense<0.000000e+00> : vector<64xf32>
    %230 = vector.multi_reduction <add>, %229, %cst_78 [1] : vector<64x256xf32> to vector<64xf32>
    %231 = vector.shape_cast %230 : vector<64xf32> to vector<64x1xf32>
    %232 = tpu.reciprocal %231 {approx = true} : vector<64x1xf32> -> vector<64x1xf32>
    %233 = vector.broadcast %232 : vector<64x1xf32> to vector<64x256xf32>
    %234 = arith.mulf %229, %233 : vector<64x256xf32>
    %235 = arith.truncf %234 : vector<64x256xf32> to vector<64x256xbf16>
    %cst_79 = arith.constant dense<0.000000e+00> : vector<64x32xf32>
    %236 = tpu.matmul %235, %38, %cst_79 {dimension_numbers = #tpu.dot_dimension_numbers<[1], [0], [0], [1], [0, 0, 1, 1], [], []>} : vector<64x256xbf16>, vector<256x32xbf16>, vector<64x32xf32> -> vector<64x32xf32>
    %237 = arith.truncf %236 : vector<64x32xf32> to vector<64x32xbf16>
    %cst_80 = arith.constant dense<0.000000e+00> : vector<64x128xf32>
    %238 = tpu.matmul %237, %27, %cst_80 {dimension_numbers = #tpu.dot_dimension_numbers<[1], [0], [0], [1], [0, 0, 1, 1], [], []>} : vector<64x32xbf16>, vector<32x128xbf16>, vector<64x128xf32> -> vector<64x128xf32>
    %239 = arith.addf %222, %238 : vector<64x128xf32>
    %240 = vector.extract_strided_slice %23 {offsets = [192, 0], sizes = [64, 32], strides = [1, 1]} : vector<256x384xbf16> to vector<64x32xbf16>
    %cst_81 = arith.constant dense<0.000000e+00> : vector<64x256xf32>
    %241 = tpu.matmul %240, %31, %cst_81 {dimension_numbers = #tpu.dot_dimension_numbers<[1], [0], [0], [1], [0, 0, 1, 1], [], []>} : vector<64x32xbf16>, vector<32x256xbf16>, vector<64x256xf32> -> vector<64x256xf32>
    %cst_82 = arith.constant dense<0xFF800000> : vector<64xf32>
    %242 = vector.multi_reduction <maximumf>, %241, %cst_82 [1] : vector<64x256xf32> to vector<64xf32>
    %243 = vector.shape_cast %242 : vector<64xf32> to vector<64x1xf32>
    %244 = vector.broadcast %243 : vector<64x1xf32> to vector<64x256xf32>
    %245 = arith.subf %241, %244 : vector<64x256xf32>
    %246 = math.exp %245 : vector<64x256xf32>
    %cst_83 = arith.constant dense<0.000000e+00> : vector<64xf32>
    %247 = vector.multi_reduction <add>, %246, %cst_83 [1] : vector<64x256xf32> to vector<64xf32>
    %248 = vector.shape_cast %247 : vector<64xf32> to vector<64x1xf32>
    %249 = tpu.reciprocal %248 {approx = true} : vector<64x1xf32> -> vector<64x1xf32>
    %250 = vector.broadcast %249 : vector<64x1xf32> to vector<64x256xf32>
    %251 = arith.mulf %246, %250 : vector<64x256xf32>
    %252 = arith.truncf %251 : vector<64x256xf32> to vector<64x256xbf16>
    %cst_84 = arith.constant dense<0.000000e+00> : vector<64x32xf32>
    %253 = tpu.matmul %252, %35, %cst_84 {dimension_numbers = #tpu.dot_dimension_numbers<[1], [0], [0], [1], [0, 0, 1, 1], [], []>} : vector<64x256xbf16>, vector<256x32xbf16>, vector<64x32xf32> -> vector<64x32xf32>
    %254 = arith.truncf %253 : vector<64x32xf32> to vector<64x32xbf16>
    %cst_85 = arith.constant dense<0.000000e+00> : vector<64x128xf32>
    %255 = tpu.matmul %254, %24, %cst_85 {dimension_numbers = #tpu.dot_dimension_numbers<[1], [0], [0], [1], [0, 0, 1, 1], [], []>} : vector<64x32xbf16>, vector<32x128xbf16>, vector<64x128xf32> -> vector<64x128xf32>
    %256 = vector.extract_strided_slice %23 {offsets = [192, 32], sizes = [64, 32], strides = [1, 1]} : vector<256x384xbf16> to vector<64x32xbf16>
    %cst_86 = arith.constant dense<0.000000e+00> : vector<64x256xf32>
    %257 = tpu.matmul %256, %32, %cst_86 {dimension_numbers = #tpu.dot_dimension_numbers<[1], [0], [0], [1], [0, 0, 1, 1], [], []>} : vector<64x32xbf16>, vector<32x256xbf16>, vector<64x256xf32> -> vector<64x256xf32>
    %cst_87 = arith.constant dense<0xFF800000> : vector<64xf32>
    %258 = vector.multi_reduction <maximumf>, %257, %cst_87 [1] : vector<64x256xf32> to vector<64xf32>
    %259 = vector.shape_cast %258 : vector<64xf32> to vector<64x1xf32>
    %260 = vector.broadcast %259 : vector<64x1xf32> to vector<64x256xf32>
    %261 = arith.subf %257, %260 : vector<64x256xf32>
    %262 = math.exp %261 : vector<64x256xf32>
    %cst_88 = arith.constant dense<0.000000e+00> : vector<64xf32>
    %263 = vector.multi_reduction <add>, %262, %cst_88 [1] : vector<64x256xf32> to vector<64xf32>
    %264 = vector.shape_cast %263 : vector<64xf32> to vector<64x1xf32>
    %265 = tpu.reciprocal %264 {approx = true} : vector<64x1xf32> -> vector<64x1xf32>
    %266 = vector.broadcast %265 : vector<64x1xf32> to vector<64x256xf32>
    %267 = arith.mulf %262, %266 : vector<64x256xf32>
    %268 = arith.truncf %267 : vector<64x256xf32> to vector<64x256xbf16>
    %cst_89 = arith.constant dense<0.000000e+00> : vector<64x32xf32>
    %269 = tpu.matmul %268, %36, %cst_89 {dimension_numbers = #tpu.dot_dimension_numbers<[1], [0], [0], [1], [0, 0, 1, 1], [], []>} : vector<64x256xbf16>, vector<256x32xbf16>, vector<64x32xf32> -> vector<64x32xf32>
    %270 = arith.truncf %269 : vector<64x32xf32> to vector<64x32xbf16>
    %cst_90 = arith.constant dense<0.000000e+00> : vector<64x128xf32>
    %271 = tpu.matmul %270, %25, %cst_90 {dimension_numbers = #tpu.dot_dimension_numbers<[1], [0], [0], [1], [0, 0, 1, 1], [], []>} : vector<64x32xbf16>, vector<32x128xbf16>, vector<64x128xf32> -> vector<64x128xf32>
    %272 = arith.addf %255, %271 : vector<64x128xf32>
    %273 = vector.extract_strided_slice %23 {offsets = [192, 64], sizes = [64, 32], strides = [1, 1]} : vector<256x384xbf16> to vector<64x32xbf16>
    %cst_91 = arith.constant dense<0.000000e+00> : vector<64x256xf32>
    %274 = tpu.matmul %273, %33, %cst_91 {dimension_numbers = #tpu.dot_dimension_numbers<[1], [0], [0], [1], [0, 0, 1, 1], [], []>} : vector<64x32xbf16>, vector<32x256xbf16>, vector<64x256xf32> -> vector<64x256xf32>
    %cst_92 = arith.constant dense<0xFF800000> : vector<64xf32>
    %275 = vector.multi_reduction <maximumf>, %274, %cst_92 [1] : vector<64x256xf32> to vector<64xf32>
    %276 = vector.shape_cast %275 : vector<64xf32> to vector<64x1xf32>
    %277 = vector.broadcast %276 : vector<64x1xf32> to vector<64x256xf32>
    %278 = arith.subf %274, %277 : vector<64x256xf32>
    %279 = math.exp %278 : vector<64x256xf32>
    %cst_93 = arith.constant dense<0.000000e+00> : vector<64xf32>
    %280 = vector.multi_reduction <add>, %279, %cst_93 [1] : vector<64x256xf32> to vector<64xf32>
    %281 = vector.shape_cast %280 : vector<64xf32> to vector<64x1xf32>
    %282 = tpu.reciprocal %281 {approx = true} : vector<64x1xf32> -> vector<64x1xf32>
    %283 = vector.broadcast %282 : vector<64x1xf32> to vector<64x256xf32>
    %284 = arith.mulf %279, %283 : vector<64x256xf32>
    %285 = arith.truncf %284 : vector<64x256xf32> to vector<64x256xbf16>
    %cst_94 = arith.constant dense<0.000000e+00> : vector<64x32xf32>
    %286 = tpu.matmul %285, %37, %cst_94 {dimension_numbers = #tpu.dot_dimension_numbers<[1], [0], [0], [1], [0, 0, 1, 1], [], []>} : vector<64x256xbf16>, vector<256x32xbf16>, vector<64x32xf32> -> vector<64x32xf32>
    %287 = arith.truncf %286 : vector<64x32xf32> to vector<64x32xbf16>
    %cst_95 = arith.constant dense<0.000000e+00> : vector<64x128xf32>
    %288 = tpu.matmul %287, %26, %cst_95 {dimension_numbers = #tpu.dot_dimension_numbers<[1], [0], [0], [1], [0, 0, 1, 1], [], []>} : vector<64x32xbf16>, vector<32x128xbf16>, vector<64x128xf32> -> vector<64x128xf32>
    %289 = arith.addf %272, %288 : vector<64x128xf32>
    %290 = vector.extract_strided_slice %23 {offsets = [192, 96], sizes = [64, 32], strides = [1, 1]} : vector<256x384xbf16> to vector<64x32xbf16>
    %cst_96 = arith.constant dense<0.000000e+00> : vector<64x256xf32>
    %291 = tpu.matmul %290, %34, %cst_96 {dimension_numbers = #tpu.dot_dimension_numbers<[1], [0], [0], [1], [0, 0, 1, 1], [], []>} : vector<64x32xbf16>, vector<32x256xbf16>, vector<64x256xf32> -> vector<64x256xf32>
    %cst_97 = arith.constant dense<0xFF800000> : vector<64xf32>
    %292 = vector.multi_reduction <maximumf>, %291, %cst_97 [1] : vector<64x256xf32> to vector<64xf32>
    %293 = vector.shape_cast %292 : vector<64xf32> to vector<64x1xf32>
    %294 = vector.broadcast %293 : vector<64x1xf32> to vector<64x256xf32>
    %295 = arith.subf %291, %294 : vector<64x256xf32>
    %296 = math.exp %295 : vector<64x256xf32>
    %cst_98 = arith.constant dense<0.000000e+00> : vector<64xf32>
    %297 = vector.multi_reduction <add>, %296, %cst_98 [1] : vector<64x256xf32> to vector<64xf32>
    %298 = vector.shape_cast %297 : vector<64xf32> to vector<64x1xf32>
    %299 = tpu.reciprocal %298 {approx = true} : vector<64x1xf32> -> vector<64x1xf32>
    %300 = vector.broadcast %299 : vector<64x1xf32> to vector<64x256xf32>
    %301 = arith.mulf %296, %300 : vector<64x256xf32>
    %302 = arith.truncf %301 : vector<64x256xf32> to vector<64x256xbf16>
    %cst_99 = arith.constant dense<0.000000e+00> : vector<64x32xf32>
    %303 = tpu.matmul %302, %38, %cst_99 {dimension_numbers = #tpu.dot_dimension_numbers<[1], [0], [0], [1], [0, 0, 1, 1], [], []>} : vector<64x256xbf16>, vector<256x32xbf16>, vector<64x32xf32> -> vector<64x32xf32>
    %304 = arith.truncf %303 : vector<64x32xf32> to vector<64x32xbf16>
    %cst_100 = arith.constant dense<0.000000e+00> : vector<64x128xf32>
    %305 = tpu.matmul %304, %27, %cst_100 {dimension_numbers = #tpu.dot_dimension_numbers<[1], [0], [0], [1], [0, 0, 1, 1], [], []>} : vector<64x32xbf16>, vector<32x128xbf16>, vector<64x128xf32> -> vector<64x128xf32>
    %306 = arith.addf %289, %305 : vector<64x128xf32>
    %307 = tpu.concatenate %105, %172, %239, %306 in 0 : vector<64x128xf32>, vector<64x128xf32>, vector<64x128xf32>, vector<64x128xf32> -> vector<256x128xf32>
    %c0_101 = arith.constant 0 : index
    %c0_102 = arith.constant 0 : index
    %308 = vector.load %arg8[%c0_101, %c0_102] : memref<1x128xf32, #tpu.memory_space<vmem>>, vector<1x128xf32>
    %309 = vector.broadcast %308 : vector<1x128xf32> to vector<256x128xf32>
    %310 = arith.addf %307, %309 : vector<256x128xf32>
    %311 = arith.addf %310, %19 : vector<256x128xf32>
    %cst_103 = arith.constant 5.000000e-01 : f32
    %312 = vector.broadcast %cst_103 : f32 to vector<256x128xf32>
    %313 = arith.mulf %312, %311 : vector<256x128xf32>
    %cst_104 = arith.constant 4.471500e-02 : f32
    %314 = vector.broadcast %cst_104 : f32 to vector<256x128xf32>
    %315 = arith.mulf %314, %311 : vector<256x128xf32>
    %316 = arith.mulf %315, %311 : vector<256x128xf32>
    %317 = arith.mulf %316, %311 : vector<256x128xf32>
    %318 = arith.addf %311, %317 : vector<256x128xf32>
    %cst_105 = arith.constant 0.797884583 : f32
    %319 = vector.broadcast %cst_105 : f32 to vector<256x128xf32>
    %320 = arith.mulf %319, %318 : vector<256x128xf32>
    %321 = math.tanh %320 : vector<256x128xf32>
    %cst_106 = arith.constant 1.000000e+00 : f32
    %322 = vector.broadcast %cst_106 : f32 to vector<256x128xf32>
    %323 = arith.addf %322, %321 : vector<256x128xf32>
    %324 = arith.mulf %313, %323 : vector<256x128xf32>
    %325 = arith.truncf %324 : vector<256x128xf32> to vector<256x128xbf16>
    %c0_107 = arith.constant 0 : index
    %c0_108 = arith.constant 0 : index
    %326 = vector.load %arg9[%c0_107, %c0_108] : memref<128x128xbf16, #tpu.memory_space<vmem>>, vector<128x128xbf16>
    %cst_109 = arith.constant dense<0.000000e+00> : vector<256x128xf32>
    %327 = tpu.matmul %325, %326, %cst_109 {dimension_numbers = #tpu.dot_dimension_numbers<[1], [0], [0], [1], [0, 0, 1, 1], [], []>} : vector<256x128xbf16>, vector<128x128xbf16>, vector<256x128xf32> -> vector<256x128xf32>
    %c0_110 = arith.constant 0 : index
    %c0_111 = arith.constant 0 : index
    %328 = vector.load %arg10[%c0_110, %c0_111] : memref<1x128xf32, #tpu.memory_space<vmem>>, vector<1x128xf32>
    %329 = vector.broadcast %328 : vector<1x128xf32> to vector<256x128xf32>
    %330 = arith.addf %327, %329 : vector<256x128xf32>
    %331 = arith.addf %324, %330 : vector<256x128xf32>
    %cst_112 = arith.constant 5.000000e-01 : f32
    %332 = vector.broadcast %cst_112 : f32 to vector<256x128xf32>
    %333 = arith.mulf %332, %331 : vector<256x128xf32>
    %cst_113 = arith.constant 4.471500e-02 : f32
    %334 = vector.broadcast %cst_113 : f32 to vector<256x128xf32>
    %335 = arith.mulf %334, %331 : vector<256x128xf32>
    %336 = arith.mulf %335, %331 : vector<256x128xf32>
    %337 = arith.mulf %336, %331 : vector<256x128xf32>
    %338 = arith.addf %331, %337 : vector<256x128xf32>
    %cst_114 = arith.constant 0.797884583 : f32
    %339 = vector.broadcast %cst_114 : f32 to vector<256x128xf32>
    %340 = arith.mulf %339, %338 : vector<256x128xf32>
    %341 = math.tanh %340 : vector<256x128xf32>
    %cst_115 = arith.constant 1.000000e+00 : f32
    %342 = vector.broadcast %cst_115 : f32 to vector<256x128xf32>
    %343 = arith.addf %342, %341 : vector<256x128xf32>
    %344 = arith.mulf %333, %343 : vector<256x128xf32>
    %345 = tpu.transpose %344, [1, 0] : vector<256x128xf32> -> vector<128x256xf32>
    %c0_116 = arith.constant 0 : index
    %c0_117 = arith.constant 0 : index
    %c0_118 = arith.constant 0 : index
    %346 = vector.load %arg11[%c0_116, %c0_117, %c0_118] : memref<1x128x256xf32, #tpu.memory_space<vmem>>, vector<1x128x256xf32>
    %347 = vector.shape_cast %346 : vector<1x128x256xf32> to vector<128x256xf32>
    %348 = vector.shape_cast %345 : vector<128x256xf32> to vector<1x128x256xf32>
    tpu.vector_store %arg11[%c0_116, %c0_117, %c0_118], %348 {strides = array<i32>} : memref<1x128x256xf32, #tpu.memory_space<vmem>>, vector<1x128x256xf32>,
    return
  }
  func.func @transform_0(%arg0: i32) -> (i32, i32, i32) {
    %c0_i32 = arith.constant 0 : i32
    %c0_i32_0 = arith.constant 0 : i32
    %c0_i32_1 = arith.constant 0 : i32
    return %arg0, %c0_i32, %c0_i32_0 : i32, i32, i32
  }
  func.func @transform_1(%arg0: i32) -> (i32, i32) {
    %c0_i32 = arith.constant 0 : i32
    %c0_i32_0 = arith.constant 0 : i32
    %c0_i32_1 = arith.constant 0 : i32
    return %c0_i32, %c0_i32_0 : i32, i32
  }
  func.func @transform_2(%arg0: i32) -> (i32, i32) {
    %c0_i32 = arith.constant 0 : i32
    %c0_i32_0 = arith.constant 0 : i32
    %c0_i32_1 = arith.constant 0 : i32
    return %c0_i32, %c0_i32_0 : i32, i32
  }
  func.func @transform_3(%arg0: i32) -> (i32, i32) {
    %c0_i32 = arith.constant 0 : i32
    %c0_i32_0 = arith.constant 0 : i32
    %c0_i32_1 = arith.constant 0 : i32
    return %c0_i32, %c0_i32_0 : i32, i32
  }
  func.func @transform_4(%arg0: i32) -> (i32, i32) {
    %c0_i32 = arith.constant 0 : i32
    %c0_i32_0 = arith.constant 0 : i32
    %c0_i32_1 = arith.constant 0 : i32
    return %c0_i32, %c0_i32_0 : i32, i32
  }
  func.func @transform_5(%arg0: i32) -> (i32, i32) {
    %c0_i32 = arith.constant 0 : i32
    %c0_i32_0 = arith.constant 0 : i32
    %c0_i32_1 = arith.constant 0 : i32
    return %c0_i32, %c0_i32_0 : i32, i32
  }
  func.func @transform_6(%arg0: i32) -> (i32, i32) {
    %c0_i32 = arith.constant 0 : i32
    %c0_i32_0 = arith.constant 0 : i32
    %c0_i32_1 = arith.constant 0 : i32
    return %c0_i32, %c0_i32_0 : i32, i32
  }
  func.func @transform_7(%arg0: i32) -> (i32, i32) {
    %c0_i32 = arith.constant 0 : i32
    %c0_i32_0 = arith.constant 0 : i32
    %c0_i32_1 = arith.constant 0 : i32
    return %c0_i32, %c0_i32_0 : i32, i32
  }
  func.func @transform_8(%arg0: i32) -> (i32, i32) {
    %c0_i32 = arith.constant 0 : i32
    %c0_i32_0 = arith.constant 0 : i32
    %c0_i32_1 = arith.constant 0 : i32
    return %c0_i32, %c0_i32_0 : i32, i32
  }
  func.func @transform_9(%arg0: i32) -> (i32, i32) {
    %c0_i32 = arith.constant 0 : i32
    %c0_i32_0 = arith.constant 0 : i32
    %c0_i32_1 = arith.constant 0 : i32
    return %c0_i32, %c0_i32_0 : i32, i32
  }
  func.func @transform_10(%arg0: i32) -> (i32, i32, i32) {
    %c0_i32 = arith.constant 0 : i32
    %c0_i32_0 = arith.constant 0 : i32
    %c0_i32_1 = arith.constant 0 : i32
    return %arg0, %c0_i32, %c0_i32_0 : i32, i32, i32
  }
}

</mosaic_0001>

<bundles_post_ra>
// kernel: pos_extraction_forward.1
= control target key start
LH: loop header
LB: loop body
LE: loop exit
PB: predicated region body
PF: predicated region fallthrough
CT: control target
= control target key end

     0   :  { %s16419_s0 = inlined_call_operand.hbm [shape: f32[2,128,256], index: 0, kind: input, shape index: {}]   ;;  %s16420_s1 = inlined_call_operand.hbm [shape: bf16[128,128], index: 1, kind: input, shape index: {}]   ;;  %s16421_s2 = inlined_call_operand.vmem [shape: f32[1,128], index: 2, kind: input, shape index: {}]   ;;  %s16422_s3 = inlined_call_operand.hbm [shape: bf16[128,128], index: 3, kind: input, shape index: {}]   ;;  %s16423_s4 = inlined_call_operand.vmem [shape: f32[1,128], index: 4, kind: input, shape index: {}]   ;;  %s16424_s5 = inlined_call_operand.hbm [shape: bf16[128,384], index: 5, kind: input, shape index: {}]   ;;  %s16425_s6 = inlined_call_operand.hbm [shape: bf16[128,128], index: 6, kind: input, shape index: {}]   ;;  %s16426_s7 = inlined_call_operand.vmem [shape: f32[1,128], index: 7, kind: input, shape index: {}]   ;;  %s16427_s8 = inlined_call_operand.hbm [shape: bf16[128,128], index: 8, kind: input, shape index: {}]   ;;  %s16428_s9 = inlined_call_operand.vmem [shape: f32[1,128], index: 9, kind: input, shape index: {}]   ;;  %s16429_s10 = inlined_call_operand.hbm [shape: f32[2,128,256], index: 10, kind: output, shape index: {}]  }
   0x1   :  { %16674 = sst [smem:[#allocation140_spill]] %s16420_s1 }
   0x2   :  { %16675 = sst [smem:[#allocation141_spill]] %s16428_s9 }
   0x3   :  { %16676 = sst [smem:[#allocation142_spill]] %s16429_s10 }
   0x4   :  { %15 = vsyncpa [#allocation3], 0 }
   0x5   :  { %17 = vsyncpa [#allocation3 + $0x1], 0 }
   0x6   :  { %18 = vsyncpa [#allocation6], 0 }
   0x7   :  { %19 = vsyncpa [#allocation9], 0 }
   0x8   :  { %20 = vsyncpa [#allocation12], 0 }
   0x9   :  { %21 = vsyncpa [#allocation4], 0 }
   0xa   :  { %23 = vsyncpa [#allocation4 + $0x1], 0  ;;  %s12157_s13 = smov 0   ;;  %s12159_s14 = smov 0  }
   0xb   :  { %s12161_s15 = smov 0   ;;  %s12163_s16 = smov 0  }
   0xc LB: > { %s12083_s17 = smov [#allocation5]   ;;  %s12178_s19 = sadd.s32 4294967295, %s12081_s16   ;;  %s12081_s16 = sphi %s12163_s16, %s17163_s16   ;;  %s12077_s15 = sphi %s12161_s15, %s17162_s15   ;;  %s12073_s14 = sphi %s12159_s14, %s17161_s14   ;;  %s12069_s13 = sphi %s12157_s13, %s17160_s13  }
   0xd   : > { %s287_s18 = sshll.u32 %s12083_s17, 4  ;;  %p9086_p0 = scmp.ge.s32.totalorder %s12081_s16, 1  ;;  %s12183_s18 = int_to_ptr.vmem [resolvable:$true] %s287_s18 }
   0xe   : > { %p16433_p1 = scmp.eq.s32.totalorder %s12178_s19, 0  ;;  %p275_p2 = scmp.lt.s32.totalorder %s12081_s16, 3 }
   0xf   : > { %s12084_s21 = smov [#allocation8]   ;;  %s12085_s24 = smov [#allocation7]  }
  0x10   : > { %p12185_p3 = pnand %p9086_p0, %p275_p2  ;;  %s319_s22 = sshll.u32 %s12084_s21, 4  ;;  %s12198_s22 = int_to_ptr.vmem [resolvable:$true] %s319_s22 }
  0x11   : > { %s12200_s25 = sshll.u32 %s12085_s24, 4  ;;  %s16679_s1 = sld [smem:[#allocation140_spill]]  ;;  %s304_s25 = int_to_ptr.vmem [resolvable:$true] %s12200_s25 }
  0x12   : > { %s16677_s20 = scalar_select %p12185_p3, 1, 0 }
  0x13   : > { %p10651_p5 = pneg %p12185_p3 }
  0x15   : > { %p12194_p6 = pnand %p10651_p5, %p16433_p1 }
  0x17   : > { %s11833_s28 = scalar_lea.hbm %s16679_s1, 1024  ;;  %p12210_p8 = pneg %p12194_p6 }
  0x18   : > { %p11834_p7 = scmp.ne.s32.totalorder %s16679_s1, %s11833_s28  ;;  %p11840_p11 = scmp.lt.u32.totalorder %s11833_s28, %s16679_s1 }
  0x1a   : > { %p11836_p9 = pnand %p12210_p8, %p11834_p7 }
  0x1c   : > { %p11837_p10 = pneg %p11836_p9 }
  0x1e   : > { %p11842_p12 = pnand %p11840_p11, %p11837_p10 }
  0x20   : > { %11845 = shalt.err (!%p11842_p12)
}
  0x21   : > { %s11846_s21 = scalar_lea.vmem %s12183_s18, 1024  ;;  %p11854_p5 = scmp.lt.s32.totalorder %s12183_s18, %s12183_s18 }
  0x22   : > { %p11847_p13 = scmp.ne.s32.totalorder %s12183_s18, %s11846_s21  ;;  %p11855_p4 = scmp.lt.s32.totalorder %s11846_s21, %s11846_s21 }
  0x24   : > { %p11849_p0 = pnand %p11847_p13, %p12210_p8  ;;  %p11856_p7 = por %p11855_p4, %p11854_p5 }
  0x26   : > { %p11850_p2 = pneg %p11849_p0 }
  0x28   : > { %p11857_p9 = pnand %p11856_p7, %p11850_p2 }
  0x2a   : > { %11860 = shalt.err (!%p11857_p9)
}
  0x2b   : > { %s16431_s24 = smov 64   ;;  %s12087_s26 = smov 4  }
  0x2c   : > { %10654 = dma.hbm_to_vmem [thread:$0]  (!%p12194_p6), %s16679_s1, 1024, %s12183_s18, [#allocation6], %s16431_s24, %s16431_s24, %s12087_s26  }
  0x2d   : > { %s11861_s12 = scalar_lea.hbm %s16424_s5, 3072 }
  0x2e   : > { %p11862_p4 = scmp.ne.s32.totalorder %s16424_s5, %s11861_s12  ;;  %p11868_p12 = scmp.lt.u32.totalorder %s11861_s12, %s16424_s5 }
  0x30   : > { %p11864_p10 = pnand %p11862_p4, %p12210_p8 }
  0x32   : > { %p11865_p11 = pneg %p11864_p10 }
  0x34   : > { %p11870_p13 = pnand %p11868_p12, %p11865_p11 }
  0x36   : > { %11873 = shalt.err (!%p11870_p13)
}
  0x37   : > { %s11874_s18 = scalar_lea.vmem %s12198_s22, 3072  ;;  %p11882_p7 = scmp.lt.s32.totalorder %s12198_s22, %s12198_s22 }
  0x38   : > { %p11875_p0 = scmp.ne.s32.totalorder %s12198_s22, %s11874_s18  ;;  %p11883_p9 = scmp.lt.s32.totalorder %s11874_s18, %s11874_s18 }
  0x3a   : > { %p11877_p2 = pnand %p11875_p0, %p12210_p8  ;;  %p11884_p4 = por %p11883_p9, %p11882_p7 }
  0x3c   : > { %p11878_p5 = pneg %p11877_p2 }
  0x3e   : > { %p11885_p10 = pnand %p11884_p4, %p11878_p5 }
  0x40   : > { %11888 = shalt.err (!%p11885_p10)
}
  0x41   : > { %s12088_s27 = smov 192   ;;  %s12089_s9 = smov 12  }
  0x42   : > { %10660 = dma.hbm_to_vmem [thread:$0]  (!%p12194_p6), %s16424_s5, 3072, %s12198_s22, [#allocation9], %s12088_s27, %s12088_s27, %s12089_s9  }
  0x43   : > { %s11889_s12 = scalar_lea.hbm %s16422_s3, 1024 }
  0x44   : > { %p11890_p11 = scmp.ne.s32.totalorder %s16422_s3, %s11889_s12  ;;  %p11896_p0 = scmp.lt.u32.totalorder %s11889_s12, %s16422_s3 }
  0x46   : > { %p11892_p12 = pnand %p11890_p11, %p12210_p8 }
  0x48   : > { %p11893_p13 = pneg %p11892_p12 }
  0x4a   : > { %p11898_p2 = pnand %p11896_p0, %p11893_p13 }
  0x4c   : > { %11901 = shalt.err (!%p11898_p2)
}
  0x4d   : > { %s11902_s10 = scalar_lea.vmem %s304_s25, 1024  ;;  %p11910_p4 = scmp.lt.s32.totalorder %s304_s25, %s304_s25 }
  0x4e   : > { %p11903_p5 = scmp.ne.s32.totalorder %s304_s25, %s11902_s10  ;;  %p11911_p10 = scmp.lt.s32.totalorder %s11902_s10, %s11902_s10 }
  0x50   : > { %p11905_p7 = pnand %p11903_p5, %p12210_p8  ;;  %p11912_p1 = por %p11911_p10, %p11910_p4 }
  0x52   : > { %p11906_p9 = pneg %p11905_p7 }
  0x54   : > { %p11913_p3 = pnand %p11912_p1, %p11906_p9 }
  0x56   : > { %11916 = shalt.err (!%p11913_p3)
}
  0x57   : > { %s16681_s22 = smov 64   ;;  %s12090_s9 = smov [#allocation10]  }
  0x58   : > { %10657 = dma.hbm_to_vmem [thread:$0]  (!%p12194_p6), %s16422_s3, 1024, %s304_s25, [#allocation6], %s16681_s22, %s16681_s22, %s12087_s26  }
  0x59   : > { %s332_s28 = sshll.u32 %s12090_s9, 4  ;;  %s12091_s29 = smov [#allocation11]   ;;  %s333_s28 = int_to_ptr.vmem [resolvable:$true] %s332_s28 }
  0x5a   : > { %s348_s30 = sshll.u32 %s12091_s29, 4  ;;  %s11917_s21 = scalar_lea.hbm %s16425_s6, 1024  ;;  %s349_s30 = int_to_ptr.vmem [resolvable:$true] %s348_s30 }
  0x5b   : > { %p11918_p1 = scmp.ne.s32.totalorder %s16425_s6, %s11917_s21  ;;  %p11924_p12 = scmp.lt.u32.totalorder %s11917_s21, %s16425_s6 }
  0x5d   : > { %p11920_p3 = pnand %p11918_p1, %p12210_p8 }
  0x5f   : > { %p11921_p11 = pneg %p11920_p3 }
  0x61   : > { %p11926_p13 = pnand %p11924_p12, %p11921_p11 }
  0x63   : > { %11929 = shalt.err (!%p11926_p13)
}
  0x64   : > { %s11930_s25 = scalar_lea.vmem %s333_s28, 1024  ;;  %p11938_p7 = scmp.lt.s32.totalorder %s333_s28, %s333_s28 }
  0x65   : > { %p11931_p0 = scmp.ne.s32.totalorder %s333_s28, %s11930_s25  ;;  %p11939_p9 = scmp.lt.s32.totalorder %s11930_s25, %s11930_s25 }
  0x67   : > { %p11933_p2 = pnand %p11931_p0, %p12210_p8  ;;  %p11940_p4 = por %p11939_p9, %p11938_p7 }
  0x69   : > { %p11934_p5 = pneg %p11933_p2 }
  0x6b   : > { %p11941_p10 = pnand %p11940_p4, %p11934_p5 }
  0x6d   : > { %11944 = shalt.err (!%p11941_p10)
}
  0x6e   : > { %10663 = dma.hbm_to_vmem [thread:$0]  (!%p12194_p6), %s16425_s6, 1024, %s333_s28, [#allocation9], %s16681_s22, %s16681_s22, %s12087_s26  }
  0x6f   : > { %s11945_s12 = scalar_lea.hbm %s16427_s8, 1024 }
  0x70   : > { %p11946_p1 = scmp.ne.s32.totalorder %s16427_s8, %s11945_s12  ;;  %p11952_p12 = scmp.lt.u32.totalorder %s11945_s12, %s16427_s8 }
  0x72   : > { %p11948_p3 = pnand %p11946_p1, %p12210_p8 }
  0x74   : > { %p11949_p11 = pneg %p11948_p3 }
  0x76   : > { %p11954_p13 = pnand %p11952_p12, %p11949_p11 }
  0x78   : > { %11957 = shalt.err (!%p11954_p13)
}
  0x79   : > { %s11958_s24 = scalar_lea.vmem %s349_s30, 1024  ;;  %p11966_p7 = scmp.lt.s32.totalorder %s349_s30, %s349_s30 }
  0x7a   : > { %p11959_p0 = scmp.ne.s32.totalorder %s349_s30, %s11958_s24  ;;  %p11967_p9 = scmp.lt.s32.totalorder %s11958_s24, %s11958_s24 }
  0x7c   : > { %p11961_p2 = pnand %p11959_p0, %p12210_p8  ;;  %p11968_p4 = por %p11967_p9, %p11966_p7 }
  0x7e   : > { %p11962_p5 = pneg %p11961_p2 }
  0x80   : > { %p11969_p10 = pnand %p11968_p4, %p11962_p5 }
  0x82   : > { %11972 = shalt.err (!%p11969_p10)
}
  0x83   : > { %10666 = dma.hbm_to_vmem [thread:$0]  (!%p12194_p6), %s16427_s8, 1024, %s349_s30, [#allocation12], %s16681_s22, %s16681_s22, %s12087_s26  }
  0x84   : > { %s9085_s23 = sadd.s32 4294967294, %s12081_s16   ;;  %s12323_s11 = sadd.s32 1, %s12081_s16  }
  0x85   : > { %s36_s1 = sadd.s32 1, %s12077_s15  ;;  %s33_s27 = ssub.s32 %s12081_s16, %s12323_s11 }
  0x86   : > { %p43_p8 = scmp.ne.s32.totalorder %s12077_s15, %s12073_s14  ;;  %p34_p1 = scmp.eq.s32.totalorder %s33_s27, 0 }
  0x87   : > { %p44_p3 = scmp.eq.s32.totalorder %s12081_s16, 0  ;;  %p49_p11 = scmp.ne.s32.totalorder %s12073_s14, %s12069_s13 }
  0x88   : > { %p262_p12 = scmp.eq.s32.totalorder %s12178_s19, 1  ;;  %p16682_p0 = scmp.eq.s32.totalorder %s12178_s19, 0 }
  0x89   : > { %s12335_s9 = scalar_select %p34_p1, %s12077_s15, %s36_s1  }
  0x8a   : > { %p45_p13 = por %p44_p3, %p43_p8  ;;  %p12339_p2 = por %p16682_p0, %p49_p11 }
  0x8b   : > { %p12343_p6 = por %p262_p12, %p43_p8  ;;  %p268_p5 = scmp.eq.s32.totalorder %s9085_s23, 1 }
  0x8c   : > { %p10680_p7 = scmp.lt.s32.totalorder %s12081_s16, 2  ;;  %s365_s22 = sand.u32 1, %s12077_s15  }
  0x8d   : > { %s16684_s26 = scalar_select %p12343_p6, 1, 0 }
  0x8e   : > { %p12349_p9 = por %p268_p5, %p49_p11  ;;  %s9093_s12 = sshll.u32 %s365_s22, 8 }
  0x8f   : > { %s9297_s17 = sshll.u32 %s12081_s16, 12  ;;  %s369_s24 = scalar_lea.vmem [#allocation2], %s9093_s12 }
  0x90   : > { %s16685_s30 = scalar_select %p12349_p9, 1, 0 }
  0x91   : > { %s12357_s10 = scalar_lea.hbm %s16419_s0, %s9297_s17  ;;  %s376_s28 = sshll.u32 %s369_s24, 4  ;;  %s12363_s28 = int_to_ptr.vmem [resolvable:$true] %s376_s28 }
  0x92   : > { %p12359_p4 = pnand %p10680_p7, %p45_p13  ;;  %s12365_s23 = scalar_lea.sflag [#allocation3], %s365_s22 }
  0x93   : > { %s11973_s1 = scalar_lea.hbm %s12357_s10, 4096  ;;  %s11978_s17 = scalar_lea.hbm %s16419_s0, 8192 }
  0x94   : > { %p11974_p10 = scmp.ne.s32.totalorder %s12357_s10, %s11973_s1  ;;  %p11975_p8 = pneg %p12359_p4 }
  0x95   : > { %p11979_p11 = scmp.lt.u32.totalorder %s12357_s10, %s16419_s0  ;;  %p11980_p12 = scmp.lt.u32.totalorder %s11978_s17, %s11973_s1 }
  0x96   : > { %p11976_p1 = pnand %p11975_p8, %p11974_p10  ;;  %p11982_p0 = scmp.lt.u32.totalorder %s11973_s1, %s12357_s10 }
  0x97   : > { %p11981_p13 = por %p11980_p12, %p11979_p11 }
  0x98   : > { %p11977_p3 = pneg %p11976_p1 }
  0x99   : > { %p11983_p5 = por %p11982_p0, %p11981_p13 }
  0x9b   : > { %p11984_p7 = pnand %p11983_p5, %p11977_p3 }
  0x9d   : > { %11987 = shalt.err (!%p11984_p7)
}
  0x9e   : > { %s11988_s22 = scalar_lea.vmem %s12363_s28, 4096  ;;  %s12092_s24 = smov [#allocation2]  }
  0x9f   : > { %p11989_p10 = scmp.ne.s32.totalorder %s12363_s28, %s11988_s22  ;;  %s11993_s27 = sshll.u32 %s12092_s24, 4  ;;  %s11994_s27 = int_to_ptr.vmem [resolvable:$false] %s11993_s27 }
  0xa0   : > { %s11995_s12 = scalar_lea.vmem %s11994_s27, 8192  ;;  %p11996_p6 = scmp.lt.s32.totalorder %s12363_s28, %s11994_s27 }
  0xa1   : > { %p11991_p1 = pnand %p11989_p10, %p11975_p8  ;;  %p11997_p11 = scmp.lt.s32.totalorder %s11995_s12, %s11988_s22 }
  0xa3   : > { %p11992_p9 = pneg %p11991_p1  ;;  %p11998_p12 = por %p11997_p11, %p11996_p6 }
  0xa5   : > { %p11999_p13 = pnand %p11998_p12, %p11992_p9 }
  0xa7   : > { %12002 = shalt.err (!%p11999_p13)
}
  0xa8   : > { %s12093_s1 = smov 256   ;;  %s12094_s17 = smov 16  }
  0xa9   : > { %10670 = dma.hbm_to_vmem [thread:$0]  (!%p12359_p4), %s12357_s10, 4096, %s12363_s28, %s12365_s23, %s12093_s1, %s12093_s1, %s12094_s17  }
  0xaa   : > { %p16687_p8 = scmp.ne.s32.totalorder %s16677_s20, 0 }
  0xac   : > { %388 = sbr.rel (%p16687_p8) target bundleno = 10703 (0x29cf), region = 60 }
  0xb3   : > { %s12396_s21 = sand.u32 1, %s12073_s14  }
  0xb4   : > { %s9097_s18 = sshll.u32 %s12396_s21, 8  ;;  %s391_s22 = scalar_lea.sflag [#allocation3], %s12396_s21 }
  0xb5   : > { %s12402_s24 = scalar_lea.vmem [#allocation2], %s9097_s18 }
  0xb6   : > { %12048 = dma.done.wait (%p12339_p2), %s391_s22, 4096  }
  0xb7   : > { %12050 = vsyncadd (%p12339_p2), %s391_s22, 4294963200  ;;  %p16688_p6 = scmp.eq.s32.totalorder %s12178_s19, 0 }
  0xb9   : > { %12052 = dma.done.wait (%p16688_p6), [#allocation6], 2048   ;;  %p16689_p9 = pmov %p16688_p6 }
  0xba   : > { %p16690_p4 = pmov %p16688_p6 }
  0xbb   : > { %12054 = vsyncadd (%p16689_p9), [#allocation6], 4294965248 }
  0xbc   : > { %12056 = dma.done.wait (%p16690_p4), [#allocation9], 4096   ;;  %p16691_p3 = pmov %p16690_p4 }
  0xbe   : > { %12058 = vsyncadd (%p16691_p3), [#allocation9], 4294963200  ;;  %p16692_p0 = pmov %p16691_p3 }
  0xc0   : > { %12060 = dma.done.wait (%p16692_p0), [#allocation12], 1024   ;;  %p16693_p5 = pmov %p16692_p0 }
  0xc1   : > { %v452_v0 = vld [vmem:[%s12402_s24] sm:$0xff]  ;;  %v454_v1 = vld [vmem:[%s12402_s24 + $0x10] sm:$0xff]  ;;  %v453_v2 = vld [vmem:[%s12402_s24 + $0x8] sm:$0xff]  ;;  %s12096_s25 = smov 96   ;;  %vm1798_vm0 = vcmask 261120   ;;  %s12097_s23 = smov 64  }
  0xc2   : > { %12062 = vsyncadd (%p16693_p5), [#allocation12], 4294966272  ;;  %484 = vxpose.xlu0.b32.start [1/16] %v452_v0, 128  ;;  %516 = vxpose.xlu1.b32.start [1/16] %v453_v2, 128  ;;  %v455_v3 = vld [vmem:[%s12402_s24 + $0x18] sm:$0xff]  ;;  %v456_v4 = vld [vmem:[%s12402_s24 + $0x20] sm:$0xff]  ;;  %s12098_s27 = smov 32   ;;  %s16268_s10 = scalar_lea.vmem [#allocation13], %s9097_s18 }
  0xc3   : > { %v457_v5 = vld [vmem:[%s12402_s24 + $0x28] sm:$0xff]  ;;  %v458_v6 = vld [vmem:[%s12402_s24 + $0x30] sm:$0xff]  ;;  %v459_v7 = vld [vmem:[%s12402_s24 + $0x38] sm:$0xff]  ;;  %s9298_s18 = sshll.u32 %s12178_s19, 12  ;;  %s8964_s28 = sshll.u32 %s16268_s10, 4  ;;  %s16374_s28 = int_to_ptr.vmem [resolvable:$true] %s8964_s28 }
  0xc4   : > { %v10848_v8 = vld [vmem:[#allocation5] sm:$0xff]   ;;  %v10849_v9 = vld [vmem:[#allocation5 + $0x8] sm:$0xff]   ;;  %v10850_v11 = vld [vmem:[#allocation5 + $0x10] sm:$0xff]   ;;  %s8951_s1 = scalar_lea.sflag [#allocation4], %s12396_s21  ;;  %s12003_s17 = scalar_lea.vmem %s16374_s28, 4096 }
  0xc5   : > { %10131 = vmatprep.subr.bf16.mxu0 %v10848_v8  ;;  %v460_v10 = vld [vmem:[%s12402_s24 + $0x40] sm:$0xff]  ;;  %v461_v12 = vld [vmem:[%s12402_s24 + $0x48] sm:$0xff]  ;;  %v462_v13 = vld [vmem:[%s12402_s24 + $0x50] sm:$0xff]  ;;  %p12004_p2 = scmp.ne.s32.totalorder %s16374_s28, %s12003_s17  ;;  %p17157_p7 = scmp.ne.s32.totalorder %s16684_s26, 0 }
  0xc6   : > { %485 = vxpose.xlu0.b32.cont [2/16] %v454_v1, 128  ;;  %517 = vxpose.xlu1.b32.cont [2/16] %v455_v3, 128  ;;  %v463_v14 = vld [vmem:[%s12402_s24 + $0x58] sm:$0xff]  ;;  %v464_v16 = vld [vmem:[%s12402_s24 + $0x60] sm:$0xff]  ;;  %v465_v18 = vld [vmem:[%s12402_s24 + $0x68] sm:$0xff]  ;;  %s12099_s19 = smov [#allocation13]  }
  0xc7   : > { %10132 = vmatpush3.bf16.msra.mxu0 %v10848_v8  ;;  %v10851_v15 = vld [vmem:[#allocation5 + $0x18] sm:$0xff]   ;;  %v10852_v17 = vld [vmem:[#allocation5 + $0x20] sm:$0xff]   ;;  %v466_v19 = vld [vmem:[%s12402_s24 + $0x70] sm:$0xff]  ;;  %p12005_p10 = pnand %p12004_p2, %p17157_p7  ;;  %s12007_s22 = sshll.u32 %s12099_s19, 4  ;;  %s12008_s22 = int_to_ptr.vmem [resolvable:$false] %s12007_s22 }
  0xc8   : > { %10133 = vmatprep.subr.bf16.mxu0 %v10849_v9  ;;  %v10853_v20 = vld [vmem:[#allocation5 + $0x28] sm:$0xff]   ;;  %v467_v21 = vld [vmem:[%s12402_s24 + $0x78] sm:$0xff]  ;;  %v468_v22 = vld [vmem:[%s12402_s24 + $0x80] sm:$0xff]  ;;  %p12010_p11 = scmp.lt.s32.totalorder %s16374_s28, %s12008_s22 }
  0xc9   : > { %v10854_v23 = vld [vmem:[#allocation5 + $0x30] sm:$0xff]   ;;  %v469_v24 = vld [vmem:[%s12402_s24 + $0x88] sm:$0xff]  ;;  %v10855_v26 = vld [vmem:[#allocation5 + $0x38] sm:$0xff]   ;;  %p12006_p1 = pneg %p12005_p10 }
  0xca   : > { %486 = vxpose.xlu0.b32.cont [3/16] %v456_v4, 128  ;;  %518 = vxpose.xlu1.b32.cont [3/16] %v457_v5, 128  ;;  %v470_v25 = vld [vmem:[%s12402_s24 + $0x90] sm:$0xff]  ;;  %v471_v27 = vld [vmem:[%s12402_s24 + $0x98] sm:$0xff]  ;;  %v472_v28 = vld [vmem:[%s12402_s24 + $0xa0] sm:$0xff] }
  0xcb   : > { %10134 = vmatpush3.bf16.msra.mxu0 %v10849_v9  ;;  %v473_v29 = vld [vmem:[%s12402_s24 + $0xa8] sm:$0xff]  ;;  %v474_v30 = vld [vmem:[%s12402_s24 + $0xb0] sm:$0xff]  ;;  %v475_v31 = vld [vmem:[%s12402_s24 + $0xb8] sm:$0xff] }
  0xcc   : > { %10135 = vmatprep.subr.bf16.mxu0 %v10850_v11  ;;  %v476_v32 = vld [vmem:[%s12402_s24 + $0xc0] sm:$0xff]  ;;  %v477_v33 = vld [vmem:[%s12402_s24 + $0xc8] sm:$0xff]  ;;  %v478_v34 = vld [vmem:[%s12402_s24 + $0xd0] sm:$0xff] }
  0xcd   : > { %v479_v35 = vld [vmem:[%s12402_s24 + $0xd8] sm:$0xff]  ;;  %v480_v36 = vld [vmem:[%s12402_s24 + $0xe0] sm:$0xff]  ;;  %v481_v37 = vld [vmem:[%s12402_s24 + $0xe8] sm:$0xff] }
  0xce   : > { %487 = vxpose.xlu0.b32.cont [4/16] %v458_v6, 128  ;;  %519 = vxpose.xlu1.b32.cont [4/16] %v459_v7, 128  ;;  %v482_v38 = vld [vmem:[%s12402_s24 + $0xf0] sm:$0xff]  ;;  %v483_v39 = vld [vmem:[%s12402_s24 + $0xf8] sm:$0xff]  ;;  %v10856_v40 = vld [vmem:[#allocation7] sm:$0xff]   ;;  %s17139_s24 = sld [smem:[#allocation141_spill]] }
  0xcf   : > { %10136 = vmatpush3.bf16.msra.mxu0 %v10850_v11  ;;  %v10857_v41 = vld [vmem:[#allocation7 + $0x8] sm:$0xff]   ;;  %10515 = vmatprep.subr.bf16.mxu1 %v10856_v40  ;;  %v10858_v42 = vld [vmem:[#allocation7 + $0x10] sm:$0xff]   ;;  %v10859_v43 = vld [vmem:[#allocation7 + $0x18] sm:$0xff]  }
  0xd0   : > { %10137 = vmatprep.subr.bf16.mxu0 %v10851_v15  ;;  %10523 = vmatpush3.bf16.msra.mxu1 %v10856_v40  ;;  %v10860_v44 = vld [vmem:[#allocation7 + $0x20] sm:$0xff]   ;;  %v10861_v45 = vld [vmem:[#allocation7 + $0x28] sm:$0xff]  }
  0xd1   : > { %10516 = vmatprep.subr.bf16.mxu1 %v10857_v41 }
  0xd2   : > { %488 = vxpose.xlu0.b32.cont [5/16] %v460_v10, 128  ;;  %520 = vxpose.xlu1.b32.cont [5/16] %v461_v12, 128 }
  0xd3   : > { %10138 = vmatpush3.bf16.msra.mxu0 %v10851_v15 }
  0xd4   : > { %10139 = vmatprep.subr.bf16.mxu0 %v10852_v17  ;;  %10524 = vmatpush3.bf16.msra.mxu1 %v10857_v41 }
  0xd5   : > { %10517 = vmatprep.subr.bf16.mxu1 %v10858_v42 }
  0xd6   : > { %489 = vxpose.xlu0.b32.cont [6/16] %v462_v13, 128  ;;  %521 = vxpose.xlu1.b32.cont [6/16] %v463_v14, 128 }
  0xd7   : > { %10140 = vmatpush3.bf16.msra.mxu0 %v10852_v17 }
  0xd8   : > { %10141 = vmatprep.subr.bf16.mxu0 %v10853_v20  ;;  %10525 = vmatpush3.bf16.msra.mxu1 %v10858_v42 }
  0xd9   : > { %10518 = vmatprep.subr.bf16.mxu1 %v10859_v43 }
  0xda   : > { %490 = vxpose.xlu0.b32.cont [7/16] %v464_v16, 128  ;;  %522 = vxpose.xlu1.b32.cont [7/16] %v465_v18, 128 }
  0xdb   : > { %10142 = vmatpush3.bf16.msra.mxu0 %v10853_v20 }
  0xdc   : > { %10143 = vmatprep.subr.bf16.mxu0 %v10854_v23  ;;  %10526 = vmatpush3.bf16.msra.mxu1 %v10859_v43 }
  0xdd   : > { %10519 = vmatprep.subr.bf16.mxu1 %v10860_v44 }
  0xde   : > { %491 = vxpose.xlu0.b32.cont [8/16] %v466_v19, 128  ;;  %523 = vxpose.xlu1.b32.cont [8/16] %v467_v21, 128 }
  0xdf   : > { %10144 = vmatpush3.bf16.msra.mxu0 %v10854_v23 }
  0xe0   : > { %10145 = vmatprep.subr.bf16.mxu0 %v10855_v26  ;;  %10527 = vmatpush3.bf16.msra.mxu1 %v10860_v44 }
  0xe1   : > { %10520 = vmatprep.subr.bf16.mxu1 %v10861_v45 }
  0xe2   : > { %492 = vxpose.xlu0.b32.cont [9/16] %v468_v22, 128  ;;  %524 = vxpose.xlu1.b32.cont [9/16] %v469_v24, 128 }
  0xe3   : > { %10146 = vmatpush3.bf16.msra.mxu0 %v10855_v26 }
  0xe4   : > { %10179 = vmatprep.subr.bf16.mxu0 %v10856_v40  ;;  %10528 = vmatpush3.bf16.msra.mxu1 %v10861_v45 }
  0xe6   : > { %493 = vxpose.xlu0.b32.cont [10/16] %v470_v25, 128  ;;  %525 = vxpose.xlu1.b32.cont [10/16] %v471_v27, 128 }
  0xea   : > { %494 = vxpose.xlu0.b32.cont [11/16] %v472_v28, 128  ;;  %526 = vxpose.xlu1.b32.cont [11/16] %v473_v29, 128 }
  0xee   : > { %495 = vxpose.xlu0.b32.cont [12/16] %v474_v30, 128  ;;  %527 = vxpose.xlu1.b32.cont [12/16] %v475_v31, 128  ;;  %v10862_v30 = vld [vmem:[#allocation7 + $0x30] sm:$0xff]   ;;  %v10863_v31 = vld [vmem:[#allocation7 + $0x38] sm:$0xff]  }
  0xef   : > { %10521 = vmatprep.subr.bf16.mxu1 %v10862_v30 }
  0xf0   : > { %10529 = vmatpush3.bf16.msra.mxu1 %v10862_v30 }
  0xf1   : > { %10522 = vmatprep.subr.bf16.mxu1 %v10863_v31 }
  0xf2   : > { %496 = vxpose.xlu0.b32.cont [13/16] %v476_v32, 128  ;;  %528 = vxpose.xlu1.b32.cont [13/16] %v477_v33, 128  ;;  %v10866_v32 = vld [vmem:[#allocation8 + $0x4] ss:$12 sps:$4 sm:$0xff]   ;;  %v12548_v33 = vld [vmem:[#allocation8 + $0x8] ss:$12 sps:$4 sm:$0xff]  }
  0xf4   : > { %10530 = vmatpush3.bf16.msra.mxu1 %v10863_v31 }
  0xf5   : > { %10227 = vmatprep.subr.bf16.mxu1 %v12548_v33 }
  0xf6   : > { %497 = vxpose.xlu0.b32.cont [14/16] %v478_v34, 128  ;;  %529 = vxpose.xlu1.b32.cont [14/16] %v479_v35, 128  ;;  %v12554_v34 = vld [vmem:[%s16421_s2] ss:$0 sm:$0xff] }
  0xfa   : > { %498 = vxpose.xlu0.b32.cont [15/16] %v480_v36, 128  ;;  %530 = vxpose.xlu1.b32.cont [15/16] %v481_v37, 128 }
  0xfe   : > { %499 = vxpose.xlu0.b32.end [16/16] %v482_v38, 128  ;;  %531 = vxpose.xlu1.b32.end [16/16] %v483_v39, 128 }
 0x142   : > { %v12452_v46 = vpop.trf.xlu0  ;;  %v12454_v47 = vpop.trf.xlu1 }
 0x146   : > { %v12456_v48 = vpop.trf.xlu0  ;;  %v12460_v50 = vpop.trf.xlu1 }
 0x147   : > { %v548_v49 = vpack.c.bf16 %v12456_v48, %v12452_v46  ;;  %v556_v15 = vpack.c.bf16 %v12460_v50, %v12454_v47 }
 0x149   : > { %10147 = vmatprep.mubr.bf16.mxu0 %v548_v49 }
 0x14a   : > { %v12462_v51 = vpop.trf.xlu0  ;;  %v12464_v52 = vpop.trf.xlu1 }
 0x14e   : > { %v12466_v53 = vpop.trf.xlu0  ;;  %v12472_v56 = vpop.trf.xlu1 }
 0x14f   : > { %v549_v54 = vpack.c.bf16 %v12466_v53, %v12462_v51  ;;  %v557_v19 = vpack.c.bf16 %v12472_v56, %v12464_v52 }
 0x151   : > { %10148 = vmatmul.mubr.bf16.vlgmr.msra.gmra.mrb[0].mxu0 %v549_v54 }
 0x152   : > { %v12470_v55 = vpop.trf.xlu0  ;;  %10180 = vmatpush3.bf16.msra.mxu0 %v10856_v40  ;;  %v12478_v59 = vpop.trf.xlu1 }
 0x153   : > { %10181 = vmatprep.subr.bf16.mxu0 %v10857_v41 }
 0x156   : > { %v12474_v57 = vpop.trf.xlu0  ;;  %10182 = vmatpush3.bf16.msra.mxu0 %v10857_v41  ;;  %v12484_v62 = vpop.trf.xlu1 }
 0x157   : > { %v550_v58 = vpack.c.bf16 %v12474_v57, %v12470_v55  ;;  %10183 = vmatprep.subr.bf16.mxu0 %v10858_v42  ;;  %v558_v20 = vpack.c.bf16 %v12484_v62, %v12478_v59 }
 0x159   : > { %10151 = vmatprep.mubr.bf16.mxu0 %v550_v58 }
 0x15a   : > { %v12480_v60 = vpop.trf.xlu0  ;;  %10184 = vmatpush3.bf16.msra.mxu0 %v10858_v42  ;;  %v12490_v1 = vpop.trf.xlu1 }
 0x15b   : > { %10185 = vmatprep.subr.bf16.mxu0 %v10859_v43 }
 0x15e   : > { %v12482_v61 = vpop.trf.xlu0  ;;  %10186 = vmatpush3.bf16.msra.mxu0 %v10859_v43  ;;  %v12498_v5 = vpop.trf.xlu1 }
 0x15f   : > { %v551_v63 = vpack.c.bf16 %v12482_v61, %v12480_v60  ;;  %10187 = vmatprep.subr.bf16.mxu0 %v10860_v44  ;;  %v559_v22 = vpack.c.bf16 %v12498_v5, %v12490_v1 }
 0x161   : > { %10152 = vmatmul.mubr.bf16.gmra.mrb[4].mxu0 %v551_v63  ;;  %v10864_v63 = vld [vmem:[#allocation8] ss:$12 sps:$4 sm:$0xff]  }
 0x162   : > { %v12488_v0 = vpop.trf.xlu0  ;;  %10188 = vmatpush3.bf16.msra.mxu0 %v10860_v44  ;;  %v12504_v8 = vpop.trf.xlu1 }
 0x163   : > { %10189 = vmatprep.subr.bf16.mxu0 %v10861_v45 }
 0x166   : > { %v12492_v2 = vpop.trf.xlu0  ;;  %10190 = vmatpush3.bf16.msra.mxu0 %v10861_v45  ;;  %v12510_v11 = vpop.trf.xlu1 }
 0x167   : > { %v552_v3 = vpack.c.bf16 %v12492_v2, %v12488_v0  ;;  %v560_v23 = vpack.c.bf16 %v12510_v11, %v12504_v8  ;;  %10191 = vmatprep.subr.bf16.mxu0 %v10862_v30 }
 0x169   : > { %10155 = vmatprep.mubr.bf16.mxu0 %v552_v3  ;;  %v10870_v3 = vld [vmem:[#allocation8 + $0x1c] ss:$12 sps:$4 sm:$0xff]  }
 0x16a   : > { %v12496_v4 = vpop.trf.xlu0  ;;  %v12516_v14 = vpop.trf.xlu1  ;;  %10192 = vmatpush3.bf16.msra.mxu0 %v10862_v30 }
 0x16b   : > { %10193 = vmatprep.subr.bf16.mxu0 %v10863_v31 }
 0x16e   : > { %v12500_v6 = vpop.trf.xlu0  ;;  %v12524_v18 = vpop.trf.xlu1  ;;  %10194 = vmatpush3.bf16.msra.mxu0 %v10863_v31  ;;  %v10876_v31 = vld [vmem:[#allocation8 + $0x48] ss:$12 sps:$4 sm:$0xff]  }
 0x16f   : > { %v553_v7 = vpack.c.bf16 %v12500_v6, %v12496_v4  ;;  %v561_v26 = vpack.c.bf16 %v12524_v18, %v12516_v14  ;;  %1316 = vmatprep.subr.bf16.mxu0 %v10866_v32 }
 0x171   : > { %10156 = vmatmul.mubr.bf16.gmra.mrb[8].mxu0 %v553_v7  ;;  %v10868_v7 = vld [vmem:[#allocation8 + $0x18] ss:$12 sps:$4 sm:$0xff]  }
 0x172   : > { %v12506_v9 = vpop.trf.xlu0  ;;  %v12530_v21 = vpop.trf.xlu1 }
 0x176   : > { %v12508_v10 = vpop.trf.xlu0  ;;  %v12536_v24 = vpop.trf.xlu1 }
 0x177   : > { %v554_v12 = vpack.c.bf16 %v12508_v10, %v12506_v9  ;;  %v562_v27 = vpack.c.bf16 %v12536_v24, %v12530_v21 }
 0x179   : > { %10159 = vmatprep.mubr.bf16.mxu0 %v554_v12  ;;  %v10874_v12 = vld [vmem:[#allocation8 + $0x34] ss:$12 sps:$4 sm:$0xff]  }
 0x17a   : > { %v12514_v13 = vpop.trf.xlu0  ;;  %v12538_v25 = vpop.trf.xlu1 }
 0x17e   : > { %v12520_v16 = vpop.trf.xlu0  ;;  %v12544_v28 = vpop.trf.xlu1 }
 0x17f   : > { %v555_v17 = vpack.c.bf16 %v12520_v16, %v12514_v13  ;;  %v563_v29 = vpack.c.bf16 %v12544_v28, %v12538_v25 }
 0x181   : > { %10160 = vmatmul.mubr.bf16.gmra.mrb[12].mxu0 %v555_v17  ;;  %v10872_v17 = vld [vmem:[#allocation8 + $0x30] ss:$12 sps:$4 sm:$0xff]  }
 0x182   : > { %10163 = vmatprep.mubr.bf16.mxu0 %v556_v15 }
 0x189   : > { %10164 = vmatmul.mubr.bf16.gmra.mrb[16].mxu0 %v557_v19 }
 0x18a   : > { %10167 = vmatprep.mubr.bf16.mxu0 %v558_v20 }
 0x191   : > { %10168 = vmatmul.mubr.bf16.gmra.mrb[20].mxu0 %v559_v22  ;;  %v10878_v22 = vld [vmem:[#allocation8 + $0x4c] ss:$12 sps:$4 sm:$0xff]  }
 0x192   : > { %10171 = vmatprep.mubr.bf16.mxu0 %v560_v23 }
 0x199   : > { %10172 = vmatmul.mubr.bf16.gmra.mrb[24].mxu0 %v561_v26 }
 0x19a   : > { %10175 = vmatprep.mubr.bf16.mxu0 %v562_v27 }
 0x1a1   : > { %10176 = vmatmul.mubr.bf16.gmra.mrb[28].mxu0 %v563_v29 }
 0x224   : > { %v10149_v35 = vpop.f32.mrb[0].mxu0 }
 0x225   : > { %v678_v36 = vadd.f32 %v10149_v35, %v12554_v34  ;;  %v669_v37 = vpop.f32.mrb[1].mxu0 }
 0x226   : > { %v670_v38 = vadd.f32 %v12554_v34, %v669_v37  ;;  %v10150_v39 = vpop.f32.mrb[2].mxu0 }
 0x227   : > { %v681_v40 = vadd.f32 %v10150_v39, %v12554_v34  ;;  %v672_v41 = vpop.f32.mrb[3].mxu0  ;;  %v798_v43 = vmax.f32 %v678_v36, 0.0  ;;  %v10882_v36 = vld [vmem:[#allocation8 + $0x64] ss:$12 sps:$4 sm:$0xff]  }
 0x228   : > { %v673_v42 = vadd.f32 %v12554_v34, %v672_v41  ;;  %v796_v45 = vmax.f32 %v670_v38, 0.0  ;;  %v10880_v41 = vld [vmem:[#allocation8 + $0x60] ss:$12 sps:$4 sm:$0xff]  }
 0x229   : > { %v799_v44 = vmax.f32 %v681_v40, 0.0 }
 0x22a   : > { %v797_v49 = vmax.f32 %v673_v42, 0.0 }
 0x22b   : > { %v829_v54 = vpack.c.bf16 %v799_v44, %v798_v43 }
 0x22c   : > { %v828_v58 = vpack.c.bf16 %v797_v49, %v796_v45 }
 0x22e   : > { %10195 = vmatprep.mubr.bf16.mxu0 %v828_v58 }
 0x22f   : > { %10196 = vmatmul.mubr.bf16.vlgmr.msra.gmra.mrb[32].mxu0 %v829_v54 }
 0x230   : > { %1317 = vmatpush1.bf16.msra.mxu0 %v10864_v63 }
 0x231   : > { %1318 = vmatprep.subr.bf16.mxu0 %v10870_v3 }
 0x234   : > { %v10153_v15 = vpop.f32.mrb[4].mxu0  ;;  %1319 = vmatpush1.bf16.msra.mxu0 %v10868_v7 }
 0x235   : > { %v694_v19 = vadd.f32 %v10153_v15, %v12554_v34  ;;  %v685_v20 = vpop.f32.mrb[5].mxu0  ;;  %1320 = vmatprep.subr.bf16.mxu0 %v10874_v12 }
 0x236   : > { %v686_v23 = vadd.f32 %v12554_v34, %v685_v20  ;;  %v10154_v26 = vpop.f32.mrb[6].mxu0 }
 0x237   : > { %v697_v27 = vadd.f32 %v10154_v26, %v12554_v34  ;;  %v688_v29 = vpop.f32.mrb[7].mxu0  ;;  %v802_v32 = vmax.f32 %v694_v19, 0.0 }
 0x238   : > { %v689_v30 = vadd.f32 %v12554_v34, %v688_v29  ;;  %1321 = vmatpush1.bf16.msra.mxu0 %v10872_v17  ;;  %v800_v37 = vmax.f32 %v686_v23, 0.0 }
 0x239   : > { %v803_v35 = vmax.f32 %v697_v27, 0.0  ;;  %1322 = vmatprep.subr.bf16.mxu0 %v10878_v22 }
 0x23a   : > { %v801_v38 = vmax.f32 %v689_v30, 0.0 }
 0x23b   : > { %v831_v39 = vpack.c.bf16 %v803_v35, %v802_v32 }
 0x23c   : > { %v830_v40 = vpack.c.bf16 %v801_v38, %v800_v37  ;;  %1323 = vmatpush1.bf16.msra.mxu0 %v10876_v31 }
 0x23d   : > { %1324 = vmatprep.subr.bf16.mxu0 %v10882_v36 }
 0x23e   : > { %10199 = vmatprep.mubr.bf16.mxu0 %v830_v40 }
 0x23f   : > { %10200 = vmatmul.mubr.bf16.gmra.mrb[36].mxu0 %v831_v39 }
 0x240   : > { %1325 = vmatpush1.bf16.msra.mxu0 %v10880_v41 }
 0x244   : > { %v10157_v42 = vpop.f32.mrb[8].mxu0 }
 0x245   : > { %v710_v43 = vadd.f32 %v10157_v42, %v12554_v34  ;;  %v701_v44 = vpop.f32.mrb[9].mxu0 }
 0x246   : > { %v702_v45 = vadd.f32 %v12554_v34, %v701_v44  ;;  %v10158_v49 = vpop.f32.mrb[10].mxu0 }
 0x247   : > { %v713_v54 = vadd.f32 %v10158_v49, %v12554_v34  ;;  %v704_v58 = vpop.f32.mrb[11].mxu0  ;;  %v806_v3 = vmax.f32 %v710_v43, 0.0 }
 0x248   : > { %v705_v63 = vadd.f32 %v12554_v34, %v704_v58  ;;  %v804_v12 = vmax.f32 %v702_v45, 0.0 }
 0x249   : > { %v807_v7 = vmax.f32 %v713_v54, 0.0 }
 0x24a   : > { %v805_v15 = vmax.f32 %v705_v63, 0.0 }
 0x24b   : > { %v833_v17 = vpack.c.bf16 %v807_v7, %v806_v3 }
 0x24c   : > { %v832_v19 = vpack.c.bf16 %v805_v15, %v804_v12 }
 0x24e   : > { %10203 = vmatprep.mubr.bf16.mxu0 %v832_v19 }
 0x24f   : > { %10204 = vmatmul.mubr.bf16.gmra.mrb[40].mxu0 %v833_v17 }
 0x254   : > { %v10161_v20 = vpop.f32.mrb[12].mxu0 }
 0x255   : > { %v726_v22 = vadd.f32 %v10161_v20, %v12554_v34  ;;  %v717_v23 = vpop.f32.mrb[13].mxu0 }
 0x256   : > { %v718_v26 = vadd.f32 %v12554_v34, %v717_v23  ;;  %v10162_v27 = vpop.f32.mrb[14].mxu0 }
 0x257   : > { %v729_v29 = vadd.f32 %v10162_v27, %v12554_v34  ;;  %v720_v30 = vpop.f32.mrb[15].mxu0  ;;  %v810_v32 = vmax.f32 %v726_v22, 0.0  ;;  %v10871_v22 = vld [vmem:[#allocation8 + $0x20] ss:$12 sps:$4 sm:$0xff]  }
 0x258   : > { %v721_v31 = vadd.f32 %v12554_v34, %v720_v30  ;;  %v808_v36 = vmax.f32 %v718_v26, 0.0 }
 0x259   : > { %v811_v35 = vmax.f32 %v729_v29, 0.0 }
 0x25a   : > { %v809_v37 = vmax.f32 %v721_v31, 0.0 }
 0x25b   : > { %v835_v38 = vpack.c.bf16 %v811_v35, %v810_v32 }
 0x25c   : > { %v10165_v39 = vpop.f32.mrb[16].mxu0  ;;  %v834_v40 = vpack.c.bf16 %v809_v37, %v808_v36  ;;  %v10875_v36 = vld [vmem:[#allocation8 + $0x38] ss:$12 sps:$4 sm:$0xff]  }
 0x25d   : > { %v742_v41 = vadd.f32 %v10165_v39, %v12554_v34  ;;  %v733_v42 = vpop.f32.mrb[17].mxu0 }
 0x25e   : > { %v10166_v43 = vpop.f32.mrb[18].mxu0  ;;  %10207 = vmatprep.mubr.bf16.mxu0 %v834_v40  ;;  %v734_v44 = vadd.f32 %v12554_v34, %v733_v42 }
 0x25f   : > { %v814_v45 = vmax.f32 %v742_v41, 0.0  ;;  %v745_v49 = vadd.f32 %v10166_v43, %v12554_v34  ;;  %v736_v54 = vpop.f32.mrb[19].mxu0  ;;  %10208 = vmatmul.mubr.bf16.gmra.mrb[44].mxu0 %v835_v38  ;;  %v10879_v43 = vld [vmem:[#allocation8 + $0x50] ss:$12 sps:$4 sm:$0xff]  }
 0x260   : > { %v737_v58 = vadd.f32 %v12554_v34, %v736_v54  ;;  %v812_v63 = vmax.f32 %v734_v44, 0.0 }
 0x261   : > { %v815_v3 = vmax.f32 %v745_v49, 0.0 }
 0x262   : > { %v813_v7 = vmax.f32 %v737_v58, 0.0 }
 0x263   : > { %v837_v12 = vpack.c.bf16 %v815_v3, %v814_v45 }
 0x264   : > { %v10169_v15 = vpop.f32.mrb[20].mxu0  ;;  %v836_v17 = vpack.c.bf16 %v813_v7, %v812_v63  ;;  %v10883_v7 = vld [vmem:[#allocation8 + $0x68] ss:$12 sps:$4 sm:$0xff]  }
 0x265   : > { %v758_v19 = vadd.f32 %v10169_v15, %v12554_v34  ;;  %v749_v20 = vpop.f32.mrb[21].mxu0 }
 0x266   : > { %v750_v23 = vadd.f32 %v12554_v34, %v749_v20  ;;  %v10170_v26 = vpop.f32.mrb[22].mxu0  ;;  %10211 = vmatprep.mubr.bf16.mxu1 %v836_v17 }
 0x267   : > { %v818_v27 = vmax.f32 %v758_v19, 0.0  ;;  %v761_v29 = vadd.f32 %v10170_v26, %v12554_v34  ;;  %v752_v30 = vpop.f32.mrb[23].mxu0  ;;  %10212 = vmatmul.mubr.bf16.vlgmr.msra.gmra.mrb[0].mxu1 %v837_v12 }
 0x268   : > { %v816_v31 = vmax.f32 %v750_v23, 0.0  ;;  %v753_v32 = vadd.f32 %v12554_v34, %v752_v30  ;;  %10228 = vmatpush3.bf16.msra.mxu1 %v12548_v33 }
 0x269   : > { %v819_v35 = vmax.f32 %v761_v29, 0.0  ;;  %10229 = vmatprep.subr.bf16.mxu1 %v10871_v22 }
 0x26a   : > { %v817_v37 = vmax.f32 %v753_v32, 0.0 }
 0x26b   : > { %v839_v38 = vpack.c.bf16 %v819_v35, %v818_v27 }
 0x26c   : > { %v10173_v39 = vpop.f32.mrb[24].mxu0  ;;  %v838_v40 = vpack.c.bf16 %v817_v37, %v816_v31  ;;  %10230 = vmatpush3.bf16.msra.mxu1 %v10871_v22 }
 0x26d   : > { %v774_v41 = vadd.f32 %v10173_v39, %v12554_v34  ;;  %v765_v42 = vpop.f32.mrb[25].mxu0  ;;  %10231 = vmatprep.subr.bf16.mxu1 %v10875_v36  ;;  %v10886_v39 = vld [vmem:[#allocation8 + $0x7c] ss:$12 sps:$4 sm:$0xff]  }
 0x26e   : > { %v766_v44 = vadd.f32 %v12554_v34, %v765_v42  ;;  %v10174_v45 = vpop.f32.mrb[26].mxu0  ;;  %10215 = vmatprep.mubr.bf16.mxu1 %v838_v40  ;;  %v10884_v40 = vld [vmem:[#allocation8 + $0x78] ss:$12 sps:$4 sm:$0xff]   ;;  %1326 = vmatprep.subr.bf16.mxu0 %v10886_v39  ;;  %v10890_v42 = vld [vmem:[#allocation8 + $0x94] ss:$12 sps:$4 sm:$0xff]  }
 0x26f   : > { %v822_v49 = vmax.f32 %v774_v41, 0.0  ;;  %v777_v33 = vadd.f32 %v10174_v45, %v12554_v34  ;;  %v768_v54 = vpop.f32.mrb[27].mxu0  ;;  %10216 = vmatmul.mubr.bf16.gmra.mrb[4].mxu1 %v839_v38  ;;  %v10887_v41 = vld [vmem:[#allocation8 + $0x80] ss:$12 sps:$4 sm:$0xff]   ;;  %1327 = vmatpush1.bf16.msra.mxu0 %v10884_v40  ;;  %v10892_v45 = vld [vmem:[#allocation8 + $0xa8] ss:$12 sps:$4 sm:$0xff]  }
 0x270   : > { %v820_v58 = vmax.f32 %v766_v44, 0.0  ;;  %v769_v63 = vadd.f32 %v12554_v34, %v768_v54  ;;  %10232 = vmatpush3.bf16.msra.mxu1 %v10875_v36  ;;  %v10891_v44 = vld [vmem:[#allocation8 + $0x98] ss:$12 sps:$4 sm:$0xff]   ;;  %1328 = vmatprep.subr.bf16.mxu0 %v10890_v42  ;;  %v12593_v54 = vld [vmem:[%s16423_s4] ss:$0 sm:$0xff] }
 0x271   : > { %v823_v3 = vmax.f32 %v777_v33, 0.0  ;;  %10233 = vmatprep.subr.bf16.mxu1 %v10879_v43  ;;  %v16468_v33 = vmov 0  }
 0x272   : > { %v821_v12 = vmax.f32 %v769_v63, 0.0  ;;  %1348 = vmatprep.mubr.bf16.mxu0 %v16468_v33 }
 0x273   : > { %v841_v15 = vpack.c.bf16 %v823_v3, %v822_v49  ;;  %v10895_v49 = vld [vmem:[#allocation8 + $0xb0] ss:$12 sps:$4 sm:$0xff]  }
 0x274   : > { %v10177_v17 = vpop.f32.mrb[28].mxu0  ;;  %v840_v19 = vpack.c.bf16 %v821_v12, %v820_v58  ;;  %10234 = vmatpush3.bf16.msra.mxu1 %v10879_v43  ;;  %v10888_v43 = vld [vmem:[#allocation8 + $0x90] ss:$12 sps:$4 sm:$0xff]  }
 0x275   : > { %v790_v20 = vadd.f32 %v10177_v17, %v12554_v34  ;;  %v781_v22 = vpop.f32.mrb[29].mxu0  ;;  %10235 = vmatprep.subr.bf16.mxu1 %v10883_v7  ;;  %1329 = vmatpush1.bf16.msra.mxu0 %v10888_v43 }
 0x276   : > { %v782_v23 = vadd.f32 %v12554_v34, %v781_v22  ;;  %v10178_v26 = vpop.f32.mrb[30].mxu0  ;;  %10219 = vmatprep.mubr.bf16.mxu1 %v840_v19 }
 0x277   : > { %v826_v27 = vmax.f32 %v790_v20, 0.0  ;;  %v793_v29 = vadd.f32 %v10178_v26, %v12554_v34  ;;  %v784_v30 = vpop.f32.mrb[31].mxu0  ;;  %10220 = vmatmul.mubr.bf16.gmra.mrb[8].mxu1 %v841_v15 }
 0x278   : > { %v824_v31 = vmax.f32 %v782_v23, 0.0  ;;  %v785_v32 = vadd.f32 %v12554_v34, %v784_v30  ;;  %10236 = vmatpush3.bf16.msra.mxu1 %v10883_v7  ;;  %v10894_v34 = vld [vmem:[#allocation8 + $0xac] ss:$12 sps:$4 sm:$0xff]  }
 0x279   : > { %v827_v35 = vmax.f32 %v793_v29, 0.0  ;;  %10237 = vmatprep.subr.bf16.mxu1 %v10887_v41  ;;  %1330 = vmatprep.subr.bf16.mxu0 %v10894_v34 }
 0x27a   : > { %v825_v36 = vmax.f32 %v785_v32, 0.0  ;;  %1331 = vmatpush1.bf16.msra.mxu0 %v10892_v45 }
 0x27b   : > { %v843_v37 = vpack.c.bf16 %v827_v35, %v826_v27 }
 0x27c   : > { %v842_v38 = vpack.c.bf16 %v825_v36, %v824_v31  ;;  %10238 = vmatpush3.bf16.msra.mxu1 %v10887_v41 }
 0x27d   : > { %10239 = vmatprep.subr.bf16.mxu1 %v10891_v44 }
 0x27e   : > { %10223 = vmatprep.mubr.bf16.mxu1 %v842_v38 }
 0x27f   : > { %10224 = vmatmul.mubr.bf16.gmra.mrb[12].mxu1 %v843_v37 }
 0x280   : > { %10240 = vmatpush3.bf16.msra.mxu1 %v10891_v44 }
 0x281   : > { %10241 = vmatprep.subr.bf16.mxu1 %v10895_v49 }
 0x284   : > { %10242 = vmatpush3.bf16.msra.mxu1 %v10895_v49 }
 0x302   : > { %v10197_v58 = vpop.f32.mrb[32].mxu0 }
 0x303   : > { %v958_v63 = vadd.f32 %v10197_v58, %v12593_v54  ;;  %v949_v3 = vpop.f32.mrb[33].mxu0 }
 0x304   : > { %v950_v7 = vadd.f32 %v12593_v54, %v949_v3  ;;  %v10198_v12 = vpop.f32.mrb[34].mxu0 }
 0x305   : > { %v961_v15 = vadd.f32 %v10198_v12, %v12593_v54  ;;  %v952_v17 = vpop.f32.mrb[35].mxu0  ;;  %v12603_v22 = vadd.f32 %v958_v63, %v12462_v51 }
 0x306   : > { %v12599_v19 = vadd.f32 %v950_v7, %v12452_v46  ;;  %v953_v20 = vadd.f32 %v12593_v54, %v952_v17 }
 0x307   : > { %16695 = vst [vmem:[#allocation20_spill] sm:$0xff] %v12603_v22  ;;  %v12606_v23 = vadd.f32 %v961_v15, %v12466_v53  ;;  %v16467_v46 = vmax.f32 %v12603_v22, 0.0 }
 0x308   : > { %16694 = vst [vmem:[#allocation19_spill] sm:$0xff] %v12599_v19  ;;  %v12609_v26 = vadd.f32 %v953_v20, %v12456_v48  ;;  %v16466_v29 = vmax.f32 %v12599_v19, 0.0 }
 0x309   : > { %16696 = vst [vmem:[#allocation21_spill] sm:$0xff] %v12606_v23  ;;  %v16465_v27 = vmax.f32 %v12606_v23, 0.0 }
 0x30a   : > { %16697 = vst [vmem:[#allocation22_spill] sm:$0xff] %v12609_v26  ;;  %v16464_v30 = vmax.f32 %v12609_v26, 0.0 }
 0x30b   : > { %v1141_v53 = vpack.c.bf16 %v16465_v27, %v16467_v46 }
 0x30c   : > { %v1140_v51 = vpack.c.bf16 %v16464_v30, %v16466_v29 }
 0x30e   : > { %1349 = vmatmul.mubr.bf16.vlgmr.msra.gmra.mrb[48].mxu0 %v1140_v51  ;;  %10243 = vmatprep.mubr.bf16.mxu1 %v1140_v51 }
 0x30f   : > { %10244 = vmatmul.mubr.bf16.vlgmr.msra.gmra.mrb[16].mxu1 %v1141_v53  ;;  %1358 = vmatprep.mubr.bf16.mxu0 %v16468_v33 }
 0x312   : > { %v10201_v48 = vpop.f32.mrb[36].mxu0 }
 0x313   : > { %v974_v31 = vadd.f32 %v10201_v48, %v12593_v54  ;;  %v965_v32 = vpop.f32.mrb[37].mxu0 }
 0x314   : > { %v966_v35 = vadd.f32 %v12593_v54, %v965_v32  ;;  %v10202_v36 = vpop.f32.mrb[38].mxu0 }
 0x315   : > { %v977_v37 = vadd.f32 %v10202_v36, %v12593_v54  ;;  %v968_v38 = vpop.f32.mrb[39].mxu0  ;;  %v12632_v41 = vadd.f32 %v974_v31, %v12480_v60 }
 0x316   : > { %v12628_v39 = vadd.f32 %v966_v35, %v12470_v55  ;;  %v969_v40 = vadd.f32 %v12593_v54, %v968_v38  ;;  %1359 = vmatmul.mubr.bf16.gmra.mrb[52].mxu0 %v1141_v53 }
 0x317   : > { %16699 = vst [vmem:[#allocation24_spill] sm:$0xff] %v12632_v41  ;;  %v12635_v42 = vadd.f32 %v977_v37, %v12482_v61  ;;  %1368 = vmatprep.mubr.bf16.mxu0 %v16468_v33  ;;  %v16463_v45 = vmax.f32 %v12632_v41, 0.0 }
 0x318   : > { %16698 = vst [vmem:[#allocation23_spill] sm:$0xff] %v12628_v39  ;;  %v12639_v43 = vadd.f32 %v969_v40, %v12474_v57  ;;  %v16462_v34 = vmax.f32 %v12628_v39, 0.0 }
 0x319   : > { %16700 = vst [vmem:[#allocation25_spill] sm:$0xff] %v12635_v42  ;;  %v16461_v44 = vmax.f32 %v12635_v42, 0.0 }
 0x31a   : > { %16701 = vst [vmem:[#allocation26_spill] sm:$0xff] %v12639_v43  ;;  %v16460_v55 = vmax.f32 %v12639_v43, 0.0 }
 0x31b   : > { %v1143_v61 = vpack.c.bf16 %v16461_v44, %v16463_v45 }
 0x31c   : > { %v1142_v60 = vpack.c.bf16 %v16460_v55, %v16462_v34 }
 0x31e   : > { %1369 = vmatmul.mubr.bf16.gmra.mrb[56].mxu0 %v1142_v60  ;;  %10247 = vmatprep.mubr.bf16.mxu1 %v1142_v60 }
 0x31f   : > { %10248 = vmatmul.mubr.bf16.gmra.mrb[20].mxu1 %v1143_v61  ;;  %1378 = vmatprep.mubr.bf16.mxu0 %v16468_v33 }
 0x322   : > { %v10205_v57 = vpop.f32.mrb[40].mxu0 }
 0x323   : > { %v981_v49 = vpop.f32.mrb[41].mxu0  ;;  %v990_v58 = vadd.f32 %v10205_v57, %v12593_v54 }
 0x324   : > { %v10206_v63 = vpop.f32.mrb[42].mxu0  ;;  %v982_v3 = vadd.f32 %v12593_v54, %v981_v49 }
 0x325   : > { %v984_v7 = vpop.f32.mrb[43].mxu0  ;;  %v993_v12 = vadd.f32 %v10206_v63, %v12593_v54  ;;  %v12663_v20 = vadd.f32 %v990_v58, %v12496_v4 }
 0x326   : > { %1379 = vmatmul.mubr.bf16.gmra.mrb[60].mxu0 %v1143_v61  ;;  %v985_v15 = vadd.f32 %v12593_v54, %v984_v7  ;;  %v12659_v17 = vadd.f32 %v982_v3, %v12488_v0 }
 0x327   : > { %1388 = vmatprep.mubr.bf16.mxu0 %v16468_v33  ;;  %16703 = vst [vmem:[#allocation28_spill] sm:$0xff] %v12663_v20  ;;  %v12666_v51 = vadd.f32 %v993_v12, %v12500_v6  ;;  %v16457_v0 = vmax.f32 %v12663_v20, 0.0 }
 0x328   : > { %16702 = vst [vmem:[#allocation27_spill] sm:$0xff] %v12659_v17  ;;  %v12669_v53 = vadd.f32 %v985_v15, %v12492_v2  ;;  %v16458_v31 = vmax.f32 %v12659_v17, 0.0 }
 0x329   : > { %16704 = vst [vmem:[#allocation29_spill] sm:$0xff] %v12666_v51  ;;  %v16456_v48 = vmax.f32 %v12666_v51, 0.0 }
 0x32a   : > { %16705 = vst [vmem:[#allocation30_spill] sm:$0xff] %v12669_v53  ;;  %v16459_v32 = vmax.f32 %v12669_v53, 0.0 }
 0x32b   : > { %v1145_v6 = vpack.c.bf16 %v16456_v48, %v16457_v0 }
 0x32c   : > { %v1144_v4 = vpack.c.bf16 %v16459_v32, %v16458_v31 }
 0x32e   : > { %1389 = vmatmul.mubr.bf16.gmra.mrb[64].mxu0 %v1144_v4  ;;  %10251 = vmatprep.mubr.bf16.mxu1 %v1144_v4 }
 0x32f   : > { %10252 = vmatmul.mubr.bf16.gmra.mrb[24].mxu1 %v1145_v6  ;;  %1398 = vmatprep.mubr.bf16.mxu0 %v16468_v33 }
 0x332   : > { %v10209_v2 = vpop.f32.mrb[44].mxu0 }
 0x333   : > { %v997_v35 = vpop.f32.mrb[45].mxu0  ;;  %v1006_v36 = vadd.f32 %v10209_v2, %v12593_v54 }
 0x334   : > { %v10210_v37 = vpop.f32.mrb[46].mxu0  ;;  %v998_v38 = vadd.f32 %v12593_v54, %v997_v35 }
 0x335   : > { %v1000_v40 = vpop.f32.mrb[47].mxu0  ;;  %v1009_v60 = vadd.f32 %v10210_v37, %v12593_v54  ;;  %v12693_v49 = vadd.f32 %v1006_v36, %v12514_v13 }
 0x336   : > { %1399 = vmatmul.mubr.bf16.gmra.mrb[68].mxu0 %v1145_v6  ;;  %v1001_v61 = vadd.f32 %v12593_v54, %v1000_v40  ;;  %v12689_v57 = vadd.f32 %v998_v38, %v12506_v9 }
 0x337   : > { %1408 = vmatprep.mubr.bf16.mxu0 %v16468_v33  ;;  %16707 = vst [vmem:[#allocation32_spill] sm:$0xff] %v12693_v49  ;;  %v12696_v58 = vadd.f32 %v1009_v60, %v12520_v16  ;;  %v16436_v6 = vmax.f32 %v12693_v49, 0.0 }
 0x338   : > { %16706 = vst [vmem:[#allocation31_spill] sm:$0xff] %v12689_v57  ;;  %v12699_v63 = vadd.f32 %v1001_v61, %v12508_v10  ;;  %v16446_v12 = vmax.f32 %v12689_v57, 0.0 }
 0x339   : > { %16708 = vst [vmem:[#allocation33_spill] sm:$0xff] %v12696_v58  ;;  %v16441_v3 = vmax.f32 %v12696_v58, 0.0 }
 0x33a   : > { %16709 = vst [vmem:[#allocation34_spill] sm:$0xff] %v12699_v63  ;;  %v10213_v7 = vpop.f32.mrb[0].mxu1  ;;  %v16455_v15 = vmax.f32 %v12699_v63, 0.0 }
 0x33b   : > { %v1022_v9 = vadd.f32 %v10213_v7, %v12593_v54  ;;  %v1013_v4 = vpop.f32.mrb[1].mxu1  ;;  %v1147_v36 = vpack.c.bf16 %v16441_v3, %v16436_v6 }
 0x33c   : > { %v1014_v13 = vadd.f32 %v12593_v54, %v1013_v4  ;;  %v10214_v2 = vpop.f32.mrb[2].mxu1  ;;  %v1146_v10 = vpack.c.bf16 %v16455_v15, %v16446_v12 }
 0x33d   : > { %v1025_v16 = vadd.f32 %v10214_v2, %v12593_v54  ;;  %v1016_v35 = vpop.f32.mrb[3].mxu1  ;;  %v12721_v40 = vadd.f32 %v1022_v9, %v12464_v52 }
 0x33e   : > { %v12717_v37 = vadd.f32 %v1014_v13, %v12454_v47  ;;  %v1017_v38 = vadd.f32 %v12593_v54, %v1016_v35  ;;  %1409 = vmatmul.mubr.bf16.gmra.mrb[72].mxu0 %v1146_v10  ;;  %10255 = vmatprep.mubr.bf16.mxu1 %v1146_v10 }
 0x33f   : > { %16711 = vst [vmem:[#allocation36_spill] sm:$0xff] %v12721_v40  ;;  %v12724_v60 = vadd.f32 %v1025_v16, %v12472_v56  ;;  %10256 = vmatmul.mubr.bf16.gmra.mrb[28].mxu1 %v1147_v36  ;;  %1418 = vmatprep.mubr.bf16.mxu0 %v16468_v33  ;;  %v16438_v9 = vmax.f32 %v12721_v40, 0.0 }
 0x340   : > { %16710 = vst [vmem:[#allocation35_spill] sm:$0xff] %v12717_v37  ;;  %v12728_v61 = vadd.f32 %v1017_v38, %v12460_v50  ;;  %v16437_v4 = vmax.f32 %v12717_v37, 0.0 }
 0x341   : > { %16712 = vst [vmem:[#allocation37_spill] sm:$0xff] %v12724_v60  ;;  %v16439_v7 = vmax.f32 %v12724_v60, 0.0 }
 0x342   : > { %16713 = vst [vmem:[#allocation38_spill] sm:$0xff] %v12728_v61  ;;  %v10217_v47 = vpop.f32.mrb[4].mxu1  ;;  %v16440_v13 = vmax.f32 %v12728_v61, 0.0 }
 0x343   : > { %v1038_v2 = vadd.f32 %v10217_v47, %v12593_v54  ;;  %v1029_v52 = vpop.f32.mrb[5].mxu1  ;;  %v1149_v38 = vpack.c.bf16 %v16439_v7, %v16438_v9 }
 0x344   : > { %v1030_v56 = vadd.f32 %v12593_v54, %v1029_v52  ;;  %v10218_v10 = vpop.f32.mrb[6].mxu1  ;;  %v1148_v50 = vpack.c.bf16 %v16440_v13, %v16437_v4 }
 0x345   : > { %v1041_v16 = vadd.f32 %v10218_v10, %v12593_v54  ;;  %v1032_v35 = vpop.f32.mrb[7].mxu1  ;;  %v12750_v52 = vadd.f32 %v1038_v2, %v12490_v1 }
 0x346   : > { %v12746_v47 = vadd.f32 %v1030_v56, %v12478_v59  ;;  %v1033_v6 = vadd.f32 %v12593_v54, %v1032_v35  ;;  %1419 = vmatmul.mubr.bf16.gmra.mrb[76].mxu0 %v1147_v36  ;;  %10259 = vmatprep.mubr.bf16.mxu1 %v1148_v50 }
 0x347   : > { %16715 = vst [vmem:[#allocation40_spill] sm:$0xff] %v12750_v52  ;;  %v12753_v4 = vadd.f32 %v1041_v16, %v12498_v5  ;;  %10260 = vmatmul.mubr.bf16.gmra.mrb[32].mxu1 %v1149_v38  ;;  %1428 = vmatprep.mubr.bf16.mxu0 %v16468_v33  ;;  %v16443_v2 = vmax.f32 %v12750_v52, 0.0 }
 0x348   : > { %16714 = vst [vmem:[#allocation39_spill] sm:$0xff] %v12746_v47  ;;  %v12757_v10 = vadd.f32 %v1033_v6, %v12484_v62  ;;  %v16442_v56 = vmax.f32 %v12746_v47, 0.0 }
 0x349   : > { %16716 = vst [vmem:[#allocation41_spill] sm:$0xff] %v12753_v4  ;;  %v16444_v9 = vmax.f32 %v12753_v4, 0.0 }
 0x34a   : > { %16717 = vst [vmem:[#allocation42_spill] sm:$0xff] %v12757_v10  ;;  %v10221_v59 = vpop.f32.mrb[8].mxu1  ;;  %v16445_v36 = vmax.f32 %v12757_v10, 0.0 }
 0x34b   : > { %v1054_v35 = vadd.f32 %v10221_v59, %v12593_v54  ;;  %v1045_v1 = vpop.f32.mrb[9].mxu1  ;;  %v1151_v13 = vpack.c.bf16 %v16444_v9, %v16443_v2 }
 0x34c   : > { %v1046_v5 = vadd.f32 %v12593_v54, %v1045_v1  ;;  %v10222_v16 = vpop.f32.mrb[10].mxu1  ;;  %v1150_v62 = vpack.c.bf16 %v16445_v36, %v16442_v56 }
 0x34d   : > { %v1057_v6 = vadd.f32 %v10222_v16, %v12593_v54  ;;  %v1048_v7 = vpop.f32.mrb[11].mxu1  ;;  %v12779_v1 = vadd.f32 %v1054_v35, %v12516_v14 }
 0x34e   : > { %v12775_v59 = vadd.f32 %v1046_v5, %v12504_v8  ;;  %v1049_v3 = vadd.f32 %v12593_v54, %v1048_v7  ;;  %1429 = vmatmul.mubr.bf16.gmra.mrb[80].mxu0 %v1148_v50  ;;  %10263 = vmatprep.mubr.bf16.mxu1 %v1150_v62 }
 0x34f   : > { %16719 = vst [vmem:[#allocation44_spill] sm:$0xff] %v12779_v1  ;;  %v12782_v56 = vadd.f32 %v1057_v6, %v12524_v18  ;;  %10264 = vmatmul.mubr.bf16.gmra.mrb[36].mxu1 %v1151_v13  ;;  %1438 = vmatprep.mubr.bf16.mxu0 %v16468_v33  ;;  %v16454_v35 = vmax.f32 %v12779_v1, 0.0 }
 0x350   : > { %16718 = vst [vmem:[#allocation43_spill] sm:$0xff] %v12775_v59  ;;  %v12786_v16 = vadd.f32 %v1049_v3, %v12510_v11  ;;  %v16453_v5 = vmax.f32 %v12775_v59, 0.0 }
 0x351   : > { %16720 = vst [vmem:[#allocation45_spill] sm:$0xff] %v12782_v56  ;;  %v16448_v2 = vmax.f32 %v12782_v56, 0.0 }
 0x352   : > { %16721 = vst [vmem:[#allocation46_spill] sm:$0xff] %v12786_v16  ;;  %v10225_v8 = vpop.f32.mrb[12].mxu1  ;;  %v16447_v7 = vmax.f32 %v12786_v16, 0.0 }
 0x353   : > { %v1070_v50 = vadd.f32 %v10225_v8, %v12593_v54  ;;  %v1061_v14 = vpop.f32.mrb[13].mxu1  ;;  %v1153_v36 = vpack.c.bf16 %v16448_v2, %v16454_v35 }
 0x354   : > { %v1062_v18 = vadd.f32 %v12593_v54, %v1061_v14  ;;  %v10226_v6 = vpop.f32.mrb[14].mxu1  ;;  %v1152_v11 = vpack.c.bf16 %v16447_v7, %v16453_v5 }
 0x355   : > { %v1073_v3 = vadd.f32 %v10226_v6, %v12593_v54  ;;  %v1064_v9 = vpop.f32.mrb[15].mxu1  ;;  %v12808_v14 = vadd.f32 %v1070_v50, %v12538_v25 }
 0x356   : > { %v12804_v8 = vadd.f32 %v1062_v18, %v12530_v21  ;;  %v1065_v12 = vadd.f32 %v12593_v54, %v1064_v9  ;;  %1439 = vmatmul.mubr.bf16.gmra.mrb[84].mxu0 %v1149_v38  ;;  %10267 = vmatprep.mubr.bf16.mxu1 %v1152_v11 }
 0x357   : > { %16723 = vst [vmem:[#allocation48_spill] sm:$0xff] %v12808_v14  ;;  %v12811_v7 = vadd.f32 %v1073_v3, %v12544_v28  ;;  %10268 = vmatmul.mubr.bf16.gmra.mrb[40].mxu1 %v1153_v36  ;;  %1448 = vmatprep.mubr.bf16.mxu0 %v16468_v33  ;;  %v16452_v9 = vmax.f32 %v12808_v14, 0.0 }
 0x358   : > { %16722 = vst [vmem:[#allocation47_spill] sm:$0xff] %v12804_v8  ;;  %v12815_v6 = vadd.f32 %v1065_v12, %v12536_v24  ;;  %v16451_v21 = vmax.f32 %v12804_v8, 0.0 }
 0x359   : > { %16724 = vst [vmem:[#allocation49_spill] sm:$0xff] %v12811_v7  ;;  %v16450_v2 = vmax.f32 %v12811_v7, 0.0 }
 0x35a   : > { %16725 = vst [vmem:[#allocation50_spill] sm:$0xff] %v12815_v6  ;;  %v16449_v54 = vmax.f32 %v12815_v6, 0.0 }
 0x35b   : > { %v1155_v28 = vpack.c.bf16 %v16450_v2, %v16452_v9 }
 0x35c   : > { %v1154_v25 = vpack.c.bf16 %v16449_v54, %v16451_v21 }
 0x35e   : > { %1449 = vmatmul.mubr.bf16.gmra.mrb[88].mxu0 %v1150_v62  ;;  %10271 = vmatprep.mubr.bf16.mxu1 %v1154_v25 }
 0x35f   : > { %10272 = vmatmul.mubr.bf16.gmra.mrb[44].mxu1 %v1155_v28  ;;  %1458 = vmatprep.mubr.bf16.mxu0 %v16468_v33 }
 0x360   : > { %1843 = vmatprep.mubr.bf16.mxu1 %v16468_v33 }
 0x366   : > { %1459 = vmatmul.mubr.bf16.gmra.mrb[92].mxu0 %v1151_v13 }
 0x367   : > { %1468 = vmatprep.mubr.bf16.mxu0 %v16468_v33 }
 0x36e   : > { %1469 = vmatmul.mubr.bf16.gmra.mrb[96].mxu0 %v1152_v11 }
 0x36f   : > { %1478 = vmatprep.mubr.bf16.mxu0 %v16468_v33 }
 0x376   : > { %1479 = vmatmul.mubr.bf16.gmra.mrb[100].mxu0 %v1153_v36 }
 0x377   : > { %1488 = vmatprep.mubr.bf16.mxu0 %v16468_v33 }
 0x37e   : > { %1489 = vmatmul.mubr.bf16.gmra.mrb[104].mxu0 %v1154_v25 }
 0x37f   : > { %1498 = vmatprep.mubr.bf16.mxu0 %v16468_v33 }
 0x386   : > { %1499 = vmatmul.mubr.bf16.gmra.mrb[108].mxu0 %v1155_v28 }
 0x387   : > { %2137 = vmatprep.mubr.bf16.mxu0 %v16468_v33 }
 0x3e1   : > { %v1350_v24 = vpop.f32.mrb[48].mxu0 }
 0x3e2   : > { %v12836_v12 = vpop.f32.mrb[49].mxu0  ;;  %v10245_v38 = vpop.f32.mrb[16].mxu1 }
 0x3e3   : > { %v1354_v62 = vpop.f32.mrb[50].mxu0  ;;  %v1543_v13 = vpop.f32.mrb[17].mxu1 }
 0x3e4   : > { %v12838_v50 = vpack.c.bf16 %v1354_v62, %v1350_v24  ;;  %v12840_v18 = vpop.f32.mrb[51].mxu0  ;;  %v10246_v11 = vpop.f32.mrb[18].mxu1 }
 0x3e5   : > { %v12842_v36 = vpack.c.bf16 %v10246_v11, %v10245_v38  ;;  %v1546_v3 = vpop.f32.mrb[19].mxu1 }
 0x3e6   : > { %v12844_v25 = vpack.c.bf16 %v1546_v3, %v1543_v13  ;;  %2085 = vrot.lane.b32.xlu1 %v12838_v50, %s12096_s25 }
 0x3e7   : > { %16726 = vst [vmem:[#allocation51_spill] sm:$0xff] %v12842_v36 }
 0x3e8   : > { %16727 = vst [vmem:[#allocation52_spill] sm:$0xff] %v12844_v25 }
 0x3e9   : > { %v1360_v28 = vpop.f32.mrb[52].mxu0 }
 0x3ea   : > { %v12848_v54 = vpop.f32.mrb[53].mxu0 }
 0x3eb   : > { %v1364_v2 = vpop.f32.mrb[54].mxu0 }
 0x3ec   : > { %v12850_v21 = vpack.c.bf16 %v1364_v2, %v1360_v28  ;;  %v12852_v24 = vpop.f32.mrb[55].mxu0 }
 0x3ee   : > { %2087 = vrot.lane.b32.xlu1 %v12850_v21, %s12096_s25 }
 0x3f1   : > { %v1370_v38 = vpop.f32.mrb[56].mxu0 }
 0x3f2   : > { %v12856_v62 = vpop.f32.mrb[57].mxu0  ;;  %v10249_v13 = vpop.f32.mrb[20].mxu1 }
 0x3f3   : > { %v1374_v11 = vpop.f32.mrb[58].mxu0  ;;  %v1559_v3 = vpop.f32.mrb[21].mxu1 }
 0x3f4   : > { %v12858_v9 = vpack.c.bf16 %v1374_v11, %v1370_v38  ;;  %v12860_v5 = vpop.f32.mrb[59].mxu0  ;;  %v10250_v35 = vpop.f32.mrb[22].mxu1 }
 0x3f5   : > { %v12862_v15 = vpack.c.bf16 %v10250_v35, %v10249_v13  ;;  %v1562_v2 = vpop.f32.mrb[23].mxu1 }
 0x3f6   : > { %v12864_v28 = vpack.c.bf16 %v1562_v2, %v1559_v3  ;;  %2089 = vrot.lane.b32.xlu1 %v12858_v9, %s12096_s25 }
 0x3f7   : > { %16728 = vst [vmem:[#allocation53_spill] sm:$0xff] %v12862_v15 }
 0x3f8   : > { %16729 = vst [vmem:[#allocation54_spill] sm:$0xff] %v12864_v28 }
 0x3f9   : > { %v1380_v48 = vpop.f32.mrb[60].mxu0 }
 0x3fa   : > { %v12868_v0 = vpop.f32.mrb[61].mxu0 }
 0x3fb   : > { %v1384_v31 = vpop.f32.mrb[62].mxu0 }
 0x3fc   : > { %v12870_v32 = vpack.c.bf16 %v1384_v31, %v1380_v48  ;;  %v12872_v55 = vpop.f32.mrb[63].mxu0 }
 0x3fe   : > { %2091 = vrot.lane.b32.xlu1 %v12870_v32, %s12096_s25 }
 0x401   : > { %v1390_v38 = vpop.f32.mrb[64].mxu0 }
 0x402   : > { %v10253_v35 = vpop.f32.mrb[24].mxu1  ;;  %2322 = vrot.lane.b32.xlu1 %v12844_v25, %s12096_s25  ;;  %v12878_v13 = vpop.f32.mrb[65].mxu0 }
 0x403   : > { %v1394_v11 = vpop.f32.mrb[66].mxu0  ;;  %v1575_v3 = vpop.f32.mrb[25].mxu1 }
 0x404   : > { %v12880_v2 = vpack.c.bf16 %v1394_v11, %v1390_v38  ;;  %v12882_v44 = vpop.f32.mrb[67].mxu0  ;;  %v10254_v48 = vpop.f32.mrb[26].mxu1 }
 0x405   : > { %v12884_v31 = vpack.c.bf16 %v10254_v48, %v10253_v35  ;;  %v1578_v34 = vpop.f32.mrb[27].mxu1 }
 0x406   : > { %16730 = vst [vmem:[#allocation55_spill] sm:$0xff] %v12880_v2  ;;  %v12886_v45 = vpack.c.bf16 %v1578_v34, %v1575_v3  ;;  %2324 = vrot.lane.b32.xlu1 %v12842_v36, %s12096_s25 }
 0x407   : > { %16731 = vst [vmem:[#allocation56_spill] sm:$0xff] %v12884_v31 }
 0x408   : > { %16732 = vst [vmem:[#allocation57_spill] sm:$0xff] %v12886_v45 }
 0x409   : > { %v1400_v30 = vpop.f32.mrb[68].mxu0 }
 0x40a   : > { %v12890_v27 = vpop.f32.mrb[69].mxu0 }
 0x40b   : > { %v1404_v29 = vpop.f32.mrb[70].mxu0 }
 0x40c   : > { %v12892_v46 = vpack.c.bf16 %v1404_v29, %v1400_v30  ;;  %v12894_v33 = vpop.f32.mrb[71].mxu0 }
 0x40e   : > { %16733 = vst [vmem:[#allocation58_spill] sm:$0xff] %v12892_v46 }
 0x411   : > { %v1410_v38 = vpop.f32.mrb[72].mxu0 }
 0x412   : > { %v12896_v11 = vpop.f32.mrb[73].mxu0  ;;  %v10257_v6 = vpop.f32.mrb[28].mxu1 }
 0x413   : > { %v1414_v35 = vpop.f32.mrb[74].mxu0  ;;  %v1591_v48 = vpop.f32.mrb[29].mxu1 }
 0x414   : > { %v12898_v7 = vpack.c.bf16 %v1414_v35, %v1410_v38  ;;  %v12900_v34 = vpop.f32.mrb[75].mxu0  ;;  %v10258_v3 = vpop.f32.mrb[30].mxu1 }
 0x415   : > { %v12902_v8 = vpack.c.bf16 %v10258_v3, %v10257_v6  ;;  %v1594_v14 = vpop.f32.mrb[31].mxu1 }
 0x416   : > { %16734 = vst [vmem:[#allocation59_spill] sm:$0xff] %v12898_v7  ;;  %v12904_v16 = vpack.c.bf16 %v1594_v14, %v1591_v48 }
 0x417   : > { %16735 = vst [vmem:[#allocation60_spill] sm:$0xff] %v12902_v8 }
 0x418   : > { %16736 = vst [vmem:[#allocation61_spill] sm:$0xff] %v12904_v16 }
 0x419   : > { %v1420_v29 = vpop.f32.mrb[76].mxu0 }
 0x41a   : > { %v12906_v30 = vpop.f32.mrb[77].mxu0  ;;  %v10261_v56 = vpop.f32.mrb[32].mxu1 }
 0x41b   : > { %v1424_v59 = vpop.f32.mrb[78].mxu0  ;;  %v1607_v1 = vpop.f32.mrb[33].mxu1 }
 0x41c   : > { %v12908_v52 = vpack.c.bf16 %v1424_v59, %v1420_v29  ;;  %v12910_v4 = vpop.f32.mrb[79].mxu0  ;;  %v10262_v38 = vpop.f32.mrb[34].mxu1 }
 0x41d   : > { %v12912_v35 = vpack.c.bf16 %v10262_v38, %v10261_v56  ;;  %v1610_v47 = vpop.f32.mrb[35].mxu1 }
 0x41e   : > { %16737 = vst [vmem:[#allocation62_spill] sm:$0xff] %v12908_v52  ;;  %v12914_v40 = vpack.c.bf16 %v1610_v47, %v1607_v1 }
 0x41f   : > { %16738 = vst [vmem:[#allocation63_spill] sm:$0xff] %v12912_v35 }
 0x420   : > { %16739 = vst [vmem:[#allocation64_spill] sm:$0xff] %v12914_v40 }
 0x421   : > { %v1430_v6 = vpop.f32.mrb[80].mxu0 }
 0x422   : > { %v1432_v3 = vpop.f32.mrb[81].mxu0  ;;  %v10265_v14 = vpop.f32.mrb[36].mxu1 }
 0x423   : > { %v10736_v48 = vpack.i.bf16 %v12836_v12, %v1432_v3  ;;  %v1434_v10 = vpop.f32.mrb[82].mxu0  ;;  %v1623_v60 = vpop.f32.mrb[37].mxu1 }
 0x424   : > { %v12917_v37 = vpack.c.bf16 %v1434_v10, %v1430_v6  ;;  %v1436_v49 = vpop.f32.mrb[83].mxu0  ;;  %v10266_v59 = vpop.f32.mrb[38].mxu1 }
 0x425   : > { %v10738_v29 = vpack.i.bf16 %v12840_v18, %v1436_v49  ;;  %v12920_v61 = vpack.c.bf16 %v10266_v59, %v10265_v14  ;;  %v1626_v56 = vpop.f32.mrb[39].mxu1  ;;  %10737 = vxpose.xlu0.b32.start [1/16] %v10736_v48, 128 }
 0x426   : > { %16740 = vst [vmem:[#allocation65_spill] sm:$0xff] %v12917_v37  ;;  %v12922_v38 = vpack.c.bf16 %v1626_v56, %v1623_v60 }
 0x427   : > { %16741 = vst [vmem:[#allocation66_spill] sm:$0xff] %v12920_v61 }
 0x428   : > { %16742 = vst [vmem:[#allocation67_spill] sm:$0xff] %v12922_v38  ;;  %2342 = vrot.lane.b32.xlu1 %v12922_v38, %s12096_s25 }
 0x429   : > { %10739 = vxpose.xlu0.b32.cont [2/16] %v10738_v29, 128  ;;  %v1440_v47 = vpop.f32.mrb[84].mxu0 }
 0x42a   : > { %v1442_v1 = vpop.f32.mrb[85].mxu0  ;;  %v10269_v12 = vpop.f32.mrb[40].mxu1 }
 0x42b   : > { %v10740_v10 = vpack.i.bf16 %v12848_v54, %v1442_v1  ;;  %v1444_v6 = vpop.f32.mrb[86].mxu0  ;;  %v1639_v3 = vpop.f32.mrb[41].mxu1 }
 0x42c   : > { %v12927_v58 = vpack.c.bf16 %v1444_v6, %v1440_v47  ;;  %2328 = vrot.lane.b32.xlu1 %v12862_v15, %s12096_s25  ;;  %v1446_v49 = vpop.f32.mrb[87].mxu0  ;;  %v10270_v18 = vpop.f32.mrb[42].mxu1 }
 0x42d   : > { %v10742_v60 = vpack.i.bf16 %v12852_v24, %v1446_v49  ;;  %v12932_v14 = vpack.c.bf16 %v10270_v18, %v10269_v12  ;;  %v1642_v48 = vpop.f32.mrb[43].mxu1  ;;  %10741 = vxpose.xlu0.b32.cont [3/16] %v10740_v10, 128 }
 0x42e   : > { %16743 = vst [vmem:[#allocation68_spill] sm:$0xff] %v12927_v58  ;;  %v12934_v59 = vpack.c.bf16 %v1642_v48, %v1639_v3 }
 0x42f   : > { %16744 = vst [vmem:[#allocation69_spill] sm:$0xff] %v12932_v14 }
 0x430   : > { %16745 = vst [vmem:[#allocation70_spill] sm:$0xff] %v12934_v59  ;;  %2346 = vrot.lane.b32.xlu1 %v12934_v59, %s12096_s25 }
 0x431   : > { %10743 = vxpose.xlu0.b32.cont [4/16] %v10742_v60, 128  ;;  %v1450_v54 = vpop.f32.mrb[88].mxu0 }
 0x432   : > { %v1452_v29 = vpop.f32.mrb[89].mxu0  ;;  %v10273_v56 = vpop.f32.mrb[44].mxu1 }
 0x433   : > { %v10744_v47 = vpack.i.bf16 %v12856_v62, %v1452_v29  ;;  %v1454_v1 = vpop.f32.mrb[90].mxu0  ;;  %v1655_v6 = vpop.f32.mrb[45].mxu1 }
 0x434   : > { %v12939_v57 = vpack.c.bf16 %v1454_v1, %v1450_v54  ;;  %v1456_v24 = vpop.f32.mrb[91].mxu0  ;;  %v10274_v12 = vpop.f32.mrb[46].mxu1 }
 0x435   : > { %v10746_v49 = vpack.i.bf16 %v12860_v5, %v1456_v24  ;;  %v12942_v10 = vpack.c.bf16 %v10274_v12, %v10273_v56  ;;  %v1658_v3 = vpop.f32.mrb[47].mxu1  ;;  %10745 = vxpose.xlu0.b32.cont [5/16] %v10744_v47, 128 }
 0x436   : > { %16746 = vst [vmem:[#allocation71_spill] sm:$0xff] %v12939_v57  ;;  %v12944_v18 = vpack.c.bf16 %v1658_v3, %v1655_v6 }
 0x437   : > { %16747 = vst [vmem:[#allocation72_spill] sm:$0xff] %v12942_v10 }
 0x438   : > { %16748 = vst [vmem:[#allocation73_spill] sm:$0xff] %v12944_v18 }
 0x439   : > { %10747 = vxpose.xlu0.b32.cont [6/16] %v10746_v49, 128  ;;  %v1460_v60 = vpop.f32.mrb[92].mxu0 }
 0x43a   : > { %v1462_v48 = vpop.f32.mrb[93].mxu0 }
 0x43b   : > { %v10748_v63 = vpack.i.bf16 %v12868_v0, %v1462_v48  ;;  %v1464_v62 = vpop.f32.mrb[94].mxu0 }
 0x43c   : > { %v12947_v29 = vpack.c.bf16 %v1464_v62, %v1460_v60  ;;  %v1466_v54 = vpop.f32.mrb[95].mxu0 }
 0x43d   : > { %v10750_v1 = vpack.i.bf16 %v12872_v55, %v1466_v54  ;;  %10749 = vxpose.xlu0.b32.cont [7/16] %v10748_v63, 128 }
 0x43e   : > { %16749 = vst [vmem:[#allocation74_spill] sm:$0xff] %v12947_v29 }
 0x441   : > { %10751 = vxpose.xlu0.b32.cont [8/16] %v10750_v1, 128  ;;  %v1470_v5 = vpop.f32.mrb[96].mxu0 }
 0x442   : > { %v1472_v56 = vpop.f32.mrb[97].mxu0 }
 0x443   : > { %v10752_v24 = vpack.i.bf16 %v12878_v13, %v1472_v56  ;;  %v1474_v47 = vpop.f32.mrb[98].mxu0 }
 0x444   : > { %v12951_v6 = vpack.c.bf16 %v1474_v47, %v1470_v5  ;;  %v1476_v12 = vpop.f32.mrb[99].mxu0 }
 0x445   : > { %v10754_v49 = vpack.i.bf16 %v12882_v44, %v1476_v12  ;;  %10753 = vxpose.xlu0.b32.cont [9/16] %v10752_v24, 128 }
 0x446   : > { %16750 = vst [vmem:[#allocation75_spill] sm:$0xff] %v12951_v6 }
 0x449   : > { %10755 = vxpose.xlu0.b32.cont [10/16] %v10754_v49, 128  ;;  %v1480_v0 = vpop.f32.mrb[100].mxu0 }
 0x44a   : > { %v1482_v3 = vpop.f32.mrb[101].mxu0 }
 0x44b   : > { %v10756_v60 = vpack.i.bf16 %v12890_v27, %v1482_v3  ;;  %v1484_v48 = vpop.f32.mrb[102].mxu0 }
 0x44c   : > { %v12955_v55 = vpack.c.bf16 %v1484_v48, %v1480_v0  ;;  %v1486_v63 = vpop.f32.mrb[103].mxu0 }
 0x44d   : > { %v10758_v62 = vpack.i.bf16 %v12894_v33, %v1486_v63  ;;  %10757 = vxpose.xlu0.b32.cont [11/16] %v10756_v60, 128 }
 0x44e   : > { %16751 = vst [vmem:[#allocation76_spill] sm:$0xff] %v12955_v55 }
 0x451   : > { %10759 = vxpose.xlu0.b32.cont [12/16] %v10758_v62, 128  ;;  %v1490_v13 = vpop.f32.mrb[104].mxu0 }
 0x452   : > { %v1492_v54 = vpop.f32.mrb[105].mxu0 }
 0x453   : > { %v10760_v1 = vpack.i.bf16 %v12896_v11, %v1492_v54  ;;  %v1494_v5 = vpop.f32.mrb[106].mxu0 }
 0x454   : > { %v12959_v44 = vpack.c.bf16 %v1494_v5, %v1490_v13  ;;  %v1496_v56 = vpop.f32.mrb[107].mxu0 }
 0x455   : > { %v10762_v24 = vpack.i.bf16 %v12900_v34, %v1496_v56  ;;  %10761 = vxpose.xlu0.b32.cont [13/16] %v10760_v1, 128 }
 0x456   : > { %16752 = vst [vmem:[#allocation77_spill] sm:$0xff] %v12959_v44 }
 0x459   : > { %10763 = vxpose.xlu0.b32.cont [14/16] %v10762_v24, 128  ;;  %v1500_v27 = vpop.f32.mrb[108].mxu0 }
 0x45a   : > { %v1502_v47 = vpop.f32.mrb[109].mxu0 }
 0x45b   : > { %v10764_v12 = vpack.i.bf16 %v12906_v30, %v1502_v47  ;;  %v1504_v49 = vpop.f32.mrb[110].mxu0 }
 0x45c   : > { %v12963_v33 = vpack.c.bf16 %v1504_v49, %v1500_v27  ;;  %v1506_v0 = vpop.f32.mrb[111].mxu0 }
 0x45d   : > { %v10766_v3 = vpack.i.bf16 %v12910_v4, %v1506_v0  ;;  %10765 = vxpose.xlu0.b32.cont [15/16] %v10764_v12, 128 }
 0x45e   : > { %16753 = vst [vmem:[#allocation78_spill] sm:$0xff] %v12963_v33 }
 0x461   : > { %10767 = vxpose.xlu0.b32.end [16/16] %v10766_v3, 128 }
 0x48a   : > { %2338 = vrot.lane.b32.xlu0 %v12914_v40, %s12096_s25 }
 0x48e   : > { %2340 = vrot.lane.b32.xlu0 %v12912_v35, %s12096_s25 }
 0x492   : > { %2326 = vrot.lane.b32.xlu0 %v12864_v28, %s12096_s25 }
 0x496   : > { %2344 = vrot.lane.b32.xlu0 %v12920_v61, %s12096_s25 }
 0x49a   : > { %2330 = vrot.lane.b32.xlu0 %v12886_v45, %s12096_s25 }
 0x4a5   : > { %v10768_v11 = vpop.trf.xlu0 }
 0x4a6   : > { %v10772_v34 = vunpack.i.h.bf16 %v10768_v11  ;;  %v10769_v4 = vunpack.i.l.bf16 %v10768_v11 }
 0x4a9   : > { %v10773_v30 = vpop.trf.xlu0 }
 0x4aa   : > { %v10777_v60 = vunpack.i.h.bf16 %v10773_v30  ;;  %v10774_v48 = vunpack.i.l.bf16 %v10773_v30 }
 0x4ac   : > { %v12976_v63 = vpack.c.bf16 %v10774_v48, %v10769_v4  ;;  %v12978_v62 = vpack.c.bf16 %v10777_v60, %v10772_v34  ;;  %v16758_v4 = vmov 0  }
 0x4ad   : > { %v10778_v13 = vpop.trf.xlu0 }
 0x4ae   : > { %16754 = vst [vmem:[#allocation79_spill] sm:$0xff] %v12976_v63  ;;  %16755 = vst [vmem:[#allocation80_spill] sm:$0xff] %v12978_v62  ;;  %1811 = vmatprep.subr.bf16.mxu1 %v12976_v63  ;;  %v10782_v54 = vunpack.i.h.bf16 %v10778_v13  ;;  %v10779_v1 = vunpack.i.l.bf16 %v10778_v13 }
 0x4af   : > { %1812 = vmatpush1.bf16.msra.mxu1 %v12978_v62 }
 0x4b1   : > { %v10783_v5 = vpop.trf.xlu0 }
 0x4b2   : > { %v10787_v56 = vunpack.i.h.bf16 %v10783_v5  ;;  %v10784_v24 = vunpack.i.l.bf16 %v10783_v5 }
 0x4b4   : > { %v12982_v27 = vpack.c.bf16 %v10784_v24, %v10779_v1  ;;  %v12984_v47 = vpack.c.bf16 %v10787_v56, %v10782_v54 }
 0x4b5   : > { %v10788_v12 = vpop.trf.xlu0 }
 0x4b6   : > { %16756 = vst [vmem:[#allocation81_spill] sm:$0xff] %v12982_v27  ;;  %16757 = vst [vmem:[#allocation82_spill] sm:$0xff] %v12984_v47  ;;  %1813 = vmatprep.subr.bf16.mxu1 %v12982_v27  ;;  %v10792_v49 = vunpack.i.h.bf16 %v10788_v12  ;;  %v10789_v0 = vunpack.i.l.bf16 %v10788_v12 }
 0x4b7   : > { %1814 = vmatpush1.bf16.msra.mxu1 %v12984_v47 }
 0x4b8   : > { %9371 = vmatprep.subr.bf16.mxu1 %v12914_v40 }
 0x4b9   : > { %v10793_v3 = vpop.trf.xlu0 }
 0x4ba   : > { %v10797_v11 = vunpack.i.h.bf16 %v10793_v3  ;;  %v10794_v34 = vunpack.i.l.bf16 %v10793_v3  ;;  %9146 = vmatmul.mubr.msk.bf16.vlgmr.msra.gmra.mrb[48].mxu1 %vm1798_vm0, %v12838_v50 }
 0x4bb   : > { %9372 = vmatpush3.bf16.msra.mxu1 %v12844_v25  ;;  %1853 = vmatprep.mubr.bf16.mxu1 %v16758_v4 }
 0x4bc   : > { %9373 = vmatprep.subr.bf16.mxu1 %v12912_v35  ;;  %v12994_v30 = vpack.c.bf16 %v10794_v34, %v10789_v0  ;;  %v12996_v60 = vpack.c.bf16 %v10797_v11, %v10792_v49  ;;  %v2086_v0 = vpop.permute.xlu1 %2085 }
 0x4bd   : > { %v10798_v48 = vpop.trf.xlu0 }
 0x4be   : > { %16759 = vst [vmem:[#allocation83_spill] sm:$0xff] %v12994_v30  ;;  %16760 = vst [vmem:[#allocation84_spill] sm:$0xff] %v12996_v60  ;;  %2105 = vmatprep.subr.bf16.mxu0 %v12994_v30  ;;  %v10802_v13 = vunpack.i.h.bf16 %v10798_v48  ;;  %v10799_v54 = vunpack.i.l.bf16 %v10798_v48 }
 0x4bf   : > { %9374 = vmatpush3.bf16.msra.mxu1 %v12842_v36  ;;  %2106 = vmatpush1.bf16.msra.mxu0 %v12996_v60 }
 0x4c0   : > { %9375 = vmatprep.subr.bf16.mxu1 %v12922_v38  ;;  %v2088_v34 = vpop.permute.xlu1 %2087 }
 0x4c1   : > { %v10803_v1 = vpop.trf.xlu0 }
 0x4c2   : > { %v10807_v5 = vunpack.i.h.bf16 %v10803_v1  ;;  %v10804_v56 = vunpack.i.l.bf16 %v10803_v1  ;;  %9147 = vmatmul.mubr.msk.bf16.gmra.mrb[52].mxu1 %vm1798_vm0, %v12850_v21 }
 0x4c3   : > { %9376 = vmatpush3.bf16.msra.mxu1 %v12864_v28  ;;  %1863 = vmatprep.mubr.bf16.mxu1 %v16758_v4 }
 0x4c4   : > { %9377 = vmatprep.subr.bf16.mxu1 %v12920_v61  ;;  %v13007_v24 = vpack.c.bf16 %v10804_v56, %v10799_v54  ;;  %v13009_v12 = vpack.c.bf16 %v10807_v5, %v10802_v13  ;;  %v2090_v54 = vpop.permute.xlu1 %2089 }
 0x4c5   : > { %v13011_v49 = vpop.trf.xlu0 }
 0x4c6   : > { %16761 = vst [vmem:[#allocation85_spill] sm:$0xff] %v13007_v24  ;;  %16762 = vst [vmem:[#allocation86_spill] sm:$0xff] %v13009_v12  ;;  %2107 = vmatprep.subr.bf16.mxu0 %v13007_v24 }
 0x4c7   : > { %16763 = vst [vmem:[#allocation87_spill] sm:$0xff] %v13011_v49  ;;  %9378 = vmatpush3.bf16.msra.mxu1 %v12862_v15  ;;  %2108 = vmatpush1.bf16.msra.mxu0 %v13009_v12 }
 0x4c8   : > { %9379 = vmatprep.subr.bf16.mxu1 %v12934_v59  ;;  %v2092_v56 = vpop.permute.xlu1 %2091 }
 0x4c9   : > { %v13017_v3 = vpop.trf.xlu0 }
 0x4ca   : > { %16764 = vst [vmem:[#allocation88_spill] sm:$0xff] %v13017_v3  ;;  %9148 = vmatmul.mubr.msk.bf16.gmra.mrb[56].mxu1 %vm1798_vm0, %v12858_v9  ;;  %9150 = vmatmul.mubr.msk.bf16.vlgmr.msra.gmra.mrb[112].mxu0 %vm1798_vm0, %v2086_v0 }
 0x4cb   : > { %9380 = vmatpush3.bf16.msra.mxu1 %v12886_v45  ;;  %1873 = vmatprep.mubr.bf16.mxu1 %v16758_v4 }
 0x4cc   : > { %9381 = vmatprep.subr.bf16.mxu1 %v12932_v14  ;;  %2147 = vmatprep.mubr.bf16.mxu0 %v16758_v4 }
 0x4cd   : > { %v13026_v11 = vpop.trf.xlu0 }
 0x4ce   : > { %16765 = vst [vmem:[#allocation89_spill] sm:$0xff] %v13026_v11 }
 0x4cf   : > { %9382 = vmatpush3.bf16.msra.mxu1 %v12884_v31 }
 0x4d0   : > { %9383 = vmatprep.subr.bf16.mxu1 %v12944_v18 }
 0x4d1   : > { %v13030_v48 = vpop.trf.xlu0 }
 0x4d2   : > { %16766 = vst [vmem:[#allocation90_spill] sm:$0xff] %v13030_v48  ;;  %9149 = vmatmul.mubr.msk.bf16.gmra.mrb[60].mxu1 %vm1798_vm0, %v12870_v32  ;;  %9151 = vmatmul.mubr.msk.bf16.gmra.mrb[116].mxu0 %vm1798_vm0, %v2088_v34 }
 0x4d3   : > { %9384 = vmatpush3.bf16.msra.mxu1 %v12904_v16  ;;  %2157 = vmatprep.mubr.bf16.mxu0 %v16758_v4 }
 0x4d4   : > { %9385 = vmatprep.subr.bf16.mxu1 %v12942_v10 }
 0x4d5   : > { %v13038_v13 = vpop.trf.xlu0 }
 0x4d6   : > { %16767 = vst [vmem:[#allocation91_spill] sm:$0xff] %v13038_v13 }
 0x4d7   : > { %9386 = vmatpush3.bf16.msra.mxu1 %v12902_v8 }
 0x4d9   : > { %v13041_v1 = vpop.trf.xlu0 }
 0x4da   : > { %16768 = vst [vmem:[#allocation92_spill] sm:$0xff] %v13041_v1  ;;  %9152 = vmatmul.mubr.msk.bf16.gmra.mrb[120].mxu0 %vm1798_vm0, %v2090_v54 }
 0x4db   : > { %2167 = vmatprep.mubr.bf16.mxu0 %v16758_v4 }
 0x4dd   : > { %v13045_v5 = vpop.trf.xlu0 }
 0x4de   : > { %16769 = vst [vmem:[#allocation93_spill] sm:$0xff] %v13045_v5 }
 0x4e1   : > { %v13047_v0 = vpop.trf.xlu0 }
 0x4e2   : > { %16770 = vst [vmem:[#allocation94_spill] sm:$0xff] %v13047_v0  ;;  %9153 = vmatmul.mubr.msk.bf16.gmra.mrb[124].mxu0 %vm1798_vm0, %v2092_v56 }
 0x4fc   : > { %v13050_v34 = vpop.permute.xlu0 %2338 }
 0x4fd   : > { %16771 = vst [vmem:[#allocation95_spill] sm:$0xff] %v13050_v34  ;;  %9411 = vmatprep.subr.bf16.mxu1 %v13050_v34 }
 0x58d   : > { %v13053_v51 = vpop.f32.mrb[48].mxu1 }
 0x58e   : > { %v13055_v20 = vpop.f32.mrb[49].mxu1 }
 0x58f   : > { %v13057_v17 = vpop.f32.mrb[50].mxu1  ;;  %v1884_v54 = vmax.f32 %v13053_v51, %v13055_v20 }
 0x590   : > { %v13061_v53 = vpop.f32.mrb[51].mxu1 }
 0x591   : > { %1885 = vmax.xlane.f32.xlu1 %v1884_v54  ;;  %v1887_v43 = vmax.f32 %v13057_v17, %v13061_v53 }
 0x593   : > { %1888 = vmax.xlane.f32.xlu0 %v1887_v43 }
 0x595   : > { %v13065_v56 = vpop.f32.mrb[52].mxu1 }
 0x596   : > { %v13067_v42 = vpop.f32.mrb[53].mxu1 }
 0x597   : > { %v13069_v39 = vpop.f32.mrb[54].mxu1  ;;  %v1890_v41 = vmax.f32 %v13065_v56, %v13067_v42 }
 0x598   : > { %v13073_v26 = vpop.f32.mrb[55].mxu1 }
 0x599   : > { %v1893_v23 = vmax.f32 %v13069_v39, %v13073_v26 }
 0x59d   : > { %v13077_v19 = vpop.f32.mrb[56].mxu1  ;;  %v13079_v54 = vpop.f32.mrb[112].mxu0 }
 0x59e   : > { %v13081_v22 = vpop.f32.mrb[57].mxu1  ;;  %v13083_v43 = vpop.f32.mrb[113].mxu0 }
 0x59f   : > { %v13085_v33 = vpop.f32.mrb[58].mxu1  ;;  %v13087_v44 = vpop.f32.mrb[114].mxu0  ;;  %v1896_v6 = vmax.f32 %v13077_v19, %v13081_v22  ;;  %v2178_v55 = vmax.f32 %v13079_v54, %v13083_v43 }
 0x5a0   : > { %v13093_v29 = vpop.f32.mrb[59].mxu1  ;;  %v13095_v57 = vpop.f32.mrb[115].mxu0 }
 0x5a1   : > { %v1899_v37 = vmax.f32 %v13085_v33, %v13093_v29  ;;  %v2181_v58 = vmax.f32 %v13087_v44, %v13095_v57 }
 0x5a2   : > { %2332 = vrot.lane.b32.xlu1 %v12884_v31, %s12096_s25 }
 0x5a5   : > { %v13103_v12 = vpop.f32.mrb[60].mxu1  ;;  %v13105_v24 = vpop.f32.mrb[116].mxu0 }
 0x5a6   : > { %v13107_v60 = vpop.f32.mrb[61].mxu1  ;;  %v13109_v30 = vpop.f32.mrb[117].mxu0 }
 0x5a7   : > { %v13111_v47 = vpop.f32.mrb[62].mxu1  ;;  %v13113_v27 = vpop.f32.mrb[118].mxu0  ;;  %v2184_v62 = vmax.f32 %v13105_v24, %v13109_v30  ;;  %v1902_v34 = vmax.f32 %v13103_v12, %v13107_v60 }
 0x5a8   : > { %v13119_v52 = vpop.f32.mrb[63].mxu1  ;;  %v13121_v7 = vpop.f32.mrb[119].mxu0 }
 0x5a9   : > { %2348 = vrot.lane.b32.xlu0 %v12932_v14, %s12096_s25  ;;  %v1905_v46 = vmax.f32 %v13111_v47, %v13119_v52  ;;  %v2187_v2 = vmax.f32 %v13113_v27, %v13121_v7 }
 0x5ad   : > { %v13129_v63 = vpop.f32.mrb[120].mxu0 }
 0x5ae   : > { %v13131_v0 = vpop.f32.mrb[121].mxu0 }
 0x5af   : > { %v13133_v5 = vpop.f32.mrb[122].mxu0  ;;  %v2190_v31 = vmax.f32 %v13129_v63, %v13131_v0 }
 0x5b0   : > { %v13137_v1 = vpop.f32.mrb[123].mxu0 }
 0x5b1   : > { %v2193_v14 = vmax.f32 %v13133_v5, %v13137_v1 }
 0x5b5   : > { %v13141_v13 = vpop.f32.mrb[124].mxu0 }
 0x5b6   : > { %v13143_v4 = vpop.f32.mrb[125].mxu0 }
 0x5b7   : > { %v13145_v48 = vpop.f32.mrb[126].mxu0  ;;  %v2196_v11 = vmax.f32 %v13141_v13, %v13143_v4 }
 0x5b8   : > { %v13149_v3 = vpop.f32.mrb[127].mxu0 }
 0x5b9   : > { %v2199_v49 = vmax.f32 %v13145_v48, %v13149_v3 }
 0x5c6   : > { %1891 = vmax.xlane.f32.xlu1 %v1890_v41  ;;  %v13157_v41 = vpop.permute.xlu1 %2322 }
 0x5c8   : > { %2185 = vmax.xlane.f32.xlu0 %v2184_v62 }
 0x5ca   : > { %1894 = vmax.xlane.f32.xlu1 %v1893_v23  ;;  %v13159_v23 = vpop.permute.xlu1 %2324 }
 0x5cc   : > { %2191 = vmax.xlane.f32.xlu0 %v2190_v31  ;;  %v13161_v31 = vpop.permute.xlu0 %2340 }
 0x5ce   : > { %1897 = vmax.xlane.f32.xlu1 %v1896_v6  ;;  %v13163_v6 = vpop.permute.xlu1 %2342 }
 0x5cf   : > { %16772 = vst [vmem:[#allocation96_spill] sm:$0xff] %v13163_v6 }
 0x5d0   : > { %2197 = vmax.xlane.f32.xlu0 %v2196_v11 }
 0x5d2   : > { %2179 = vmax.xlane.f32.xlu1 %v2178_v55 }
 0x5d6   : > { %1900 = vmax.xlane.f32.xlu1 %v1899_v37 }
 0x5da   : > { %2182 = vmax.xlane.f32.xlu1 %v2181_v58  ;;  %v13165_v58 = vpop.permute.xlu0 %2326 }
 0x5db   : > { %16773 = vst [vmem:[#allocation97_spill] sm:$0xff] %v13165_v58 }
 0x5de   : > { %1903 = vmax.xlane.f32.xlu1 %v1902_v34  ;;  %v13169_v37 = vpop.permute.xlu0 %2344 }
 0x5df   : > { %16775 = vst [vmem:[#allocation99_spill] sm:$0xff] %v13169_v37 }
 0x5e2   : > { %1906 = vmax.xlane.f32.xlu1 %v1905_v46  ;;  %v13167_v46 = vpop.permute.xlu1 %2328 }
 0x5e3   : > { %16774 = vst [vmem:[#allocation98_spill] sm:$0xff] %v13167_v46 }
 0x5e6   : > { %2334 = vrot.lane.b32.xlu0 %v12904_v16, %s12096_s25  ;;  %2188 = vmax.xlane.f32.xlu1 %v2187_v2  ;;  %v13171_v2 = vpop.permute.xlu1 %2346 }
 0x5e7   : > { %16776 = vst [vmem:[#allocation100_spill] sm:$0xff] %v13171_v2 }
 0x5ea   : > { %2194 = vmax.xlane.f32.xlu1 %v2193_v14  ;;  %v13173_v14 = vpop.permute.xlu0 %2330 }
 0x5eb   : > { %16777 = vst [vmem:[#allocation101_spill] sm:$0xff] %v13173_v14 }
 0x5ee   : > { %2200 = vmax.xlane.f32.xlu1 %v2199_v49 }
 0x5ff   : > { %2350 = vrot.lane.b32.xlu1 %v12944_v18, %s12096_s25 }
 0x61e   : > { %v1886_v55 = vpop.xlane.xlu1 %1885 }
 0x61f   : > { %v1908_v62 = vsub.f32 %v13053_v51, %v1886_v55  ;;  %v1909_v49 = vsub.f32 %v13055_v20, %v1886_v55 }
 0x620   : > { %v1889_v11 = vpop.xlane.xlu0 %1888 }
 0x621   : > { %v1924_v34 = vmul.f32 1.442695, %v1908_v62  ;;  %v1926_v16 = vmul.f32 1.442695, %v1909_v49  ;;  %v1910_v18 = vsub.f32 %v13057_v17, %v1889_v11  ;;  %v1911_v58 = vsub.f32 %v13061_v53, %v1889_v11 }
 0x622   : > { %v13191_v53 = vpop.permute.xlu1 %2332 }
 0x623   : > { %10912 = vpow2.f32 %v1924_v34  ;;  %v1928_v46 = vmul.f32 1.442695, %v1910_v18  ;;  %v1930_v6 = vmul.f32 1.442695, %v1911_v58  ;;  %16778 = vst [vmem:[#allocation102_spill] sm:$0xff] %v13191_v53 }
 0x624   : > { %10914 = vpow2.f32 %v1926_v16  ;;  %v13195_v49 = vpop.permute.xlu0 %2348 }
 0x625   : > { %10916 = vpow2.f32 %v1928_v46  ;;  %16779 = vst [vmem:[#allocation103_spill] sm:$0xff] %v13195_v49 }
 0x626   : > { %10918 = vpow2.f32 %v1930_v6 }
 0x62d   : > { %v13179_v2 = vpop.eup %10912 }
 0x62e   : > { %v13181_v14 = vpop.eup %10914 }
 0x62f   : > { %v13183_v51 = vpop.eup %10916  ;;  %v1956_v20 = vadd.f32 %v13181_v14, %v13179_v2 }
 0x630   : > { %v13187_v55 = vpop.eup %10918 }
 0x631   : > { %1957 = vadd.xlane.f32.xlu0 %v1956_v20  ;;  %v1959_v17 = vadd.f32 %v13187_v55, %v13183_v51 }
 0x633   : > { %1960 = vadd.xlane.f32.xlu1 %v1959_v17 }
 0x653   : > { %v1892_v16 = vpop.xlane.xlu1 %1891 }
 0x654   : > { %v1912_v18 = vsub.f32 %v13065_v56, %v1892_v16  ;;  %v1913_v6 = vsub.f32 %v13067_v42, %v1892_v16 }
 0x655   : > { %v2186_v53 = vpop.xlane.xlu0 %2185 }
 0x656   : > { %v1932_v58 = vmul.f32 1.442695, %v1912_v18  ;;  %v1934_v46 = vmul.f32 1.442695, %v1913_v6  ;;  %v2206_v18 = vsub.f32 %v13105_v24, %v2186_v53 }
 0x657   : > { %v1895_v62 = vpop.xlane.xlu1 %1894 }
 0x658   : > { %10920 = vpow2.f32 %v1932_v58  ;;  %v1914_v11 = vsub.f32 %v13069_v39, %v1895_v62  ;;  %v1915_v34 = vsub.f32 %v13073_v26, %v1895_v62  ;;  %v2207_v62 = vsub.f32 %v13109_v30, %v2186_v53 }
 0x659   : > { %10922 = vpow2.f32 %v1934_v46 }
 0x65a   : > { %v1936_v20 = vmul.f32 1.442695, %v1914_v11  ;;  %v1938_v17 = vmul.f32 1.442695, %v1915_v34  ;;  %v2226_v34 = vmul.f32 1.442695, %v2206_v18  ;;  %v2192_v18 = vpop.xlane.xlu0 %2191 }
 0x65b   : > { %v1898_v37 = vpop.xlane.xlu1 %1897 }
 0x65c   : > { %10924 = vpow2.f32 %v1936_v20  ;;  %v1916_v56 = vsub.f32 %v13077_v19, %v1898_v37  ;;  %v1917_v42 = vsub.f32 %v13081_v22, %v1898_v37 }
 0x65d   : > { %10926 = vpow2.f32 %v1938_v17  ;;  %v2228_v17 = vmul.f32 1.442695, %v2207_v62 }
 0x65e   : > { %v1940_v16 = vmul.f32 1.442695, %v1916_v56  ;;  %v1942_v6 = vmul.f32 1.442695, %v1917_v42 }
 0x65f   : > { %v2180_v58 = vpop.xlane.xlu1 %2179 }
 0x660   : > { %10928 = vpow2.f32 %v1940_v16  ;;  %v2202_v39 = vsub.f32 %v13079_v54, %v2180_v58  ;;  %v2203_v26 = vsub.f32 %v13083_v43, %v2180_v58 }
 0x661   : > { %10930 = vpow2.f32 %v1942_v6 }
 0x662   : > { %v13204_v46 = vpop.eup %10920  ;;  %v2218_v11 = vmul.f32 1.442695, %v2202_v39  ;;  %v2220_v22 = vmul.f32 1.442695, %v2203_v26 }
 0x663   : > { %v13207_v19 = vpop.eup %10922  ;;  %v1901_v37 = vpop.xlane.xlu1 %1900 }
 0x664   : > { %10932 = vpow2.f32 %v2218_v11  ;;  %v1918_v24 = vsub.f32 %v13085_v33, %v1901_v37  ;;  %v1919_v20 = vsub.f32 %v13093_v29, %v1901_v37  ;;  %v1962_v54 = vadd.f32 %v13207_v19, %v13204_v46 }
 0x665   : > { %10934 = vpow2.f32 %v2220_v22  ;;  %v2210_v22 = vsub.f32 %v13129_v63, %v2192_v18 }
 0x666   : > { %v13213_v43 = vpop.eup %10924  ;;  %v1944_v56 = vmul.f32 1.442695, %v1918_v24  ;;  %v1946_v30 = vmul.f32 1.442695, %v1919_v20  ;;  %1963 = vadd.xlane.f32.xlu0 %v1962_v54  ;;  %10936 = vpow2.f32 %v2226_v34  ;;  %v2211_v54 = vsub.f32 %v13131_v0, %v2192_v18 }
 0x667   : > { %v13215_v53 = vpop.eup %10926  ;;  %v2183_v42 = vpop.xlane.xlu1 %2182 }
 0x668   : > { %10938 = vpow2.f32 %v1944_v56  ;;  %v2204_v16 = vsub.f32 %v13087_v44, %v2183_v42  ;;  %v2205_v33 = vsub.f32 %v13095_v57, %v2183_v42  ;;  %v1965_v29 = vadd.f32 %v13215_v53, %v13213_v43 }
 0x669   : > { %10940 = vpow2.f32 %v1946_v30 }
 0x66a   : > { %v13221_v6 = vpop.eup %10928  ;;  %10942 = vpow2.f32 %v2228_v17  ;;  %v2222_v58 = vmul.f32 1.442695, %v2204_v16  ;;  %v2224_v39 = vmul.f32 1.442695, %v2205_v33  ;;  %1966 = vadd.xlane.f32.xlu1 %v1965_v29  ;;  %v2198_v17 = vpop.xlane.xlu0 %2197  ;;  %v2234_v16 = vmul.f32 1.442695, %v2210_v22 }
 0x66b   : > { %v13223_v26 = vpop.eup %10930  ;;  %v1904_v62 = vpop.xlane.xlu1 %1903  ;;  %v2214_v33 = vsub.f32 %v13141_v13, %v2198_v17 }
 0x66c   : > { %10944 = vpow2.f32 %v2222_v58  ;;  %v1920_v11 = vsub.f32 %v13103_v12, %v1904_v62  ;;  %v1921_v44 = vsub.f32 %v13107_v60, %v1904_v62  ;;  %v1968_v57 = vadd.f32 %v13223_v26, %v13221_v6 }
 0x66d   : > { %10946 = vpow2.f32 %v2224_v39  ;;  %v2236_v58 = vmul.f32 1.442695, %v2211_v54 }
 0x66e   : > { %v13229_v34 = vpop.eup %10932  ;;  %v1948_v37 = vmul.f32 1.442695, %v1920_v11  ;;  %v1950_v24 = vmul.f32 1.442695, %v1921_v44  ;;  %1969 = vadd.xlane.f32.xlu0 %v1968_v57  ;;  %v2242_v57 = vmul.f32 1.442695, %v2214_v33 }
 0x66f   : > { %v13232_v20 = vpop.eup %10934  ;;  %v1907_v56 = vpop.xlane.xlu1 %1906 }
 0x670   : > { %10948 = vpow2.f32 %v1948_v37  ;;  %v1922_v60 = vsub.f32 %v13111_v47, %v1907_v56  ;;  %v1923_v12 = vsub.f32 %v13119_v52, %v1907_v56  ;;  %v2250_v30 = vadd.f32 %v13232_v20, %v13229_v34  ;;  %v13239_v42 = vpop.eup %10936 }
 0x671   : > { %10950 = vpow2.f32 %v1950_v24  ;;  %v2215_v47 = vsub.f32 %v13143_v4, %v2198_v17 }
 0x672   : > { %v13241_v63 = vpop.eup %10938  ;;  %v1952_v29 = vmul.f32 1.442695, %v1922_v60  ;;  %v1954_v0 = vmul.f32 1.442695, %v1923_v12  ;;  %2251 = vadd.xlane.f32.xlu1 %v2250_v30 }
 0x673   : > { %v13244_v18 = vpop.eup %10940  ;;  %v2189_v52 = vpop.xlane.xlu1 %2188  ;;  %v2244_v24 = vmul.f32 1.442695, %v2215_v47 }
 0x674   : > { %v13247_v39 = vpop.eup %10942  ;;  %10952 = vpow2.f32 %v1952_v29  ;;  %v2208_v62 = vsub.f32 %v13113_v27, %v2189_v52  ;;  %v2209_v11 = vsub.f32 %v13121_v7, %v2189_v52  ;;  %v1971_v44 = vadd.f32 %v13244_v18, %v13241_v63 }
 0x675   : > { %10954 = vpow2.f32 %v1954_v0  ;;  %v2256_v27 = vadd.f32 %v13247_v39, %v13239_v42 }
 0x676   : > { %v13253_v13 = vpop.eup %10944  ;;  %10956 = vpow2.f32 %v2234_v16  ;;  %v2230_v22 = vmul.f32 1.442695, %v2208_v62  ;;  %v2232_v37 = vmul.f32 1.442695, %v2209_v11  ;;  %1972 = vadd.xlane.f32.xlu1 %v1971_v44 }
 0x677   : > { %v13255_v4 = vpop.eup %10946  ;;  %10958 = vpow2.f32 %v2236_v58  ;;  %v2195_v54 = vpop.xlane.xlu1 %2194 }
 0x678   : > { %10960 = vpow2.f32 %v2230_v22  ;;  %v2212_v7 = vsub.f32 %v13133_v5, %v2195_v54  ;;  %v2213_v17 = vsub.f32 %v13137_v1, %v2195_v54  ;;  %v2253_v56 = vadd.f32 %v13255_v4, %v13253_v13 }
 0x679   : > { %10962 = vpow2.f32 %v2232_v37 }
 0x67a   : > { %v13263_v60 = vpop.eup %10948  ;;  %10964 = vpow2.f32 %v2242_v57  ;;  %v2238_v12 = vmul.f32 1.442695, %v2212_v7  ;;  %v2240_v30 = vmul.f32 1.442695, %v2213_v17  ;;  %2254 = vadd.xlane.f32.xlu0 %v2253_v56  ;;  %2257 = vadd.xlane.f32.xlu1 %v2256_v27 }
 0x67b   : > { %v13265_v16 = vpop.eup %10950  ;;  %10966 = vpow2.f32 %v2244_v24  ;;  %v2201_v33 = vpop.xlane.xlu1 %2200 }
 0x67c   : > { %10968 = vpow2.f32 %v2238_v12  ;;  %v2216_v5 = vsub.f32 %v13145_v48, %v2201_v33  ;;  %v2217_v1 = vsub.f32 %v13149_v3, %v2201_v33  ;;  %v1974_v29 = vadd.f32 %v13265_v16, %v13263_v60  ;;  %v13335_v33 = vpop.permute.xlu0 %2334 }
 0x67d   : > { %10970 = vpow2.f32 %v2240_v30  ;;  %16780 = vst [vmem:[#allocation104_spill] sm:$0xff] %v13335_v33 }
 0x67e   : > { %v13271_v0 = vpop.eup %10952  ;;  %v2246_v58 = vmul.f32 1.442695, %v2216_v5  ;;  %v2248_v47 = vmul.f32 1.442695, %v2217_v1  ;;  %1975 = vadd.xlane.f32.xlu0 %v1974_v29 }
 0x67f   : > { %v13273_v52 = vpop.eup %10954  ;;  %v13337_v5 = vpop.permute.xlu1 %2350 }
 0x680   : > { %v13275_v62 = vpop.eup %10956  ;;  %10972 = vpow2.f32 %v2246_v58  ;;  %v1977_v11 = vadd.f32 %v13273_v52, %v13271_v0  ;;  %16781 = vst [vmem:[#allocation105_spill] sm:$0xff] %v13337_v5 }
 0x681   : > { %v13279_v48 = vpop.eup %10958  ;;  %10974 = vpow2.f32 %v2248_v47 }
 0x682   : > { %v13281_v3 = vpop.eup %10960  ;;  %1978 = vadd.xlane.f32.xlu1 %v1977_v11  ;;  %v2262_v22 = vadd.f32 %v13279_v48, %v13275_v62 }
 0x683   : > { %v13283_v44 = vpop.eup %10962 }
 0x684   : > { %v13285_v57 = vpop.eup %10964  ;;  %v2259_v37 = vadd.f32 %v13283_v44, %v13281_v3 }
 0x685   : > { %v13291_v24 = vpop.eup %10966 }
 0x686   : > { %v13293_v54 = vpop.eup %10968  ;;  %2263 = vadd.xlane.f32.xlu1 %v2262_v22  ;;  %2260 = vadd.xlane.f32.xlu0 %v2259_v37  ;;  %v2268_v7 = vadd.f32 %v13291_v24, %v13285_v57 }
 0x687   : > { %v13295_v27 = vpop.eup %10970 }
 0x688   : > { %v2265_v17 = vadd.f32 %v13295_v27, %v13293_v54 }
 0x68a   : > { %v13301_v56 = vpop.eup %10972  ;;  %2269 = vadd.xlane.f32.xlu1 %v2268_v7  ;;  %2266 = vadd.xlane.f32.xlu0 %v2265_v17 }
 0x68b   : > { %v13303_v12 = vpop.eup %10974 }
 0x68c   : > { %v2271_v30 = vadd.f32 %v13303_v12, %v13301_v56 }
 0x68e   : > { %2272 = vadd.xlane.f32.xlu0 %v2271_v30 }
 0x69b   : > { %2336 = vrot.lane.b32.xlu1 %v12902_v8, %s12096_s25 }
 0x69f   : > { %2617 = vrot.lane.b32.xlu1 %v12838_v50, %s12097_s23 }
 0x6a3   : > { %2621 = vrot.lane.b32.xlu1 %v12858_v9, %s12097_s23 }
 0x6a4   : > { %2352 = vrot.lane.b32.xlu0 %v12942_v10, %s12096_s25 }
 0x6a7   : > { %2838 = vrot.lane.b32.xlu1 %v12844_v25, %s12097_s23 }
 0x6a8   : > { %2619 = vrot.lane.b32.xlu0 %v12850_v21, %s12097_s23 }
 0x6ab   : > { %2840 = vrot.lane.b32.xlu1 %v12842_v36, %s12097_s23 }
 0x6ac   : > { %2623 = vrot.lane.b32.xlu0 %v12870_v32, %s12097_s23 }
 0x6af   : > { %2858 = vrot.lane.b32.xlu1 %v12922_v38, %s12097_s23 }
 0x6b0   : > { %2854 = vrot.lane.b32.xlu0 %v12914_v40, %s12097_s23 }
 0x6b3   : > { %2844 = vrot.lane.b32.xlu1 %v12862_v15, %s12097_s23 }
 0x6b4   : > { %2856 = vrot.lane.b32.xlu0 %v12912_v35, %s12097_s23 }
 0x6b7   : > { %2862 = vrot.lane.b32.xlu1 %v12934_v59, %s12097_s23 }
 0x6b8   : > { %2842 = vrot.lane.b32.xlu0 %v12864_v28, %s12097_s23 }
 0x6bc   : > { %2860 = vrot.lane.b32.xlu0 %v12920_v61, %s12097_s23 }
 0x6be   : > { %v1958_v1 = vpop.xlane.xlu0 %1957 }
 0x6bf   : > { %10976 = vrcp.f32 %v1958_v1  ;;  %v16782_v1 = vld [vmem:[#allocation96_spill] sm:$0xff] }
 0x6c0   : > { %2846 = vrot.lane.b32.xlu0 %v12886_v45, %s12097_s23  ;;  %v1961_v29 = vpop.xlane.xlu1 %1960 }
 0x6c1   : > { %10978 = vrcp.f32 %v1961_v29  ;;  %v16783_v29 = vld [vmem:[#allocation97_spill] sm:$0xff] }
 0x6c9   : > { %v10977_v58 = vpop.eup %10976 }
 0x6ca   : > { %v1988_v11 = vmul.f32 %v10977_v58, %v13179_v2  ;;  %v1989_v37 = vmul.f32 %v10977_v58, %v13181_v14  ;;  %v16784_v2 = vld [vmem:[#allocation99_spill] sm:$0xff]  ;;  %v16786_v14 = vld [vmem:[#allocation100_spill] sm:$0xff]  ;;  %v16788_v58 = vld [vmem:[#allocation102_spill] sm:$0xff] }
 0x6cb   : > { %v10979_v47 = vpop.eup %10978 }
 0x6cc   : > { %v1990_v22 = vmul.f32 %v10979_v47, %v13183_v51  ;;  %v1991_v7 = vmul.f32 %v10979_v47, %v13187_v55  ;;  %v16785_v51 = vld [vmem:[#allocation98_spill] sm:$0xff]  ;;  %v16787_v55 = vld [vmem:[#allocation101_spill] sm:$0xff] }
 0x6ce   : > { %v2005_v17 = vpack.c.bf16 %v1991_v7, %v1989_v37  ;;  %v2004_v30 = vpack.c.bf16 %v1990_v22, %v1988_v11 }
 0x6d0   : > { %2044 = vmatprep.mubr.bf16.mxu1 %v2005_v17 }
 0x6d1   : > { %2045 = vmatmul.mubr.bf16.vlgmr.msra.gmra.mrb[64].mxu1 %v2004_v30 }
 0x6d2   : > { %9412 = vmatpush3.bf16.msra.mxu1 %v13157_v41 }
 0x6d3   : > { %9413 = vmatprep.subr.bf16.mxu1 %v13161_v31 }
 0x6d6   : > { %9414 = vmatpush3.bf16.msra.mxu1 %v13159_v23 }
 0x6d7   : > { %9415 = vmatprep.subr.bf16.mxu1 %v16782_v1 }
 0x6da   : > { %9416 = vmatpush3.bf16.msra.mxu1 %v16783_v29 }
 0x6db   : > { %9417 = vmatprep.subr.bf16.mxu1 %v16784_v2 }
 0x6de   : > { %9418 = vmatpush3.bf16.msra.mxu1 %v16785_v51 }
 0x6df   : > { %9419 = vmatprep.subr.bf16.mxu1 %v16786_v14 }
 0x6e2   : > { %9420 = vmatpush3.bf16.msra.mxu1 %v16787_v55 }
 0x6e3   : > { %9421 = vmatprep.subr.bf16.mxu1 %v13195_v49 }
 0x6e6   : > { %9422 = vmatpush3.bf16.msra.mxu1 %v16788_v58 }
 0x6e7   : > { %9423 = vmatprep.subr.bf16.mxu1 %v13337_v5 }
 0x6ea   : > { %9424 = vmatpush3.bf16.msra.mxu1 %v13335_v33 }
 0x6f3   : > { %v1964_v47 = vpop.xlane.xlu0 %1963 }
 0x6f4   : > { %10980 = vrcp.f32 %v1964_v47 }
 0x6f7   : > { %v1967_v11 = vpop.xlane.xlu1 %1966 }
 0x6f8   : > { %10982 = vrcp.f32 %v1967_v11 }
 0x6fb   : > { %v1970_v22 = vpop.xlane.xlu0 %1969 }
 0x6fc   : > { %10984 = vrcp.f32 %v1970_v22 }
 0x6fe   : > { %v10981_v7 = vpop.eup %10980 }
 0x6ff   : > { %v2252_v37 = vpop.xlane.xlu1 %2251  ;;  %v1993_v55 = vmul.f32 %v10981_v7, %v13207_v19  ;;  %v1992_v58 = vmul.f32 %v10981_v7, %v13204_v46 }
 0x702   : > { %v10983_v17 = vpop.eup %10982 }
 0x703   : > { %v1973_v30 = vpop.xlane.xlu1 %1972  ;;  %v1995_v49 = vmul.f32 %v10983_v17, %v13215_v53  ;;  %v1994_v5 = vmul.f32 %v10983_v17, %v13213_v43 }
 0x704   : > { %10986 = vrcp.f32 %v1973_v30 }
 0x705   : > { %v2007_v33 = vpack.c.bf16 %v1995_v49, %v1993_v55  ;;  %v2006_v14 = vpack.c.bf16 %v1994_v5, %v1992_v58  ;;  %10988 = vrcp.f32 %v2252_v37 }
 0x706   : > { %v10985_v2 = vpop.eup %10984 }
 0x707   : > { %v2255_v47 = vpop.xlane.xlu0 %2254  ;;  %2052 = vmatprep.mubr.bf16.mxu1 %v2007_v33  ;;  %v2258_v11 = vpop.xlane.xlu1 %2257  ;;  %v1997_v53 = vmul.f32 %v10985_v2, %v13223_v26  ;;  %v1996_v43 = vmul.f32 %v10985_v2, %v13221_v6 }
 0x708   : > { %2053 = vmatmul.mubr.bf16.gmra.mrb[68].mxu1 %v2006_v14  ;;  %10990 = vrcp.f32 %v2255_v47 }
 0x70b   : > { %v1976_v51 = vpop.xlane.xlu0 %1975 }
 0x70c   : > { %10992 = vrcp.f32 %v1976_v51 }
 0x70e   : > { %v10987_v22 = vpop.eup %10986 }
 0x70f   : > { %v1979_v19 = vpop.xlane.xlu1 %1978  ;;  %v1999_v46 = vmul.f32 %v10987_v22, %v13244_v18  ;;  %v1998_v49 = vmul.f32 %v10987_v22, %v13241_v63  ;;  %v10989_v58 = vpop.eup %10988  ;;  %v16789_v22 = vld [vmem:[#allocation87_spill] sm:$0xff] }
 0x710   : > { %10994 = vrcp.f32 %v1979_v19  ;;  %v10809_v19 = vunpack.i.l.bf16 %v16789_v22 }
 0x711   : > { %v2009_v5 = vpack.c.bf16 %v1999_v46, %v1997_v53  ;;  %v2008_v33 = vpack.c.bf16 %v1998_v49, %v1996_v43  ;;  %v16790_v53 = vld [vmem:[#allocation88_spill] sm:$0xff] }
 0x712   : > { %v10991_v37 = vpop.eup %10990  ;;  %v10814_v46 = vunpack.i.l.bf16 %v16790_v53 }
 0x713   : > { %v2261_v14 = vpop.xlane.xlu0 %2260  ;;  %2060 = vmatprep.mubr.bf16.mxu1 %v2009_v5  ;;  %v2264_v55 = vpop.xlane.xlu1 %2263  ;;  %v2285_v18 = vmul.f32 %v10991_v37, %v13255_v4 }
 0x714   : > { %2061 = vmatmul.mubr.bf16.gmra.mrb[72].mxu1 %v2008_v33  ;;  %10996 = vrcp.f32 %v2261_v14  ;;  %v10812_v33 = vunpack.i.h.bf16 %v16789_v22  ;;  %v10817_v14 = vunpack.i.h.bf16 %v16790_v53 }
 0x715   : > { %10998 = vrcp.f32 %v2258_v11  ;;  %v2283_v11 = vmul.f32 %v10989_v58, %v13232_v20  ;;  %v2284_v20 = vmul.f32 %v10991_v37, %v13253_v13 }
 0x716   : > { %v10993_v7 = vpop.eup %10992 }
 0x717   : > { %v2267_v51 = vpop.xlane.xlu0 %2266  ;;  %v2270_v17 = vpop.xlane.xlu1 %2269  ;;  %v2001_v63 = vmul.f32 %v10993_v7, %v13265_v16  ;;  %v2000_v30 = vmul.f32 %v10993_v7, %v13263_v60  ;;  %v2299_v4 = vpack.c.bf16 %v2285_v18, %v2283_v11  ;;  %v13381_v60 = vpack.c.bf16 %v10814_v46, %v10809_v19  ;;  %v16792_v7 = vld [vmem:[#allocation89_spill] sm:$0xff]  ;;  %v16793_v18 = vld [vmem:[#allocation90_spill] sm:$0xff] }
 0x718   : > { %11000 = vrcp.f32 %v2267_v51  ;;  %v10822_v13 = vunpack.i.h.bf16 %v16792_v7  ;;  %v10827_v37 = vunpack.i.h.bf16 %v16793_v18  ;;  %v13397_v19 = vpack.c.bf16 %v10817_v14, %v10812_v33 }
 0x719   : > { %11002 = vrcp.f32 %v2264_v55  ;;  %16791 = vst [vmem:[#allocation96_spill] sm:$0xff] %v13381_v60 }
 0x71a   : > { %v10995_v26 = vpop.eup %10994  ;;  %16794 = vst [vmem:[#allocation97_spill] sm:$0xff] %v13397_v19 }
 0x71b   : > { %v2273_v6 = vpop.xlane.xlu0 %2272  ;;  %v2003_v2 = vmul.f32 %v10995_v26, %v13273_v52  ;;  %v2002_v47 = vmul.f32 %v10995_v26, %v13271_v0  ;;  %v13378_v52 = vpop.permute.xlu1 %2336  ;;  %v10819_v26 = vunpack.i.l.bf16 %v16792_v7 }
 0x71c   : > { %11004 = vrcp.f32 %v2273_v6  ;;  %v13406_v6 = vpack.c.bf16 %v10827_v37, %v10822_v13  ;;  %v10897_v13 = vld [vmem:[#allocation10 + $0x18] sm:$0xff]   ;;  %v10898_v37 = vld [vmem:[#allocation10] sm:$0xff]  }
 0x71d   : > { %v2011_v43 = vpack.c.bf16 %v2003_v2, %v2001_v63  ;;  %v2010_v49 = vpack.c.bf16 %v2002_v47, %v2000_v30  ;;  %v10824_v63 = vunpack.i.l.bf16 %v16793_v18  ;;  %v2282_v2 = vmul.f32 %v10989_v58, %v13229_v34 }
 0x71e   : > { %v10997_v16 = vpop.eup %10996  ;;  %11006 = vrcp.f32 %v2270_v17  ;;  %16797 = vst [vmem:[#allocation89_spill] sm:$0xff] %v13406_v6 }
 0x71f   : > { %v13376_v5 = vpop.permute.xlu0 %2352  ;;  %2068 = vmatprep.mubr.bf16.mxu1 %v2011_v43  ;;  %v10999_v0 = vpop.eup %10998  ;;  %v2289_v51 = vmul.f32 %v10997_v16, %v13283_v44  ;;  %v2298_v47 = vpack.c.bf16 %v2284_v20, %v2282_v2  ;;  %v13399_v46 = vpack.c.bf16 %v10824_v63, %v10819_v26 }
 0x720   : > { %2069 = vmatmul.mubr.bf16.gmra.mrb[76].mxu1 %v2010_v49  ;;  %9425 = vmatprep.subr.bf16.mxu1 %v13376_v5  ;;  %v2287_v30 = vmul.f32 %v10999_v0, %v13247_v39  ;;  %v2288_v39 = vmul.f32 %v10997_v16, %v13281_v3  ;;  %v2286_v49 = vmul.f32 %v10999_v0, %v13239_v42  ;;  %v2618_v33 = vpop.permute.xlu1 %2617 }
 0x721   : > { %9426 = vmatpush3.bf16.msra.mxu1 %v13378_v52  ;;  %2402 = vmatprep.mubr.bf16.mxu1 %v2299_v4  ;;  %16795 = vst [vmem:[#allocation87_spill] sm:$0xff] %v13399_v46 }
 0x722   : > { %2637 = vmatprep.subr.bf16.mxu1 %v13381_v60  ;;  %v2301_v53 = vpack.c.bf16 %v2289_v51, %v2287_v30  ;;  %v11001_v44 = vpop.eup %11000  ;;  %v2300_v11 = vpack.c.bf16 %v2288_v39, %v2286_v49 }
 0x723   : > { %v2620_v55 = vpop.permute.xlu0 %2619  ;;  %v11003_v34 = vpop.eup %11002  ;;  %v2293_v43 = vmul.f32 %v11001_v44, %v13295_v27  ;;  %v2292_v16 = vmul.f32 %v11001_v44, %v13293_v54  ;;  %v16799_v54 = vmov 0  }
 0x724   : > { %v2291_v17 = vmul.f32 %v11003_v34, %v13279_v48  ;;  %v2290_v27 = vmul.f32 %v11003_v34, %v13275_v62  ;;  %v2622_v51 = vpop.permute.xlu1 %2621 }
 0x726   : > { %v2303_v4 = vpack.c.bf16 %v2293_v43, %v2291_v17  ;;  %v11005_v20 = vpop.eup %11004  ;;  %v2302_v0 = vpack.c.bf16 %v2292_v16, %v2290_v27 }
 0x727   : > { %v13395_v22 = vpop.permute.xlu0 %2623  ;;  %v2297_v14 = vmul.f32 %v11005_v20, %v13303_v12  ;;  %v2296_v7 = vmul.f32 %v11005_v20, %v13301_v56 }
 0x728   : > { %2403 = vmatmul.mubr.bf16.vlgmr.msra.gmra.mrb[80].mxu1 %v2298_v47  ;;  %v11007_v3 = vpop.eup %11006  ;;  %v13419_v18 = vpop.permute.xlu1 %2838 }
 0x729   : > { %2638 = vmatpush1.bf16.msra.mxu1 %v13397_v19  ;;  %2410 = vmatprep.mubr.bf16.mxu1 %v2301_v53  ;;  %v2295_v42 = vmul.f32 %v11007_v3, %v13291_v24  ;;  %v2294_v26 = vmul.f32 %v11007_v3, %v13285_v57  ;;  %16798 = vst [vmem:[#allocation90_spill] sm:$0xff] %v13419_v18 }
 0x72a   : > { %2639 = vmatprep.subr.bf16.mxu1 %v13399_v46 }
 0x72b   : > { %v13404_v58 = vpop.permute.xlu0 %2854  ;;  %v2305_v48 = vpack.c.bf16 %v2297_v14, %v2295_v42  ;;  %v2304_v63 = vpack.c.bf16 %v2296_v7, %v2294_v26 }
 0x72c   : > { %16796 = vst [vmem:[#allocation88_spill] sm:$0xff] %v13404_v58  ;;  %v13422_v12 = vpop.permute.xlu1 %2840 }
 0x72d   : > { %2640 = vmatpush1.bf16.msra.mxu1 %v13406_v6  ;;  %16800 = vst [vmem:[#allocation106_spill] sm:$0xff] %v13422_v12 }
 0x72e   : > { %9463 = vmatprep.subr.bf16.mxu1 %v13404_v58 }
 0x72f   : > { %v13424_v62 = vpop.permute.xlu0 %2856 }
 0x730   : > { %2411 = vmatmul.mubr.bf16.gmra.mrb[84].mxu1 %v2300_v11  ;;  %16801 = vst [vmem:[#allocation107_spill] sm:$0xff] %v13424_v62  ;;  %v13427_v24 = vpop.permute.xlu1 %2858 }
 0x731   : > { %2418 = vmatprep.mubr.bf16.mxu1 %v2303_v4  ;;  %16802 = vst [vmem:[#allocation108_spill] sm:$0xff] %v13427_v24 }
 0x733   : > { %v13432_v57 = vpop.permute.xlu0 %2842 }
 0x734   : > { %16803 = vst [vmem:[#allocation109_spill] sm:$0xff] %v13432_v57  ;;  %v13436_v56 = vpop.permute.xlu1 %2844 }
 0x735   : > { %16804 = vst [vmem:[#allocation110_spill] sm:$0xff] %v13436_v56 }
 0x737   : > { %v13439_v2 = vpop.permute.xlu0 %2860 }
 0x738   : > { %2419 = vmatmul.mubr.bf16.gmra.mrb[88].mxu1 %v2302_v0  ;;  %16805 = vst [vmem:[#allocation111_spill] sm:$0xff] %v13439_v2  ;;  %v13444_v30 = vpop.permute.xlu1 %2862 }
 0x739   : > { %2426 = vmatprep.mubr.bf16.mxu1 %v2305_v48  ;;  %16806 = vst [vmem:[#allocation112_spill] sm:$0xff] %v13444_v30 }
 0x73b   : > { %v13448_v47 = vpop.permute.xlu0 %2846 }
 0x73c   : > { %16807 = vst [vmem:[#allocation113_spill] sm:$0xff] %v13448_v47 }
 0x740   : > { %2427 = vmatmul.mubr.bf16.gmra.mrb[92].mxu1 %v2304_v63 }
 0x741   : > { %2669 = vmatprep.mubr.bf16.mxu1 %v16799_v54 }
 0x748   : > { %9166 = vmatmul.mubr.msk.bf16.vlgmr.msra.gmra.mrb[96].mxu1 %vm1798_vm0, %v2618_v33 }
 0x749   : > { %9464 = vmatpush3.bf16.msra.mxu1 %v13419_v18  ;;  %2679 = vmatprep.mubr.bf16.mxu1 %v16799_v54 }
 0x74a   : > { %9465 = vmatprep.subr.bf16.mxu1 %v13424_v62 }
 0x74d   : > { %9466 = vmatpush3.bf16.msra.mxu1 %v13422_v12 }
 0x74e   : > { %9467 = vmatprep.subr.bf16.mxu1 %v13427_v24 }
 0x750   : > { %9167 = vmatmul.mubr.msk.bf16.gmra.mrb[100].mxu1 %vm1798_vm0, %v2620_v55  ;;  %v10896_v55 = vld [vmem:[#allocation10 + $0x10] sm:$0xff]  }
 0x751   : > { %9468 = vmatpush3.bf16.msra.mxu1 %v13432_v57  ;;  %2689 = vmatprep.mubr.bf16.mxu1 %v16799_v54 }
 0x752   : > { %9469 = vmatprep.subr.bf16.mxu1 %v13439_v2  ;;  %10275 = vmatprep.subr.bf16.mxu0 %v10896_v55 }
 0x753   : > { %10276 = vmatpush3.bf16.msra.mxu0 %v10896_v55 }
 0x754   : > { %10277 = vmatprep.subr.bf16.mxu0 %v10897_v13 }
 0x755   : > { %9470 = vmatpush3.bf16.msra.mxu1 %v13436_v56 }
 0x756   : > { %9471 = vmatprep.subr.bf16.mxu1 %v13444_v30 }
 0x757   : > { %10278 = vmatpush3.bf16.msra.mxu0 %v10897_v13 }
 0x758   : > { %9168 = vmatmul.mubr.msk.bf16.gmra.mrb[104].mxu1 %vm1798_vm0, %v2622_v51  ;;  %10287 = vmatprep.subr.bf16.mxu0 %v10898_v37 }
 0x759   : > { %9472 = vmatpush3.bf16.msra.mxu1 %v13448_v47  ;;  %2699 = vmatprep.mubr.bf16.mxu1 %v16799_v54  ;;  %v16814_v47 = vld [vmem:[#allocation61_spill] sm:$0xff] }
 0x760   : > { %9169 = vmatmul.mubr.msk.bf16.gmra.mrb[108].mxu1 %vm1798_vm0, %v13395_v22 }
 0x7a4   : > { %v9387_v53 = vpop.f32.mrb[64].mxu1 }
 0x7a5   : > { %v9388_v44 = vpop.f32.mrb[65].mxu1 }
 0x7a6   : > { %v13455_v34 = vadd.f32 %v9388_v44, %v9387_v53  ;;  %v9390_v39 = vpop.f32.mrb[66].mxu1 }
 0x7a7   : > { %v9391_v43 = vpop.f32.mrb[67].mxu1 }
 0x7a8   : > { %v13457_v49 = vadd.f32 %v9391_v43, %v9390_v39 }
 0x7aa   : > { %v2077_v17 = vpack.c.bf16 %v13457_v49, %v13455_v34 }
 0x7db   : > { %v9393_v22 = vpop.f32.mrb[68].mxu1 }
 0x7dc   : > { %v9394_v11 = vpop.f32.mrb[69].mxu1 }
 0x7dd   : > { %v13461_v4 = vadd.f32 %v9394_v11, %v9393_v22  ;;  %v9396_v20 = vpop.f32.mrb[70].mxu1 }
 0x7de   : > { %v9397_v33 = vpop.f32.mrb[71].mxu1 }
 0x7df   : > { %v13463_v3 = vadd.f32 %v9397_v33, %v9396_v20 }
 0x7e1   : > { %v2078_v16 = vpack.c.bf16 %v13463_v3, %v13461_v4 }
 0x7e7   : > { %v9399_v14 = vpop.f32.mrb[72].mxu1 }
 0x7e8   : > { %v9400_v27 = vpop.f32.mrb[73].mxu1 }
 0x7e9   : > { %v13467_v42 = vadd.f32 %v9400_v27, %v9399_v14  ;;  %v9402_v0 = vpop.f32.mrb[74].mxu1 }
 0x7ea   : > { %v9403_v51 = vpop.f32.mrb[75].mxu1 }
 0x7eb   : > { %v13469_v48 = vadd.f32 %v9403_v51, %v9402_v0 }
 0x7ed   : > { %v2079_v7 = vpack.c.bf16 %v13469_v48, %v13467_v42 }
 0x7f3   : > { %v9405_v26 = vpop.f32.mrb[76].mxu1 }
 0x7f4   : > { %v9406_v63 = vpop.f32.mrb[77].mxu1 }
 0x7f5   : > { %v13473_v55 = vadd.f32 %v9406_v63, %v9405_v26  ;;  %v9408_v13 = vpop.f32.mrb[78].mxu1  ;;  %v10899_v63 = vld [vmem:[#allocation10 + $0x8] sm:$0xff]  }
 0x7f6   : > { %v9409_v53 = vpop.f32.mrb[79].mxu1 }
 0x7f7   : > { %v13475_v44 = vadd.f32 %v9409_v53, %v9408_v13 }
 0x7f9   : > { %v2080_v34 = vpack.c.bf16 %v13475_v44, %v13473_v55 }
 0x7fb   : > { %v9427_v39 = vpop.f32.mrb[80].mxu1 }
 0x7fc   : > { %v9428_v43 = vpop.f32.mrb[81].mxu1 }
 0x7fd   : > { %v9429_v49 = vadd.f32 %v9428_v43, %v9427_v39  ;;  %v9430_v22 = vpop.f32.mrb[82].mxu1 }
 0x7fe   : > { %v9431_v11 = vpop.f32.mrb[83].mxu1 }
 0x7ff   : > { %v9432_v20 = vadd.f32 %v9431_v11, %v9430_v22  ;;  %v10900_v22 = vld [vmem:[#allocation10 + $0x20] sm:$0xff]  }
 0x801   : > { %v2435_v33 = vpack.c.bf16 %v9432_v20, %v9429_v49 }
 0x803   : > { %v9433_v14 = vpop.f32.mrb[84].mxu1  ;;  %10279 = vmatprep.mubr.msk.bf16.mxu0 %vm1798_vm0, %v2435_v33 }
 0x804   : > { %v9434_v27 = vpop.f32.mrb[85].mxu1 }
 0x805   : > { %v9435_v42 = vadd.f32 %v9434_v27, %v9433_v14  ;;  %v9436_v0 = vpop.f32.mrb[86].mxu1 }
 0x806   : > { %v9437_v51 = vpop.f32.mrb[87].mxu1 }
 0x807   : > { %v9438_v48 = vadd.f32 %v9437_v51, %v9436_v0 }
 0x809   : > { %v2436_v26 = vpack.c.bf16 %v9438_v48, %v9435_v42 }
 0x80b   : > { %v9439_v13 = vpop.f32.mrb[88].mxu1  ;;  %10280 = vmatmul.mubr.msk.bf16.vlgmr.msra.gmra.mrb[128].mxu0 %vm1798_vm0, %v2436_v26 }
 0x80c   : > { %v9440_v53 = vpop.f32.mrb[89].mxu1  ;;  %10288 = vmatpush3.bf16.msra.mxu0 %v10898_v37 }
 0x80d   : > { %v9441_v39 = vadd.f32 %v9440_v53, %v9439_v13  ;;  %v9442_v43 = vpop.f32.mrb[90].mxu1  ;;  %10289 = vmatprep.subr.bf16.mxu0 %v10899_v63 }
 0x80e   : > { %v9443_v49 = vpop.f32.mrb[91].mxu1 }
 0x80f   : > { %v9444_v11 = vadd.f32 %v9443_v49, %v9442_v43  ;;  %v10901_v43 = vld [vmem:[#allocation10 + $0x28] sm:$0xff]   ;;  %v16808_v49 = vld [vmem:[#allocation91_spill] sm:$0xff] }
 0x810   : > { %10290 = vmatpush3.bf16.msra.mxu0 %v10899_v63 }
 0x811   : > { %v2437_v20 = vpack.c.bf16 %v9444_v11, %v9441_v39  ;;  %10299 = vmatprep.subr.bf16.mxu0 %v10900_v22  ;;  %v10829_v11 = vunpack.i.l.bf16 %v16808_v49 }
 0x813   : > { %v9445_v33 = vpop.f32.mrb[92].mxu1  ;;  %10283 = vmatprep.mubr.msk.bf16.mxu0 %vm1798_vm0, %v2437_v20  ;;  %v16809_v20 = vld [vmem:[#allocation92_spill] sm:$0xff] }
 0x814   : > { %v9446_v14 = vpop.f32.mrb[93].mxu1 }
 0x815   : > { %v9447_v27 = vadd.f32 %v9446_v14, %v9445_v33  ;;  %v9448_v42 = vpop.f32.mrb[94].mxu1  ;;  %v10834_v33 = vunpack.i.l.bf16 %v16809_v20 }
 0x816   : > { %v9449_v0 = vpop.f32.mrb[95].mxu1 }
 0x817   : > { %v9450_v51 = vadd.f32 %v9449_v0, %v9448_v42 }
 0x819   : > { %v2438_v48 = vpack.c.bf16 %v9450_v51, %v9447_v27  ;;  %v13495_v51 = vpack.c.bf16 %v10834_v33, %v10829_v11 }
 0x81b   : > { %10284 = vmatmul.mubr.msk.bf16.gmra.mrb[132].mxu0 %vm1798_vm0, %v2438_v48  ;;  %v2671_v37 = vpop.f32.mrb[96].mxu1  ;;  %16810 = vst [vmem:[#allocation91_spill] sm:$0xff] %v13495_v51 }
 0x81c   : > { %10291 = vmatprep.mubr.msk.bf16.mxu0 %vm1798_vm0, %v2077_v17  ;;  %v2673_v26 = vpop.f32.mrb[97].mxu1 }
 0x81d   : > { %v2675_v13 = vpop.f32.mrb[98].mxu1  ;;  %v2710_v53 = vmax.f32 %v2671_v37, %v2673_v26 }
 0x81e   : > { %v2677_v63 = vpop.f32.mrb[99].mxu1 }
 0x81f   : > { %2711 = vmax.xlane.f32.xlu1 %v2710_v53  ;;  %v2713_v39 = vmax.f32 %v2675_v13, %v2677_v63 }
 0x821   : > { %2714 = vmax.xlane.f32.xlu0 %v2713_v39  ;;  %v16811_v39 = vld [vmem:[#allocation56_spill] sm:$0xff] }
 0x823   : > { %10292 = vmatmul.mubr.msk.bf16.vlgmr.msra.gmra.mrb[128].mxu0 %vm1798_vm0, %v2078_v16  ;;  %v2681_v14 = vpop.f32.mrb[100].mxu1 }
 0x824   : > { %10300 = vmatpush3.bf16.msra.mxu0 %v10900_v22  ;;  %10295 = vmatprep.mubr.msk.bf16.mxu0 %vm1798_vm0, %v2079_v7  ;;  %v2683_v17 = vpop.f32.mrb[101].mxu1 }
 0x825   : > { %v13491_v27 = vpop.f32.mrb[102].mxu1  ;;  %10301 = vmatprep.subr.bf16.mxu0 %v10901_v43  ;;  %v2716_v42 = vmax.f32 %v2681_v14, %v2683_v17 }
 0x826   : > { %v13493_v0 = vpop.f32.mrb[103].mxu1 }
 0x827   : > { %2717 = vmax.xlane.f32.xlu0 %v2716_v42  ;;  %v2719_v48 = vmax.f32 %v13491_v27, %v13493_v0  ;;  %v16812_v42 = vld [vmem:[#allocation69_spill] sm:$0xff] }
 0x828   : > { %10302 = vmatpush3.bf16.msra.mxu0 %v10901_v43 }
 0x829   : > { %3072 = vmatprep.subr.bf16.mxu0 %v13495_v51  ;;  %v16813_v51 = vld [vmem:[#allocation73_spill] sm:$0xff] }
 0x82b   : > { %10296 = vmatmul.mubr.msk.bf16.gmra.mrb[132].mxu0 %vm1798_vm0, %v2080_v34  ;;  %v13504_v4 = vpop.f32.mrb[104].mxu1 }
 0x82c   : > { %v13506_v3 = vpop.f32.mrb[105].mxu1 }
 0x82d   : > { %v13508_v16 = vpop.f32.mrb[106].mxu1  ;;  %v2722_v7 = vmax.f32 %v13504_v4, %v13506_v3 }
 0x82e   : > { %v13512_v22 = vpop.f32.mrb[107].mxu1 }
 0x82f   : > { %v2725_v53 = vmax.f32 %v13508_v16, %v13512_v22 }
 0x830   : > { %2848 = vrot.lane.b32.xlu1 %v16811_v39, %s12097_s23 }
 0x833   : > { %v13518_v55 = vpop.f32.mrb[108].mxu1 }
 0x834   : > { %v13520_v44 = vpop.f32.mrb[109].mxu1 }
 0x835   : > { %v13522_v34 = vpop.f32.mrb[110].mxu1  ;;  %v2728_v43 = vmax.f32 %v13518_v55, %v13520_v44 }
 0x836   : > { %v13526_v11 = vpop.f32.mrb[111].mxu1 }
 0x837   : > { %v2731_v33 = vmax.f32 %v13522_v34, %v13526_v11 }
 0x83d   : > { %2864 = vrot.lane.b32.xlu0 %v16812_v42, %s12097_s23 }
 0x854   : > { %2720 = vmax.xlane.f32.xlu1 %v2719_v48 }
 0x858   : > { %2726 = vmax.xlane.f32.xlu1 %v2725_v53 }
 0x85c   : > { %2723 = vmax.xlane.f32.xlu0 %v2722_v7  ;;  %2732 = vmax.xlane.f32.xlu1 %v2731_v33 }
 0x860   : > { %2729 = vmax.xlane.f32.xlu0 %v2728_v43 }
 0x86d   : > { %2866 = vrot.lane.b32.xlu1 %v16813_v51, %s12097_s23 }
 0x876   : > { %2850 = vrot.lane.b32.xlu0 %v16814_v47, %s12097_s23 }
 0x8ac   : > { %v2712_v30 = vpop.xlane.xlu1 %2711 }
 0x8ad   : > { %v2734_v56 = vsub.f32 %v2671_v37, %v2712_v30  ;;  %v2735_v2 = vsub.f32 %v2673_v26, %v2712_v30 }
 0x8ae   : > { %v2715_v57 = vpop.xlane.xlu0 %2714 }
 0x8af   : > { %v2750_v24 = vmul.f32 1.442695, %v2734_v56  ;;  %v2752_v12 = vmul.f32 1.442695, %v2735_v2  ;;  %v2736_v62 = vsub.f32 %v2675_v13, %v2715_v57  ;;  %v2737_v18 = vsub.f32 %v2677_v63, %v2715_v57 }
 0x8b0   : > { %v13538_v37 = vpop.permute.xlu1 %2848 }
 0x8b1   : > { %11008 = vpow2.f32 %v2750_v24  ;;  %v2754_v48 = vmul.f32 1.442695, %v2736_v62  ;;  %v2756_v53 = vmul.f32 1.442695, %v2737_v18  ;;  %16816 = vst [vmem:[#allocation114_spill] sm:$0xff] %v13538_v37 }
 0x8b2   : > { %11010 = vpow2.f32 %v2752_v12 }
 0x8b3   : > { %11012 = vpow2.f32 %v2754_v48 }
 0x8b4   : > { %11014 = vpow2.f32 %v2756_v53  ;;  %v2718_v7 = vpop.xlane.xlu0 %2717 }
 0x8b5   : > { %v2738_v43 = vsub.f32 %v2681_v14, %v2718_v7  ;;  %v2739_v33 = vsub.f32 %v2683_v17, %v2718_v7 }
 0x8b7   : > { %v2758_v58 = vmul.f32 1.442695, %v2738_v43  ;;  %v2760_v6 = vmul.f32 1.442695, %v2739_v33 }
 0x8b8   : > { %v13536_v46 = vpop.permute.xlu0 %2864 }
 0x8b9   : > { %16815 = vst [vmem:[#allocation92_spill] sm:$0xff] %v13536_v46  ;;  %11016 = vpow2.f32 %v2758_v58  ;;  %9473 = vmatprep.subr.bf16.mxu1 %v13536_v46 }
 0x8ba   : > { %11018 = vpow2.f32 %v2760_v6  ;;  %9474 = vmatpush3.bf16.msra.mxu1 %v13538_v37 }
 0x8bb   : > { %v13542_v62 = vpop.eup %11008 }
 0x8bc   : > { %v13544_v18 = vpop.eup %11010 }
 0x8bd   : > { %v13546_v12 = vpop.eup %11012  ;;  %v2782_v24 = vadd.f32 %v13544_v18, %v13542_v62 }
 0x8be   : > { %v13550_v57 = vpop.eup %11014 }
 0x8bf   : > { %2783 = vadd.xlane.f32.xlu1 %v2782_v24  ;;  %v2785_v58 = vadd.f32 %v13550_v57, %v13546_v12 }
 0x8c1   : > { %2786 = vadd.xlane.f32.xlu0 %v2785_v58 }
 0x8c3   : > { %v13554_v56 = vpop.eup %11016 }
 0x8c4   : > { %v13556_v6 = vpop.eup %11018 }
 0x8c5   : > { %v2788_v2 = vadd.f32 %v13556_v6, %v13554_v56 }
 0x8c7   : > { %2789 = vadd.xlane.f32.xlu1 %v2788_v2 }
 0x8e1   : > { %v2721_v30 = vpop.xlane.xlu1 %2720 }
 0x8e2   : > { %v2740_v26 = vsub.f32 %v13491_v27, %v2721_v30  ;;  %v2741_v13 = vsub.f32 %v13493_v0, %v2721_v30 }
 0x8e4   : > { %v2762_v63 = vmul.f32 1.442695, %v2740_v26  ;;  %v2764_v14 = vmul.f32 1.442695, %v2741_v13 }
 0x8e5   : > { %v2727_v17 = vpop.xlane.xlu1 %2726 }
 0x8e6   : > { %11020 = vpow2.f32 %v2762_v63  ;;  %v2744_v48 = vsub.f32 %v13508_v16, %v2727_v17  ;;  %v2745_v53 = vsub.f32 %v13512_v22, %v2727_v17 }
 0x8e7   : > { %11022 = vpow2.f32 %v2764_v14 }
 0x8e8   : > { %v2770_v7 = vmul.f32 1.442695, %v2744_v48  ;;  %v2772_v43 = vmul.f32 1.442695, %v2745_v53 }
 0x8e9   : > { %v2724_v33 = vpop.xlane.xlu0 %2723  ;;  %v2733_v24 = vpop.xlane.xlu1 %2732 }
 0x8ea   : > { %11024 = vpow2.f32 %v2770_v7  ;;  %v2742_v58 = vsub.f32 %v13504_v4, %v2724_v33  ;;  %v2743_v27 = vsub.f32 %v13506_v3, %v2724_v33  ;;  %v2748_v0 = vsub.f32 %v13522_v34, %v2733_v24 }
 0x8eb   : > { %11026 = vpow2.f32 %v2772_v43  ;;  %v2749_v2 = vsub.f32 %v13526_v11, %v2733_v24 }
 0x8ec   : > { %v2766_v30 = vmul.f32 1.442695, %v2742_v58  ;;  %v2768_v26 = vmul.f32 1.442695, %v2743_v27  ;;  %v2778_v16 = vmul.f32 1.442695, %v2748_v0 }
 0x8ed   : > { %v2780_v13 = vmul.f32 1.442695, %v2749_v2  ;;  %v2730_v22 = vpop.xlane.xlu0 %2729  ;;  %v13568_v63 = vpop.permute.xlu1 %2866 }
 0x8ee   : > { %16817 = vst [vmem:[#allocation115_spill] sm:$0xff] %v13568_v63  ;;  %11028 = vpow2.f32 %v2766_v30  ;;  %v2746_v14 = vsub.f32 %v13518_v55, %v2730_v22  ;;  %v2747_v17 = vsub.f32 %v13520_v44, %v2730_v22  ;;  %9475 = vmatprep.subr.bf16.mxu1 %v13568_v63 }
 0x8ef   : > { %11030 = vpow2.f32 %v2768_v26 }
 0x8f0   : > { %v13573_v4 = vpop.eup %11020  ;;  %11032 = vpow2.f32 %v2778_v16  ;;  %v2774_v3 = vmul.f32 1.442695, %v2746_v14  ;;  %v2776_v34 = vmul.f32 1.442695, %v2747_v17 }
 0x8f1   : > { %v13575_v11 = vpop.eup %11022  ;;  %11034 = vpow2.f32 %v2780_v13  ;;  %v13577_v48 = vpop.permute.xlu0 %2850 }
 0x8f2   : > { %16818 = vst [vmem:[#allocation116_spill] sm:$0xff] %v13577_v48  ;;  %11036 = vpow2.f32 %v2774_v3  ;;  %9476 = vmatpush3.bf16.msra.mxu1 %v13577_v48  ;;  %v2791_v55 = vadd.f32 %v13575_v11, %v13573_v4 }
 0x8f3   : > { %11038 = vpow2.f32 %v2776_v34 }
 0x8f4   : > { %v13582_v44 = vpop.eup %11024  ;;  %2792 = vadd.xlane.f32.xlu0 %v2791_v55 }
 0x8f5   : > { %v13584_v53 = vpop.eup %11026 }
 0x8f6   : > { %v2797_v7 = vadd.f32 %v13584_v53, %v13582_v44 }
 0x8f8   : > { %v13588_v43 = vpop.eup %11028  ;;  %2798 = vadd.xlane.f32.xlu0 %v2797_v7 }
 0x8f9   : > { %v13590_v33 = vpop.eup %11030 }
 0x8fa   : > { %v13592_v24 = vpop.eup %11032  ;;  %v2794_v58 = vadd.f32 %v13590_v33, %v13588_v43 }
 0x8fb   : > { %v13596_v27 = vpop.eup %11034 }
 0x8fc   : > { %v13598_v0 = vpop.eup %11036  ;;  %2795 = vadd.xlane.f32.xlu1 %v2794_v58  ;;  %v2803_v2 = vadd.f32 %v13596_v27, %v13592_v24 }
 0x8fd   : > { %v13602_v30 = vpop.eup %11038 }
 0x8fe   : > { %2804 = vadd.xlane.f32.xlu0 %v2803_v2  ;;  %v2800_v26 = vadd.f32 %v13602_v30, %v13598_v0 }
 0x900   : > { %2801 = vadd.xlane.f32.xlu1 %v2800_v26 }
 0x911   : > { %2852 = vrot.lane.b32.xlu1 %v12902_v8, %s12097_s23 }
 0x914   : > { %2868 = vrot.lane.b32.xlu0 %v12942_v10, %s12097_s23 }
 0x915   : > { %3052 = vrot.lane.b32.xlu1 %v12838_v50, %s12098_s27 }
 0x918   : > { %3054 = vrot.lane.b32.xlu0 %v12850_v21, %s12098_s27 }
 0x919   : > { %3056 = vrot.lane.b32.xlu1 %v12858_v9, %s12098_s27 }
 0x91c   : > { %3058 = vrot.lane.b32.xlu0 %v12870_v32, %s12098_s27 }
 0x91d   : > { %3273 = vrot.lane.b32.xlu1 %v12844_v25, %s12098_s27 }
 0x920   : > { %3289 = vrot.lane.b32.xlu0 %v12914_v40, %s12098_s27 }
 0x921   : > { %3275 = vrot.lane.b32.xlu1 %v12842_v36, %s12098_s27 }
 0x924   : > { %3291 = vrot.lane.b32.xlu0 %v12912_v35, %s12098_s27 }
 0x925   : > { %3293 = vrot.lane.b32.xlu1 %v12922_v38, %s12098_s27 }
 0x928   : > { %3277 = vrot.lane.b32.xlu0 %v12864_v28, %s12098_s27 }
 0x929   : > { %3279 = vrot.lane.b32.xlu1 %v12862_v15, %s12098_s27 }
 0x92c   : > { %3295 = vrot.lane.b32.xlu0 %v12920_v61, %s12098_s27 }
 0x92d   : > { %3297 = vrot.lane.b32.xlu1 %v12934_v59, %s12098_s27 }
 0x930   : > { %3281 = vrot.lane.b32.xlu0 %v12886_v45, %s12098_s27 }
 0x94c   : > { %v2784_v32 = vpop.xlane.xlu1 %2783 }
 0x94d   : > { %11040 = vrcp.f32 %v2784_v32 }
 0x94e   : > { %v2787_v21 = vpop.xlane.xlu0 %2786 }
 0x94f   : > { %11042 = vrcp.f32 %v2787_v21 }
 0x954   : > { %v2790_v55 = vpop.xlane.xlu1 %2789 }
 0x957   : > { %v11041_v9 = vpop.eup %11040 }
 0x958   : > { %v2814_v16 = vmul.f32 %v11041_v9, %v13542_v62  ;;  %v2815_v22 = vmul.f32 %v11041_v9, %v13544_v18 }
 0x959   : > { %v11043_v50 = vpop.eup %11042 }
 0x95a   : > { %v2816_v13 = vmul.f32 %v11043_v50, %v13546_v12  ;;  %v2817_v14 = vmul.f32 %v11043_v50, %v13550_v57 }
 0x95c   : > { %v2831_v17 = vpack.c.bf16 %v2817_v14, %v2815_v22  ;;  %v2830_v3 = vpack.c.bf16 %v2816_v13, %v2814_v16 }
 0x95e   : > { %2918 = vmatprep.mubr.bf16.mxu1 %v2831_v17 }
 0x981   : > { %v2793_v34 = vpop.xlane.xlu0 %2792 }
 0x982   : > { %11044 = vrcp.f32 %v2793_v34 }
 0x983   : > { %11046 = vrcp.f32 %v2790_v55 }
 0x985   : > { %v2799_v7 = vpop.xlane.xlu0 %2798 }
 0x989   : > { %v2796_v58 = vpop.xlane.xlu1 %2795 }
 0x98a   : > { %11048 = vrcp.f32 %v2796_v58 }
 0x98b   : > { %v2805_v2 = vpop.xlane.xlu0 %2804  ;;  %11050 = vrcp.f32 %v2799_v7 }
 0x98c   : > { %v11045_v26 = vpop.eup %11044 }
 0x98d   : > { %v2802_v62 = vpop.xlane.xlu1 %2801  ;;  %v11047_v32 = vpop.eup %11046  ;;  %v2821_v18 = vmul.f32 %v11045_v26, %v13575_v11  ;;  %v2820_v11 = vmul.f32 %v11045_v26, %v13573_v4 }
 0x98e   : > { %v2819_v21 = vmul.f32 %v11047_v32, %v13556_v6  ;;  %11052 = vrcp.f32 %v2802_v62  ;;  %v2818_v6 = vmul.f32 %v11047_v32, %v13554_v56 }
 0x98f   : > { %v13642_v12 = vpop.permute.xlu0 %2868  ;;  %11054 = vrcp.f32 %v2805_v2 }
 0x990   : > { %16819 = vst [vmem:[#allocation117_spill] sm:$0xff] %v13642_v12  ;;  %9477 = vmatprep.subr.bf16.mxu1 %v13642_v12  ;;  %v2833_v50 = vpack.c.bf16 %v2821_v18, %v2819_v21  ;;  %v2832_v58 = vpack.c.bf16 %v2820_v11, %v2818_v6 }
 0x991   : > { %v13646_v57 = vpop.permute.xlu1 %2852 }
 0x992   : > { %16820 = vst [vmem:[#allocation118_spill] sm:$0xff] %v13646_v57  ;;  %9478 = vmatpush3.bf16.msra.mxu1 %v13646_v57 }
 0x993   : > { %v13650_v9 = vpop.permute.xlu0 %3054 }
 0x994   : > { %v11049_v16 = vpop.eup %11048 }
 0x995   : > { %2919 = vmatmul.mubr.bf16.vlgmr.msra.gmra.mrb[112].mxu1 %v2830_v3  ;;  %v13652_v13 = vpop.permute.xlu1 %3052  ;;  %v11051_v22 = vpop.eup %11050  ;;  %v2823_v17 = vmul.f32 %v11049_v16, %v13590_v33  ;;  %v2822_v56 = vmul.f32 %v11049_v16, %v13588_v43 }
 0x996   : > { %2926 = vmatprep.mubr.bf16.mxu1 %v2833_v50  ;;  %v2825_v55 = vmul.f32 %v11051_v22, %v13584_v53  ;;  %v2824_v32 = vmul.f32 %v11051_v22, %v13582_v44 }
 0x997   : > { %v13654_v14 = vpop.permute.xlu0 %3058 }
 0x998   : > { %v2835_v3 = vpack.c.bf16 %v2825_v55, %v2823_v17  ;;  %v11053_v2 = vpop.eup %11052  ;;  %v2834_v50 = vpack.c.bf16 %v2824_v32, %v2822_v56 }
 0x999   : > { %v13658_v34 = vpop.permute.xlu1 %3056  ;;  %v11055_v4 = vpop.eup %11054  ;;  %v2827_v53 = vmul.f32 %v11053_v2, %v13602_v30  ;;  %v2826_v44 = vmul.f32 %v11053_v2, %v13598_v0 }
 0x99a   : > { %v2829_v18 = vmul.f32 %v11055_v4, %v13596_v27  ;;  %v2828_v27 = vmul.f32 %v11055_v4, %v13592_v24 }
 0x99b   : > { %v13662_v7 = vpop.permute.xlu0 %3289 }
 0x99c   : > { %16821 = vst [vmem:[#allocation119_spill] sm:$0xff] %v13662_v7  ;;  %9509 = vmatprep.subr.bf16.mxu1 %v13662_v7  ;;  %v2837_v11 = vpack.c.bf16 %v2829_v18, %v2827_v53  ;;  %v2836_v16 = vpack.c.bf16 %v2828_v27, %v2826_v44  ;;  %v16831_v27 = vld [vmem:[#allocation93_spill] sm:$0xff] }
 0x99d   : > { %2927 = vmatmul.mubr.bf16.gmra.mrb[116].mxu1 %v2832_v58  ;;  %v13665_v62 = vpop.permute.xlu1 %3273 }
 0x99e   : > { %16822 = vst [vmem:[#allocation120_spill] sm:$0xff] %v13665_v62  ;;  %2934 = vmatprep.mubr.bf16.mxu1 %v2835_v3  ;;  %9510 = vmatpush3.bf16.msra.mxu1 %v13665_v62 }
 0x99f   : > { %v13668_v33 = vpop.permute.xlu0 %3291 }
 0x9a0   : > { %16823 = vst [vmem:[#allocation121_spill] sm:$0xff] %v13668_v33  ;;  %9511 = vmatprep.subr.bf16.mxu1 %v13668_v33 }
 0x9a1   : > { %v13673_v26 = vpop.permute.xlu1 %3275 }
 0x9a2   : > { %16824 = vst [vmem:[#allocation122_spill] sm:$0xff] %v13673_v26  ;;  %9512 = vmatpush3.bf16.msra.mxu1 %v13673_v26 }
 0x9a3   : > { %v13678_v21 = vpop.permute.xlu0 %3277 }
 0x9a4   : > { %16825 = vst [vmem:[#allocation123_spill] sm:$0xff] %v13678_v21 }
 0x9a5   : > { %2935 = vmatmul.mubr.bf16.gmra.mrb[120].mxu1 %v2834_v50  ;;  %v13680_v17 = vpop.permute.xlu1 %3293  ;;  %v10832_v50 = vunpack.i.h.bf16 %v16808_v49 }
 0x9a6   : > { %16826 = vst [vmem:[#allocation124_spill] sm:$0xff] %v13680_v17  ;;  %2942 = vmatprep.mubr.bf16.mxu1 %v2837_v11  ;;  %9513 = vmatprep.subr.bf16.mxu1 %v13680_v17  ;;  %v10837_v11 = vunpack.i.h.bf16 %v16809_v20 }
 0x9a7   : > { %v13683_v43 = vpop.permute.xlu0 %3295  ;;  %9514 = vmatpush3.bf16.msra.mxu1 %v13678_v21 }
 0x9a8   : > { %16827 = vst [vmem:[#allocation125_spill] sm:$0xff] %v13683_v43  ;;  %9515 = vmatprep.subr.bf16.mxu1 %v13683_v43 }
 0x9a9   : > { %v13688_v30 = vpop.permute.xlu1 %3279 }
 0x9aa   : > { %16828 = vst [vmem:[#allocation126_spill] sm:$0xff] %v13688_v30 }
 0x9ab   : > { %9516 = vmatpush3.bf16.msra.mxu1 %v13688_v30  ;;  %v13694_v6 = vpop.permute.xlu0 %3281 }
 0x9ac   : > { %16830 = vst [vmem:[#allocation128_spill] sm:$0xff] %v13694_v6 }
 0x9ad   : > { %2943 = vmatmul.mubr.bf16.gmra.mrb[124].mxu1 %v2836_v16  ;;  %v13692_v22 = vpop.permute.xlu1 %3297  ;;  %v10839_v16 = vunpack.i.l.bf16 %v16831_v27 }
 0x9ae   : > { %16829 = vst [vmem:[#allocation127_spill] sm:$0xff] %v13692_v22  ;;  %9517 = vmatprep.subr.bf16.mxu1 %v13692_v22 }
 0x9af   : > { %9518 = vmatpush3.bf16.msra.mxu1 %v13694_v6  ;;  %v16832_v6 = vld [vmem:[#allocation94_spill] sm:$0xff] }
 0x9b0   : > { %v10844_v22 = vunpack.i.l.bf16 %v16832_v6 }
 0xa68   : > { %v9479_v55 = vpop.f32.mrb[112].mxu1 }
 0xa69   : > { %v9480_v0 = vpop.f32.mrb[113].mxu1 }
 0xa6a   : > { %v9481_v58 = vadd.f32 %v9480_v0, %v9479_v55  ;;  %v9482_v3 = vpop.f32.mrb[114].mxu1 }
 0xa6b   : > { %v9483_v2 = vpop.f32.mrb[115].mxu1 }
 0xa6c   : > { %v9484_v56 = vadd.f32 %v9483_v2, %v9482_v3  ;;  %v10842_v3 = vunpack.i.h.bf16 %v16831_v27  ;;  %v13705_v2 = vpack.c.bf16 %v10837_v11, %v10832_v50 }
 0xa6e   : > { %v2951_v53 = vpack.c.bf16 %v9484_v56, %v9481_v58  ;;  %v10847_v58 = vunpack.i.h.bf16 %v16832_v6  ;;  %16833 = vst [vmem:[#allocation93_spill] sm:$0xff] %v13705_v2 }
 0xa70   : > { %v9485_v24 = vpop.f32.mrb[116].mxu1  ;;  %10303 = vmatprep.mubr.msk.bf16.mxu0 %vm1798_vm0, %v2951_v53  ;;  %v13708_v53 = vpack.c.bf16 %v10844_v22, %v10839_v16 }
 0xa71   : > { %v9486_v4 = vpop.f32.mrb[117].mxu1 }
 0xa72   : > { %v9487_v32 = vadd.f32 %v9486_v4, %v9485_v24  ;;  %v9488_v18 = vpop.f32.mrb[118].mxu1  ;;  %16834 = vst [vmem:[#allocation94_spill] sm:$0xff] %v13708_v53  ;;  %v10902_v4 = vld [vmem:[#allocation10 + $0x30] sm:$0xff]  }
 0xa73   : > { %v9489_v44 = vpop.f32.mrb[119].mxu1 }
 0xa74   : > { %v9490_v55 = vadd.f32 %v9489_v44, %v9488_v18  ;;  %v13712_v18 = vpack.c.bf16 %v10847_v58, %v10842_v3  ;;  %v10903_v3 = vld [vmem:[#allocation10 + $0x38] sm:$0xff]   ;;  %v16836_v58 = vld [vmem:[#allocation79_spill] sm:$0xff] }
 0xa76   : > { %v2952_v0 = vpack.c.bf16 %v9490_v55, %v9487_v32  ;;  %16835 = vst [vmem:[#allocation129_spill] sm:$0xff] %v13712_v18 }
 0xa78   : > { %v9491_v56 = vpop.f32.mrb[120].mxu1  ;;  %10304 = vmatmul.mubr.msk.bf16.vlgmr.msra.gmra.mrb[128].mxu0 %vm1798_vm0, %v2952_v0 }
 0xa79   : > { %3073 = vmatpush1.bf16.msra.mxu0 %v13705_v2  ;;  %v9492_v49 = vpop.f32.mrb[121].mxu1 }
 0xa7a   : > { %v9493_v20 = vadd.f32 %v9492_v49, %v9491_v56  ;;  %3074 = vmatprep.subr.bf16.mxu0 %v13708_v53  ;;  %v9494_v24 = vpop.f32.mrb[122].mxu1 }
 0xa7b   : > { %v9495_v32 = vpop.f32.mrb[123].mxu1 }
 0xa7c   : > { %v9496_v44 = vadd.f32 %v9495_v32, %v9494_v24 }
 0xa7d   : > { %3075 = vmatpush1.bf16.msra.mxu0 %v13712_v18 }
 0xa7e   : > { %v2953_v6 = vpack.c.bf16 %v9496_v44, %v9493_v20  ;;  %10311 = vmatprep.subr.bf16.mxu0 %v10902_v4 }
 0xa80   : > { %v9497_v50 = vpop.f32.mrb[124].mxu1  ;;  %10307 = vmatprep.mubr.msk.bf16.mxu0 %vm1798_vm0, %v2953_v6 }
 0xa81   : > { %v9498_v22 = vpop.f32.mrb[125].mxu1 }
 0xa82   : > { %v9499_v11 = vadd.f32 %v9498_v22, %v9497_v50  ;;  %v9500_v27 = vpop.f32.mrb[126].mxu1 }
 0xa83   : > { %v9501_v16 = vpop.f32.mrb[127].mxu1 }
 0xa84   : > { %v9502_v55 = vadd.f32 %v9501_v16, %v9500_v27 }
 0xa86   : > { %v2954_v0 = vpack.c.bf16 %v9502_v55, %v9499_v11 }
 0xa88   : > { %10308 = vmatmul.mubr.msk.bf16.gmra.mrb[132].mxu0 %vm1798_vm0, %v2954_v0 }
 0xa89   : > { %3104 = vmatprep.mubr.bf16.mxu0 %v16799_v54 }
 0xa90   : > { %9176 = vmatmul.mubr.msk.bf16.vlgmr.msra.gmra.mrb[136].mxu0 %vm1798_vm0, %v13652_v13 }
 0xa91   : > { %10312 = vmatpush3.bf16.msra.mxu0 %v10902_v4  ;;  %3114 = vmatprep.mubr.bf16.mxu0 %v16799_v54 }
 0xa92   : > { %10313 = vmatprep.subr.bf16.mxu0 %v10903_v3 }
 0xa95   : > { %10314 = vmatpush3.bf16.msra.mxu0 %v10903_v3 }
 0xa96   : > { %3499 = vmatprep.subr.bf16.mxu0 %v16836_v58 }
 0xa98   : > { %9177 = vmatmul.mubr.msk.bf16.gmra.mrb[140].mxu0 %vm1798_vm0, %v13650_v9 }
 0xa99   : > { %3124 = vmatprep.mubr.bf16.mxu0 %v16799_v54 }
 0xaa0   : > { %9178 = vmatmul.mubr.msk.bf16.gmra.mrb[144].mxu0 %vm1798_vm0, %v13658_v34 }
 0xaa1   : > { %3134 = vmatprep.mubr.bf16.mxu0 %v16799_v54 }
 0xaa8   : > { %9179 = vmatmul.mubr.msk.bf16.gmra.mrb[148].mxu0 %vm1798_vm0, %v13654_v14 }
 0xb63   : > { %v3106_v13 = vpop.f32.mrb[136].mxu0 }
 0xb64   : > { %v3108_v56 = vpop.f32.mrb[137].mxu0 }
 0xb65   : > { %v3145_v49 = vmax.f32 %v3106_v13, %v3108_v56  ;;  %v3110_v20 = vpop.f32.mrb[138].mxu0 }
 0xb66   : > { %v3112_v24 = vpop.f32.mrb[139].mxu0 }
 0xb67   : > { %v3148_v4 = vmax.f32 %v3110_v20, %v3112_v24  ;;  %3146 = vmax.xlane.f32.xlu1 %v3145_v49 }
 0xb69   : > { %3149 = vmax.xlane.f32.xlu0 %v3148_v4 }
 0xb6b   : > { %v3116_v32 = vpop.f32.mrb[140].mxu0 }
 0xb6c   : > { %v3118_v9 = vpop.f32.mrb[141].mxu0 }
 0xb6d   : > { %v3151_v44 = vmax.f32 %v3116_v32, %v3118_v9  ;;  %v13730_v6 = vpop.f32.mrb[142].mxu0 }
 0xb6e   : > { %v13732_v50 = vpop.f32.mrb[143].mxu0 }
 0xb6f   : > { %v3154_v34 = vmax.f32 %v13730_v6, %v13732_v50  ;;  %3152 = vmax.xlane.f32.xlu0 %v3151_v44 }
 0xb73   : > { %v13736_v14 = vpop.f32.mrb[144].mxu0 }
 0xb74   : > { %v13738_v22 = vpop.f32.mrb[145].mxu0 }
 0xb75   : > { %v3157_v11 = vmax.f32 %v13736_v14, %v13738_v22  ;;  %v13742_v27 = vpop.f32.mrb[146].mxu0 }
 0xb76   : > { %v13744_v16 = vpop.f32.mrb[147].mxu0 }
 0xb77   : > { %v3160_v55 = vmax.f32 %v13742_v27, %v13744_v16 }
 0xb78   : > { %3283 = vrot.lane.b32.xlu1 %v16811_v39, %s12098_s27 }
 0xb7b   : > { %v13750_v0 = vpop.f32.mrb[148].mxu0 }
 0xb7c   : > { %v13752_v3 = vpop.f32.mrb[149].mxu0 }
 0xb7d   : > { %v3163_v49 = vmax.f32 %v13750_v0, %v13752_v3  ;;  %v13756_v4 = vpop.f32.mrb[150].mxu0 }
 0xb7e   : > { %v13758_v44 = vpop.f32.mrb[151].mxu0 }
 0xb7f   : > { %v3166_v58 = vmax.f32 %v13756_v4, %v13758_v44 }
 0xb85   : > { %3299 = vrot.lane.b32.xlu0 %v16812_v42, %s12098_s27 }
 0xb9c   : > { %3155 = vmax.xlane.f32.xlu1 %v3154_v34 }
 0xba0   : > { %3161 = vmax.xlane.f32.xlu1 %v3160_v55 }
 0xba4   : > { %3158 = vmax.xlane.f32.xlu0 %v3157_v11  ;;  %3167 = vmax.xlane.f32.xlu1 %v3166_v58 }
 0xba8   : > { %3164 = vmax.xlane.f32.xlu0 %v3163_v49 }
 0xbb5   : > { %3301 = vrot.lane.b32.xlu1 %v16813_v51, %s12098_s27 }
 0xbbe   : > { %3285 = vrot.lane.b32.xlu0 %v16814_v47, %s12098_s27 }
 0xbf4   : > { %v3147_v18 = vpop.xlane.xlu1 %3146 }
 0xbf5   : > { %v3169_v53 = vsub.f32 %v3106_v13, %v3147_v18  ;;  %v3170_v2 = vsub.f32 %v3108_v56, %v3147_v18 }
 0xbf6   : > { %v3150_v30 = vpop.xlane.xlu0 %3149 }
 0xbf7   : > { %v3185_v43 = vmul.f32 1.442695, %v3169_v53  ;;  %v3187_v21 = vmul.f32 1.442695, %v3170_v2  ;;  %v3171_v17 = vsub.f32 %v3110_v20, %v3150_v30  ;;  %v3172_v26 = vsub.f32 %v3112_v24, %v3150_v30 }
 0xbf8   : > { %v13770_v13 = vpop.permute.xlu1 %3283 }
 0xbf9   : > { %11056 = vpow2.f32 %v3185_v43  ;;  %v3189_v34 = vmul.f32 1.442695, %v3171_v17  ;;  %v3191_v55 = vmul.f32 1.442695, %v3172_v26  ;;  %16838 = vst [vmem:[#allocation131_spill] sm:$0xff] %v13770_v13 }
 0xbfa   : > { %11058 = vpow2.f32 %v3187_v21 }
 0xbfb   : > { %11060 = vpow2.f32 %v3189_v34 }
 0xbfc   : > { %11062 = vpow2.f32 %v3191_v55  ;;  %v3153_v58 = vpop.xlane.xlu0 %3152 }
 0xbfd   : > { %v3173_v11 = vsub.f32 %v3116_v32, %v3153_v58  ;;  %v3174_v49 = vsub.f32 %v3118_v9, %v3153_v58 }
 0xbff   : > { %v3193_v33 = vmul.f32 1.442695, %v3173_v11  ;;  %v3195_v62 = vmul.f32 1.442695, %v3174_v49 }
 0xc00   : > { %v13768_v7 = vpop.permute.xlu0 %3299 }
 0xc01   : > { %16837 = vst [vmem:[#allocation130_spill] sm:$0xff] %v13768_v7  ;;  %11064 = vpow2.f32 %v3193_v33  ;;  %9519 = vmatprep.subr.bf16.mxu1 %v13768_v7 }
 0xc02   : > { %11066 = vpow2.f32 %v3195_v62  ;;  %9520 = vmatpush3.bf16.msra.mxu1 %v13770_v13 }
 0xc03   : > { %v13774_v17 = vpop.eup %11056 }
 0xc04   : > { %v13776_v26 = vpop.eup %11058 }
 0xc05   : > { %v13778_v21 = vpop.eup %11060  ;;  %v3217_v43 = vadd.f32 %v13776_v26, %v13774_v17 }
 0xc06   : > { %v13782_v30 = vpop.eup %11062 }
 0xc07   : > { %3218 = vadd.xlane.f32.xlu1 %v3217_v43  ;;  %v3220_v33 = vadd.f32 %v13782_v30, %v13778_v21 }
 0xc09   : > { %3221 = vadd.xlane.f32.xlu0 %v3220_v33 }
 0xc0b   : > { %v13786_v2 = vpop.eup %11064 }
 0xc0c   : > { %v13788_v62 = vpop.eup %11066 }
 0xc0d   : > { %v3223_v53 = vadd.f32 %v13788_v62, %v13786_v2 }
 0xc0f   : > { %3224 = vadd.xlane.f32.xlu1 %v3223_v53 }
 0xc29   : > { %v3156_v18 = vpop.xlane.xlu1 %3155 }
 0xc2a   : > { %v3175_v56 = vsub.f32 %v13730_v6, %v3156_v18  ;;  %v3176_v20 = vsub.f32 %v13732_v50, %v3156_v18 }
 0xc2c   : > { %v3197_v24 = vmul.f32 1.442695, %v3175_v56  ;;  %v3199_v32 = vmul.f32 1.442695, %v3176_v20 }
 0xc2d   : > { %v3162_v9 = vpop.xlane.xlu1 %3161 }
 0xc2e   : > { %11068 = vpow2.f32 %v3197_v24  ;;  %v3179_v34 = vsub.f32 %v13742_v27, %v3162_v9  ;;  %v3180_v55 = vsub.f32 %v13744_v16, %v3162_v9 }
 0xc2f   : > { %11070 = vpow2.f32 %v3199_v32 }
 0xc30   : > { %v3205_v58 = vmul.f32 1.442695, %v3179_v34  ;;  %v3207_v11 = vmul.f32 1.442695, %v3180_v55 }
 0xc31   : > { %v3159_v49 = vpop.xlane.xlu0 %3158  ;;  %v3168_v43 = vpop.xlane.xlu1 %3167 }
 0xc32   : > { %11072 = vpow2.f32 %v3205_v58  ;;  %v3177_v33 = vsub.f32 %v13736_v14, %v3159_v49  ;;  %v3178_v6 = vsub.f32 %v13738_v22, %v3159_v49  ;;  %v3183_v50 = vsub.f32 %v13756_v4, %v3168_v43 }
 0xc33   : > { %11074 = vpow2.f32 %v3207_v11  ;;  %v3184_v53 = vsub.f32 %v13758_v44, %v3168_v43 }
 0xc34   : > { %v3201_v18 = vmul.f32 1.442695, %v3177_v33  ;;  %v3203_v56 = vmul.f32 1.442695, %v3178_v6  ;;  %v3213_v27 = vmul.f32 1.442695, %v3183_v50 }
 0xc35   : > { %v3215_v20 = vmul.f32 1.442695, %v3184_v53  ;;  %v3165_v16 = vpop.xlane.xlu0 %3164  ;;  %v13800_v24 = vpop.permute.xlu1 %3301 }
 0xc36   : > { %16839 = vst [vmem:[#allocation132_spill] sm:$0xff] %v13800_v24  ;;  %11076 = vpow2.f32 %v3201_v18  ;;  %v3181_v32 = vsub.f32 %v13750_v0, %v3165_v16  ;;  %v3182_v9 = vsub.f32 %v13752_v3, %v3165_v16  ;;  %9521 = vmatprep.subr.bf16.mxu1 %v13800_v24  ;;  %v16843_v16 = vld [vmem:[#allocation59_spill] sm:$0xff] }
 0xc37   : > { %11078 = vpow2.f32 %v3203_v56 }
 0xc38   : > { %v13805_v14 = vpop.eup %11068  ;;  %11080 = vpow2.f32 %v3213_v27  ;;  %v3209_v22 = vmul.f32 1.442695, %v3181_v32  ;;  %v3211_v4 = vmul.f32 1.442695, %v3182_v9  ;;  %v16841_v27 = vld [vmem:[#allocation55_spill] sm:$0xff]  ;;  %v16844_v32 = vld [vmem:[#allocation62_spill] sm:$0xff] }
 0xc39   : > { %v11071_v44 = vpop.eup %11070  ;;  %11082 = vpow2.f32 %v3215_v20  ;;  %v13807_v34 = vpop.permute.xlu0 %3285  ;;  %v16842_v20 = vld [vmem:[#allocation58_spill] sm:$0xff] }
 0xc3a   : > { %16840 = vst [vmem:[#allocation133_spill] sm:$0xff] %v13807_v34  ;;  %11084 = vpow2.f32 %v3209_v22  ;;  %9522 = vmatpush3.bf16.msra.mxu1 %v13807_v34  ;;  %v3226_v55 = vadd.f32 %v11071_v44, %v13805_v14 }
 0xc3b   : > { %11086 = vpow2.f32 %v3211_v4 }
 0xc3c   : > { %v13811_v0 = vpop.eup %11072  ;;  %3227 = vadd.xlane.f32.xlu0 %v3226_v55 }
 0xc3d   : > { %v13813_v3 = vpop.eup %11074 }
 0xc3e   : > { %v3232_v58 = vadd.f32 %v13813_v3, %v13811_v0 }
 0xc40   : > { %v13817_v11 = vpop.eup %11076  ;;  %3233 = vadd.xlane.f32.xlu0 %v3232_v58 }
 0xc41   : > { %v11079_v49 = vpop.eup %11078 }
 0xc42   : > { %v13819_v43 = vpop.eup %11080  ;;  %v3229_v33 = vadd.f32 %v11079_v49, %v13817_v11 }
 0xc43   : > { %v13822_v6 = vpop.eup %11082 }
 0xc44   : > { %v13824_v50 = vpop.eup %11084  ;;  %3230 = vadd.xlane.f32.xlu1 %v3229_v33  ;;  %v3238_v53 = vadd.f32 %v13822_v6, %v13819_v43 }
 0xc45   : > { %v13828_v18 = vpop.eup %11086 }
 0xc46   : > { %3239 = vadd.xlane.f32.xlu0 %v3238_v53  ;;  %v3235_v56 = vadd.f32 %v13828_v18, %v13824_v50 }
 0xc48   : > { %3236 = vadd.xlane.f32.xlu1 %v3235_v56 }
 0xc59   : > { %3287 = vrot.lane.b32.xlu1 %v12902_v8, %s12098_s27 }
 0xc5c   : > { %3303 = vrot.lane.b32.xlu0 %v12942_v10, %s12098_s27 }
 0xc5d   : > { %3773 = vrot.lane.b32.xlu1 %v16841_v27, %s12096_s25 }
 0xc60   : > { %3775 = vrot.lane.b32.xlu0 %v16842_v20, %s12096_s25 }
 0xc61   : > { %3777 = vrot.lane.b32.xlu1 %v16843_v16, %s12096_s25 }
 0xc64   : > { %3779 = vrot.lane.b32.xlu0 %v16844_v32, %s12096_s25 }
 0xc94   : > { %v3219_v9 = vpop.xlane.xlu1 %3218 }
 0xc95   : > { %11088 = vrcp.f32 %v3219_v9 }
 0xc96   : > { %v3222_v22 = vpop.xlane.xlu0 %3221 }
 0xc97   : > { %11090 = vrcp.f32 %v3222_v22 }
 0xc9c   : > { %v3225_v7 = vpop.xlane.xlu1 %3224 }
 0xc9f   : > { %v11089_v4 = vpop.eup %11088 }
 0xca0   : > { %v3249_v58 = vmul.f32 %v11089_v4, %v13774_v17  ;;  %v3250_v53 = vmul.f32 %v11089_v4, %v13776_v26 }
 0xca1   : > { %v11091_v55 = vpop.eup %11090 }
 0xca2   : > { %v3251_v33 = vmul.f32 %v11091_v55, %v13778_v21  ;;  %v3252_v56 = vmul.f32 %v11091_v55, %v13782_v30 }
 0xca4   : > { %v3266_v34 = vpack.c.bf16 %v3252_v56, %v3250_v53  ;;  %v3265_v24 = vpack.c.bf16 %v3251_v33, %v3249_v58 }
 0xca6   : > { %3353 = vmatprep.mubr.bf16.mxu1 %v3266_v34 }
 0xcc9   : > { %v3228_v13 = vpop.xlane.xlu0 %3227 }
 0xcca   : > { %11092 = vrcp.f32 %v3228_v13 }
 0xccb   : > { %11094 = vrcp.f32 %v3225_v7 }
 0xccd   : > { %v3234_v9 = vpop.xlane.xlu0 %3233 }
 0xcd1   : > { %v3231_v57 = vpop.xlane.xlu1 %3230 }
 0xcd2   : > { %11096 = vrcp.f32 %v3231_v57 }
 0xcd3   : > { %v3240_v22 = vpop.xlane.xlu0 %3239  ;;  %11098 = vrcp.f32 %v3234_v9 }
 0xcd4   : > { %v11093_v12 = vpop.eup %11092 }
 0xcd5   : > { %v3237_v17 = vpop.xlane.xlu1 %3236  ;;  %v11095_v48 = vpop.eup %11094  ;;  %v3256_v26 = vmul.f32 %v11093_v12, %v11071_v44  ;;  %v3255_v44 = vmul.f32 %v11093_v12, %v13805_v14 }
 0xcd6   : > { %v3254_v13 = vmul.f32 %v11095_v48, %v13788_v62  ;;  %11100 = vrcp.f32 %v3237_v17  ;;  %v3253_v55 = vmul.f32 %v11095_v48, %v13786_v2 }
 0xcd7   : > { %v13848_v21 = vpop.permute.xlu0 %3303  ;;  %11102 = vrcp.f32 %v3240_v22 }
 0xcd8   : > { %16845 = vst [vmem:[#allocation55_spill] sm:$0xff] %v13848_v21  ;;  %9523 = vmatprep.subr.bf16.mxu1 %v13848_v21  ;;  %v3268_v7 = vpack.c.bf16 %v3256_v26, %v3254_v13  ;;  %v3267_v58 = vpack.c.bf16 %v3255_v44, %v3253_v55 }
 0xcd9   : > { %v13851_v30 = vpop.permute.xlu1 %3287 }
 0xcda   : > { %16846 = vst [vmem:[#allocation58_spill] sm:$0xff] %v13851_v30  ;;  %9524 = vmatpush3.bf16.msra.mxu1 %v13851_v30 }
 0xcdb   : > { %9555 = vmatprep.subr.bf16.mxu1 %v12914_v40 }
 0xcdc   : > { %v11097_v57 = vpop.eup %11096 }
 0xcdd   : > { %3354 = vmatmul.mubr.bf16.vlgmr.msra.gmra.mrb[128].mxu1 %v3265_v24  ;;  %v11099_v34 = vpop.eup %11098  ;;  %v3258_v4 = vmul.f32 %v11097_v57, %v11079_v49  ;;  %v3257_v12 = vmul.f32 %v11097_v57, %v13817_v11 }
 0xcde   : > { %3361 = vmatprep.mubr.bf16.mxu1 %v3268_v7  ;;  %9556 = vmatpush3.bf16.msra.mxu1 %v12844_v25  ;;  %v3260_v62 = vmul.f32 %v11099_v34, %v13813_v3  ;;  %v3259_v2 = vmul.f32 %v11099_v34, %v13811_v0 }
 0xcdf   : > { %9557 = vmatprep.subr.bf16.mxu1 %v12912_v35 }
 0xce0   : > { %v3270_v33 = vpack.c.bf16 %v3260_v62, %v3258_v4  ;;  %v11101_v24 = vpop.eup %11100  ;;  %v3269_v3 = vpack.c.bf16 %v3259_v2, %v3257_v12 }
 0xce1   : > { %v11103_v53 = vpop.eup %11102  ;;  %v3262_v48 = vmul.f32 %v11101_v24, %v13828_v18  ;;  %v3261_v11 = vmul.f32 %v11101_v24, %v13824_v50 }
 0xce2   : > { %9558 = vmatpush3.bf16.msra.mxu1 %v12842_v36  ;;  %v3264_v14 = vmul.f32 %v11103_v53, %v13822_v6  ;;  %v3263_v18 = vmul.f32 %v11103_v53, %v13819_v43  ;;  %v16847_v6 = vld [vmem:[#allocation95_spill] sm:$0xff]  ;;  %v16849_v53 = vld [vmem:[#allocation81_spill] sm:$0xff] }
 0xce3   : > { %9559 = vmatprep.subr.bf16.mxu1 %v12922_v38 }
 0xce4   : > { %v3272_v49 = vpack.c.bf16 %v3264_v14, %v3262_v48  ;;  %v3271_v0 = vpack.c.bf16 %v3263_v18, %v3261_v11  ;;  %v16850_v14 = vld [vmem:[#allocation82_spill] sm:$0xff] }
 0xce5   : > { %3362 = vmatmul.mubr.bf16.gmra.mrb[132].mxu1 %v3267_v58  ;;  %v16848_v58 = vld [vmem:[#allocation80_spill] sm:$0xff] }
 0xce6   : > { %3369 = vmatprep.mubr.bf16.mxu1 %v3270_v33  ;;  %9560 = vmatpush3.bf16.msra.mxu1 %v12864_v28 }
 0xce7   : > { %9561 = vmatprep.subr.bf16.mxu1 %v12920_v61 }
 0xcea   : > { %9562 = vmatpush3.bf16.msra.mxu1 %v12862_v15 }
 0xceb   : > { %9563 = vmatprep.subr.bf16.mxu1 %v12934_v59 }
 0xced   : > { %3370 = vmatmul.mubr.bf16.gmra.mrb[136].mxu1 %v3269_v3 }
 0xcee   : > { %3377 = vmatprep.mubr.bf16.mxu1 %v3272_v49  ;;  %9564 = vmatpush3.bf16.msra.mxu1 %v12886_v45  ;;  %v16851_v49 = vld [vmem:[#allocation83_spill] sm:$0xff] }
 0xcef   : > { %9565 = vmatprep.subr.bf16.mxu1 %v16812_v42 }
 0xcf2   : > { %9566 = vmatpush3.bf16.msra.mxu1 %v16811_v39 }
 0xcf3   : > { %9567 = vmatprep.subr.bf16.mxu1 %v16813_v51 }
 0xcf5   : > { %3378 = vmatmul.mubr.bf16.gmra.mrb[140].mxu1 %v3271_v0 }
 0xcf6   : > { %9568 = vmatpush3.bf16.msra.mxu1 %v16814_v47 }
 0xcf7   : > { %9569 = vmatprep.subr.bf16.mxu1 %v12942_v10 }
 0xcfa   : > { %9570 = vmatpush3.bf16.msra.mxu1 %v12902_v8 }
 0xcfb   : > { %9595 = vmatprep.subr.bf16.mxu1 %v16847_v6 }
 0xdb0   : > { %v9525_v56 = vpop.f32.mrb[128].mxu1 }
 0xdb1   : > { %v9526_v9 = vpop.f32.mrb[129].mxu1 }
 0xdb2   : > { %v9527_v22 = vadd.f32 %v9526_v9, %v9525_v56  ;;  %v9528_v50 = vpop.f32.mrb[130].mxu1 }
 0xdb3   : > { %v9529_v17 = vpop.f32.mrb[131].mxu1 }
 0xdb4   : > { %v9530_v43 = vadd.f32 %v9529_v17, %v9528_v50  ;;  %v16852_v17 = vld [vmem:[#allocation84_spill] sm:$0xff] }
 0xdb6   : > { %v3386_v26 = vpack.c.bf16 %v9530_v43, %v9527_v22  ;;  %v16853_v43 = vld [vmem:[#allocation85_spill] sm:$0xff] }
 0xdb8   : > { %v9531_v13 = vpop.f32.mrb[132].mxu1  ;;  %10315 = vmatprep.mubr.msk.bf16.mxu0 %vm1798_vm0, %v3386_v26  ;;  %v16854_v26 = vld [vmem:[#allocation86_spill] sm:$0xff] }
 0xdb9   : > { %v9532_v7 = vpop.f32.mrb[133].mxu1 }
 0xdba   : > { %v9533_v57 = vadd.f32 %v9532_v7, %v9531_v13  ;;  %v9534_v34 = vpop.f32.mrb[134].mxu1  ;;  %v11808_v13 = vld [vmem:[#allocation10 + $0x10] sm:$0xff]   ;;  %v3774_v7 = vpop.permute.xlu1 %3773 }
 0xdbb   : > { %v9535_v44 = vpop.f32.mrb[135].mxu1 }
 0xdbc   : > { %v9536_v4 = vadd.f32 %v9535_v44, %v9534_v34  ;;  %v13907_v34 = vld [vmem:[#allocation10] sm:$0xff]   ;;  %v3776_v44 = vpop.permute.xlu0 %3775 }
 0xdbe   : > { %v3387_v55 = vpack.c.bf16 %v9536_v4, %v9533_v57  ;;  %v11809_v57 = vld [vmem:[#allocation10 + $0x18] sm:$0xff]   ;;  %v3778_v4 = vpop.permute.xlu1 %3777 }
 0xdc0   : > { %v9537_v62 = vpop.f32.mrb[136].mxu1  ;;  %10316 = vmatmul.mubr.msk.bf16.vlgmr.msra.gmra.mrb[128].mxu0 %vm1798_vm0, %v3387_v55  ;;  %v3780_v55 = vpop.permute.xlu0 %3779 }
 0xdc1   : > { %3500 = vmatpush1.bf16.msra.mxu0 %v16848_v58  ;;  %v9538_v33 = vpop.f32.mrb[137].mxu1 }
 0xdc2   : > { %v9539_v24 = vadd.f32 %v9538_v33, %v9537_v62  ;;  %3501 = vmatprep.subr.bf16.mxu0 %v16849_v53  ;;  %v9540_v12 = vpop.f32.mrb[138].mxu1 }
 0xdc3   : > { %v9541_v48 = vpop.f32.mrb[139].mxu1 }
 0xdc4   : > { %v9542_v2 = vadd.f32 %v9541_v48, %v9540_v12 }
 0xdc5   : > { %3502 = vmatpush1.bf16.msra.mxu0 %v16850_v14 }
 0xdc6   : > { %v3388_v3 = vpack.c.bf16 %v9542_v2, %v9539_v24  ;;  %3793 = vmatprep.subr.bf16.mxu0 %v16851_v49 }
 0xdc8   : > { %v9543_v11 = vpop.f32.mrb[140].mxu1  ;;  %10319 = vmatprep.mubr.msk.bf16.mxu0 %vm1798_vm0, %v3388_v3 }
 0xdc9   : > { %v9544_v18 = vpop.f32.mrb[141].mxu1 }
 0xdca   : > { %v9545_v0 = vadd.f32 %v9544_v18, %v9543_v11  ;;  %v9546_v56 = vpop.f32.mrb[142].mxu1 }
 0xdcb   : > { %v9547_v9 = vpop.f32.mrb[143].mxu1 }
 0xdcc   : > { %v9548_v22 = vadd.f32 %v9547_v9, %v9546_v56 }
 0xdce   : > { %v3389_v50 = vpack.c.bf16 %v9548_v22, %v9545_v0 }
 0xdd0   : > { %10320 = vmatmul.mubr.msk.bf16.gmra.mrb[132].mxu0 %vm1798_vm0, %v3389_v50 }
 0xdd1   : > { %3531 = vmatprep.mubr.bf16.mxu0 %v16799_v54 }
 0xdd8   : > { %9186 = vmatmul.mubr.msk.bf16.vlgmr.msra.gmra.mrb[152].mxu0 %vm1798_vm0, %v16841_v27 }
 0xdd9   : > { %3794 = vmatpush1.bf16.msra.mxu0 %v16852_v17  ;;  %3541 = vmatprep.mubr.bf16.mxu0 %v16799_v54 }
 0xdda   : > { %3795 = vmatprep.subr.bf16.mxu0 %v16853_v43 }
 0xddd   : > { %3796 = vmatpush1.bf16.msra.mxu0 %v16854_v26 }
 0xdde   : > { %10323 = vmatprep.subr.bf16.mxu0 %v11808_v13 }
 0xde0   : > { %9187 = vmatmul.mubr.msk.bf16.gmra.mrb[156].mxu0 %vm1798_vm0, %v16842_v20 }
 0xde1   : > { %3551 = vmatprep.mubr.bf16.mxu0 %v16799_v54 }
 0xde8   : > { %9188 = vmatmul.mubr.msk.bf16.gmra.mrb[160].mxu0 %vm1798_vm0, %v16843_v16 }
 0xde9   : > { %3561 = vmatprep.mubr.bf16.mxu0 %v16799_v54 }
 0xdf0   : > { %9189 = vmatmul.mubr.msk.bf16.gmra.mrb[164].mxu0 %vm1798_vm0, %v16844_v32 }
 0xdf1   : > { %3825 = vmatprep.mubr.bf16.mxu0 %v16799_v54 }
 0xdf8   : > { %9190 = vmatmul.mubr.msk.bf16.vlgmr.msra.gmra.mrb[168].mxu0 %vm1798_vm0, %v3774_v7 }
 0xdf9   : > { %3835 = vmatprep.mubr.bf16.mxu0 %v16799_v54  ;;  %10324 = vmatpush3.bf16.msra.mxu0 %v11808_v13 }
 0xdfa   : > { %10325 = vmatprep.subr.bf16.mxu0 %v11809_v57 }
 0xdfd   : > { %10326 = vmatpush3.bf16.msra.mxu0 %v11809_v57 }
 0xdfe   : > { %10335 = vmatprep.subr.bf16.mxu0 %v13907_v34 }
 0xe00   : > { %9191 = vmatmul.mubr.msk.bf16.gmra.mrb[172].mxu0 %vm1798_vm0, %v3776_v44 }
 0xe01   : > { %3845 = vmatprep.mubr.bf16.mxu0 %v16799_v54 }
 0xe08   : > { %9192 = vmatmul.mubr.msk.bf16.gmra.mrb[176].mxu0 %vm1798_vm0, %v3778_v4 }
 0xe09   : > { %3855 = vmatprep.mubr.bf16.mxu0 %v16799_v54 }
 0xe10   : > { %9193 = vmatmul.mubr.msk.bf16.gmra.mrb[180].mxu0 %vm1798_vm0, %v3780_v55 }
 0xe93   : > { %v13915_v62 = vpop.f32.mrb[128].mxu0 }
 0xe94   : > { %16855 = vst [vmem:[#allocation59_spill] sm:$0xff] %v13915_v62  ;;  %v13917_v33 = vpop.f32.mrb[129].mxu0 }
 0xe95   : > { %16856 = vst [vmem:[#allocation62_spill] sm:$0xff] %v13917_v33  ;;  %v13919_v24 = vpop.f32.mrb[130].mxu0 }
 0xe96   : > { %16857 = vst [vmem:[#allocation134_spill] sm:$0xff] %v13919_v24  ;;  %v13921_v12 = vpop.f32.mrb[131].mxu0 }
 0xe97   : > { %16858 = vst [vmem:[#allocation135_spill] sm:$0xff] %v13921_v12 }
 0xea3   : > { %v13923_v48 = vpop.f32.mrb[132].mxu0 }
 0xea4   : > { %16859 = vst [vmem:[#allocation136_spill] sm:$0xff] %v13923_v48  ;;  %v13925_v2 = vpop.f32.mrb[133].mxu0 }
 0xea5   : > { %16860 = vst [vmem:[#allocation137_spill] sm:$0xff] %v13925_v2  ;;  %v13927_v3 = vpop.f32.mrb[134].mxu0 }
 0xea6   : > { %16861 = vst [vmem:[#allocation138_spill] sm:$0xff] %v13927_v3  ;;  %v13929_v11 = vpop.f32.mrb[135].mxu0 }
 0xea7   : > { %16862 = vst [vmem:[#allocation139_spill] sm:$0xff] %v13929_v11 }
 0xeab   : > { %v13931_v18 = vpop.f32.mrb[152].mxu0 }
 0xeac   : > { %v13933_v0 = vpop.f32.mrb[153].mxu0 }
 0xead   : > { %v3572_v56 = vmax.f32 %v13931_v18, %v13933_v0  ;;  %v13937_v9 = vpop.f32.mrb[154].mxu0 }
 0xeae   : > { %v13939_v22 = vpop.f32.mrb[155].mxu0 }
 0xeaf   : > { %v3575_v50 = vmax.f32 %v13937_v9, %v13939_v22  ;;  %3573 = vmax.xlane.f32.xlu1 %v3572_v56 }
 0xeb1   : > { %3576 = vmax.xlane.f32.xlu0 %v3575_v50 }
 0xeb3   : > { %v13943_v13 = vpop.f32.mrb[156].mxu0 }
 0xeb4   : > { %v13945_v7 = vpop.f32.mrb[157].mxu0 }
 0xeb5   : > { %v3578_v57 = vmax.f32 %v13943_v13, %v13945_v7  ;;  %v13949_v44 = vpop.f32.mrb[158].mxu0 }
 0xeb6   : > { %v13951_v4 = vpop.f32.mrb[159].mxu0 }
 0xeb7   : > { %v3581_v55 = vmax.f32 %v13949_v44, %v13951_v4  ;;  %3579 = vmax.xlane.f32.xlu0 %v3578_v57 }
 0xeb9   : > { %3582 = vmax.xlane.f32.xlu1 %v3581_v55 }
 0xebb   : > { %v13955_v11 = vpop.f32.mrb[160].mxu0 }
 0xebc   : > { %v13957_v56 = vpop.f32.mrb[161].mxu0 }
 0xebd   : > { %v3584_v50 = vmax.f32 %v13955_v11, %v13957_v56  ;;  %v13961_v3 = vpop.f32.mrb[162].mxu0 }
 0xebe   : > { %v13963_v2 = vpop.f32.mrb[163].mxu0 }
 0xebf   : > { %v3587_v48 = vmax.f32 %v13961_v3, %v13963_v2  ;;  %3585 = vmax.xlane.f32.xlu0 %v3584_v50 }
 0xec1   : > { %3588 = vmax.xlane.f32.xlu1 %v3587_v48 }
 0xec3   : > { %v13967_v12 = vpop.f32.mrb[164].mxu0 }
 0xec4   : > { %v13969_v57 = vpop.f32.mrb[165].mxu0 }
 0xec5   : > { %v3590_v55 = vmax.f32 %v13967_v12, %v13969_v57  ;;  %v13973_v24 = vpop.f32.mrb[166].mxu0 }
 0xec6   : > { %v13975_v33 = vpop.f32.mrb[167].mxu0 }
 0xec7   : > { %v3593_v62 = vmax.f32 %v13973_v24, %v13975_v33  ;;  %3591 = vmax.xlane.f32.xlu0 %v3590_v55 }
 0xec9   : > { %3594 = vmax.xlane.f32.xlu1 %v3593_v62 }
 0xecb   : > { %v13979_v26 = vpop.f32.mrb[168].mxu0 }
 0xecc   : > { %v13981_v50 = vpop.f32.mrb[169].mxu0 }
 0xecd   : > { %v3866_v48 = vmax.f32 %v13979_v26, %v13981_v50  ;;  %v13985_v43 = vpop.f32.mrb[170].mxu0 }
 0xece   : > { %v13987_v17 = vpop.f32.mrb[171].mxu0 }
 0xecf   : > { %v3869_v49 = vmax.f32 %v13985_v43, %v13987_v17  ;;  %3867 = vmax.xlane.f32.xlu0 %v3866_v48 }
 0xed1   : > { %3870 = vmax.xlane.f32.xlu1 %v3869_v49 }
 0xed3   : > { %v13991_v14 = vpop.f32.mrb[172].mxu0 }
 0xed4   : > { %v13993_v55 = vpop.f32.mrb[173].mxu0 }
 0xed5   : > { %v3872_v62 = vmax.f32 %v13991_v14, %v13993_v55  ;;  %v13997_v53 = vpop.f32.mrb[174].mxu0 }
 0xed6   : > { %v13999_v58 = vpop.f32.mrb[175].mxu0 }
 0xed7   : > { %v3875_v6 = vmax.f32 %v13997_v53, %v13999_v58  ;;  %3873 = vmax.xlane.f32.xlu0 %v3872_v62 }
 0xed9   : > { %3876 = vmax.xlane.f32.xlu1 %v3875_v6 }
 0xedb   : > { %v14003_v8 = vpop.f32.mrb[176].mxu0 }
 0xedc   : > { %v14005_v48 = vpop.f32.mrb[177].mxu0 }
 0xedd   : > { %v3878_v49 = vmax.f32 %v14003_v8, %v14005_v48  ;;  %v14009_v10 = vpop.f32.mrb[178].mxu0 }
 0xede   : > { %v14011_v47 = vpop.f32.mrb[179].mxu0 }
 0xedf   : > { %v3881_v51 = vmax.f32 %v14009_v10, %v14011_v47  ;;  %3879 = vmax.xlane.f32.xlu0 %v3878_v49 }
 0xee1   : > { %3882 = vmax.xlane.f32.xlu1 %v3881_v51 }
 0xee3   : > { %v14015_v39 = vpop.f32.mrb[180].mxu0 }
 0xee4   : > { %v14017_v62 = vpop.f32.mrb[181].mxu0 }
 0xee5   : > { %v3884_v6 = vmax.f32 %v14015_v39, %v14017_v62  ;;  %v14021_v42 = vpop.f32.mrb[182].mxu0 }
 0xee6   : > { %v14023_v45 = vpop.f32.mrb[183].mxu0 }
 0xee7   : > { %v3887_v59 = vmax.f32 %v14021_v42, %v14023_v45  ;;  %3885 = vmax.xlane.f32.xlu0 %v3884_v6 }
 0xee9   : > { %3888 = vmax.xlane.f32.xlu1 %v3887_v59 }
 0xf3c   : > { %v3574_v15 = vpop.xlane.xlu1 %3573 }
 0xf3d   : > { %v3596_v49 = vsub.f32 %v13931_v18, %v3574_v15  ;;  %v3597_v51 = vsub.f32 %v13933_v0, %v3574_v15 }
 0xf3e   : > { %v3577_v61 = vpop.xlane.xlu0 %3576 }
 0xf3f   : > { %v3612_v28 = vmul.f32 1.442695, %v3596_v49  ;;  %v3614_v38 = vmul.f32 1.442695, %v3597_v51  ;;  %v3598_v36 = vsub.f32 %v13937_v9, %v3577_v61  ;;  %v3599_v35 = vsub.f32 %v13939_v22, %v3577_v61 }
 0xf41   : > { %11104 = vpow2.f32 %v3612_v28  ;;  %v3616_v25 = vmul.f32 1.442695, %v3598_v36  ;;  %v3618_v40 = vmul.f32 1.442695, %v3599_v35 }
 0xf42   : > { %11106 = vpow2.f32 %v3614_v38 }
 0xf43   : > { %11108 = vpow2.f32 %v3616_v25 }
 0xf44   : > { %11110 = vpow2.f32 %v3618_v40  ;;  %v3580_v6 = vpop.xlane.xlu0 %3579 }
 0xf45   : > { %v3600_v59 = vsub.f32 %v13943_v13, %v3580_v6  ;;  %v3601_v18 = vsub.f32 %v13945_v7, %v3580_v6 }
 0xf46   : > { %v3583_v30 = vpop.xlane.xlu1 %3582 }
 0xf47   : > { %v3620_v15 = vmul.f32 1.442695, %v3600_v59  ;;  %v3622_v0 = vmul.f32 1.442695, %v3601_v18  ;;  %v3602_v49 = vsub.f32 %v13949_v44, %v3583_v30  ;;  %v3603_v9 = vsub.f32 %v13951_v4, %v3583_v30 }
 0xf49   : > { %11112 = vpow2.f32 %v3620_v15  ;;  %v3624_v61 = vmul.f32 1.442695, %v3602_v49  ;;  %v3626_v28 = vmul.f32 1.442695, %v3603_v9 }
 0xf4a   : > { %11114 = vpow2.f32 %v3622_v0 }
 0xf4b   : > { %v14035_v36 = vpop.eup %11104  ;;  %11116 = vpow2.f32 %v3624_v61 }
 0xf4c   : > { %v14037_v40 = vpop.eup %11106  ;;  %11118 = vpow2.f32 %v3626_v28  ;;  %v3586_v25 = vpop.xlane.xlu0 %3585 }
 0xf4d   : > { %v14039_v35 = vpop.eup %11108  ;;  %v3604_v38 = vsub.f32 %v13955_v11, %v3586_v25  ;;  %v3605_v22 = vsub.f32 %v13957_v56, %v3586_v25  ;;  %v3644_v30 = vadd.f32 %v14037_v40, %v14035_v36 }
 0xf4e   : > { %v14045_v13 = vpop.eup %11110  ;;  %v3589_v7 = vpop.xlane.xlu1 %3588 }
 0xf4f   : > { %v3628_v44 = vmul.f32 1.442695, %v3604_v38  ;;  %v3630_v4 = vmul.f32 1.442695, %v3605_v22  ;;  %3645 = vadd.xlane.f32.xlu0 %v3644_v30  ;;  %v3606_v51 = vsub.f32 %v13961_v3, %v3589_v7  ;;  %v3607_v6 = vsub.f32 %v13963_v2, %v3589_v7 }
 0xf50   : > { %v3647_v59 = vadd.f32 %v14045_v13, %v14039_v35 }
 0xf51   : > { %11120 = vpow2.f32 %v3628_v44  ;;  %v3632_v11 = vmul.f32 1.442695, %v3606_v51  ;;  %v3634_v18 = vmul.f32 1.442695, %v3607_v6 }
 0xf52   : > { %11122 = vpow2.f32 %v3630_v4  ;;  %3648 = vadd.xlane.f32.xlu1 %v3647_v59 }
 0xf53   : > { %v14051_v56 = vpop.eup %11112  ;;  %11124 = vpow2.f32 %v3632_v11 }
 0xf54   : > { %v14053_v15 = vpop.eup %11114  ;;  %11126 = vpow2.f32 %v3634_v18  ;;  %v3592_v0 = vpop.xlane.xlu0 %3591 }
 0xf55   : > { %v14055_v49 = vpop.eup %11116  ;;  %v3608_v3 = vsub.f32 %v13967_v12, %v3592_v0  ;;  %v3609_v2 = vsub.f32 %v13969_v57, %v3592_v0  ;;  %v3650_v9 = vadd.f32 %v14053_v15, %v14051_v56 }
 0xf56   : > { %v14061_v61 = vpop.eup %11118  ;;  %v3595_v28 = vpop.xlane.xlu1 %3594 }
 0xf57   : > { %v3636_v25 = vmul.f32 1.442695, %v3608_v3  ;;  %v3638_v38 = vmul.f32 1.442695, %v3609_v2  ;;  %3651 = vadd.xlane.f32.xlu0 %v3650_v9  ;;  %v3610_v22 = vsub.f32 %v13973_v24, %v3595_v28  ;;  %v3611_v30 = vsub.f32 %v13975_v33, %v3595_v28 }
 0xf58   : > { %v3653_v7 = vadd.f32 %v14061_v61, %v14055_v49 }
 0xf59   : > { %11128 = vpow2.f32 %v3636_v25  ;;  %v3640_v12 = vmul.f32 1.442695, %v3610_v22  ;;  %v3642_v44 = vmul.f32 1.442695, %v3611_v30 }
 0xf5a   : > { %11130 = vpow2.f32 %v3638_v38  ;;  %3654 = vadd.xlane.f32.xlu1 %v3653_v7 }
 0xf5b   : > { %v14067_v57 = vpop.eup %11120  ;;  %11132 = vpow2.f32 %v3640_v12 }
 0xf5c   : > { %v14069_v4 = vpop.eup %11122  ;;  %11134 = vpow2.f32 %v3642_v44  ;;  %v3868_v51 = vpop.xlane.xlu0 %3867 }
 0xf5d   : > { %v14071_v6 = vpop.eup %11124  ;;  %v3890_v24 = vsub.f32 %v13979_v26, %v3868_v51  ;;  %v3891_v33 = vsub.f32 %v13981_v50, %v3868_v51  ;;  %v3656_v59 = vadd.f32 %v14069_v4, %v14067_v57 }
 0xf5e   : > { %v14077_v11 = vpop.eup %11126  ;;  %v3871_v18 = vpop.xlane.xlu1 %3870 }
 0xf5f   : > { %v3906_v0 = vmul.f32 1.442695, %v3890_v24  ;;  %v3908_v3 = vmul.f32 1.442695, %v3891_v33  ;;  %3657 = vadd.xlane.f32.xlu0 %v3656_v59  ;;  %v3892_v2 = vsub.f32 %v13985_v43, %v3871_v18  ;;  %v3893_v9 = vsub.f32 %v13987_v17, %v3871_v18 }
 0xf60   : > { %v3659_v28 = vadd.f32 %v14077_v11, %v14071_v6 }
 0xf61   : > { %11136 = vpow2.f32 %v3906_v0  ;;  %v3910_v26 = vmul.f32 1.442695, %v3892_v2  ;;  %v3912_v25 = vmul.f32 1.442695, %v3893_v9 }
 0xf62   : > { %11138 = vpow2.f32 %v3908_v3  ;;  %3660 = vadd.xlane.f32.xlu1 %v3659_v28 }
 0xf63   : > { %v14083_v50 = vpop.eup %11128  ;;  %11140 = vpow2.f32 %v3910_v26 }
 0xf64   : > { %v14085_v38 = vpop.eup %11130  ;;  %11142 = vpow2.f32 %v3912_v25  ;;  %v3874_v22 = vpop.xlane.xlu0 %3873 }
 0xf65   : > { %v14087_v30 = vpop.eup %11132  ;;  %v3894_v43 = vsub.f32 %v13991_v14, %v3874_v22  ;;  %v3895_v17 = vsub.f32 %v13993_v55, %v3874_v22  ;;  %v3662_v7 = vadd.f32 %v14085_v38, %v14083_v50 }
 0xf66   : > { %v14093_v12 = vpop.eup %11134  ;;  %v3877_v44 = vpop.xlane.xlu1 %3876 }
 0xf67   : > { %v3914_v51 = vmul.f32 1.442695, %v3894_v43  ;;  %v3916_v24 = vmul.f32 1.442695, %v3895_v17  ;;  %3663 = vadd.xlane.f32.xlu0 %v3662_v7  ;;  %v3896_v33 = vsub.f32 %v13997_v53, %v3877_v44  ;;  %v3897_v59 = vsub.f32 %v13999_v58, %v3877_v44 }
 0xf68   : > { %v3665_v18 = vadd.f32 %v14093_v12, %v14087_v30 }
 0xf69   : > { %11144 = vpow2.f32 %v3914_v51  ;;  %v3918_v14 = vmul.f32 1.442695, %v3896_v33  ;;  %v3920_v0 = vmul.f32 1.442695, %v3897_v59 }
 0xf6a   : > { %11146 = vpow2.f32 %v3916_v24  ;;  %3666 = vadd.xlane.f32.xlu1 %v3665_v18 }
 0xf6b   : > { %v14099_v55 = vpop.eup %11136  ;;  %11148 = vpow2.f32 %v3918_v14 }
 0xf6c   : > { %v14101_v3 = vpop.eup %11138  ;;  %11150 = vpow2.f32 %v3920_v0  ;;  %v3880_v2 = vpop.xlane.xlu0 %3879 }
 0xf6d   : > { %v14103_v9 = vpop.eup %11140  ;;  %v3898_v53 = vsub.f32 %v14003_v8, %v3880_v2  ;;  %v3899_v58 = vsub.f32 %v14005_v48, %v3880_v2  ;;  %v3938_v28 = vadd.f32 %v14101_v3, %v14099_v55 }
 0xf6e   : > { %v14109_v26 = vpop.eup %11142  ;;  %v3883_v25 = vpop.xlane.xlu1 %3882 }
 0xf6f   : > { %v3922_v22 = vmul.f32 1.442695, %v3898_v53  ;;  %v3924_v43 = vmul.f32 1.442695, %v3899_v58  ;;  %3939 = vadd.xlane.f32.xlu0 %v3938_v28  ;;  %v3900_v17 = vsub.f32 %v14009_v10, %v3883_v25  ;;  %v3901_v7 = vsub.f32 %v14011_v47, %v3883_v25 }
 0xf70   : > { %v3941_v44 = vadd.f32 %v14109_v26, %v14103_v9 }
 0xf71   : > { %11152 = vpow2.f32 %v3922_v22  ;;  %v3926_v8 = vmul.f32 1.442695, %v3900_v17  ;;  %v3928_v51 = vmul.f32 1.442695, %v3901_v7 }
 0xf72   : > { %11154 = vpow2.f32 %v3924_v43  ;;  %3942 = vadd.xlane.f32.xlu1 %v3941_v44 }
 0xf73   : > { %v14115_v48 = vpop.eup %11144  ;;  %11156 = vpow2.f32 %v3926_v8 }
 0xf74   : > { %v14117_v24 = vpop.eup %11146  ;;  %11158 = vpow2.f32 %v3928_v51  ;;  %v3886_v33 = vpop.xlane.xlu0 %3885 }
 0xf75   : > { %v14119_v59 = vpop.eup %11148  ;;  %v3902_v10 = vsub.f32 %v14015_v39, %v3886_v33  ;;  %v3903_v47 = vsub.f32 %v14017_v62, %v3886_v33  ;;  %v3944_v18 = vadd.f32 %v14117_v24, %v14115_v48 }
 0xf76   : > { %v14125_v14 = vpop.eup %11150  ;;  %v3889_v0 = vpop.xlane.xlu1 %3888 }
 0xf77   : > { %v3930_v2 = vmul.f32 1.442695, %v3902_v10  ;;  %v3932_v53 = vmul.f32 1.442695, %v3903_v47  ;;  %3945 = vadd.xlane.f32.xlu0 %v3944_v18  ;;  %v3904_v58 = vsub.f32 %v14021_v42, %v3889_v0  ;;  %v3905_v28 = vsub.f32 %v14023_v45, %v3889_v0 }
 0xf78   : > { %v3947_v25 = vadd.f32 %v14125_v14, %v14119_v59 }
 0xf79   : > { %11160 = vpow2.f32 %v3930_v2  ;;  %v3934_v39 = vmul.f32 1.442695, %v3904_v58  ;;  %v3936_v22 = vmul.f32 1.442695, %v3905_v28 }
 0xf7a   : > { %11162 = vpow2.f32 %v3932_v53  ;;  %3948 = vadd.xlane.f32.xlu1 %v3947_v25 }
 0xf7b   : > { %v14131_v62 = vpop.eup %11152  ;;  %11164 = vpow2.f32 %v3934_v39 }
 0xf7c   : > { %v14133_v43 = vpop.eup %11154  ;;  %11166 = vpow2.f32 %v3936_v22 }
 0xf7d   : > { %v14135_v17 = vpop.eup %11156  ;;  %v3950_v42 = vadd.f32 %v14133_v43, %v14131_v62 }
 0xf7e   : > { %v14139_v45 = vpop.eup %11158 }
 0xf7f   : > { %3951 = vadd.xlane.f32.xlu0 %v3950_v42  ;;  %v3953_v7 = vadd.f32 %v14139_v45, %v14135_v17 }
 0xf81   : > { %3954 = vadd.xlane.f32.xlu1 %v3953_v7 }
 0xf83   : > { %v14143_v44 = vpop.eup %11160 }
 0xf84   : > { %v14145_v8 = vpop.eup %11162 }
 0xf85   : > { %v14147_v51 = vpop.eup %11164  ;;  %v3956_v33 = vadd.f32 %v14145_v8, %v14143_v44 }
 0xf86   : > { %v14151_v10 = vpop.eup %11166 }
 0xf87   : > { %3957 = vadd.xlane.f32.xlu0 %v3956_v33  ;;  %v3959_v47 = vadd.f32 %v14151_v10, %v14147_v51 }
 0xf89   : > { %3960 = vadd.xlane.f32.xlu1 %v3959_v47 }
 0xf9a   : > { %4219 = vrot.lane.b32.xlu1 %v16842_v20, %s12097_s23 }
 0xf9d   : > { %4217 = vrot.lane.b32.xlu0 %v16841_v27, %s12097_s23 }
 0xf9e   : > { %4221 = vrot.lane.b32.xlu1 %v16843_v16, %s12097_s23 }
 0xfa1   : > { %4223 = vrot.lane.b32.xlu0 %v16844_v32, %s12097_s23 }
 0xfdc   : > { %v3646_v18 = vpop.xlane.xlu0 %3645 }
 0xfdd   : > { %11168 = vrcp.f32 %v3646_v18 }
 0xfdf   : > { %v3649_v0 = vpop.xlane.xlu1 %3648 }
 0xfe0   : > { %11170 = vrcp.f32 %v3649_v0 }
 0xfe4   : > { %v3652_v2 = vpop.xlane.xlu0 %3651 }
 0xfe5   : > { %11172 = vrcp.f32 %v3652_v2 }
 0xfe7   : > { %v3655_v53 = vpop.xlane.xlu1 %3654  ;;  %v11169_v58 = vpop.eup %11168 }
 0xfe8   : > { %11174 = vrcp.f32 %v3655_v53  ;;  %v3676_v25 = vmul.f32 %v11169_v58, %v14035_v36  ;;  %v3677_v22 = vmul.f32 %v11169_v58, %v14037_v40 }
 0xfea   : > { %v11171_v28 = vpop.eup %11170 }
 0xfeb   : > { %v3678_v39 = vmul.f32 %v11171_v28, %v14039_v35  ;;  %v3679_v42 = vmul.f32 %v11171_v28, %v14045_v13 }
 0xfec   : > { %v3658_v7 = vpop.xlane.xlu0 %3657 }
 0xfed   : > { %v3693_v33 = vpack.c.bf16 %v3679_v42, %v3677_v22  ;;  %v3692_v47 = vpack.c.bf16 %v3678_v39, %v3676_v25  ;;  %11176 = vrcp.f32 %v3658_v7 }
 0xfef   : > { %3732 = vmatprep.mubr.bf16.mxu1 %v3693_v33  ;;  %v3661_v18 = vpop.xlane.xlu1 %3660  ;;  %v11173_v0 = vpop.eup %11172  ;;  %v16864_v33 = vld [vmem:[#allocation98_spill] sm:$0xff] }
 0xff0   : > { %11178 = vrcp.f32 %v3661_v18  ;;  %3733 = vmatmul.mubr.bf16.vlgmr.msra.gmra.mrb[144].mxu1 %v3692_v47  ;;  %v3681_v36 = vmul.f32 %v11173_v0, %v14053_v15  ;;  %v3680_v35 = vmul.f32 %v11173_v0, %v14051_v56  ;;  %v16865_v0 = vld [vmem:[#allocation100_spill] sm:$0xff] }
 0xff1   : > { %9596 = vmatpush3.bf16.msra.mxu1 %v13157_v41 }
 0xff2   : > { %v11175_v2 = vpop.eup %11174  ;;  %9597 = vmatprep.subr.bf16.mxu1 %v13161_v31 }
 0xff3   : > { %v3683_v40 = vmul.f32 %v11175_v2, %v14061_v61  ;;  %v3682_v13 = vmul.f32 %v11175_v2, %v14055_v49  ;;  %v16863_v61 = vld [vmem:[#allocation99_spill] sm:$0xff] }
 0xff4   : > { %v3664_v53 = vpop.xlane.xlu0 %3663 }
 0xff5   : > { %9598 = vmatpush3.bf16.msra.mxu1 %v13159_v23  ;;  %v3695_v58 = vpack.c.bf16 %v3683_v40, %v3681_v36  ;;  %v3694_v28 = vpack.c.bf16 %v3682_v13, %v3680_v35  ;;  %11180 = vrcp.f32 %v3664_v53  ;;  %v16867_v40 = vld [vmem:[#allocation103_spill] sm:$0xff] }
 0xff6   : > { %9599 = vmatprep.subr.bf16.mxu1 %v16782_v1 }
 0xff7   : > { %3740 = vmatprep.mubr.bf16.mxu1 %v3695_v58  ;;  %v3667_v25 = vpop.xlane.xlu1 %3666  ;;  %v11177_v39 = vpop.eup %11176  ;;  %v16868_v58 = vld [vmem:[#allocation102_spill] sm:$0xff] }
 0xff8   : > { %11182 = vrcp.f32 %v3667_v25  ;;  %3741 = vmatmul.mubr.bf16.gmra.mrb[148].mxu1 %v3694_v28  ;;  %v3685_v56 = vmul.f32 %v11177_v39, %v14069_v4  ;;  %v3684_v22 = vmul.f32 %v11177_v39, %v14067_v57  ;;  %v16866_v4 = vld [vmem:[#allocation101_spill] sm:$0xff] }
 0xff9   : > { %9600 = vmatpush3.bf16.msra.mxu1 %v16783_v29  ;;  %v16869_v39 = vld [vmem:[#allocation105_spill] sm:$0xff] }
 0xffa   : > { %v11179_v15 = vpop.eup %11178  ;;  %9601 = vmatprep.subr.bf16.mxu1 %v16863_v61 }
 0xffb   : > { %v3687_v49 = vmul.f32 %v11179_v15, %v14077_v11  ;;  %v3686_v42 = vmul.f32 %v11179_v15, %v14071_v6 }
 0xffc   : > { %v3940_v7 = vpop.xlane.xlu0 %3939 }
 0xffd   : > { %9602 = vmatpush3.bf16.msra.mxu1 %v16864_v33  ;;  %v3697_v47 = vpack.c.bf16 %v3687_v49, %v3685_v56  ;;  %v3696_v18 = vpack.c.bf16 %v3686_v42, %v3684_v22  ;;  %11184 = vrcp.f32 %v3940_v7 }
 0xffe   : > { %9603 = vmatprep.subr.bf16.mxu1 %v16865_v0 }
 0xfff   : > { %3748 = vmatprep.mubr.bf16.mxu1 %v3697_v47  ;;  %v3943_v2 = vpop.xlane.xlu1 %3942  ;;  %v11181_v36 = vpop.eup %11180 }
0x1000   : > { %11186 = vrcp.f32 %v3943_v2  ;;  %3749 = vmatmul.mubr.bf16.gmra.mrb[152].mxu1 %v3696_v18  ;;  %v3689_v57 = vmul.f32 %v11181_v36, %v14085_v38  ;;  %v3688_v35 = vmul.f32 %v11181_v36, %v14083_v50  ;;  %v16870_v38 = vld [vmem:[#allocation104_spill] sm:$0xff] }
0x1001   : > { %9604 = vmatpush3.bf16.msra.mxu1 %v16866_v4 }
0x1002   : > { %v11183_v11 = vpop.eup %11182  ;;  %9605 = vmatprep.subr.bf16.mxu1 %v16867_v40 }
0x1003   : > { %v3691_v6 = vmul.f32 %v11183_v11, %v14093_v12  ;;  %v3690_v13 = vmul.f32 %v11183_v11, %v14087_v30 }
0x1004   : > { %v3946_v53 = vpop.xlane.xlu0 %3945 }
0x1005   : > { %9606 = vmatpush3.bf16.msra.mxu1 %v16868_v58  ;;  %v3699_v28 = vpack.c.bf16 %v3691_v6, %v3689_v57  ;;  %v3698_v25 = vpack.c.bf16 %v3690_v13, %v3688_v35  ;;  %11188 = vrcp.f32 %v3946_v53  ;;  %v16872_v6 = vld [vmem:[#allocation89_spill] sm:$0xff]  ;;  %v16873_v53 = vld [vmem:[#allocation88_spill] sm:$0xff] }
0x1006   : > { %9607 = vmatprep.subr.bf16.mxu1 %v16869_v39 }
0x1007   : > { %3756 = vmatprep.mubr.bf16.mxu1 %v3699_v28  ;;  %v3949_v15 = vpop.xlane.xlu1 %3948  ;;  %v11185_v56 = vpop.eup %11184 }
0x1008   : > { %11190 = vrcp.f32 %v3949_v15  ;;  %3757 = vmatmul.mubr.bf16.gmra.mrb[156].mxu1 %v3698_v25  ;;  %v3970_v50 = vmul.f32 %v11185_v56, %v14099_v55  ;;  %v3971_v49 = vmul.f32 %v11185_v56, %v14101_v3 }
0x1009   : > { %9608 = vmatpush3.bf16.msra.mxu1 %v16870_v38 }
0x100a   : > { %v11187_v12 = vpop.eup %11186  ;;  %9609 = vmatprep.subr.bf16.mxu1 %v13376_v5 }
0x100b   : > { %v3972_v30 = vmul.f32 %v11187_v12, %v14103_v9  ;;  %v3973_v22 = vmul.f32 %v11187_v12, %v14109_v26  ;;  %v16871_v9 = vld [vmem:[#allocation87_spill] sm:$0xff] }
0x100c   : > { %v3952_v42 = vpop.xlane.xlu0 %3951 }
0x100d   : > { %9610 = vmatpush3.bf16.msra.mxu1 %v13378_v52  ;;  %11192 = vrcp.f32 %v3952_v42  ;;  %v3987_v7 = vpack.c.bf16 %v3973_v22, %v3971_v49  ;;  %v3986_v47 = vpack.c.bf16 %v3972_v30, %v3970_v50 }
0x100e   : > { %4237 = vmatprep.subr.bf16.mxu1 %v13381_v60  ;;  %v3955_v18 = vpop.xlane.xlu1 %3954 }
0x100f   : > { %4026 = vmatprep.mubr.bf16.mxu1 %v3987_v7  ;;  %11194 = vrcp.f32 %v3955_v18  ;;  %v11189_v2 = vpop.eup %11188  ;;  %v16879_v18 = vld [vmem:[#allocation111_spill] sm:$0xff] }
0x1010   : > { %4027 = vmatmul.mubr.bf16.vlgmr.msra.gmra.mrb[160].mxu1 %v3986_v47  ;;  %v3975_v3 = vmul.f32 %v11189_v2, %v14117_v24  ;;  %v3974_v36 = vmul.f32 %v11189_v2, %v14115_v48  ;;  %v16878_v47 = vld [vmem:[#allocation109_spill] sm:$0xff]  ;;  %v16880_v2 = vld [vmem:[#allocation110_spill] sm:$0xff] }
0x1011   : > { %4238 = vmatpush1.bf16.msra.mxu1 %v13397_v19 }
0x1012   : > { %v11191_v55 = vpop.eup %11190  ;;  %4239 = vmatprep.subr.bf16.mxu1 %v16871_v9 }
0x1013   : > { %v3977_v26 = vmul.f32 %v11191_v55, %v14125_v14  ;;  %v3976_v11 = vmul.f32 %v11191_v55, %v14119_v59  ;;  %v16881_v55 = vld [vmem:[#allocation112_spill] sm:$0xff] }
0x1014   : > { %v3958_v57 = vpop.xlane.xlu0 %3957 }
0x1015   : > { %4240 = vmatpush1.bf16.msra.mxu1 %v16872_v6  ;;  %11196 = vrcp.f32 %v3958_v57  ;;  %v3989_v35 = vpack.c.bf16 %v3977_v26, %v3975_v3  ;;  %v3988_v13 = vpack.c.bf16 %v3976_v11, %v3974_v36  ;;  %v16882_v26 = vld [vmem:[#allocation113_spill] sm:$0xff]  ;;  %v16883_v11 = vld [vmem:[#allocation116_spill] sm:$0xff] }
0x1016   : > { %9647 = vmatprep.subr.bf16.mxu1 %v16873_v53  ;;  %v3961_v28 = vpop.xlane.xlu1 %3960  ;;  %v16884_v57 = vld [vmem:[#allocation117_spill] sm:$0xff] }
0x1017   : > { %v11193_v25 = vpop.eup %11192  ;;  %4034 = vmatprep.mubr.bf16.mxu1 %v3989_v35  ;;  %11198 = vrcp.f32 %v3961_v28  ;;  %v16885_v35 = vld [vmem:[#allocation118_spill] sm:$0xff] }
0x1018   : > { %4035 = vmatmul.mubr.bf16.gmra.mrb[164].mxu1 %v3988_v13  ;;  %v3979_v14 = vmul.f32 %v11193_v25, %v14133_v43  ;;  %v3978_v59 = vmul.f32 %v11193_v25, %v14131_v62  ;;  %v4218_v62 = vpop.permute.xlu0 %4217  ;;  %v16886_v13 = vld [vmem:[#allocation119_spill] sm:$0xff] }
0x1019   : > { %v11195_v24 = vpop.eup %11194 }
0x101a   : > { %v3981_v48 = vmul.f32 %v11195_v24, %v14139_v45  ;;  %v3980_v15 = vmul.f32 %v11195_v24, %v14135_v17  ;;  %v16874_v17 = vld [vmem:[#allocation90_spill] sm:$0xff] }
0x101c   : > { %v3991_v56 = vpack.c.bf16 %v3981_v48, %v3979_v14  ;;  %v3990_v12 = vpack.c.bf16 %v3980_v15, %v3978_v59  ;;  %v4224_v36 = vpop.permute.xlu0 %4223 }
0x101e   : > { %4042 = vmatprep.mubr.bf16.mxu1 %v3991_v56 }
0x101f   : > { %v11197_v50 = vpop.eup %11196 }
0x1020   : > { %4043 = vmatmul.mubr.bf16.gmra.mrb[168].mxu1 %v3990_v12  ;;  %v3983_v49 = vmul.f32 %v11197_v50, %v14145_v8  ;;  %v3982_v42 = vmul.f32 %v11197_v50, %v14143_v44  ;;  %v16875_v8 = vld [vmem:[#allocation107_spill] sm:$0xff]  ;;  %v16877_v44 = vld [vmem:[#allocation108_spill] sm:$0xff] }
0x1021   : > { %v11199_v30 = vpop.eup %11198 }
0x1022   : > { %v3985_v22 = vmul.f32 %v11199_v30, %v14151_v10  ;;  %v3984_v43 = vmul.f32 %v11199_v30, %v14147_v51  ;;  %v16876_v10 = vld [vmem:[#allocation106_spill] sm:$0xff]  ;;  %v4220_v51 = vpop.permute.xlu1 %4219 }
0x1024   : > { %v3993_v7 = vpack.c.bf16 %v3985_v22, %v3983_v49  ;;  %v3992_v45 = vpack.c.bf16 %v3984_v43, %v3982_v42 }
0x1026   : > { %4050 = vmatprep.mubr.bf16.mxu1 %v3993_v7  ;;  %v4222_v3 = vpop.permute.xlu1 %4221 }
0x1028   : > { %4051 = vmatmul.mubr.bf16.gmra.mrb[172].mxu1 %v3992_v45 }
0x1029   : > { %4269 = vmatprep.mubr.bf16.mxu1 %v16799_v54 }
0x1030   : > { %9202 = vmatmul.mubr.msk.bf16.vlgmr.msra.gmra.mrb[176].mxu1 %vm1798_vm0, %v4218_v62 }
0x1031   : > { %9648 = vmatpush3.bf16.msra.mxu1 %v16874_v17  ;;  %4279 = vmatprep.mubr.bf16.mxu1 %v16799_v54 }
0x1032   : > { %9649 = vmatprep.subr.bf16.mxu1 %v16875_v8 }
0x1035   : > { %9650 = vmatpush3.bf16.msra.mxu1 %v16876_v10 }
0x1036   : > { %9651 = vmatprep.subr.bf16.mxu1 %v16877_v44 }
0x1038   : > { %9203 = vmatmul.mubr.msk.bf16.gmra.mrb[180].mxu1 %vm1798_vm0, %v4220_v51 }
0x1039   : > { %9652 = vmatpush3.bf16.msra.mxu1 %v16878_v47  ;;  %4289 = vmatprep.mubr.bf16.mxu1 %v16799_v54 }
0x103a   : > { %9653 = vmatprep.subr.bf16.mxu1 %v16879_v18 }
0x103d   : > { %9654 = vmatpush3.bf16.msra.mxu1 %v16880_v2 }
0x103e   : > { %9655 = vmatprep.subr.bf16.mxu1 %v16881_v55 }
0x1040   : > { %9204 = vmatmul.mubr.msk.bf16.gmra.mrb[184].mxu1 %vm1798_vm0, %v4222_v3 }
0x1041   : > { %9656 = vmatpush3.bf16.msra.mxu1 %v16882_v26  ;;  %4299 = vmatprep.mubr.bf16.mxu1 %v16799_v54 }
0x1042   : > { %9657 = vmatprep.subr.bf16.mxu1 %v13536_v46 }
0x1045   : > { %9658 = vmatpush3.bf16.msra.mxu1 %v13538_v37 }
0x1046   : > { %9659 = vmatprep.subr.bf16.mxu1 %v13568_v63 }
0x1048   : > { %9205 = vmatmul.mubr.msk.bf16.gmra.mrb[188].mxu1 %vm1798_vm0, %v4224_v36 }
0x1049   : > { %9660 = vmatpush3.bf16.msra.mxu1 %v16883_v11 }
0x104a   : > { %9661 = vmatprep.subr.bf16.mxu1 %v16884_v57 }
0x104d   : > { %9662 = vmatpush3.bf16.msra.mxu1 %v16885_v35 }
0x104e   : > { %9693 = vmatprep.subr.bf16.mxu1 %v16886_v13  ;;  %v11811_v13 = vld [vmem:[#allocation10 + $0x8] sm:$0xff]  }
0x10c3   : > { %v9571_v28 = vpop.f32.mrb[144].mxu1 }
0x10c4   : > { %v9572_v25 = vpop.f32.mrb[145].mxu1 }
0x10c5   : > { %v14239_v24 = vadd.f32 %v9572_v25, %v9571_v28  ;;  %v9574_v14 = vpop.f32.mrb[146].mxu1 }
0x10c6   : > { %v9575_v48 = vpop.f32.mrb[147].mxu1 }
0x10c7   : > { %v14241_v59 = vadd.f32 %v9575_v48, %v9574_v14 }
0x10c9   : > { %v3765_v15 = vpack.c.bf16 %v14241_v59, %v14239_v24 }
0x10cb   : > { %v9577_v56 = vpop.f32.mrb[148].mxu1 }
0x10cc   : > { %v9578_v12 = vpop.f32.mrb[149].mxu1 }
0x10cd   : > { %v14245_v50 = vadd.f32 %v9578_v12, %v9577_v56  ;;  %v9580_v30 = vpop.f32.mrb[150].mxu1 }
0x10ce   : > { %v9581_v49 = vpop.f32.mrb[151].mxu1 }
0x10cf   : > { %v14247_v22 = vadd.f32 %v9581_v49, %v9580_v30 }
0x10d1   : > { %v3766_v42 = vpack.c.bf16 %v14247_v22, %v14245_v50 }
0x10d3   : > { %v9583_v43 = vpop.f32.mrb[152].mxu1 }
0x10d4   : > { %v9584_v7 = vpop.f32.mrb[153].mxu1 }
0x10d5   : > { %v14251_v45 = vadd.f32 %v9584_v7, %v9583_v43  ;;  %v9586_v62 = vpop.f32.mrb[154].mxu1 }
0x10d6   : > { %v9587_v51 = vpop.f32.mrb[155].mxu1 }
0x10d7   : > { %v9588_v3 = vadd.f32 %v9587_v51, %v9586_v62 }
0x10d9   : > { %v3767_v36 = vpack.c.bf16 %v9588_v3, %v14251_v45 }
0x10db   : > { %v9589_v28 = vpop.f32.mrb[156].mxu1 }
0x10dc   : > { %v9590_v25 = vpop.f32.mrb[157].mxu1 }
0x10dd   : > { %v14254_v24 = vadd.f32 %v9590_v25, %v9589_v28  ;;  %v9592_v14 = vpop.f32.mrb[158].mxu1 }
0x10de   : > { %v9593_v48 = vpop.f32.mrb[159].mxu1 }
0x10df   : > { %v14256_v59 = vadd.f32 %v9593_v48, %v9592_v14 }
0x10e3   : > { %v9611_v12 = vpop.f32.mrb[160].mxu1 }
0x10e4   : > { %v9612_v50 = vpop.f32.mrb[161].mxu1 }
0x10e5   : > { %v9613_v30 = vadd.f32 %v9612_v50, %v9611_v12  ;;  %v9614_v49 = vpop.f32.mrb[162].mxu1 }
0x10e6   : > { %v9615_v22 = vpop.f32.mrb[163].mxu1 }
0x10e7   : > { %v9616_v43 = vadd.f32 %v9615_v22, %v9614_v49 }
0x10e9   : > { %v4059_v7 = vpack.c.bf16 %v9616_v43, %v9613_v30  ;;  %v11812_v43 = vld [vmem:[#allocation10 + $0x20] sm:$0xff]  }
0x10eb   : > { %v9617_v62 = vpop.f32.mrb[164].mxu1  ;;  %10327 = vmatprep.mubr.msk.bf16.mxu0 %vm1798_vm0, %v4059_v7 }
0x10ec   : > { %v9618_v45 = vpop.f32.mrb[165].mxu1 }
0x10ed   : > { %v9619_v51 = vadd.f32 %v9618_v45, %v9617_v62  ;;  %v9620_v3 = vpop.f32.mrb[166].mxu1 }
0x10ee   : > { %v9621_v28 = vpop.f32.mrb[167].mxu1 }
0x10ef   : > { %v9622_v25 = vadd.f32 %v9621_v28, %v9620_v3 }
0x10f1   : > { %v4060_v14 = vpack.c.bf16 %v9622_v25, %v9619_v51 }
0x10f3   : > { %v9623_v48 = vpop.f32.mrb[168].mxu1  ;;  %10328 = vmatmul.mubr.msk.bf16.vlgmr.msra.gmra.mrb[184].mxu0 %vm1798_vm0, %v4060_v14 }
0x10f4   : > { %v9624_v56 = vpop.f32.mrb[169].mxu1  ;;  %10336 = vmatpush3.bf16.msra.mxu0 %v13907_v34 }
0x10f5   : > { %v9625_v12 = vadd.f32 %v9624_v56, %v9623_v48  ;;  %v9626_v50 = vpop.f32.mrb[170].mxu1  ;;  %10337 = vmatprep.subr.bf16.mxu0 %v11811_v13 }
0x10f6   : > { %v9627_v30 = vpop.f32.mrb[171].mxu1 }
0x10f7   : > { %v9628_v49 = vadd.f32 %v9627_v30, %v9626_v50 }
0x10f8   : > { %10338 = vmatpush3.bf16.msra.mxu0 %v11811_v13 }
0x10f9   : > { %v4061_v22 = vpack.c.bf16 %v9628_v49, %v9625_v12  ;;  %10347 = vmatprep.subr.bf16.mxu0 %v11812_v43 }
0x10fb   : > { %v9629_v7 = vpop.f32.mrb[172].mxu1  ;;  %10331 = vmatprep.mubr.msk.bf16.mxu0 %vm1798_vm0, %v4061_v22 }
0x10fc   : > { %v9630_v62 = vpop.f32.mrb[173].mxu1 }
0x10fd   : > { %v9631_v45 = vadd.f32 %v9630_v62, %v9629_v7  ;;  %v9632_v51 = vpop.f32.mrb[174].mxu1  ;;  %v11813_v7 = vld [vmem:[#allocation10 + $0x28] sm:$0xff]  }
0x10fe   : > { %v9633_v3 = vpop.f32.mrb[175].mxu1 }
0x10ff   : > { %v9634_v28 = vadd.f32 %v9633_v3, %v9632_v51  ;;  %v16888_v51 = vpack.c.bf16 %v14256_v59, %v14254_v24 }
0x1101   : > { %v4062_v25 = vpack.c.bf16 %v9634_v28, %v9631_v45  ;;  %v16887_v45 = vld [vmem:[#allocation91_spill] sm:$0xff] }
0x1103   : > { %10332 = vmatmul.mubr.msk.bf16.gmra.mrb[188].mxu0 %vm1798_vm0, %v4062_v25  ;;  %v4271_v34 = vpop.f32.mrb[176].mxu1 }
0x1104   : > { %10339 = vmatprep.mubr.msk.bf16.mxu0 %vm1798_vm0, %v3765_v15  ;;  %v4273_v56 = vpop.f32.mrb[177].mxu1 }
0x1105   : > { %v4310_v14 = vmax.f32 %v4271_v34, %v4273_v56  ;;  %v4275_v13 = vpop.f32.mrb[178].mxu1 }
0x1106   : > { %v4277_v48 = vpop.f32.mrb[179].mxu1 }
0x1107   : > { %v4313_v12 = vmax.f32 %v4275_v13, %v4277_v48  ;;  %4311 = vmax.xlane.f32.xlu1 %v4310_v14 }
0x1109   : > { %4314 = vmax.xlane.f32.xlu0 %v4313_v12 }
0x110b   : > { %10340 = vmatmul.mubr.msk.bf16.vlgmr.msra.gmra.mrb[184].mxu0 %vm1798_vm0, %v3766_v42  ;;  %v4281_v50 = vpop.f32.mrb[180].mxu1 }
0x110c   : > { %10348 = vmatpush3.bf16.msra.mxu0 %v11812_v43  ;;  %10343 = vmatprep.mubr.msk.bf16.mxu0 %vm1798_vm0, %v3767_v36  ;;  %v4283_v30 = vpop.f32.mrb[181].mxu1 }
0x110d   : > { %v4316_v49 = vmax.f32 %v4281_v50, %v4283_v30  ;;  %v4285_v22 = vpop.f32.mrb[182].mxu1  ;;  %10349 = vmatprep.subr.bf16.mxu0 %v11813_v7 }
0x110e   : > { %v4287_v62 = vpop.f32.mrb[183].mxu1 }
0x110f   : > { %v4319_v15 = vmax.f32 %v4285_v22, %v4287_v62  ;;  %4317 = vmax.xlane.f32.xlu0 %v4316_v49 }
0x1110   : > { %10350 = vmatpush3.bf16.msra.mxu0 %v11813_v7 }
0x1111   : > { %4612 = vmatprep.subr.bf16.mxu0 %v16887_v45  ;;  %4320 = vmax.xlane.f32.xlu1 %v4319_v15 }
0x1113   : > { %10344 = vmatmul.mubr.msk.bf16.gmra.mrb[188].mxu0 %vm1798_vm0, %v16888_v51  ;;  %v4291_v42 = vpop.f32.mrb[184].mxu1 }
0x1114   : > { %v4293_v43 = vpop.f32.mrb[185].mxu1 }
0x1115   : > { %v4322_v36 = vmax.f32 %v4291_v42, %v4293_v43  ;;  %v4295_v3 = vpop.f32.mrb[186].mxu1 }
0x1116   : > { %v4297_v28 = vpop.f32.mrb[187].mxu1 }
0x1117   : > { %v4325_v25 = vmax.f32 %v4295_v3, %v4297_v28  ;;  %4323 = vmax.xlane.f32.xlu0 %v4322_v36 }
0x1119   : > { %4326 = vmax.xlane.f32.xlu1 %v4325_v25 }
0x111b   : > { %v14273_v14 = vpop.f32.mrb[188].mxu1 }
0x111c   : > { %v14275_v12 = vpop.f32.mrb[189].mxu1 }
0x111d   : > { %v4328_v49 = vmax.f32 %v14273_v14, %v14275_v12  ;;  %v14279_v7 = vpop.f32.mrb[190].mxu1 }
0x111e   : > { %v14281_v24 = vpop.f32.mrb[191].mxu1 }
0x111f   : > { %v4331_v59 = vmax.f32 %v14279_v7, %v14281_v24  ;;  %4329 = vmax.xlane.f32.xlu0 %v4328_v49 }
0x1121   : > { %4332 = vmax.xlane.f32.xlu1 %v4331_v59 }
0x1194   : > { %v4312_v15 = vpop.xlane.xlu1 %4311 }
0x1195   : > { %v4334_v51 = vsub.f32 %v4271_v34, %v4312_v15  ;;  %v4335_v36 = vsub.f32 %v4273_v56, %v4312_v15 }
0x1196   : > { %v4315_v25 = vpop.xlane.xlu0 %4314 }
0x1197   : > { %v4350_v45 = vmul.f32 1.442695, %v4334_v51  ;;  %v4352_v35 = vmul.f32 1.442695, %v4335_v36  ;;  %v4336_v57 = vsub.f32 %v4275_v13, %v4315_v25  ;;  %v4337_v11 = vsub.f32 %v4277_v48, %v4315_v25 }
0x1199   : > { %11200 = vpow2.f32 %v4350_v45  ;;  %v4354_v63 = vmul.f32 1.442695, %v4336_v57  ;;  %v4356_v37 = vmul.f32 1.442695, %v4337_v11 }
0x119a   : > { %11202 = vpow2.f32 %v4352_v35 }
0x119b   : > { %11204 = vpow2.f32 %v4354_v63 }
0x119c   : > { %11206 = vpow2.f32 %v4356_v37  ;;  %v4318_v46 = vpop.xlane.xlu0 %4317 }
0x119d   : > { %v4338_v26 = vsub.f32 %v4281_v50, %v4318_v46  ;;  %v4339_v55 = vsub.f32 %v4283_v30, %v4318_v46 }
0x119e   : > { %v4321_v2 = vpop.xlane.xlu1 %4320 }
0x119f   : > { %v4358_v49 = vmul.f32 1.442695, %v4338_v26  ;;  %v4360_v59 = vmul.f32 1.442695, %v4339_v55  ;;  %v4340_v18 = vsub.f32 %v4285_v22, %v4321_v2  ;;  %v4341_v34 = vsub.f32 %v4287_v62, %v4321_v2 }
0x11a1   : > { %11208 = vpow2.f32 %v4358_v49  ;;  %v4362_v56 = vmul.f32 1.442695, %v4340_v18  ;;  %v4364_v15 = vmul.f32 1.442695, %v4341_v34 }
0x11a2   : > { %11210 = vpow2.f32 %v4360_v59 }
0x11a3   : > { %v14285_v13 = vpop.eup %11200  ;;  %11212 = vpow2.f32 %v4362_v56 }
0x11a4   : > { %v14287_v57 = vpop.eup %11202  ;;  %11214 = vpow2.f32 %v4364_v15  ;;  %v4324_v63 = vpop.xlane.xlu0 %4323 }
0x11a5   : > { %v14289_v37 = vpop.eup %11204  ;;  %v4342_v11 = vsub.f32 %v4291_v42, %v4324_v63  ;;  %v4343_v46 = vsub.f32 %v4293_v43, %v4324_v63  ;;  %v4382_v55 = vadd.f32 %v14287_v57, %v14285_v13 }
0x11a6   : > { %v14293_v26 = vpop.eup %11206  ;;  %v4327_v2 = vpop.xlane.xlu1 %4326 }
0x11a7   : > { %v4366_v18 = vmul.f32 1.442695, %v4342_v11  ;;  %v4368_v35 = vmul.f32 1.442695, %v4343_v46  ;;  %4383 = vadd.xlane.f32.xlu0 %v4382_v55  ;;  %v4344_v48 = vsub.f32 %v4295_v3, %v4327_v2  ;;  %v4345_v50 = vsub.f32 %v4297_v28, %v4327_v2 }
0x11a8   : > { %v4385_v30 = vadd.f32 %v14293_v26, %v14289_v37 }
0x11a9   : > { %11216 = vpow2.f32 %v4366_v18  ;;  %v4370_v22 = vmul.f32 1.442695, %v4344_v48  ;;  %v4372_v62 = vmul.f32 1.442695, %v4345_v50 }
0x11aa   : > { %11218 = vpow2.f32 %v4368_v35  ;;  %4386 = vadd.xlane.f32.xlu1 %v4385_v30 }
0x11ab   : > { %v14297_v45 = vpop.eup %11208  ;;  %11220 = vpow2.f32 %v4370_v22 }
0x11ac   : > { %v14299_v42 = vpop.eup %11210  ;;  %11222 = vpow2.f32 %v4372_v62  ;;  %v4330_v43 = vpop.xlane.xlu0 %4329 }
0x11ad   : > { %v14301_v51 = vpop.eup %11212  ;;  %v4346_v3 = vsub.f32 %v14273_v14, %v4330_v43  ;;  %v4347_v28 = vsub.f32 %v14275_v12, %v4330_v43  ;;  %v4388_v36 = vadd.f32 %v14299_v42, %v14297_v45 }
0x11ae   : > { %v11215_v25 = vpop.eup %11214  ;;  %v4333_v49 = vpop.xlane.xlu1 %4332 }
0x11af   : > { %v4374_v59 = vmul.f32 1.442695, %v4346_v3  ;;  %v4376_v34 = vmul.f32 1.442695, %v4347_v28  ;;  %4389 = vadd.xlane.f32.xlu0 %v4388_v36  ;;  %v4348_v56 = vsub.f32 %v14279_v7, %v4333_v49  ;;  %v4349_v15 = vsub.f32 %v14281_v24, %v4333_v49 }
0x11b0   : > { %v4391_v63 = vadd.f32 %v11215_v25, %v14301_v51 }
0x11b1   : > { %11224 = vpow2.f32 %v4374_v59  ;;  %v4378_v11 = vmul.f32 1.442695, %v4348_v56  ;;  %v4380_v46 = vmul.f32 1.442695, %v4349_v15 }
0x11b2   : > { %11226 = vpow2.f32 %v4376_v34  ;;  %4392 = vadd.xlane.f32.xlu1 %v4391_v63 }
0x11b3   : > { %v14310_v14 = vpop.eup %11216  ;;  %11228 = vpow2.f32 %v4378_v11  ;;  %v16889_v11 = vld [vmem:[#allocation120_spill] sm:$0xff] }
0x11b4   : > { %v14312_v12 = vpop.eup %11218  ;;  %11230 = vpow2.f32 %v4380_v46 }
0x11b5   : > { %v14314_v55 = vpop.eup %11220  ;;  %v4394_v7 = vadd.f32 %v14312_v12, %v14310_v14 }
0x11b6   : > { %v11223_v2 = vpop.eup %11222 }
0x11b7   : > { %4395 = vadd.xlane.f32.xlu0 %v4394_v7  ;;  %v4397_v24 = vadd.f32 %v11223_v2, %v14314_v55  ;;  %v16890_v7 = vld [vmem:[#allocation121_spill] sm:$0xff] }
0x11b9   : > { %4398 = vadd.xlane.f32.xlu1 %v4397_v24 }
0x11bb   : > { %v14319_v18 = vpop.eup %11224 }
0x11bc   : > { %v14321_v35 = vpop.eup %11226 }
0x11bd   : > { %v14323_v48 = vpop.eup %11228  ;;  %v4400_v50 = vadd.f32 %v14321_v35, %v14319_v18 }
0x11be   : > { %v14327_v30 = vpop.eup %11230 }
0x11bf   : > { %4401 = vadd.xlane.f32.xlu0 %v4400_v50  ;;  %v4403_v22 = vadd.f32 %v14327_v30, %v14323_v48  ;;  %v16891_v50 = vld [vmem:[#allocation122_spill] sm:$0xff] }
0x11c1   : > { %4404 = vadd.xlane.f32.xlu1 %v4403_v22 }
0x11d2   : > { %4594 = vrot.lane.b32.xlu1 %v16842_v20, %s12098_s27 }
0x11d5   : > { %4592 = vrot.lane.b32.xlu0 %v16841_v27, %s12098_s27 }
0x11d6   : > { %4596 = vrot.lane.b32.xlu1 %v16843_v16, %s12098_s27 }
0x11d9   : > { %4598 = vrot.lane.b32.xlu0 %v16844_v32, %s12098_s27 }
0x1234   : > { %v4384_v62 = vpop.xlane.xlu0 %4383 }
0x1235   : > { %11232 = vrcp.f32 %v4384_v62 }
0x1237   : > { %v4387_v43 = vpop.xlane.xlu1 %4386 }
0x1238   : > { %11234 = vrcp.f32 %v4387_v43  ;;  %v16892_v43 = vld [vmem:[#allocation124_spill] sm:$0xff] }
0x123c   : > { %v4390_v3 = vpop.xlane.xlu0 %4389 }
0x123d   : > { %11236 = vrcp.f32 %v4390_v3 }
0x123f   : > { %v4393_v28 = vpop.xlane.xlu1 %4392  ;;  %v11233_v36 = vpop.eup %11232 }
0x1240   : > { %11238 = vrcp.f32 %v4393_v28  ;;  %v4414_v20 = vmul.f32 %v11233_v36, %v14285_v13  ;;  %v4415_v59 = vmul.f32 %v11233_v36, %v14287_v57 }
0x1242   : > { %v11235_v49 = vpop.eup %11234 }
0x1243   : > { %v4416_v27 = vmul.f32 %v11235_v49, %v14289_v37  ;;  %v4417_v16 = vmul.f32 %v11235_v49, %v14293_v26 }
0x1244   : > { %v4396_v34 = vpop.xlane.xlu0 %4395 }
0x1245   : > { %11240 = vrcp.f32 %v4396_v34  ;;  %v4431_v32 = vpack.c.bf16 %v4417_v16, %v4415_v59  ;;  %v4430_v56 = vpack.c.bf16 %v4416_v27, %v4414_v20  ;;  %v16895_v16 = vld [vmem:[#allocation126_spill] sm:$0xff]  ;;  %v16896_v34 = vld [vmem:[#allocation127_spill] sm:$0xff] }
0x1246   : > { %v4399_v15 = vpop.xlane.xlu1 %4398 }
0x1247   : > { %4470 = vmatprep.mubr.bf16.mxu1 %v4431_v32  ;;  %11242 = vrcp.f32 %v4399_v15  ;;  %v11237_v63 = vpop.eup %11236  ;;  %v16897_v15 = vld [vmem:[#allocation128_spill] sm:$0xff] }
0x1248   : > { %4471 = vmatmul.mubr.bf16.vlgmr.msra.gmra.mrb[192].mxu1 %v4430_v56  ;;  %v4419_v13 = vmul.f32 %v11237_v63, %v14299_v42  ;;  %v4418_v57 = vmul.f32 %v11237_v63, %v14297_v45  ;;  %v16893_v42 = vld [vmem:[#allocation123_spill] sm:$0xff]  ;;  %v16898_v63 = vld [vmem:[#allocation130_spill] sm:$0xff] }
0x1249   : > { %9694 = vmatpush3.bf16.msra.mxu1 %v16889_v11 }
0x124a   : > { %v11239_v46 = vpop.eup %11238  ;;  %9695 = vmatprep.subr.bf16.mxu1 %v16890_v7 }
0x124b   : > { %v4421_v37 = vmul.f32 %v11239_v46, %v11215_v25  ;;  %v4420_v26 = vmul.f32 %v11239_v46, %v14301_v51  ;;  %v16894_v25 = vld [vmem:[#allocation125_spill] sm:$0xff] }
0x124c   : > { %v4402_v24 = vpop.xlane.xlu0 %4401 }
0x124d   : > { %9696 = vmatpush3.bf16.msra.mxu1 %v16891_v50  ;;  %11244 = vrcp.f32 %v4402_v24  ;;  %v4433_v22 = vpack.c.bf16 %v4421_v37, %v4419_v13  ;;  %v4432_v62 = vpack.c.bf16 %v4420_v26, %v4418_v57  ;;  %v16899_v37 = vld [vmem:[#allocation131_spill] sm:$0xff]  ;;  %v16900_v57 = vld [vmem:[#allocation132_spill] sm:$0xff]  ;;  %v16901_v26 = vld [vmem:[#allocation133_spill] sm:$0xff] }
0x124e   : > { %9697 = vmatprep.subr.bf16.mxu1 %v16892_v43  ;;  %v4405_v3 = vpop.xlane.xlu1 %4404  ;;  %v16902_v24 = vld [vmem:[#allocation58_spill] sm:$0xff] }
0x124f   : > { %v11241_v28 = vpop.eup %11240  ;;  %4478 = vmatprep.mubr.bf16.mxu1 %v4433_v22  ;;  %11246 = vrcp.f32 %v4405_v3 }
0x1250   : > { %4479 = vmatmul.mubr.bf16.gmra.mrb[196].mxu1 %v4432_v62  ;;  %v4423_v45 = vmul.f32 %v11241_v28, %v14312_v12  ;;  %v4422_v49 = vmul.f32 %v11241_v28, %v14310_v14 }
0x1251   : > { %v11243_v36 = vpop.eup %11242  ;;  %9698 = vmatpush3.bf16.msra.mxu1 %v16893_v42  ;;  %v16913_v42 = vld [vmem:[#allocation63_spill] sm:$0xff] }
0x1252   : > { %9699 = vmatprep.subr.bf16.mxu1 %v16894_v25  ;;  %v4425_v51 = vmul.f32 %v11243_v36, %v11223_v2  ;;  %v4424_v20 = vmul.f32 %v11243_v36, %v14314_v55 }
0x1254   : > { %v4435_v27 = vpack.c.bf16 %v4425_v51, %v4423_v45  ;;  %v4434_v59 = vpack.c.bf16 %v4424_v20, %v4422_v49 }
0x1255   : > { %9700 = vmatpush3.bf16.msra.mxu1 %v16895_v16 }
0x1256   : > { %9701 = vmatprep.subr.bf16.mxu1 %v16896_v34  ;;  %4486 = vmatprep.mubr.bf16.mxu1 %v4435_v27 }
0x1257   : > { %v11245_v32 = vpop.eup %11244 }
0x1258   : > { %4487 = vmatmul.mubr.bf16.gmra.mrb[200].mxu1 %v4434_v59  ;;  %v4427_v12 = vmul.f32 %v11245_v32, %v14321_v35  ;;  %v4426_v55 = vmul.f32 %v11245_v32, %v14319_v18  ;;  %v16903_v35 = vld [vmem:[#allocation64_spill] sm:$0xff] }
0x1259   : > { %v11247_v56 = vpop.eup %11246  ;;  %9702 = vmatpush3.bf16.msra.mxu1 %v16897_v15 }
0x125a   : > { %9703 = vmatprep.subr.bf16.mxu1 %v16898_v63  ;;  %v4429_v14 = vmul.f32 %v11247_v56, %v14327_v30  ;;  %v4428_v2 = vmul.f32 %v11247_v56, %v14323_v48  ;;  %v16904_v56 = vld [vmem:[#allocation93_spill] sm:$0xff] }
0x125c   : > { %v4437_v46 = vpack.c.bf16 %v4429_v14, %v4427_v12  ;;  %v4436_v13 = vpack.c.bf16 %v4428_v2, %v4426_v55  ;;  %v16905_v55 = vld [vmem:[#allocation94_spill] sm:$0xff] }
0x125d   : > { %9704 = vmatpush3.bf16.msra.mxu1 %v16899_v37 }
0x125e   : > { %9705 = vmatprep.subr.bf16.mxu1 %v16900_v57  ;;  %4494 = vmatprep.mubr.bf16.mxu1 %v4437_v46 }
0x1260   : > { %4495 = vmatmul.mubr.bf16.gmra.mrb[204].mxu1 %v4436_v13 }
0x1261   : > { %9706 = vmatpush3.bf16.msra.mxu1 %v16901_v26 }
0x1262   : > { %9707 = vmatprep.subr.bf16.mxu1 %v13848_v21 }
0x1265   : > { %9708 = vmatpush3.bf16.msra.mxu1 %v16902_v24 }
0x1266   : > { %9739 = vmatprep.subr.bf16.mxu1 %v16903_v35 }
0x131b   : > { %v9663_v30 = vpop.f32.mrb[192].mxu1 }
0x131c   : > { %v9664_v18 = vpop.f32.mrb[193].mxu1 }
0x131d   : > { %v9665_v22 = vadd.f32 %v9664_v18, %v9663_v30  ;;  %v9666_v48 = vpop.f32.mrb[194].mxu1  ;;  %v16906_v30 = vld [vmem:[#allocation129_spill] sm:$0xff] }
0x131e   : > { %v9667_v62 = vpop.f32.mrb[195].mxu1 }
0x131f   : > { %v9668_v3 = vadd.f32 %v9667_v62, %v9666_v48 }
0x1321   : > { %v4503_v28 = vpack.c.bf16 %v9668_v3, %v9665_v22  ;;  %v11814_v22 = vld [vmem:[#allocation10 + $0x30] sm:$0xff]  }
0x1323   : > { %v9669_v36 = vpop.f32.mrb[196].mxu1  ;;  %10351 = vmatprep.mubr.msk.bf16.mxu0 %vm1798_vm0, %v4503_v28 }
0x1324   : > { %v9670_v45 = vpop.f32.mrb[197].mxu1 }
0x1325   : > { %v9671_v51 = vadd.f32 %v9670_v45, %v9669_v36  ;;  %v9672_v49 = vpop.f32.mrb[198].mxu1 }
0x1326   : > { %v9673_v20 = vpop.f32.mrb[199].mxu1 }
0x1327   : > { %v9674_v27 = vadd.f32 %v9673_v20, %v9672_v49  ;;  %v4593_v49 = vpop.permute.xlu0 %4592  ;;  %v11815_v20 = vld [vmem:[#allocation10 + $0x38] sm:$0xff]  }
0x1329   : > { %v4504_v59 = vpack.c.bf16 %v9674_v27, %v9671_v51  ;;  %v16907_v27 = vld [vmem:[#allocation79_spill] sm:$0xff] }
0x132b   : > { %v9675_v32 = vpop.f32.mrb[200].mxu1  ;;  %10352 = vmatmul.mubr.msk.bf16.vlgmr.msra.gmra.mrb[184].mxu0 %vm1798_vm0, %v4504_v59  ;;  %v4595_v59 = vpop.permute.xlu1 %4594 }
0x132c   : > { %4613 = vmatpush1.bf16.msra.mxu0 %v16904_v56  ;;  %v9676_v12 = vpop.f32.mrb[201].mxu1 }
0x132d   : > { %v9677_v14 = vadd.f32 %v9676_v12, %v9675_v32  ;;  %4614 = vmatprep.subr.bf16.mxu0 %v16905_v55  ;;  %v9678_v2 = vpop.f32.mrb[202].mxu1  ;;  %v4599_v12 = vpop.permute.xlu0 %4598 }
0x132e   : > { %v9679_v46 = vpop.f32.mrb[203].mxu1 }
0x132f   : > { %v9680_v13 = vadd.f32 %v9679_v46, %v9678_v2  ;;  %v4597_v32 = vpop.permute.xlu1 %4596 }
0x1330   : > { %4615 = vmatpush1.bf16.msra.mxu0 %v16906_v30 }
0x1331   : > { %v4505_v18 = vpack.c.bf16 %v9680_v13, %v9677_v14  ;;  %10359 = vmatprep.subr.bf16.mxu0 %v11814_v22 }
0x1333   : > { %v9681_v48 = vpop.f32.mrb[204].mxu1  ;;  %10355 = vmatprep.mubr.msk.bf16.mxu0 %vm1798_vm0, %v4505_v18 }
0x1334   : > { %v9682_v62 = vpop.f32.mrb[205].mxu1 }
0x1335   : > { %v9683_v3 = vadd.f32 %v9682_v62, %v9681_v48  ;;  %v9684_v28 = vpop.f32.mrb[206].mxu1 }
0x1336   : > { %v9685_v36 = vpop.f32.mrb[207].mxu1 }
0x1337   : > { %v9686_v45 = vadd.f32 %v9685_v36, %v9684_v28 }
0x1339   : > { %v4506_v51 = vpack.c.bf16 %v9686_v45, %v9683_v3 }
0x133b   : > { %10356 = vmatmul.mubr.msk.bf16.gmra.mrb[188].mxu0 %vm1798_vm0, %v4506_v51 }
0x133c   : > { %4644 = vmatprep.mubr.bf16.mxu0 %v16799_v54 }
0x1343   : > { %9210 = vmatmul.mubr.msk.bf16.vlgmr.msra.gmra.mrb[192].mxu0 %vm1798_vm0, %v4593_v49 }
0x1344   : > { %10360 = vmatpush3.bf16.msra.mxu0 %v11814_v22  ;;  %4654 = vmatprep.mubr.bf16.mxu0 %v16799_v54 }
0x1345   : > { %10361 = vmatprep.subr.bf16.mxu0 %v11815_v20 }
0x1348   : > { %10362 = vmatpush3.bf16.msra.mxu0 %v11815_v20 }
0x1349   : > { %4979 = vmatprep.subr.bf16.mxu0 %v16907_v27 }
0x134b   : > { %9211 = vmatmul.mubr.msk.bf16.gmra.mrb[196].mxu0 %vm1798_vm0, %v4595_v59 }
0x134c   : > { %4664 = vmatprep.mubr.bf16.mxu0 %v16799_v54 }
0x1353   : > { %9212 = vmatmul.mubr.msk.bf16.gmra.mrb[200].mxu0 %vm1798_vm0, %v4597_v32 }
0x1354   : > { %4674 = vmatprep.mubr.bf16.mxu0 %v16799_v54 }
0x135b   : > { %9213 = vmatmul.mubr.msk.bf16.gmra.mrb[204].mxu0 %vm1798_vm0, %v4599_v12 }
0x1416   : > { %v4646_v14 = vpop.f32.mrb[192].mxu0 }
0x1417   : > { %v4648_v2 = vpop.f32.mrb[193].mxu0 }
0x1418   : > { %v4685_v46 = vmax.f32 %v4646_v14, %v4648_v2  ;;  %v4650_v13 = vpop.f32.mrb[194].mxu0 }
0x1419   : > { %v4652_v18 = vpop.f32.mrb[195].mxu0 }
0x141a   : > { %v4688_v22 = vmax.f32 %v4650_v13, %v4652_v18  ;;  %4686 = vmax.xlane.f32.xlu1 %v4685_v46 }
0x141c   : > { %4689 = vmax.xlane.f32.xlu0 %v4688_v22 }
0x141e   : > { %v4656_v48 = vpop.f32.mrb[196].mxu0 }
0x141f   : > { %v4658_v62 = vpop.f32.mrb[197].mxu0 }
0x1420   : > { %v4691_v3 = vmax.f32 %v4656_v48, %v4658_v62  ;;  %v4660_v28 = vpop.f32.mrb[198].mxu0 }
0x1421   : > { %v4662_v36 = vpop.f32.mrb[199].mxu0 }
0x1422   : > { %v4694_v45 = vmax.f32 %v4660_v28, %v4662_v36  ;;  %4692 = vmax.xlane.f32.xlu0 %v4691_v3 }
0x1424   : > { %4695 = vmax.xlane.f32.xlu1 %v4694_v45 }
0x1426   : > { %v4666_v51 = vpop.f32.mrb[200].mxu0 }
0x1427   : > { %v4668_v49 = vpop.f32.mrb[201].mxu0 }
0x1428   : > { %v4697_v20 = vmax.f32 %v4666_v51, %v4668_v49  ;;  %v4670_v59 = vpop.f32.mrb[202].mxu0 }
0x1429   : > { %v4672_v32 = vpop.f32.mrb[203].mxu0 }
0x142a   : > { %v4700_v12 = vmax.f32 %v4670_v59, %v4672_v32  ;;  %4698 = vmax.xlane.f32.xlu0 %v4697_v20 }
0x142c   : > { %4701 = vmax.xlane.f32.xlu1 %v4700_v12 }
0x142e   : > { %v14385_v27 = vpop.f32.mrb[204].mxu0 }
0x142f   : > { %v14387_v46 = vpop.f32.mrb[205].mxu0 }
0x1430   : > { %v4703_v22 = vmax.f32 %v14385_v27, %v14387_v46  ;;  %v14391_v30 = vpop.f32.mrb[206].mxu0 }
0x1431   : > { %v14393_v55 = vpop.f32.mrb[207].mxu0 }
0x1432   : > { %v4706_v3 = vmax.f32 %v14391_v30, %v14393_v55  ;;  %4704 = vmax.xlane.f32.xlu0 %v4703_v22 }
0x1434   : > { %4707 = vmax.xlane.f32.xlu1 %v4706_v3 }
0x14a7   : > { %v4687_v45 = vpop.xlane.xlu1 %4686 }
0x14a8   : > { %v4709_v56 = vsub.f32 %v4646_v14, %v4687_v45  ;;  %v4710_v20 = vsub.f32 %v4648_v2, %v4687_v45 }
0x14a9   : > { %v4690_v12 = vpop.xlane.xlu0 %4689 }
0x14aa   : > { %v4725_v35 = vmul.f32 1.442695, %v4709_v56  ;;  %v4727_v24 = vmul.f32 1.442695, %v4710_v20  ;;  %v4711_v21 = vsub.f32 %v4650_v13, %v4690_v12  ;;  %v4712_v26 = vsub.f32 %v4652_v18, %v4690_v12 }
0x14ac   : > { %11248 = vpow2.f32 %v4725_v35  ;;  %v4729_v57 = vmul.f32 1.442695, %v4711_v21  ;;  %v4731_v37 = vmul.f32 1.442695, %v4712_v26 }
0x14ad   : > { %11250 = vpow2.f32 %v4727_v24 }
0x14ae   : > { %11252 = vpow2.f32 %v4729_v57 }
0x14af   : > { %11254 = vpow2.f32 %v4731_v37  ;;  %v4693_v63 = vpop.xlane.xlu0 %4692 }
0x14b0   : > { %v4713_v15 = vsub.f32 %v4656_v48, %v4693_v63  ;;  %v4714_v34 = vsub.f32 %v4658_v62, %v4693_v63 }
0x14b1   : > { %v4696_v16 = vpop.xlane.xlu1 %4695 }
0x14b2   : > { %v4733_v22 = vmul.f32 1.442695, %v4713_v15  ;;  %v4735_v3 = vmul.f32 1.442695, %v4714_v34  ;;  %v4715_v25 = vsub.f32 %v4660_v28, %v4696_v16  ;;  %v4716_v14 = vsub.f32 %v4662_v36, %v4696_v16 }
0x14b4   : > { %11256 = vpow2.f32 %v4733_v22  ;;  %v4737_v2 = vmul.f32 1.442695, %v4715_v25  ;;  %v4739_v56 = vmul.f32 1.442695, %v4716_v14 }
0x14b5   : > { %11258 = vpow2.f32 %v4735_v3 }
0x14b6   : > { %v14397_v13 = vpop.eup %11248  ;;  %11260 = vpow2.f32 %v4737_v2 }
0x14b7   : > { %v14399_v21 = vpop.eup %11250  ;;  %11262 = vpow2.f32 %v4739_v56  ;;  %v4699_v57 = vpop.xlane.xlu0 %4698 }
0x14b8   : > { %v14401_v37 = vpop.eup %11252  ;;  %v4717_v26 = vsub.f32 %v4666_v51, %v4699_v57  ;;  %v4718_v63 = vsub.f32 %v4668_v49, %v4699_v57  ;;  %v4757_v34 = vadd.f32 %v14399_v21, %v14397_v13 }
0x14b9   : > { %v14405_v15 = vpop.eup %11254  ;;  %v4702_v16 = vpop.xlane.xlu1 %4701 }
0x14ba   : > { %v4741_v25 = vmul.f32 1.442695, %v4717_v26  ;;  %v4743_v24 = vmul.f32 1.442695, %v4718_v63  ;;  %4758 = vadd.xlane.f32.xlu0 %v4757_v34  ;;  %v4719_v35 = vsub.f32 %v4670_v59, %v4702_v16  ;;  %v4720_v18 = vsub.f32 %v4672_v32, %v4702_v16 }
0x14bb   : > { %v4760_v48 = vadd.f32 %v14405_v15, %v14401_v37 }
0x14bc   : > { %11264 = vpow2.f32 %v4741_v25  ;;  %v4745_v62 = vmul.f32 1.442695, %v4719_v35  ;;  %v4747_v28 = vmul.f32 1.442695, %v4720_v18 }
0x14bd   : > { %11266 = vpow2.f32 %v4743_v24  ;;  %4761 = vadd.xlane.f32.xlu1 %v4760_v48 }
0x14be   : > { %v14409_v36 = vpop.eup %11256  ;;  %11268 = vpow2.f32 %v4745_v62 }
0x14bf   : > { %v14411_v51 = vpop.eup %11258  ;;  %11270 = vpow2.f32 %v4747_v28  ;;  %v4705_v49 = vpop.xlane.xlu0 %4704  ;;  %v16908_v28 = vld [vmem:[#allocation68_spill] sm:$0xff] }
0x14c0   : > { %v14413_v45 = vpop.eup %11260  ;;  %v4721_v59 = vsub.f32 %v14385_v27, %v4705_v49  ;;  %v4722_v32 = vsub.f32 %v14387_v46, %v4705_v49  ;;  %v4763_v20 = vadd.f32 %v14411_v51, %v14409_v36  ;;  %v16909_v49 = vld [vmem:[#allocation65_spill] sm:$0xff] }
0x14c1   : > { %v11263_v12 = vpop.eup %11262  ;;  %v4708_v22 = vpop.xlane.xlu1 %4707 }
0x14c2   : > { %v4749_v3 = vmul.f32 1.442695, %v4721_v59  ;;  %v4751_v14 = vmul.f32 1.442695, %v4722_v32  ;;  %4764 = vadd.xlane.f32.xlu0 %v4763_v20  ;;  %v4723_v2 = vsub.f32 %v14391_v30, %v4708_v22  ;;  %v4724_v56 = vsub.f32 %v14393_v55, %v4708_v22  ;;  %v16910_v59 = vld [vmem:[#allocation71_spill] sm:$0xff]  ;;  %v16911_v32 = vld [vmem:[#allocation74_spill] sm:$0xff] }
0x14c3   : > { %v4766_v57 = vadd.f32 %v11263_v12, %v14413_v45 }
0x14c4   : > { %11272 = vpow2.f32 %v4749_v3  ;;  %v4753_v26 = vmul.f32 1.442695, %v4723_v2  ;;  %v4755_v63 = vmul.f32 1.442695, %v4724_v56 }
0x14c5   : > { %11274 = vpow2.f32 %v4751_v14  ;;  %4767 = vadd.xlane.f32.xlu1 %v4766_v57 }
0x14c6   : > { %v14422_v27 = vpop.eup %11264  ;;  %11276 = vpow2.f32 %v4753_v26 }
0x14c7   : > { %v14424_v46 = vpop.eup %11266  ;;  %11278 = vpow2.f32 %v4755_v63 }
0x14c8   : > { %v14426_v34 = vpop.eup %11268  ;;  %v4769_v30 = vadd.f32 %v14424_v46, %v14422_v27 }
0x14c9   : > { %v11271_v16 = vpop.eup %11270 }
0x14ca   : > { %4770 = vadd.xlane.f32.xlu0 %v4769_v30  ;;  %v4772_v55 = vadd.f32 %v11271_v16, %v14426_v34 }
0x14cc   : > { %4773 = vadd.xlane.f32.xlu1 %v4772_v55 }
0x14ce   : > { %v14431_v25 = vpop.eup %11272 }
0x14cf   : > { %v14433_v24 = vpop.eup %11274 }
0x14d0   : > { %v14435_v35 = vpop.eup %11276  ;;  %v4775_v18 = vadd.f32 %v14433_v24, %v14431_v25 }
0x14d1   : > { %v14439_v48 = vpop.eup %11278 }
0x14d2   : > { %4776 = vadd.xlane.f32.xlu0 %v4775_v18  ;;  %v4778_v62 = vadd.f32 %v14439_v48, %v14435_v35 }
0x14d4   : > { %4779 = vadd.xlane.f32.xlu1 %v4778_v62 }
0x14e5   : > { %5255 = vrot.lane.b32.xlu1 %v16908_v28, %s12096_s25 }
0x14e8   : > { %5253 = vrot.lane.b32.xlu0 %v16909_v49, %s12096_s25 }
0x14e9   : > { %5257 = vrot.lane.b32.xlu1 %v16910_v59, %s12096_s25 }
0x14ec   : > { %5259 = vrot.lane.b32.xlu0 %v16911_v32, %s12096_s25 }
0x1547   : > { %v4759_v20 = vpop.xlane.xlu0 %4758 }
0x1548   : > { %11280 = vrcp.f32 %v4759_v20 }
0x154a   : > { %v4762_v22 = vpop.xlane.xlu1 %4761 }
0x154b   : > { %11282 = vrcp.f32 %v4762_v22 }
0x154f   : > { %v4765_v3 = vpop.xlane.xlu0 %4764 }
0x1550   : > { %11284 = vrcp.f32 %v4765_v3  ;;  %v16912_v3 = vld [vmem:[#allocation52_spill] sm:$0xff] }
0x1552   : > { %v4768_v14 = vpop.xlane.xlu1 %4767  ;;  %v11281_v2 = vpop.eup %11280 }
0x1553   : > { %11286 = vrcp.f32 %v4768_v14  ;;  %v4789_v57 = vmul.f32 %v11281_v2, %v14397_v13  ;;  %v4790_v63 = vmul.f32 %v11281_v2, %v14399_v21 }
0x1555   : > { %v11283_v56 = vpop.eup %11282 }
0x1556   : > { %v4791_v26 = vmul.f32 %v11283_v56, %v14401_v37  ;;  %v4792_v30 = vmul.f32 %v11283_v56, %v14405_v15  ;;  %v16914_v56 = vld [vmem:[#allocation51_spill] sm:$0xff] }
0x1557   : > { %v4771_v55 = vpop.xlane.xlu0 %4770 }
0x1558   : > { %11288 = vrcp.f32 %v4771_v55  ;;  %v4806_v18 = vpack.c.bf16 %v4792_v30, %v4790_v63  ;;  %v4805_v62 = vpack.c.bf16 %v4791_v26, %v4789_v57  ;;  %v16915_v63 = vld [vmem:[#allocation67_spill] sm:$0xff] }
0x1559   : > { %v4774_v20 = vpop.xlane.xlu1 %4773 }
0x155a   : > { %4845 = vmatprep.mubr.bf16.mxu1 %v4806_v18  ;;  %11290 = vrcp.f32 %v4774_v20  ;;  %v11285_v22 = vpop.eup %11284 }
0x155b   : > { %4846 = vmatmul.mubr.bf16.vlgmr.msra.gmra.mrb[208].mxu1 %v4805_v62  ;;  %v4794_v13 = vmul.f32 %v11285_v22, %v14411_v51  ;;  %v4793_v21 = vmul.f32 %v11285_v22, %v14409_v36  ;;  %v16916_v51 = vld [vmem:[#allocation54_spill] sm:$0xff] }
0x155c   : > { %9740 = vmatpush3.bf16.msra.mxu1 %v16912_v3 }
0x155d   : > { %v11287_v14 = vpop.eup %11286  ;;  %9741 = vmatprep.subr.bf16.mxu1 %v16913_v42 }
0x155e   : > { %v4796_v37 = vmul.f32 %v11287_v14, %v11263_v12  ;;  %v4795_v15 = vmul.f32 %v11287_v14, %v14413_v45  ;;  %v16917_v12 = vld [vmem:[#allocation66_spill] sm:$0xff] }
0x155f   : > { %v4777_v2 = vpop.xlane.xlu0 %4776 }
0x1560   : > { %9742 = vmatpush3.bf16.msra.mxu1 %v16914_v56  ;;  %11292 = vrcp.f32 %v4777_v2  ;;  %v4808_v57 = vpack.c.bf16 %v4796_v37, %v4794_v13  ;;  %v4807_v26 = vpack.c.bf16 %v4795_v15, %v4793_v21  ;;  %v16918_v13 = vld [vmem:[#allocation53_spill] sm:$0xff]  ;;  %v16919_v37 = vld [vmem:[#allocation70_spill] sm:$0xff] }
0x1561   : > { %9743 = vmatprep.subr.bf16.mxu1 %v16915_v63  ;;  %v4780_v30 = vpop.xlane.xlu1 %4779  ;;  %v16920_v2 = vld [vmem:[#allocation57_spill] sm:$0xff] }
0x1562   : > { %v11289_v55 = vpop.eup %11288  ;;  %4853 = vmatprep.mubr.bf16.mxu1 %v4808_v57  ;;  %11294 = vrcp.f32 %v4780_v30  ;;  %v16921_v57 = vld [vmem:[#allocation69_spill] sm:$0xff] }
0x1563   : > { %4854 = vmatmul.mubr.bf16.gmra.mrb[212].mxu1 %v4807_v26  ;;  %v4798_v36 = vmul.f32 %v11289_v55, %v14424_v46  ;;  %v4797_v62 = vmul.f32 %v11289_v55, %v14422_v27  ;;  %v16922_v55 = vld [vmem:[#allocation56_spill] sm:$0xff] }
0x1564   : > { %v11291_v18 = vpop.eup %11290  ;;  %9744 = vmatpush3.bf16.msra.mxu1 %v16916_v51 }
0x1565   : > { %9745 = vmatprep.subr.bf16.mxu1 %v16917_v12  ;;  %v4800_v45 = vmul.f32 %v11291_v18, %v11271_v16  ;;  %v4799_v20 = vmul.f32 %v11291_v18, %v14426_v34  ;;  %v16923_v18 = vld [vmem:[#allocation73_spill] sm:$0xff] }
0x1567   : > { %v4810_v22 = vpack.c.bf16 %v4800_v45, %v4798_v36  ;;  %v4809_v14 = vpack.c.bf16 %v4799_v20, %v4797_v62  ;;  %v16924_v36 = vld [vmem:[#allocation61_spill] sm:$0xff]  ;;  %v16925_v45 = vld [vmem:[#allocation72_spill] sm:$0xff] }
0x1568   : > { %9746 = vmatpush3.bf16.msra.mxu1 %v16918_v13  ;;  %v16926_v62 = vld [vmem:[#allocation60_spill] sm:$0xff] }
0x1569   : > { %9747 = vmatprep.subr.bf16.mxu1 %v16919_v37  ;;  %4861 = vmatprep.mubr.bf16.mxu1 %v4810_v22 }
0x156a   : > { %v11293_v21 = vpop.eup %11292 }
0x156b   : > { %4862 = vmatmul.mubr.bf16.gmra.mrb[216].mxu1 %v4809_v14  ;;  %v4802_v46 = vmul.f32 %v11293_v21, %v14433_v24  ;;  %v4801_v34 = vmul.f32 %v11293_v21, %v14431_v25  ;;  %v16927_v24 = vld [vmem:[#allocation95_spill] sm:$0xff] }
0x156c   : > { %v11295_v15 = vpop.eup %11294  ;;  %9748 = vmatpush3.bf16.msra.mxu1 %v16920_v2 }
0x156d   : > { %9749 = vmatprep.subr.bf16.mxu1 %v16921_v57  ;;  %v4804_v27 = vmul.f32 %v11295_v15, %v14439_v48  ;;  %v4803_v16 = vmul.f32 %v11295_v15, %v14435_v35 }
0x156f   : > { %v4812_v26 = vpack.c.bf16 %v4804_v27, %v4802_v46  ;;  %v4811_v30 = vpack.c.bf16 %v4803_v16, %v4801_v34 }
0x1570   : > { %9750 = vmatpush3.bf16.msra.mxu1 %v16922_v55 }
0x1571   : > { %9751 = vmatprep.subr.bf16.mxu1 %v16923_v18  ;;  %4869 = vmatprep.mubr.bf16.mxu1 %v4812_v26 }
0x1573   : > { %4870 = vmatmul.mubr.bf16.gmra.mrb[220].mxu1 %v4811_v30 }
0x1574   : > { %9752 = vmatpush3.bf16.msra.mxu1 %v16924_v36 }
0x1575   : > { %9753 = vmatprep.subr.bf16.mxu1 %v16925_v45 }
0x1578   : > { %9754 = vmatpush3.bf16.msra.mxu1 %v16926_v62 }
0x1579   : > { %9779 = vmatprep.subr.bf16.mxu1 %v16927_v24  ;;  %v16928_v24 = vld [vmem:[#allocation80_spill] sm:$0xff] }
0x162e   : > { %v9709_v48 = vpop.f32.mrb[208].mxu1 }
0x162f   : > { %v9710_v25 = vpop.f32.mrb[209].mxu1 }
0x1630   : > { %v9711_v20 = vadd.f32 %v9710_v25, %v9709_v48  ;;  %v9712_v35 = vpop.f32.mrb[210].mxu1  ;;  %v16929_v25 = vld [vmem:[#allocation81_spill] sm:$0xff] }
0x1631   : > { %v9713_v22 = vpop.f32.mrb[211].mxu1 }
0x1632   : > { %v9714_v14 = vadd.f32 %v9713_v22, %v9712_v35 }
0x1634   : > { %v4878_v21 = vpack.c.bf16 %v9714_v14, %v9711_v20  ;;  %v16930_v14 = vld [vmem:[#allocation82_spill] sm:$0xff] }
0x1636   : > { %v9715_v15 = vpop.f32.mrb[212].mxu1  ;;  %10363 = vmatprep.mubr.msk.bf16.mxu0 %vm1798_vm0, %v4878_v21 }
0x1637   : > { %v9716_v46 = vpop.f32.mrb[213].mxu1 }
0x1638   : > { %v9717_v27 = vadd.f32 %v9716_v46, %v9715_v15  ;;  %v9718_v34 = vpop.f32.mrb[214].mxu1  ;;  %v16931_v15 = vld [vmem:[#allocation83_spill] sm:$0xff] }
0x1639   : > { %v9719_v16 = vpop.f32.mrb[215].mxu1 }
0x163a   : > { %v9720_v26 = vadd.f32 %v9719_v16, %v9718_v34 }
0x163c   : > { %v4879_v30 = vpack.c.bf16 %v9720_v26, %v9717_v27 }
0x163e   : > { %v9721_v45 = vpop.f32.mrb[216].mxu1  ;;  %10364 = vmatmul.mubr.msk.bf16.vlgmr.msra.gmra.mrb[184].mxu0 %vm1798_vm0, %v4879_v30 }
0x163f   : > { %4980 = vmatpush1.bf16.msra.mxu0 %v16928_v24  ;;  %v9722_v62 = vpop.f32.mrb[217].mxu1 }
0x1640   : > { %v9723_v48 = vadd.f32 %v9722_v62, %v9721_v45  ;;  %4981 = vmatprep.subr.bf16.mxu0 %v16929_v25  ;;  %v9724_v35 = vpop.f32.mrb[218].mxu1  ;;  %v16932_v45 = vld [vmem:[#allocation84_spill] sm:$0xff]  ;;  %v16933_v62 = vld [vmem:[#allocation85_spill] sm:$0xff] }
0x1641   : > { %v9725_v20 = vpop.f32.mrb[219].mxu1 }
0x1642   : > { %v9726_v22 = vadd.f32 %v9725_v20, %v9724_v35  ;;  %v11816_v35 = vld [vmem:[#allocation10 + $0x10] sm:$0xff]   ;;  %v11817_v20 = vld [vmem:[#allocation10 + $0x18] sm:$0xff]  }
0x1643   : > { %4982 = vmatpush1.bf16.msra.mxu0 %v16930_v14 }
0x1644   : > { %v4880_v21 = vpack.c.bf16 %v9726_v22, %v9723_v48  ;;  %5273 = vmatprep.subr.bf16.mxu0 %v16931_v15  ;;  %v16934_v48 = vld [vmem:[#allocation86_spill] sm:$0xff]  ;;  %v14507_v22 = vld [vmem:[#allocation10] sm:$0xff]  }
0x1645   : > { %16935 = vst [vmem:[#allocation99_spill] sm:$0xff] %v14507_v22 }
0x1646   : > { %v9727_v46 = vpop.f32.mrb[220].mxu1  ;;  %10367 = vmatprep.mubr.msk.bf16.mxu0 %vm1798_vm0, %v4880_v21  ;;  %v5256_v21 = vpop.permute.xlu1 %5255 }
0x1647   : > { %v9728_v27 = vpop.f32.mrb[221].mxu1 }
0x1648   : > { %v9729_v34 = vadd.f32 %v9728_v27, %v9727_v46  ;;  %v9730_v16 = vpop.f32.mrb[222].mxu1 }
0x1649   : > { %v9731_v26 = vpop.f32.mrb[223].mxu1 }
0x164a   : > { %v9732_v30 = vadd.f32 %v9731_v26, %v9730_v16  ;;  %v5258_v46 = vpop.permute.xlu1 %5257 }
0x164c   : > { %v4881_v24 = vpack.c.bf16 %v9732_v30, %v9729_v34 }
0x164e   : > { %10368 = vmatmul.mubr.msk.bf16.gmra.mrb[188].mxu0 %vm1798_vm0, %v4881_v24  ;;  %v5254_v24 = vpop.permute.xlu0 %5253 }
0x164f   : > { %5011 = vmatprep.mubr.bf16.mxu0 %v16799_v54 }
0x1652   : > { %v5260_v27 = vpop.permute.xlu0 %5259 }
0x1656   : > { %9218 = vmatmul.mubr.msk.bf16.vlgmr.msra.gmra.mrb[208].mxu0 %vm1798_vm0, %v16909_v49 }
0x1657   : > { %5274 = vmatpush1.bf16.msra.mxu0 %v16932_v45  ;;  %5021 = vmatprep.mubr.bf16.mxu0 %v16799_v54 }
0x1658   : > { %5275 = vmatprep.subr.bf16.mxu0 %v16933_v62 }
0x165b   : > { %5276 = vmatpush1.bf16.msra.mxu0 %v16934_v48 }
0x165c   : > { %10371 = vmatprep.subr.bf16.mxu0 %v11816_v35 }
0x165e   : > { %9219 = vmatmul.mubr.msk.bf16.gmra.mrb[212].mxu0 %vm1798_vm0, %v16908_v28 }
0x165f   : > { %5031 = vmatprep.mubr.bf16.mxu0 %v16799_v54 }
0x1666   : > { %9220 = vmatmul.mubr.msk.bf16.gmra.mrb[216].mxu0 %vm1798_vm0, %v16910_v59 }
0x1667   : > { %5041 = vmatprep.mubr.bf16.mxu0 %v16799_v54 }
0x166e   : > { %9221 = vmatmul.mubr.msk.bf16.gmra.mrb[220].mxu0 %vm1798_vm0, %v16911_v32 }
0x166f   : > { %5305 = vmatprep.mubr.bf16.mxu0 %v16799_v54 }
0x1676   : > { %9222 = vmatmul.mubr.msk.bf16.vlgmr.msra.gmra.mrb[224].mxu0 %vm1798_vm0, %v5254_v24 }
0x1677   : > { %5315 = vmatprep.mubr.bf16.mxu0 %v16799_v54  ;;  %10372 = vmatpush3.bf16.msra.mxu0 %v11816_v35 }
0x1678   : > { %10373 = vmatprep.subr.bf16.mxu0 %v11817_v20 }
0x167b   : > { %10374 = vmatpush3.bf16.msra.mxu0 %v11817_v20 }
0x167c   : > { %10383 = vmatprep.subr.bf16.mxu0 %v14507_v22 }
0x167e   : > { %9223 = vmatmul.mubr.msk.bf16.gmra.mrb[228].mxu0 %vm1798_vm0, %v5256_v21 }
0x167f   : > { %5325 = vmatprep.mubr.bf16.mxu0 %v16799_v54 }
0x1686   : > { %9224 = vmatmul.mubr.msk.bf16.gmra.mrb[232].mxu0 %vm1798_vm0, %v5258_v46 }
0x1687   : > { %5335 = vmatprep.mubr.bf16.mxu0 %v16799_v54 }
0x168e   : > { %9225 = vmatmul.mubr.msk.bf16.gmra.mrb[236].mxu0 %vm1798_vm0, %v5260_v27 }
0x1711   : > { %v14515_v34 = vpop.f32.mrb[184].mxu0 }
0x1712   : > { %16936 = vst [vmem:[#allocation98_spill] sm:$0xff] %v14515_v34  ;;  %v14517_v16 = vpop.f32.mrb[185].mxu0 }
0x1713   : > { %16937 = vst [vmem:[#allocation100_spill] sm:$0xff] %v14517_v16  ;;  %v14519_v26 = vpop.f32.mrb[186].mxu0 }
0x1714   : > { %16938 = vst [vmem:[#allocation101_spill] sm:$0xff] %v14519_v26  ;;  %v14521_v30 = vpop.f32.mrb[187].mxu0 }
0x1715   : > { %16939 = vst [vmem:[#allocation103_spill] sm:$0xff] %v14521_v30 }
0x1721   : > { %v14523_v35 = vpop.f32.mrb[188].mxu0 }
0x1722   : > { %16940 = vst [vmem:[#allocation102_spill] sm:$0xff] %v14523_v35  ;;  %v14525_v24 = vpop.f32.mrb[189].mxu0 }
0x1723   : > { %16941 = vst [vmem:[#allocation105_spill] sm:$0xff] %v14525_v24  ;;  %v14527_v20 = vpop.f32.mrb[190].mxu0 }
0x1724   : > { %16942 = vst [vmem:[#allocation104_spill] sm:$0xff] %v14527_v20  ;;  %v14529_v21 = vpop.f32.mrb[191].mxu0 }
0x1725   : > { %16943 = vst [vmem:[#allocation68_spill] sm:$0xff] %v14529_v21 }
0x1729   : > { %v14531_v46 = vpop.f32.mrb[208].mxu0 }
0x172a   : > { %v14533_v48 = vpop.f32.mrb[209].mxu0 }
0x172b   : > { %v5052_v27 = vmax.f32 %v14531_v46, %v14533_v48  ;;  %v14537_v34 = vpop.f32.mrb[210].mxu0 }
0x172c   : > { %v14539_v26 = vpop.f32.mrb[211].mxu0 }
0x172d   : > { %v5055_v35 = vmax.f32 %v14537_v34, %v14539_v26  ;;  %5053 = vmax.xlane.f32.xlu1 %v5052_v27 }
0x172f   : > { %5056 = vmax.xlane.f32.xlu0 %v5055_v35 }
0x1731   : > { %v14543_v24 = vpop.f32.mrb[212].mxu0 }
0x1732   : > { %v14545_v20 = vpop.f32.mrb[213].mxu0 }
0x1733   : > { %v5058_v21 = vmax.f32 %v14543_v24, %v14545_v20  ;;  %v14549_v16 = vpop.f32.mrb[214].mxu0 }
0x1734   : > { %v14551_v30 = vpop.f32.mrb[215].mxu0 }
0x1735   : > { %v5061_v62 = vmax.f32 %v14549_v16, %v14551_v30  ;;  %5059 = vmax.xlane.f32.xlu0 %v5058_v21 }
0x1737   : > { %5062 = vmax.xlane.f32.xlu1 %v5061_v62 }
0x1739   : > { %v14555_v45 = vpop.f32.mrb[216].mxu0 }
0x173a   : > { %v14557_v27 = vpop.f32.mrb[217].mxu0 }
0x173b   : > { %v5064_v35 = vmax.f32 %v14555_v45, %v14557_v27  ;;  %v14561_v15 = vpop.f32.mrb[218].mxu0 }
0x173c   : > { %v14563_v14 = vpop.f32.mrb[219].mxu0 }
0x173d   : > { %v5067_v25 = vmax.f32 %v14561_v15, %v14563_v14  ;;  %5065 = vmax.xlane.f32.xlu0 %v5064_v35 }
0x173f   : > { %5068 = vmax.xlane.f32.xlu1 %v5067_v25 }
0x1741   : > { %v14567_v36 = vpop.f32.mrb[220].mxu0 }
0x1742   : > { %v14569_v21 = vpop.f32.mrb[221].mxu0 }
0x1743   : > { %v5070_v62 = vmax.f32 %v14567_v36, %v14569_v21  ;;  %v14573_v18 = vpop.f32.mrb[222].mxu0 }
0x1744   : > { %v14575_v55 = vpop.f32.mrb[223].mxu0 }
0x1745   : > { %v5073_v57 = vmax.f32 %v14573_v18, %v14575_v55  ;;  %5071 = vmax.xlane.f32.xlu0 %v5070_v62 }
0x1747   : > { %5074 = vmax.xlane.f32.xlu1 %v5073_v57 }
0x1749   : > { %v14579_v2 = vpop.f32.mrb[224].mxu0 }
0x174a   : > { %v14581_v35 = vpop.f32.mrb[225].mxu0 }
0x174b   : > { %v5346_v25 = vmax.f32 %v14579_v2, %v14581_v35  ;;  %v14585_v37 = vpop.f32.mrb[226].mxu0 }
0x174c   : > { %v14587_v13 = vpop.f32.mrb[227].mxu0 }
0x174d   : > { %v5349_v12 = vmax.f32 %v14585_v37, %v14587_v13  ;;  %5347 = vmax.xlane.f32.xlu0 %v5346_v25 }
0x174f   : > { %5350 = vmax.xlane.f32.xlu1 %v5349_v12 }
0x1751   : > { %v14591_v51 = vpop.f32.mrb[228].mxu0 }
0x1752   : > { %v14593_v62 = vpop.f32.mrb[229].mxu0 }
0x1753   : > { %v5352_v57 = vmax.f32 %v14591_v51, %v14593_v62  ;;  %v14597_v63 = vpop.f32.mrb[230].mxu0 }
0x1754   : > { %v14599_v56 = vpop.f32.mrb[231].mxu0 }
0x1755   : > { %v5355_v42 = vmax.f32 %v14597_v63, %v14599_v56  ;;  %5353 = vmax.xlane.f32.xlu0 %v5352_v57 }
0x1757   : > { %5356 = vmax.xlane.f32.xlu1 %v5355_v42 }
0x1759   : > { %v14603_v3 = vpop.f32.mrb[232].mxu0 }
0x175a   : > { %v14605_v25 = vpop.f32.mrb[233].mxu0 }
0x175b   : > { %v5358_v12 = vmax.f32 %v14603_v3, %v14605_v25  ;;  %v14609_v43 = vpop.f32.mrb[234].mxu0 }
0x175c   : > { %v14611_v50 = vpop.f32.mrb[235].mxu0 }
0x175d   : > { %v5361_v7 = vmax.f32 %v14609_v43, %v14611_v50  ;;  %5359 = vmax.xlane.f32.xlu0 %v5358_v12 }
0x175f   : > { %5362 = vmax.xlane.f32.xlu1 %v5361_v7 }
0x1761   : > { %v14615_v11 = vpop.f32.mrb[236].mxu0 }
0x1762   : > { %v14617_v57 = vpop.f32.mrb[237].mxu0 }
0x1763   : > { %v5364_v42 = vmax.f32 %v14615_v11, %v14617_v57  ;;  %v14621_v22 = vpop.f32.mrb[238].mxu0 }
0x1764   : > { %v14623_v47 = vpop.f32.mrb[239].mxu0 }
0x1765   : > { %v5367_v44 = vmax.f32 %v14621_v22, %v14623_v47  ;;  %5365 = vmax.xlane.f32.xlu0 %v5364_v42 }
0x1767   : > { %5368 = vmax.xlane.f32.xlu1 %v5367_v44 }
0x17ba   : > { %v5054_v10 = vpop.xlane.xlu1 %5053 }
0x17bb   : > { %v5076_v12 = vsub.f32 %v14531_v46, %v5054_v10  ;;  %v5077_v7 = vsub.f32 %v14533_v48, %v5054_v10 }
0x17bc   : > { %v5057_v8 = vpop.xlane.xlu0 %5056 }
0x17bd   : > { %v5092_v17 = vmul.f32 1.442695, %v5076_v12  ;;  %v5094_v54 = vmul.f32 1.442695, %v5077_v7  ;;  %v5078_v53 = vsub.f32 %v14537_v34, %v5057_v8  ;;  %v5079_v6 = vsub.f32 %v14539_v26, %v5057_v8 }
0x17bf   : > { %11296 = vpow2.f32 %v5092_v17  ;;  %v5096_v9 = vmul.f32 1.442695, %v5078_v53  ;;  %v5098_v19 = vmul.f32 1.442695, %v5079_v6 }
0x17c0   : > { %11298 = vpow2.f32 %v5094_v54 }
0x17c1   : > { %11300 = vpow2.f32 %v5096_v9 }
0x17c2   : > { %11302 = vpow2.f32 %v5098_v19  ;;  %v5060_v42 = vpop.xlane.xlu0 %5059 }
0x17c3   : > { %v5080_v44 = vsub.f32 %v14543_v24, %v5060_v42  ;;  %v5081_v46 = vsub.f32 %v14545_v20, %v5060_v42 }
0x17c4   : > { %v5063_v60 = vpop.xlane.xlu1 %5062 }
0x17c5   : > { %v5100_v10 = vmul.f32 1.442695, %v5080_v44  ;;  %v5102_v48 = vmul.f32 1.442695, %v5081_v46  ;;  %v5082_v12 = vsub.f32 %v14549_v16, %v5063_v60  ;;  %v5083_v34 = vsub.f32 %v14551_v30, %v5063_v60 }
0x17c7   : > { %11304 = vpow2.f32 %v5100_v10  ;;  %v5104_v8 = vmul.f32 1.442695, %v5082_v12  ;;  %v5106_v17 = vmul.f32 1.442695, %v5083_v34 }
0x17c8   : > { %11306 = vpow2.f32 %v5102_v48 }
0x17c9   : > { %v14635_v6 = vpop.eup %11296  ;;  %11308 = vpow2.f32 %v5104_v8 }
0x17ca   : > { %v14637_v19 = vpop.eup %11298  ;;  %11310 = vpow2.f32 %v5106_v17  ;;  %v5066_v54 = vpop.xlane.xlu0 %5065 }
0x17cb   : > { %v14639_v9 = vpop.eup %11300  ;;  %v5084_v53 = vsub.f32 %v14555_v45, %v5066_v54  ;;  %v5085_v26 = vsub.f32 %v14557_v27, %v5066_v54  ;;  %v5124_v60 = vadd.f32 %v14637_v19, %v14635_v6 }
0x17cc   : > { %v14645_v16 = vpop.eup %11302  ;;  %v5069_v30 = vpop.xlane.xlu1 %5068 }
0x17cd   : > { %v5108_v24 = vmul.f32 1.442695, %v5084_v53  ;;  %v5110_v20 = vmul.f32 1.442695, %v5085_v26  ;;  %5125 = vadd.xlane.f32.xlu0 %v5124_v60  ;;  %v5086_v7 = vsub.f32 %v14561_v15, %v5069_v30  ;;  %v5087_v42 = vsub.f32 %v14563_v14, %v5069_v30 }
0x17ce   : > { %v5127_v44 = vadd.f32 %v14645_v16, %v14639_v9 }
0x17cf   : > { %11312 = vpow2.f32 %v5108_v24  ;;  %v5112_v45 = vmul.f32 1.442695, %v5086_v7  ;;  %v5114_v46 = vmul.f32 1.442695, %v5087_v42 }
0x17d0   : > { %11314 = vpow2.f32 %v5110_v20  ;;  %5128 = vadd.xlane.f32.xlu1 %v5127_v44 }
0x17d1   : > { %v14651_v27 = vpop.eup %11304  ;;  %11316 = vpow2.f32 %v5112_v45 }
0x17d2   : > { %v14653_v10 = vpop.eup %11306  ;;  %11318 = vpow2.f32 %v5114_v46  ;;  %v5072_v48 = vpop.xlane.xlu0 %5071 }
0x17d3   : > { %v14655_v12 = vpop.eup %11308  ;;  %v5088_v15 = vsub.f32 %v14567_v36, %v5072_v48  ;;  %v5089_v14 = vsub.f32 %v14569_v21, %v5072_v48  ;;  %v5130_v34 = vadd.f32 %v14653_v10, %v14651_v27 }
0x17d4   : > { %v14661_v8 = vpop.eup %11310  ;;  %v5075_v17 = vpop.xlane.xlu1 %5074 }
0x17d5   : > { %v5116_v54 = vmul.f32 1.442695, %v5088_v15  ;;  %v5118_v53 = vmul.f32 1.442695, %v5089_v14  ;;  %5131 = vadd.xlane.f32.xlu0 %v5130_v34  ;;  %v5090_v26 = vsub.f32 %v14573_v18, %v5075_v17  ;;  %v5091_v60 = vsub.f32 %v14575_v55, %v5075_v17 }
0x17d6   : > { %v5133_v30 = vadd.f32 %v14661_v8, %v14655_v12 }
0x17d7   : > { %11320 = vpow2.f32 %v5116_v54  ;;  %v5120_v36 = vmul.f32 1.442695, %v5090_v26  ;;  %v5122_v24 = vmul.f32 1.442695, %v5091_v60 }
0x17d8   : > { %11322 = vpow2.f32 %v5118_v53  ;;  %5134 = vadd.xlane.f32.xlu1 %v5133_v30 }
0x17d9   : > { %v14667_v21 = vpop.eup %11312  ;;  %11324 = vpow2.f32 %v5120_v36 }
0x17da   : > { %v14669_v20 = vpop.eup %11314  ;;  %11326 = vpow2.f32 %v5122_v24  ;;  %v5348_v7 = vpop.xlane.xlu0 %5347 }
0x17db   : > { %v14671_v42 = vpop.eup %11316  ;;  %v5370_v18 = vsub.f32 %v14579_v2, %v5348_v7  ;;  %v5371_v55 = vsub.f32 %v14581_v35, %v5348_v7  ;;  %v5136_v44 = vadd.f32 %v14669_v20, %v14667_v21 }
0x17dc   : > { %v14677_v45 = vpop.eup %11318  ;;  %v5351_v46 = vpop.xlane.xlu1 %5350 }
0x17dd   : > { %v5386_v48 = vmul.f32 1.442695, %v5370_v18  ;;  %v5388_v15 = vmul.f32 1.442695, %v5371_v55  ;;  %5137 = vadd.xlane.f32.xlu0 %v5136_v44  ;;  %v5372_v14 = vsub.f32 %v14585_v37, %v5351_v46  ;;  %v5373_v34 = vsub.f32 %v14587_v13, %v5351_v46 }
0x17de   : > { %v5139_v17 = vadd.f32 %v14677_v45, %v14671_v42 }
0x17df   : > { %11328 = vpow2.f32 %v5386_v48  ;;  %v5390_v2 = vmul.f32 1.442695, %v5372_v14  ;;  %v5392_v54 = vmul.f32 1.442695, %v5373_v34 }
0x17e0   : > { %11330 = vpow2.f32 %v5388_v15  ;;  %5140 = vadd.xlane.f32.xlu1 %v5139_v17 }
0x17e1   : > { %v14683_v35 = vpop.eup %11320  ;;  %11332 = vpow2.f32 %v5390_v2 }
0x17e2   : > { %v14685_v53 = vpop.eup %11322  ;;  %11334 = vpow2.f32 %v5392_v54  ;;  %v5354_v26 = vpop.xlane.xlu0 %5353 }
0x17e3   : > { %v14687_v60 = vpop.eup %11324  ;;  %v5374_v37 = vsub.f32 %v14591_v51, %v5354_v26  ;;  %v5375_v13 = vsub.f32 %v14593_v62, %v5354_v26  ;;  %v5142_v30 = vadd.f32 %v14685_v53, %v14683_v35 }
0x17e4   : > { %v14693_v36 = vpop.eup %11326  ;;  %v5357_v24 = vpop.xlane.xlu1 %5356 }
0x17e5   : > { %v5394_v7 = vmul.f32 1.442695, %v5374_v37  ;;  %v5396_v18 = vmul.f32 1.442695, %v5375_v13  ;;  %5143 = vadd.xlane.f32.xlu0 %v5142_v30  ;;  %v5376_v55 = vsub.f32 %v14597_v63, %v5357_v24  ;;  %v5377_v44 = vsub.f32 %v14599_v56, %v5357_v24 }
0x17e6   : > { %v5145_v46 = vadd.f32 %v14693_v36, %v14687_v60 }
0x17e7   : > { %11336 = vpow2.f32 %v5394_v7  ;;  %v5398_v51 = vmul.f32 1.442695, %v5376_v55  ;;  %v5400_v48 = vmul.f32 1.442695, %v5377_v44 }
0x17e8   : > { %11338 = vpow2.f32 %v5396_v18  ;;  %5146 = vadd.xlane.f32.xlu1 %v5145_v46 }
0x17e9   : > { %v14699_v62 = vpop.eup %11328  ;;  %11340 = vpow2.f32 %v5398_v51 }
0x17ea   : > { %v14701_v15 = vpop.eup %11330  ;;  %11342 = vpow2.f32 %v5400_v48  ;;  %v5360_v14 = vpop.xlane.xlu0 %5359 }
0x17eb   : > { %v14703_v34 = vpop.eup %11332  ;;  %v5378_v63 = vsub.f32 %v14603_v3, %v5360_v14  ;;  %v5379_v56 = vsub.f32 %v14605_v25, %v5360_v14  ;;  %v5418_v17 = vadd.f32 %v14701_v15, %v14699_v62 }
0x17ec   : > { %v14709_v2 = vpop.eup %11334  ;;  %v5363_v54 = vpop.xlane.xlu1 %5362 }
0x17ed   : > { %v5402_v26 = vmul.f32 1.442695, %v5378_v63  ;;  %v5404_v37 = vmul.f32 1.442695, %v5379_v56  ;;  %5419 = vadd.xlane.f32.xlu0 %v5418_v17  ;;  %v5380_v13 = vsub.f32 %v14609_v43, %v5363_v54  ;;  %v5381_v30 = vsub.f32 %v14611_v50, %v5363_v54 }
0x17ee   : > { %v5421_v24 = vadd.f32 %v14709_v2, %v14703_v34 }
0x17ef   : > { %11344 = vpow2.f32 %v5402_v26  ;;  %v5406_v3 = vmul.f32 1.442695, %v5380_v13  ;;  %v5408_v7 = vmul.f32 1.442695, %v5381_v30 }
0x17f0   : > { %11346 = vpow2.f32 %v5404_v37  ;;  %5422 = vadd.xlane.f32.xlu1 %v5421_v24 }
0x17f1   : > { %v14715_v25 = vpop.eup %11336  ;;  %11348 = vpow2.f32 %v5406_v3 }
0x17f2   : > { %v14717_v18 = vpop.eup %11338  ;;  %11350 = vpow2.f32 %v5408_v7  ;;  %v5366_v55 = vpop.xlane.xlu0 %5365 }
0x17f3   : > { %v14719_v44 = vpop.eup %11340  ;;  %v5382_v43 = vsub.f32 %v14615_v11, %v5366_v55  ;;  %v5383_v50 = vsub.f32 %v14617_v57, %v5366_v55  ;;  %v5424_v46 = vadd.f32 %v14717_v18, %v14715_v25 }
0x17f4   : > { %v14725_v51 = vpop.eup %11342  ;;  %v5369_v48 = vpop.xlane.xlu1 %5368 }
0x17f5   : > { %v5410_v14 = vmul.f32 1.442695, %v5382_v43  ;;  %v5412_v63 = vmul.f32 1.442695, %v5383_v50  ;;  %5425 = vadd.xlane.f32.xlu0 %v5424_v46  ;;  %v5384_v56 = vsub.f32 %v14621_v22, %v5369_v48  ;;  %v5385_v17 = vsub.f32 %v14623_v47, %v5369_v48 }
0x17f6   : > { %v5427_v54 = vadd.f32 %v14725_v51, %v14719_v44 }
0x17f7   : > { %11352 = vpow2.f32 %v5410_v14  ;;  %v5414_v11 = vmul.f32 1.442695, %v5384_v56  ;;  %v5416_v26 = vmul.f32 1.442695, %v5385_v17 }
0x17f8   : > { %11354 = vpow2.f32 %v5412_v63  ;;  %5428 = vadd.xlane.f32.xlu1 %v5427_v54 }
0x17f9   : > { %v14731_v57 = vpop.eup %11344  ;;  %11356 = vpow2.f32 %v5414_v11 }
0x17fa   : > { %v14733_v37 = vpop.eup %11346  ;;  %11358 = vpow2.f32 %v5416_v26 }
0x17fb   : > { %v14735_v13 = vpop.eup %11348  ;;  %v5430_v22 = vadd.f32 %v14733_v37, %v14731_v57 }
0x17fc   : > { %v14739_v47 = vpop.eup %11350 }
0x17fd   : > { %5431 = vadd.xlane.f32.xlu0 %v5430_v22  ;;  %v5433_v30 = vadd.f32 %v14739_v47, %v14735_v13 }
0x17ff   : > { %5434 = vadd.xlane.f32.xlu1 %v5433_v30 }
0x1801   : > { %v14743_v24 = vpop.eup %11352 }
0x1802   : > { %v14745_v3 = vpop.eup %11354 }
0x1803   : > { %v14747_v7 = vpop.eup %11356  ;;  %v5436_v55 = vadd.f32 %v14745_v3, %v14743_v24 }
0x1804   : > { %v14751_v43 = vpop.eup %11358 }
0x1805   : > { %5437 = vadd.xlane.f32.xlu0 %v5436_v55  ;;  %v5439_v50 = vadd.f32 %v14751_v43, %v14747_v7 }
0x1807   : > { %5440 = vadd.xlane.f32.xlu1 %v5439_v50 }
0x1818   : > { %5699 = vrot.lane.b32.xlu1 %v16908_v28, %s12097_s23 }
0x181b   : > { %5697 = vrot.lane.b32.xlu0 %v16909_v49, %s12097_s23 }
0x181c   : > { %5701 = vrot.lane.b32.xlu1 %v16910_v59, %s12097_s23 }
0x181f   : > { %5703 = vrot.lane.b32.xlu0 %v16911_v32, %s12097_s23 }
0x185a   : > { %v5126_v46 = vpop.xlane.xlu0 %5125 }
0x185b   : > { %11360 = vrcp.f32 %v5126_v46 }
0x185d   : > { %v5129_v48 = vpop.xlane.xlu1 %5128 }
0x185e   : > { %11362 = vrcp.f32 %v5129_v48 }
0x1862   : > { %v5132_v14 = vpop.xlane.xlu0 %5131 }
0x1863   : > { %11364 = vrcp.f32 %v5132_v14 }
0x1865   : > { %v5135_v63 = vpop.xlane.xlu1 %5134  ;;  %v11361_v56 = vpop.eup %11360 }
0x1866   : > { %11366 = vrcp.f32 %v5135_v63  ;;  %v5156_v54 = vmul.f32 %v11361_v56, %v14635_v6  ;;  %v5157_v26 = vmul.f32 %v11361_v56, %v14637_v19 }
0x1868   : > { %v11363_v17 = vpop.eup %11362 }
0x1869   : > { %v5158_v11 = vmul.f32 %v11363_v17, %v14639_v9  ;;  %v5159_v22 = vmul.f32 %v11363_v17, %v14645_v16 }
0x186a   : > { %v5138_v30 = vpop.xlane.xlu0 %5137 }
0x186b   : > { %v5173_v55 = vpack.c.bf16 %v5159_v22, %v5157_v26  ;;  %v5172_v50 = vpack.c.bf16 %v5158_v11, %v5156_v54  ;;  %11368 = vrcp.f32 %v5138_v30 }
0x186d   : > { %5212 = vmatprep.mubr.bf16.mxu1 %v5173_v55  ;;  %v5141_v46 = vpop.xlane.xlu1 %5140  ;;  %v11365_v48 = vpop.eup %11364 }
0x186e   : > { %11370 = vrcp.f32 %v5141_v46  ;;  %5213 = vmatmul.mubr.bf16.vlgmr.msra.gmra.mrb[224].mxu1 %v5172_v50  ;;  %v5161_v6 = vmul.f32 %v11365_v48, %v14653_v10  ;;  %v5160_v9 = vmul.f32 %v11365_v48, %v14651_v27 }
0x186f   : > { %9780 = vmatpush3.bf16.msra.mxu1 %v13157_v41 }
0x1870   : > { %v11367_v14 = vpop.eup %11366  ;;  %9781 = vmatprep.subr.bf16.mxu1 %v13161_v31 }
0x1871   : > { %v5163_v19 = vmul.f32 %v11367_v14, %v14661_v8  ;;  %v5162_v16 = vmul.f32 %v11367_v14, %v14655_v12 }
0x1872   : > { %v5144_v63 = vpop.xlane.xlu0 %5143 }
0x1873   : > { %9782 = vmatpush3.bf16.msra.mxu1 %v13159_v23  ;;  %v5175_v56 = vpack.c.bf16 %v5163_v19, %v5161_v6  ;;  %v5174_v17 = vpack.c.bf16 %v5162_v16, %v5160_v9  ;;  %11372 = vrcp.f32 %v5144_v63 }
0x1874   : > { %9783 = vmatprep.subr.bf16.mxu1 %v16782_v1 }
0x1875   : > { %5220 = vmatprep.mubr.bf16.mxu1 %v5175_v56  ;;  %v5147_v54 = vpop.xlane.xlu1 %5146  ;;  %v11369_v11 = vpop.eup %11368 }
0x1876   : > { %11374 = vrcp.f32 %v5147_v54  ;;  %5221 = vmatmul.mubr.bf16.gmra.mrb[228].mxu1 %v5174_v17  ;;  %v5165_v27 = vmul.f32 %v11369_v11, %v14669_v20  ;;  %v5164_v8 = vmul.f32 %v11369_v11, %v14667_v21  ;;  %v16944_v11 = vld [vmem:[#allocation96_spill] sm:$0xff] }
0x1877   : > { %9784 = vmatpush3.bf16.msra.mxu1 %v16783_v29 }
0x1878   : > { %v11371_v10 = vpop.eup %11370  ;;  %9785 = vmatprep.subr.bf16.mxu1 %v16863_v61 }
0x1879   : > { %v5167_v12 = vmul.f32 %v11371_v10, %v14677_v45  ;;  %v5166_v26 = vmul.f32 %v11371_v10, %v14671_v42 }
0x187a   : > { %v5420_v22 = vpop.xlane.xlu0 %5419 }
0x187b   : > { %9786 = vmatpush3.bf16.msra.mxu1 %v16864_v33  ;;  %v5177_v30 = vpack.c.bf16 %v5167_v12, %v5165_v27  ;;  %v5176_v55 = vpack.c.bf16 %v5166_v26, %v5164_v8  ;;  %11376 = vrcp.f32 %v5420_v22  ;;  %v16946_v12 = vld [vmem:[#allocation87_spill] sm:$0xff] }
0x187c   : > { %9787 = vmatprep.subr.bf16.mxu1 %v16865_v0 }
0x187d   : > { %5228 = vmatprep.mubr.bf16.mxu1 %v5177_v30  ;;  %v5423_v50 = vpop.xlane.xlu1 %5422  ;;  %v11373_v46 = vpop.eup %11372  ;;  %v16947_v30 = vld [vmem:[#allocation89_spill] sm:$0xff] }
0x187e   : > { %11378 = vrcp.f32 %v5423_v50  ;;  %5229 = vmatmul.mubr.bf16.gmra.mrb[232].mxu1 %v5176_v55  ;;  %v5169_v21 = vmul.f32 %v11373_v46, %v14685_v53  ;;  %v5168_v45 = vmul.f32 %v11373_v46, %v14683_v35  ;;  %v16948_v46 = vld [vmem:[#allocation88_spill] sm:$0xff] }
0x187f   : > { %9788 = vmatpush3.bf16.msra.mxu1 %v16866_v4 }
0x1880   : > { %v11375_v20 = vpop.eup %11374  ;;  %9789 = vmatprep.subr.bf16.mxu1 %v16867_v40 }
0x1881   : > { %v5171_v42 = vmul.f32 %v11375_v20, %v14693_v36  ;;  %v5170_v48 = vmul.f32 %v11375_v20, %v14687_v60 }
0x1882   : > { %v5426_v14 = vpop.xlane.xlu0 %5425 }
0x1883   : > { %9790 = vmatpush3.bf16.msra.mxu1 %v16868_v58  ;;  %v5179_v6 = vpack.c.bf16 %v5171_v42, %v5169_v21  ;;  %v5178_v19 = vpack.c.bf16 %v5170_v48, %v5168_v45  ;;  %11380 = vrcp.f32 %v5426_v14 }
0x1884   : > { %9791 = vmatprep.subr.bf16.mxu1 %v16869_v39 }
0x1885   : > { %5236 = vmatprep.mubr.bf16.mxu1 %v5179_v6  ;;  %v5429_v9 = vpop.xlane.xlu1 %5428  ;;  %v11377_v16 = vpop.eup %11376 }
0x1886   : > { %11382 = vrcp.f32 %v5429_v9  ;;  %5237 = vmatmul.mubr.bf16.gmra.mrb[236].mxu1 %v5178_v19  ;;  %v5450_v35 = vmul.f32 %v11377_v16, %v14699_v62  ;;  %v5451_v36 = vmul.f32 %v11377_v16, %v14701_v15  ;;  %v16945_v62 = vld [vmem:[#allocation97_spill] sm:$0xff] }
0x1887   : > { %9792 = vmatpush3.bf16.msra.mxu1 %v16870_v38 }
0x1888   : > { %v11379_v53 = vpop.eup %11378  ;;  %9793 = vmatprep.subr.bf16.mxu1 %v13376_v5 }
0x1889   : > { %v5452_v60 = vmul.f32 %v11379_v53, %v14703_v34  ;;  %v5453_v63 = vmul.f32 %v11379_v53, %v14709_v2 }
0x188a   : > { %v5432_v56 = vpop.xlane.xlu0 %5431 }
0x188b   : > { %9794 = vmatpush3.bf16.msra.mxu1 %v13378_v52  ;;  %11384 = vrcp.f32 %v5432_v56  ;;  %v5467_v17 = vpack.c.bf16 %v5453_v63, %v5451_v36  ;;  %v5466_v54 = vpack.c.bf16 %v5452_v60, %v5450_v35  ;;  %v16950_v35 = vld [vmem:[#allocation90_spill] sm:$0xff]  ;;  %v16954_v60 = vld [vmem:[#allocation109_spill] sm:$0xff]  ;;  %v16955_v36 = vld [vmem:[#allocation111_spill] sm:$0xff] }
0x188c   : > { %5717 = vmatprep.subr.bf16.mxu1 %v16944_v11  ;;  %v5435_v10 = vpop.xlane.xlu1 %5434  ;;  %v16956_v63 = vld [vmem:[#allocation110_spill] sm:$0xff]  ;;  %v16957_v56 = vld [vmem:[#allocation112_spill] sm:$0xff] }
0x188d   : > { %5506 = vmatprep.mubr.bf16.mxu1 %v5467_v17  ;;  %11386 = vrcp.f32 %v5435_v10  ;;  %v11381_v27 = vpop.eup %11380  ;;  %v16959_v10 = vld [vmem:[#allocation92_spill] sm:$0xff] }
0x188e   : > { %5507 = vmatmul.mubr.bf16.vlgmr.msra.gmra.mrb[240].mxu1 %v5466_v54  ;;  %v5455_v15 = vmul.f32 %v11381_v27, %v14717_v18  ;;  %v5454_v8 = vmul.f32 %v11381_v27, %v14715_v25  ;;  %v16958_v54 = vld [vmem:[#allocation113_spill] sm:$0xff]  ;;  %v16960_v27 = vld [vmem:[#allocation114_spill] sm:$0xff] }
0x188f   : > { %5718 = vmatpush1.bf16.msra.mxu1 %v16945_v62 }
0x1890   : > { %v11383_v34 = vpop.eup %11382  ;;  %5719 = vmatprep.subr.bf16.mxu1 %v16946_v12 }
0x1891   : > { %v5457_v2 = vmul.f32 %v11383_v34, %v14725_v51  ;;  %v5456_v26 = vmul.f32 %v11383_v34, %v14719_v44  ;;  %v16961_v34 = vld [vmem:[#allocation115_spill] sm:$0xff] }
0x1892   : > { %v5438_v22 = vpop.xlane.xlu0 %5437 }
0x1893   : > { %5720 = vmatpush1.bf16.msra.mxu1 %v16947_v30  ;;  %11388 = vrcp.f32 %v5438_v22  ;;  %v5469_v55 = vpack.c.bf16 %v5457_v2, %v5455_v15  ;;  %v5468_v50 = vpack.c.bf16 %v5456_v26, %v5454_v8  ;;  %v16962_v2 = vld [vmem:[#allocation116_spill] sm:$0xff]  ;;  %v16963_v8 = vld [vmem:[#allocation117_spill] sm:$0xff]  ;;  %v16964_v26 = vld [vmem:[#allocation118_spill] sm:$0xff] }
0x1894   : > { %9831 = vmatprep.subr.bf16.mxu1 %v16948_v46  ;;  %v5441_v20 = vpop.xlane.xlu1 %5440  ;;  %v16965_v22 = vld [vmem:[#allocation119_spill] sm:$0xff] }
0x1895   : > { %v11385_v21 = vpop.eup %11384  ;;  %5514 = vmatprep.mubr.bf16.mxu1 %v5469_v55  ;;  %11390 = vrcp.f32 %v5441_v20 }
0x1896   : > { %5515 = vmatmul.mubr.bf16.gmra.mrb[244].mxu1 %v5468_v50  ;;  %v5459_v51 = vmul.f32 %v11385_v21, %v14733_v37  ;;  %v5458_v44 = vmul.f32 %v11385_v21, %v14731_v57  ;;  %v16949_v57 = vmov 0  }
0x1897   : > { %v11387_v18 = vpop.eup %11386 }
0x1898   : > { %v5461_v25 = vmul.f32 %v11387_v18, %v14739_v47  ;;  %v5460_v42 = vmul.f32 %v11387_v18, %v14735_v13  ;;  %v5698_v13 = vpop.permute.xlu0 %5697 }
0x189a   : > { %v5471_v45 = vpack.c.bf16 %v5461_v25, %v5459_v51  ;;  %v5470_v48 = vpack.c.bf16 %v5460_v42, %v5458_v44 }
0x189c   : > { %5522 = vmatprep.mubr.bf16.mxu1 %v5471_v45  ;;  %v5704_v15 = vpop.permute.xlu0 %5703 }
0x189d   : > { %v11389_v14 = vpop.eup %11388 }
0x189e   : > { %5523 = vmatmul.mubr.bf16.gmra.mrb[248].mxu1 %v5470_v48  ;;  %v5463_v19 = vmul.f32 %v11389_v14, %v14745_v3  ;;  %v5462_v16 = vmul.f32 %v11389_v14, %v14743_v24  ;;  %v16951_v3 = vld [vmem:[#allocation107_spill] sm:$0xff]  ;;  %v16953_v24 = vld [vmem:[#allocation108_spill] sm:$0xff] }
0x189f   : > { %v11391_v6 = vpop.eup %11390 }
0x18a0   : > { %v5465_v9 = vmul.f32 %v11391_v6, %v14751_v43  ;;  %v5464_v37 = vmul.f32 %v11391_v6, %v14747_v7  ;;  %v16952_v43 = vld [vmem:[#allocation106_spill] sm:$0xff]  ;;  %v5700_v7 = vpop.permute.xlu1 %5699 }
0x18a2   : > { %v5473_v53 = vpack.c.bf16 %v5465_v9, %v5463_v19  ;;  %v5472_v47 = vpack.c.bf16 %v5464_v37, %v5462_v16 }
0x18a4   : > { %5530 = vmatprep.mubr.bf16.mxu1 %v5473_v53  ;;  %v5702_v17 = vpop.permute.xlu1 %5701 }
0x18a6   : > { %5531 = vmatmul.mubr.bf16.gmra.mrb[252].mxu1 %v5472_v47 }
0x18a7   : > { %5749 = vmatprep.mubr.bf16.mxu1 %v16949_v57 }
0x18ae   : > { %9234 = vmatmul.mubr.msk.bf16.vlgmr.msra.gmra.mrb[0].mxu1 %vm1798_vm0, %v5698_v13 }
0x18af   : > { %9832 = vmatpush3.bf16.msra.mxu1 %v16950_v35  ;;  %5759 = vmatprep.mubr.bf16.mxu1 %v16949_v57 }
0x18b0   : > { %9833 = vmatprep.subr.bf16.mxu1 %v16951_v3 }
0x18b3   : > { %9834 = vmatpush3.bf16.msra.mxu1 %v16952_v43 }
0x18b4   : > { %9835 = vmatprep.subr.bf16.mxu1 %v16953_v24 }
0x18b6   : > { %9235 = vmatmul.mubr.msk.bf16.gmra.mrb[4].mxu1 %vm1798_vm0, %v5700_v7 }
0x18b7   : > { %9836 = vmatpush3.bf16.msra.mxu1 %v16954_v60  ;;  %5769 = vmatprep.mubr.bf16.mxu1 %v16949_v57 }
0x18b8   : > { %9837 = vmatprep.subr.bf16.mxu1 %v16955_v36 }
0x18bb   : > { %9838 = vmatpush3.bf16.msra.mxu1 %v16956_v63 }
0x18bc   : > { %9839 = vmatprep.subr.bf16.mxu1 %v16957_v56 }
0x18be   : > { %9236 = vmatmul.mubr.msk.bf16.gmra.mrb[8].mxu1 %vm1798_vm0, %v5702_v17 }
0x18bf   : > { %9840 = vmatpush3.bf16.msra.mxu1 %v16958_v54  ;;  %5779 = vmatprep.mubr.bf16.mxu1 %v16949_v57 }
0x18c0   : > { %9841 = vmatprep.subr.bf16.mxu1 %v16959_v10 }
0x18c3   : > { %9842 = vmatpush3.bf16.msra.mxu1 %v16960_v27 }
0x18c4   : > { %9843 = vmatprep.subr.bf16.mxu1 %v16961_v34 }
0x18c6   : > { %9237 = vmatmul.mubr.msk.bf16.gmra.mrb[12].mxu1 %vm1798_vm0, %v5704_v15 }
0x18c7   : > { %9844 = vmatpush3.bf16.msra.mxu1 %v16962_v2 }
0x18c8   : > { %9845 = vmatprep.subr.bf16.mxu1 %v16963_v8 }
0x18cb   : > { %9846 = vmatpush3.bf16.msra.mxu1 %v16964_v26 }
0x18cc   : > { %9877 = vmatprep.subr.bf16.mxu1 %v16965_v22 }
0x1941   : > { %v9755_v55 = vpop.f32.mrb[224].mxu1 }
0x1942   : > { %v9756_v50 = vpop.f32.mrb[225].mxu1 }
0x1943   : > { %v14839_v20 = vadd.f32 %v9756_v50, %v9755_v55  ;;  %v9758_v21 = vpop.f32.mrb[226].mxu1 }
0x1944   : > { %v9759_v18 = vpop.f32.mrb[227].mxu1 }
0x1945   : > { %v14841_v51 = vadd.f32 %v9759_v18, %v9758_v21  ;;  %v11819_v18 = vld [vmem:[#allocation10 + $0x8] sm:$0xff]  }
0x1947   : > { %v5245_v25 = vpack.c.bf16 %v14841_v51, %v14839_v20 }
0x1949   : > { %v9761_v44 = vpop.f32.mrb[228].mxu1 }
0x194a   : > { %v9762_v42 = vpop.f32.mrb[229].mxu1 }
0x194b   : > { %v14845_v45 = vadd.f32 %v9762_v42, %v9761_v44  ;;  %v9764_v48 = vpop.f32.mrb[230].mxu1 }
0x194c   : > { %v9765_v14 = vpop.f32.mrb[231].mxu1 }
0x194d   : > { %v14847_v6 = vadd.f32 %v9765_v14, %v9764_v48 }
0x194f   : > { %v5246_v19 = vpack.c.bf16 %v14847_v6, %v14845_v45 }
0x1951   : > { %v9767_v9 = vpop.f32.mrb[232].mxu1 }
0x1952   : > { %v9768_v16 = vpop.f32.mrb[233].mxu1 }
0x1953   : > { %v14851_v37 = vadd.f32 %v9768_v16, %v9767_v9  ;;  %v9770_v53 = vpop.f32.mrb[234].mxu1 }
0x1954   : > { %v9771_v47 = vpop.f32.mrb[235].mxu1 }
0x1955   : > { %v9772_v13 = vadd.f32 %v9771_v47, %v9770_v53 }
0x1957   : > { %v5247_v7 = vpack.c.bf16 %v9772_v13, %v14851_v37 }
0x1959   : > { %v9773_v17 = vpop.f32.mrb[236].mxu1 }
0x195a   : > { %v9774_v15 = vpop.f32.mrb[237].mxu1 }
0x195b   : > { %v14854_v55 = vadd.f32 %v9774_v15, %v9773_v17  ;;  %v9776_v50 = vpop.f32.mrb[238].mxu1 }
0x195c   : > { %v9777_v20 = vpop.f32.mrb[239].mxu1 }
0x195d   : > { %v14856_v21 = vadd.f32 %v9777_v20, %v9776_v50  ;;  %v16966_v20 = vld [vmem:[#allocation99_spill] sm:$0xff] }
0x1961   : > { %v9795_v51 = vpop.f32.mrb[240].mxu1 }
0x1962   : > { %v9796_v44 = vpop.f32.mrb[241].mxu1 }
0x1963   : > { %v9797_v42 = vadd.f32 %v9796_v44, %v9795_v51  ;;  %v9798_v45 = vpop.f32.mrb[242].mxu1 }
0x1964   : > { %v9799_v48 = vpop.f32.mrb[243].mxu1 }
0x1965   : > { %v9800_v14 = vadd.f32 %v9799_v48, %v9798_v45 }
0x1967   : > { %v5539_v6 = vpack.c.bf16 %v9800_v14, %v9797_v42  ;;  %v11820_v14 = vld [vmem:[#allocation10 + $0x20] sm:$0xff]  }
0x1969   : > { %v9801_v9 = vpop.f32.mrb[244].mxu1  ;;  %10375 = vmatprep.mubr.msk.bf16.mxu0 %vm1798_vm0, %v5539_v6 }
0x196a   : > { %v9802_v16 = vpop.f32.mrb[245].mxu1 }
0x196b   : > { %v9803_v37 = vadd.f32 %v9802_v16, %v9801_v9  ;;  %v9804_v53 = vpop.f32.mrb[246].mxu1 }
0x196c   : > { %v9805_v47 = vpop.f32.mrb[247].mxu1 }
0x196d   : > { %v9806_v13 = vadd.f32 %v9805_v47, %v9804_v53 }
0x196f   : > { %v5540_v17 = vpack.c.bf16 %v9806_v13, %v9803_v37 }
0x1971   : > { %v9807_v15 = vpop.f32.mrb[248].mxu1  ;;  %10376 = vmatmul.mubr.msk.bf16.vlgmr.msra.gmra.mrb[240].mxu0 %vm1798_vm0, %v5540_v17 }
0x1972   : > { %v9808_v50 = vpop.f32.mrb[249].mxu1  ;;  %10384 = vmatpush3.bf16.msra.mxu0 %v16966_v20 }
0x1973   : > { %v9809_v51 = vadd.f32 %v9808_v50, %v9807_v15  ;;  %v9810_v44 = vpop.f32.mrb[250].mxu1  ;;  %10385 = vmatprep.subr.bf16.mxu0 %v11819_v18 }
0x1974   : > { %v9811_v42 = vpop.f32.mrb[251].mxu1 }
0x1975   : > { %v9812_v45 = vadd.f32 %v9811_v42, %v9810_v44 }
0x1976   : > { %10386 = vmatpush3.bf16.msra.mxu0 %v11819_v18 }
0x1977   : > { %v5541_v48 = vpack.c.bf16 %v9812_v45, %v9809_v51  ;;  %10395 = vmatprep.subr.bf16.mxu0 %v11820_v14 }
0x1979   : > { %v9813_v6 = vpop.f32.mrb[252].mxu1  ;;  %10379 = vmatprep.mubr.msk.bf16.mxu0 %vm1798_vm0, %v5541_v48 }
0x197a   : > { %v9814_v9 = vpop.f32.mrb[253].mxu1 }
0x197b   : > { %v9815_v16 = vadd.f32 %v9814_v9, %v9813_v6  ;;  %v9816_v37 = vpop.f32.mrb[254].mxu1  ;;  %v11821_v6 = vld [vmem:[#allocation10 + $0x28] sm:$0xff]  }
0x197c   : > { %v9817_v53 = vpop.f32.mrb[255].mxu1 }
0x197d   : > { %v9818_v47 = vadd.f32 %v9817_v53, %v9816_v37  ;;  %v16968_v37 = vpack.c.bf16 %v14856_v21, %v14854_v55 }
0x197f   : > { %v5542_v13 = vpack.c.bf16 %v9818_v47, %v9815_v16  ;;  %v16967_v16 = vld [vmem:[#allocation91_spill] sm:$0xff] }
0x1981   : > { %10380 = vmatmul.mubr.msk.bf16.gmra.mrb[244].mxu0 %vm1798_vm0, %v5542_v13  ;;  %v5751_v17 = vpop.f32.mrb[0].mxu1 }
0x1982   : > { %10387 = vmatprep.mubr.msk.bf16.mxu0 %vm1798_vm0, %v5245_v25  ;;  %v5753_v15 = vpop.f32.mrb[1].mxu1 }
0x1983   : > { %v5790_v50 = vmax.f32 %v5751_v17, %v5753_v15  ;;  %v5755_v18 = vpop.f32.mrb[2].mxu1 }
0x1984   : > { %v5757_v20 = vpop.f32.mrb[3].mxu1 }
0x1985   : > { %v5793_v51 = vmax.f32 %v5755_v18, %v5757_v20  ;;  %5791 = vmax.xlane.f32.xlu1 %v5790_v50 }
0x1987   : > { %5794 = vmax.xlane.f32.xlu0 %v5793_v51 }
0x1989   : > { %10388 = vmatmul.mubr.msk.bf16.vlgmr.msra.gmra.mrb[240].mxu0 %vm1798_vm0, %v5246_v19  ;;  %v5761_v44 = vpop.f32.mrb[4].mxu1 }
0x198a   : > { %10396 = vmatpush3.bf16.msra.mxu0 %v11820_v14  ;;  %10391 = vmatprep.mubr.msk.bf16.mxu0 %vm1798_vm0, %v5247_v7  ;;  %v5763_v42 = vpop.f32.mrb[5].mxu1 }
0x198b   : > { %v5796_v45 = vmax.f32 %v5761_v44, %v5763_v42  ;;  %v5765_v48 = vpop.f32.mrb[6].mxu1  ;;  %10397 = vmatprep.subr.bf16.mxu0 %v11821_v6 }
0x198c   : > { %v5767_v9 = vpop.f32.mrb[7].mxu1 }
0x198d   : > { %v5799_v25 = vmax.f32 %v5765_v48, %v5767_v9  ;;  %5797 = vmax.xlane.f32.xlu0 %v5796_v45 }
0x198e   : > { %10398 = vmatpush3.bf16.msra.mxu0 %v11821_v6 }
0x198f   : > { %6092 = vmatprep.subr.bf16.mxu0 %v16967_v16  ;;  %5800 = vmax.xlane.f32.xlu1 %v5799_v25 }
0x1991   : > { %10392 = vmatmul.mubr.msk.bf16.gmra.mrb[244].mxu0 %vm1798_vm0, %v16968_v37  ;;  %v5771_v19 = vpop.f32.mrb[8].mxu1 }
0x1992   : > { %v5773_v14 = vpop.f32.mrb[9].mxu1 }
0x1993   : > { %v5802_v7 = vmax.f32 %v5771_v19, %v5773_v14  ;;  %v5775_v53 = vpop.f32.mrb[10].mxu1 }
0x1994   : > { %v5777_v47 = vpop.f32.mrb[11].mxu1 }
0x1995   : > { %v5805_v13 = vmax.f32 %v5775_v53, %v5777_v47  ;;  %5803 = vmax.xlane.f32.xlu0 %v5802_v7 }
0x1997   : > { %5806 = vmax.xlane.f32.xlu1 %v5805_v13 }
0x1999   : > { %v14873_v50 = vpop.f32.mrb[12].mxu1 }
0x199a   : > { %v14875_v51 = vpop.f32.mrb[13].mxu1 }
0x199b   : > { %v5808_v45 = vmax.f32 %v14873_v50, %v14875_v51  ;;  %v14879_v6 = vpop.f32.mrb[14].mxu1 }
0x199c   : > { %v14881_v55 = vpop.f32.mrb[15].mxu1 }
0x199d   : > { %v5811_v21 = vmax.f32 %v14879_v6, %v14881_v55  ;;  %5809 = vmax.xlane.f32.xlu0 %v5808_v45 }
0x199f   : > { %5812 = vmax.xlane.f32.xlu1 %v5811_v21 }
0x1a12   : > { %v5792_v25 = vpop.xlane.xlu1 %5791 }
0x1a13   : > { %v5814_v37 = vsub.f32 %v5751_v17, %v5792_v25  ;;  %v5815_v7 = vsub.f32 %v5753_v15, %v5792_v25 }
0x1a14   : > { %v5795_v13 = vpop.xlane.xlu0 %5794 }
0x1a15   : > { %v5830_v16 = vmul.f32 1.442695, %v5814_v37  ;;  %v5832_v22 = vmul.f32 1.442695, %v5815_v7  ;;  %v5816_v26 = vsub.f32 %v5755_v18, %v5795_v13  ;;  %v5817_v8 = vsub.f32 %v5757_v20, %v5795_v13 }
0x1a17   : > { %11392 = vpow2.f32 %v5830_v16  ;;  %v5834_v2 = vmul.f32 1.442695, %v5816_v26  ;;  %v5836_v34 = vmul.f32 1.442695, %v5817_v8 }
0x1a18   : > { %11394 = vpow2.f32 %v5832_v22 }
0x1a19   : > { %11396 = vpow2.f32 %v5834_v2 }
0x1a1a   : > { %11398 = vpow2.f32 %v5836_v34  ;;  %v5798_v27 = vpop.xlane.xlu0 %5797 }
0x1a1b   : > { %v5818_v10 = vsub.f32 %v5761_v44, %v5798_v27  ;;  %v5819_v54 = vsub.f32 %v5763_v42, %v5798_v27 }
0x1a1c   : > { %v5801_v56 = vpop.xlane.xlu1 %5800 }
0x1a1d   : > { %v5838_v45 = vmul.f32 1.442695, %v5818_v10  ;;  %v5840_v21 = vmul.f32 1.442695, %v5819_v54  ;;  %v5820_v63 = vsub.f32 %v5765_v48, %v5801_v56  ;;  %v5821_v17 = vsub.f32 %v5767_v9, %v5801_v56 }
0x1a1f   : > { %11400 = vpow2.f32 %v5838_v45  ;;  %v5842_v15 = vmul.f32 1.442695, %v5820_v63  ;;  %v5844_v25 = vmul.f32 1.442695, %v5821_v17 }
0x1a20   : > { %11402 = vpow2.f32 %v5840_v21 }
0x1a21   : > { %v14885_v18 = vpop.eup %11392  ;;  %11404 = vpow2.f32 %v5842_v15 }
0x1a22   : > { %v14887_v26 = vpop.eup %11394  ;;  %11406 = vpow2.f32 %v5844_v25  ;;  %v5804_v2 = vpop.xlane.xlu0 %5803 }
0x1a23   : > { %v14889_v34 = vpop.eup %11396  ;;  %v5822_v8 = vsub.f32 %v5771_v19, %v5804_v2  ;;  %v5823_v27 = vsub.f32 %v5773_v14, %v5804_v2  ;;  %v5862_v54 = vadd.f32 %v14887_v26, %v14885_v18 }
0x1a24   : > { %v14893_v10 = vpop.eup %11398  ;;  %v5807_v56 = vpop.xlane.xlu1 %5806 }
0x1a25   : > { %v5846_v63 = vmul.f32 1.442695, %v5822_v8  ;;  %v5848_v22 = vmul.f32 1.442695, %v5823_v27  ;;  %5863 = vadd.xlane.f32.xlu0 %v5862_v54  ;;  %v5824_v20 = vsub.f32 %v5775_v53, %v5807_v56  ;;  %v5825_v44 = vsub.f32 %v5777_v47, %v5807_v56 }
0x1a26   : > { %v5865_v42 = vadd.f32 %v14893_v10, %v14889_v34 }
0x1a27   : > { %11408 = vpow2.f32 %v5846_v63  ;;  %v5850_v48 = vmul.f32 1.442695, %v5824_v20  ;;  %v5852_v9 = vmul.f32 1.442695, %v5825_v44 }
0x1a28   : > { %11410 = vpow2.f32 %v5848_v22  ;;  %5866 = vadd.xlane.f32.xlu1 %v5865_v42 }
0x1a29   : > { %v14897_v16 = vpop.eup %11400  ;;  %11412 = vpow2.f32 %v5850_v48 }
0x1a2a   : > { %v14899_v19 = vpop.eup %11402  ;;  %11414 = vpow2.f32 %v5852_v9  ;;  %v5810_v14 = vpop.xlane.xlu0 %5809 }
0x1a2b   : > { %v14901_v37 = vpop.eup %11404  ;;  %v5826_v53 = vsub.f32 %v14873_v50, %v5810_v14  ;;  %v5827_v47 = vsub.f32 %v14875_v51, %v5810_v14  ;;  %v5868_v7 = vadd.f32 %v14899_v19, %v14897_v16 }
0x1a2c   : > { %v14907_v13 = vpop.eup %11406  ;;  %v5813_v45 = vpop.xlane.xlu1 %5812 }
0x1a2d   : > { %v5854_v21 = vmul.f32 1.442695, %v5826_v53  ;;  %v5856_v17 = vmul.f32 1.442695, %v5827_v47  ;;  %5869 = vadd.xlane.f32.xlu0 %v5868_v7  ;;  %v5828_v15 = vsub.f32 %v14879_v6, %v5813_v45  ;;  %v5829_v25 = vsub.f32 %v14881_v55, %v5813_v45 }
0x1a2e   : > { %v5871_v2 = vadd.f32 %v14907_v13, %v14901_v37 }
0x1a2f   : > { %11416 = vpow2.f32 %v5854_v21  ;;  %v5858_v50 = vmul.f32 1.442695, %v5828_v15  ;;  %v5860_v8 = vmul.f32 1.442695, %v5829_v25 }
0x1a30   : > { %11418 = vpow2.f32 %v5856_v17  ;;  %5872 = vadd.xlane.f32.xlu1 %v5871_v2 }
0x1a31   : > { %v14913_v51 = vpop.eup %11408  ;;  %11420 = vpow2.f32 %v5858_v50  ;;  %v16969_v50 = vld [vmem:[#allocation120_spill] sm:$0xff] }
0x1a32   : > { %v14915_v27 = vpop.eup %11410  ;;  %11422 = vpow2.f32 %v5860_v8 }
0x1a33   : > { %v11413_v54 = vpop.eup %11412  ;;  %v5874_v6 = vadd.f32 %v14915_v27, %v14913_v51 }
0x1a34   : > { %v14919_v56 = vpop.eup %11414 }
0x1a35   : > { %5875 = vadd.xlane.f32.xlu0 %v5874_v6  ;;  %v5877_v55 = vadd.f32 %v14919_v56, %v11413_v54  ;;  %v16970_v6 = vld [vmem:[#allocation121_spill] sm:$0xff] }
0x1a37   : > { %5878 = vadd.xlane.f32.xlu1 %v5877_v55 }
0x1a39   : > { %v14922_v63 = vpop.eup %11416 }
0x1a3a   : > { %v14924_v22 = vpop.eup %11418 }
0x1a3b   : > { %v14926_v20 = vpop.eup %11420  ;;  %v5880_v44 = vadd.f32 %v14924_v22, %v14922_v63 }
0x1a3c   : > { %v14930_v42 = vpop.eup %11422 }
0x1a3d   : > { %5881 = vadd.xlane.f32.xlu0 %v5880_v44  ;;  %v5883_v48 = vadd.f32 %v14930_v42, %v14926_v20 }
0x1a3f   : > { %5884 = vadd.xlane.f32.xlu1 %v5883_v48  ;;  %v16971_v48 = vld [vmem:[#allocation122_spill] sm:$0xff] }
0x1a50   : > { %6074 = vrot.lane.b32.xlu1 %v16908_v28, %s12098_s27 }
0x1a53   : > { %6072 = vrot.lane.b32.xlu0 %v16909_v49, %s12098_s27 }
0x1a54   : > { %6076 = vrot.lane.b32.xlu1 %v16910_v59, %s12098_s27 }
0x1a57   : > { %6078 = vrot.lane.b32.xlu0 %v16911_v32, %s12098_s27 }
0x1ab2   : > { %v5864_v9 = vpop.xlane.xlu0 %5863 }
0x1ab3   : > { %11424 = vrcp.f32 %v5864_v9 }
0x1ab5   : > { %v5867_v14 = vpop.xlane.xlu1 %5866 }
0x1ab6   : > { %11426 = vrcp.f32 %v5867_v14  ;;  %v16972_v14 = vld [vmem:[#allocation124_spill] sm:$0xff] }
0x1aba   : > { %v5870_v53 = vpop.xlane.xlu0 %5869 }
0x1abb   : > { %11428 = vrcp.f32 %v5870_v53 }
0x1abd   : > { %v5873_v47 = vpop.xlane.xlu1 %5872  ;;  %v11425_v7 = vpop.eup %11424 }
0x1abe   : > { %11430 = vrcp.f32 %v5873_v47  ;;  %v5894_v28 = vmul.f32 %v11425_v7, %v14885_v18  ;;  %v5895_v21 = vmul.f32 %v11425_v7, %v14887_v26  ;;  %v16973_v7 = vld [vmem:[#allocation123_spill] sm:$0xff] }
0x1ac0   : > { %v11427_v45 = vpop.eup %11426 }
0x1ac1   : > { %v5896_v49 = vmul.f32 %v11427_v45, %v14889_v34  ;;  %v5897_v59 = vmul.f32 %v11427_v45, %v14893_v10 }
0x1ac2   : > { %v5876_v17 = vpop.xlane.xlu0 %5875 }
0x1ac3   : > { %v5910_v32 = vpack.c.bf16 %v5896_v49, %v5894_v28  ;;  %11432 = vrcp.f32 %v5876_v17  ;;  %v5911_v15 = vpack.c.bf16 %v5897_v59, %v5895_v21  ;;  %v16975_v59 = vld [vmem:[#allocation126_spill] sm:$0xff]  ;;  %v16976_v17 = vld [vmem:[#allocation127_spill] sm:$0xff] }
0x1ac4   : > { %v5879_v25 = vpop.xlane.xlu1 %5878 }
0x1ac5   : > { %5950 = vmatprep.mubr.bf16.mxu1 %v5911_v15  ;;  %11434 = vrcp.f32 %v5879_v25  ;;  %v11429_v2 = vpop.eup %11428  ;;  %v16977_v25 = vld [vmem:[#allocation128_spill] sm:$0xff] }
0x1ac6   : > { %5951 = vmatmul.mubr.bf16.vlgmr.msra.gmra.mrb[16].mxu1 %v5910_v32  ;;  %v5898_v18 = vmul.f32 %v11429_v2, %v14897_v16  ;;  %v5899_v34 = vmul.f32 %v11429_v2, %v14899_v19  ;;  %v16978_v2 = vld [vmem:[#allocation130_spill] sm:$0xff] }
0x1ac7   : > { %9878 = vmatpush3.bf16.msra.mxu1 %v16969_v50 }
0x1ac8   : > { %v11431_v8 = vpop.eup %11430  ;;  %9879 = vmatprep.subr.bf16.mxu1 %v16970_v6 }
0x1ac9   : > { %v5900_v26 = vmul.f32 %v11431_v8, %v14901_v37  ;;  %v5901_v10 = vmul.f32 %v11431_v8, %v14907_v13  ;;  %v16974_v13 = vld [vmem:[#allocation125_spill] sm:$0xff] }
0x1aca   : > { %v5882_v55 = vpop.xlane.xlu0 %5881 }
0x1acb   : > { %v5912_v44 = vpack.c.bf16 %v5900_v26, %v5898_v18  ;;  %9880 = vmatpush3.bf16.msra.mxu1 %v16971_v48  ;;  %11436 = vrcp.f32 %v5882_v55  ;;  %v5913_v9 = vpack.c.bf16 %v5901_v10, %v5899_v34  ;;  %v16979_v26 = vld [vmem:[#allocation131_spill] sm:$0xff]  ;;  %v16980_v34 = vld [vmem:[#allocation132_spill] sm:$0xff]  ;;  %v16981_v10 = vld [vmem:[#allocation133_spill] sm:$0xff] }
0x1acc   : > { %9881 = vmatprep.subr.bf16.mxu1 %v16972_v14  ;;  %v5885_v53 = vpop.xlane.xlu1 %5884  ;;  %v16982_v55 = vld [vmem:[#allocation55_spill] sm:$0xff] }
0x1acd   : > { %v11433_v47 = vpop.eup %11432  ;;  %5958 = vmatprep.mubr.bf16.mxu1 %v5913_v9  ;;  %11438 = vrcp.f32 %v5885_v53  ;;  %v16994_v14 = vld [vmem:[#allocation63_spill] sm:$0xff] }
0x1ace   : > { %5959 = vmatmul.mubr.bf16.gmra.mrb[20].mxu1 %v5912_v44  ;;  %v5902_v19 = vmul.f32 %v11433_v47, %v14913_v51  ;;  %v5903_v45 = vmul.f32 %v11433_v47, %v14915_v27 }
0x1acf   : > { %v11435_v16 = vpop.eup %11434  ;;  %9882 = vmatpush3.bf16.msra.mxu1 %v16973_v7 }
0x1ad0   : > { %v5904_v37 = vmul.f32 %v11435_v16, %v11413_v54  ;;  %9883 = vmatprep.subr.bf16.mxu1 %v16974_v13  ;;  %v5905_v28 = vmul.f32 %v11435_v16, %v14919_v56 }
0x1ad2   : > { %v5914_v49 = vpack.c.bf16 %v5904_v37, %v5902_v19  ;;  %v5915_v21 = vpack.c.bf16 %v5905_v28, %v5903_v45 }
0x1ad3   : > { %9884 = vmatpush3.bf16.msra.mxu1 %v16975_v59 }
0x1ad4   : > { %9885 = vmatprep.subr.bf16.mxu1 %v16976_v17  ;;  %5966 = vmatprep.mubr.bf16.mxu1 %v5915_v21 }
0x1ad5   : > { %v11437_v32 = vpop.eup %11436 }
0x1ad6   : > { %5967 = vmatmul.mubr.bf16.gmra.mrb[24].mxu1 %v5914_v49  ;;  %v5906_v51 = vmul.f32 %v11437_v32, %v14922_v63  ;;  %v5907_v27 = vmul.f32 %v11437_v32, %v14924_v22  ;;  %v16983_v63 = vld [vmem:[#allocation58_spill] sm:$0xff] }
0x1ad7   : > { %v11439_v15 = vpop.eup %11438  ;;  %9886 = vmatpush3.bf16.msra.mxu1 %v16977_v25 }
0x1ad8   : > { %v5908_v54 = vmul.f32 %v11439_v15, %v14926_v20  ;;  %9887 = vmatprep.subr.bf16.mxu1 %v16978_v2  ;;  %v5909_v56 = vmul.f32 %v11439_v15, %v14930_v42  ;;  %v16984_v20 = vld [vmem:[#allocation64_spill] sm:$0xff] }
0x1ada   : > { %v5916_v8 = vpack.c.bf16 %v5908_v54, %v5906_v51  ;;  %v5917_v18 = vpack.c.bf16 %v5909_v56, %v5907_v27  ;;  %v16985_v51 = vld [vmem:[#allocation93_spill] sm:$0xff]  ;;  %v16986_v56 = vld [vmem:[#allocation94_spill] sm:$0xff] }
0x1adb   : > { %9888 = vmatpush3.bf16.msra.mxu1 %v16979_v26 }
0x1adc   : > { %9889 = vmatprep.subr.bf16.mxu1 %v16980_v34  ;;  %5974 = vmatprep.mubr.bf16.mxu1 %v5917_v18 }
0x1ade   : > { %5975 = vmatmul.mubr.bf16.gmra.mrb[28].mxu1 %v5916_v8 }
0x1adf   : > { %9890 = vmatpush3.bf16.msra.mxu1 %v16981_v10 }
0x1ae0   : > { %9891 = vmatprep.subr.bf16.mxu1 %v16982_v55 }
0x1ae3   : > { %9892 = vmatpush3.bf16.msra.mxu1 %v16983_v63 }
0x1ae4   : > { %9923 = vmatprep.subr.bf16.mxu1 %v16984_v20 }
0x1b99   : > { %v9847_v44 = vpop.f32.mrb[16].mxu1 }
0x1b9a   : > { %v9848_v22 = vpop.f32.mrb[17].mxu1 }
0x1b9b   : > { %v9849_v9 = vadd.f32 %v9848_v22, %v9847_v44  ;;  %v9850_v42 = vpop.f32.mrb[18].mxu1  ;;  %v16987_v44 = vld [vmem:[#allocation129_spill] sm:$0xff] }
0x1b9c   : > { %v9851_v53 = vpop.f32.mrb[19].mxu1 }
0x1b9d   : > { %v9852_v47 = vadd.f32 %v9851_v53, %v9850_v42 }
0x1b9f   : > { %v5983_v16 = vpack.c.bf16 %v9852_v47, %v9849_v9  ;;  %v11822_v9 = vld [vmem:[#allocation10 + $0x30] sm:$0xff]  }
0x1ba1   : > { %v9853_v19 = vpop.f32.mrb[20].mxu1  ;;  %10399 = vmatprep.mubr.msk.bf16.mxu0 %vm1798_vm0, %v5983_v16 }
0x1ba2   : > { %v9854_v37 = vpop.f32.mrb[21].mxu1 }
0x1ba3   : > { %v9855_v45 = vadd.f32 %v9854_v37, %v9853_v19  ;;  %v9856_v28 = vpop.f32.mrb[22].mxu1 }
0x1ba4   : > { %v9857_v49 = vpop.f32.mrb[23].mxu1 }
0x1ba5   : > { %v9858_v21 = vadd.f32 %v9857_v49, %v9856_v28  ;;  %v6073_v28 = vpop.permute.xlu0 %6072  ;;  %v11823_v49 = vld [vmem:[#allocation10 + $0x38] sm:$0xff]  }
0x1ba7   : > { %v5984_v32 = vpack.c.bf16 %v9858_v21, %v9855_v45  ;;  %v16988_v21 = vld [vmem:[#allocation79_spill] sm:$0xff] }
0x1ba9   : > { %v9859_v15 = vpop.f32.mrb[24].mxu1  ;;  %10400 = vmatmul.mubr.msk.bf16.vlgmr.msra.gmra.mrb[240].mxu0 %vm1798_vm0, %v5984_v32  ;;  %v6075_v32 = vpop.permute.xlu1 %6074 }
0x1baa   : > { %6093 = vmatpush1.bf16.msra.mxu0 %v16985_v51  ;;  %v9860_v54 = vpop.f32.mrb[25].mxu1 }
0x1bab   : > { %v9861_v27 = vadd.f32 %v9860_v54, %v9859_v15  ;;  %6094 = vmatprep.subr.bf16.mxu0 %v16986_v56  ;;  %v9862_v8 = vpop.f32.mrb[26].mxu1  ;;  %v6079_v54 = vpop.permute.xlu0 %6078 }
0x1bac   : > { %v9863_v18 = vpop.f32.mrb[27].mxu1 }
0x1bad   : > { %v9864_v20 = vadd.f32 %v9863_v18, %v9862_v8  ;;  %v6077_v15 = vpop.permute.xlu1 %6076 }
0x1bae   : > { %6095 = vmatpush1.bf16.msra.mxu0 %v16987_v44 }
0x1baf   : > { %v5985_v22 = vpack.c.bf16 %v9864_v20, %v9861_v27  ;;  %10407 = vmatprep.subr.bf16.mxu0 %v11822_v9 }
0x1bb1   : > { %v9865_v42 = vpop.f32.mrb[28].mxu1  ;;  %10403 = vmatprep.mubr.msk.bf16.mxu0 %vm1798_vm0, %v5985_v22 }
0x1bb2   : > { %v9866_v53 = vpop.f32.mrb[29].mxu1 }
0x1bb3   : > { %v9867_v47 = vadd.f32 %v9866_v53, %v9865_v42  ;;  %v9868_v16 = vpop.f32.mrb[30].mxu1 }
0x1bb4   : > { %v9869_v19 = vpop.f32.mrb[31].mxu1 }
0x1bb5   : > { %v9870_v37 = vadd.f32 %v9869_v19, %v9868_v16 }
0x1bb7   : > { %v5986_v45 = vpack.c.bf16 %v9870_v37, %v9867_v47 }
0x1bb9   : > { %10404 = vmatmul.mubr.msk.bf16.gmra.mrb[244].mxu0 %vm1798_vm0, %v5986_v45 }
0x1bba   : > { %6124 = vmatprep.mubr.bf16.mxu0 %v16949_v57 }
0x1bc1   : > { %9242 = vmatmul.mubr.msk.bf16.vlgmr.msra.gmra.mrb[248].mxu0 %vm1798_vm0, %v6073_v28 }
0x1bc2   : > { %10408 = vmatpush3.bf16.msra.mxu0 %v11822_v9  ;;  %6134 = vmatprep.mubr.bf16.mxu0 %v16949_v57 }
0x1bc3   : > { %10409 = vmatprep.subr.bf16.mxu0 %v11823_v49 }
0x1bc6   : > { %10410 = vmatpush3.bf16.msra.mxu0 %v11823_v49 }
0x1bc7   : > { %6459 = vmatprep.subr.bf16.mxu0 %v16988_v21 }
0x1bc9   : > { %9243 = vmatmul.mubr.msk.bf16.gmra.mrb[252].mxu0 %vm1798_vm0, %v6075_v32 }
0x1bca   : > { %6144 = vmatprep.mubr.bf16.mxu0 %v16949_v57 }
0x1bd1   : > { %9244 = vmatmul.mubr.msk.bf16.gmra.mrb[0].mxu0 %vm1798_vm0, %v6077_v15 }
0x1bd2   : > { %6154 = vmatprep.mubr.bf16.mxu0 %v16949_v57 }
0x1bd9   : > { %9245 = vmatmul.mubr.msk.bf16.gmra.mrb[4].mxu0 %vm1798_vm0, %v6079_v54 }
0x1c94   : > { %v6126_v27 = vpop.f32.mrb[248].mxu0 }
0x1c95   : > { %v6128_v8 = vpop.f32.mrb[249].mxu0 }
0x1c96   : > { %v6165_v18 = vmax.f32 %v6126_v27, %v6128_v8  ;;  %v6130_v20 = vpop.f32.mrb[250].mxu0 }
0x1c97   : > { %v6132_v22 = vpop.f32.mrb[251].mxu0 }
0x1c98   : > { %v6168_v9 = vmax.f32 %v6130_v20, %v6132_v22  ;;  %6166 = vmax.xlane.f32.xlu1 %v6165_v18 }
0x1c9a   : > { %6169 = vmax.xlane.f32.xlu0 %v6168_v9 }
0x1c9c   : > { %v6136_v42 = vpop.f32.mrb[252].mxu0 }
0x1c9d   : > { %v6138_v53 = vpop.f32.mrb[253].mxu0 }
0x1c9e   : > { %v6171_v47 = vmax.f32 %v6136_v42, %v6138_v53  ;;  %v6140_v16 = vpop.f32.mrb[254].mxu0 }
0x1c9f   : > { %v6142_v19 = vpop.f32.mrb[255].mxu0 }
0x1ca0   : > { %v6174_v37 = vmax.f32 %v6140_v16, %v6142_v19  ;;  %6172 = vmax.xlane.f32.xlu0 %v6171_v47 }
0x1ca2   : > { %6175 = vmax.xlane.f32.xlu1 %v6174_v37 }
0x1ca4   : > { %v6146_v45 = vpop.f32.mrb[0].mxu0 }
0x1ca5   : > { %v6148_v28 = vpop.f32.mrb[1].mxu0 }
0x1ca6   : > { %v6177_v49 = vmax.f32 %v6146_v45, %v6148_v28  ;;  %v6150_v21 = vpop.f32.mrb[2].mxu0 }
0x1ca7   : > { %v6152_v32 = vpop.f32.mrb[3].mxu0 }
0x1ca8   : > { %v6180_v15 = vmax.f32 %v6150_v21, %v6152_v32  ;;  %6178 = vmax.xlane.f32.xlu0 %v6177_v49 }
0x1caa   : > { %6181 = vmax.xlane.f32.xlu1 %v6180_v15 }
0x1cac   : > { %v14989_v54 = vpop.f32.mrb[4].mxu0 }
0x1cad   : > { %v14991_v18 = vpop.f32.mrb[5].mxu0 }
0x1cae   : > { %v6183_v9 = vmax.f32 %v14989_v54, %v14991_v18  ;;  %v14995_v44 = vpop.f32.mrb[6].mxu0 }
0x1caf   : > { %v14997_v56 = vpop.f32.mrb[7].mxu0 }
0x1cb0   : > { %v6186_v47 = vmax.f32 %v14995_v44, %v14997_v56  ;;  %6184 = vmax.xlane.f32.xlu0 %v6183_v9 }
0x1cb2   : > { %6187 = vmax.xlane.f32.xlu1 %v6186_v47 }
0x1d25   : > { %v6167_v37 = vpop.xlane.xlu1 %6166 }
0x1d26   : > { %v6189_v51 = vsub.f32 %v6126_v27, %v6167_v37  ;;  %v6190_v49 = vsub.f32 %v6128_v8, %v6167_v37 }
0x1d27   : > { %v6170_v15 = vpop.xlane.xlu0 %6169 }
0x1d28   : > { %v6205_v63 = vmul.f32 1.442695, %v6189_v51  ;;  %v6207_v55 = vmul.f32 1.442695, %v6190_v49  ;;  %v6191_v10 = vsub.f32 %v6130_v20, %v6170_v15  ;;  %v6192_v34 = vsub.f32 %v6132_v22, %v6170_v15 }
0x1d2a   : > { %11440 = vpow2.f32 %v6205_v63  ;;  %v6209_v26 = vmul.f32 1.442695, %v6191_v10  ;;  %v6211_v2 = vmul.f32 1.442695, %v6192_v34 }
0x1d2b   : > { %11442 = vpow2.f32 %v6207_v55 }
0x1d2c   : > { %11444 = vpow2.f32 %v6209_v26 }
0x1d2d   : > { %11446 = vpow2.f32 %v6211_v2  ;;  %v6173_v25 = vpop.xlane.xlu0 %6172 }
0x1d2e   : > { %v6193_v17 = vsub.f32 %v6136_v42, %v6173_v25  ;;  %v6194_v59 = vsub.f32 %v6138_v53, %v6173_v25 }
0x1d2f   : > { %v6176_v13 = vpop.xlane.xlu1 %6175 }
0x1d30   : > { %v6213_v9 = vmul.f32 1.442695, %v6193_v17  ;;  %v6215_v47 = vmul.f32 1.442695, %v6194_v59  ;;  %v6195_v7 = vsub.f32 %v6140_v16, %v6176_v13  ;;  %v6196_v27 = vsub.f32 %v6142_v19, %v6176_v13 }
0x1d32   : > { %11448 = vpow2.f32 %v6213_v9  ;;  %v6217_v8 = vmul.f32 1.442695, %v6195_v7  ;;  %v6219_v51 = vmul.f32 1.442695, %v6196_v27 }
0x1d33   : > { %11450 = vpow2.f32 %v6215_v47 }
0x1d34   : > { %v15001_v20 = vpop.eup %11440  ;;  %11452 = vpow2.f32 %v6217_v8 }
0x1d35   : > { %v15003_v10 = vpop.eup %11442  ;;  %11454 = vpow2.f32 %v6219_v51  ;;  %v6179_v26 = vpop.xlane.xlu0 %6178 }
0x1d36   : > { %v15005_v2 = vpop.eup %11444  ;;  %v6197_v34 = vsub.f32 %v6146_v45, %v6179_v26  ;;  %v6198_v25 = vsub.f32 %v6148_v28, %v6179_v26  ;;  %v6237_v59 = vadd.f32 %v15003_v10, %v15001_v20 }
0x1d37   : > { %v15009_v17 = vpop.eup %11446  ;;  %v6182_v13 = vpop.xlane.xlu1 %6181 }
0x1d38   : > { %v6221_v7 = vmul.f32 1.442695, %v6197_v34  ;;  %v6223_v55 = vmul.f32 1.442695, %v6198_v25  ;;  %6238 = vadd.xlane.f32.xlu0 %v6237_v59  ;;  %v6199_v63 = vsub.f32 %v6150_v21, %v6182_v13  ;;  %v6200_v22 = vsub.f32 %v6152_v32, %v6182_v13 }
0x1d39   : > { %v6240_v42 = vadd.f32 %v15009_v17, %v15005_v2 }
0x1d3a   : > { %11456 = vpow2.f32 %v6221_v7  ;;  %v6225_v53 = vmul.f32 1.442695, %v6199_v63  ;;  %v6227_v16 = vmul.f32 1.442695, %v6200_v22 }
0x1d3b   : > { %11458 = vpow2.f32 %v6223_v55  ;;  %6241 = vadd.xlane.f32.xlu1 %v6240_v42 }
0x1d3c   : > { %v15013_v19 = vpop.eup %11448  ;;  %11460 = vpow2.f32 %v6225_v53 }
0x1d3d   : > { %v15015_v45 = vpop.eup %11450  ;;  %11462 = vpow2.f32 %v6227_v16  ;;  %v6185_v28 = vpop.xlane.xlu0 %6184  ;;  %v16989_v16 = vld [vmem:[#allocation76_spill] sm:$0xff] }
0x1d3e   : > { %v15017_v37 = vpop.eup %11452  ;;  %v6201_v21 = vsub.f32 %v14989_v54, %v6185_v28  ;;  %v6202_v32 = vsub.f32 %v14991_v18, %v6185_v28  ;;  %v6243_v49 = vadd.f32 %v15015_v45, %v15013_v19  ;;  %v16990_v28 = vld [vmem:[#allocation75_spill] sm:$0xff] }
0x1d3f   : > { %v15023_v15 = vpop.eup %11454  ;;  %v6188_v9 = vpop.xlane.xlu1 %6187 }
0x1d40   : > { %v6229_v47 = vmul.f32 1.442695, %v6201_v21  ;;  %v6231_v27 = vmul.f32 1.442695, %v6202_v32  ;;  %6244 = vadd.xlane.f32.xlu0 %v6243_v49  ;;  %v6203_v8 = vsub.f32 %v14995_v44, %v6188_v9  ;;  %v6204_v51 = vsub.f32 %v14997_v56, %v6188_v9  ;;  %v16991_v21 = vld [vmem:[#allocation77_spill] sm:$0xff]  ;;  %v16992_v32 = vld [vmem:[#allocation78_spill] sm:$0xff] }
0x1d41   : > { %v6246_v26 = vadd.f32 %v15023_v15, %v15017_v37 }
0x1d42   : > { %11464 = vpow2.f32 %v6229_v47  ;;  %v6233_v54 = vmul.f32 1.442695, %v6203_v8  ;;  %v6235_v34 = vmul.f32 1.442695, %v6204_v51 }
0x1d43   : > { %11466 = vpow2.f32 %v6231_v27  ;;  %6247 = vadd.xlane.f32.xlu1 %v6246_v26 }
0x1d44   : > { %v15029_v18 = vpop.eup %11456  ;;  %11468 = vpow2.f32 %v6233_v54 }
0x1d45   : > { %v15031_v25 = vpop.eup %11458  ;;  %11470 = vpow2.f32 %v6235_v34 }
0x1d46   : > { %v11461_v59 = vpop.eup %11460  ;;  %v6249_v44 = vadd.f32 %v15031_v25, %v15029_v18 }
0x1d47   : > { %v15035_v13 = vpop.eup %11462 }
0x1d48   : > { %6250 = vadd.xlane.f32.xlu0 %v6249_v44  ;;  %v6252_v56 = vadd.f32 %v15035_v13, %v11461_v59 }
0x1d4a   : > { %6253 = vadd.xlane.f32.xlu1 %v6252_v56 }
0x1d4c   : > { %v15038_v7 = vpop.eup %11464 }
0x1d4d   : > { %v15040_v55 = vpop.eup %11466 }
0x1d4e   : > { %v15042_v63 = vpop.eup %11468  ;;  %v6255_v22 = vadd.f32 %v15040_v55, %v15038_v7 }
0x1d4f   : > { %v15046_v42 = vpop.eup %11470 }
0x1d50   : > { %6256 = vadd.xlane.f32.xlu0 %v6255_v22  ;;  %v6258_v53 = vadd.f32 %v15046_v42, %v15042_v63 }
0x1d52   : > { %6259 = vadd.xlane.f32.xlu1 %v6258_v53 }
0x1d63   : > { %6735 = vrot.lane.b32.xlu1 %v16989_v16, %s12096_s25 }
0x1d66   : > { %6733 = vrot.lane.b32.xlu0 %v16990_v28, %s12096_s25 }
0x1d67   : > { %6737 = vrot.lane.b32.xlu1 %v16991_v21, %s12096_s25 }
0x1d6a   : > { %6739 = vrot.lane.b32.xlu0 %v16992_v32, %s12096_s25 }
0x1dc5   : > { %v6239_v49 = vpop.xlane.xlu0 %6238 }
0x1dc6   : > { %11472 = vrcp.f32 %v6239_v49 }
0x1dc8   : > { %v6242_v9 = vpop.xlane.xlu1 %6241 }
0x1dc9   : > { %11474 = vrcp.f32 %v6242_v9 }
0x1dcd   : > { %v6245_v47 = vpop.xlane.xlu0 %6244 }
0x1dce   : > { %11476 = vrcp.f32 %v6245_v47  ;;  %v16993_v47 = vld [vmem:[#allocation52_spill] sm:$0xff] }
0x1dd0   : > { %v6248_v27 = vpop.xlane.xlu1 %6247  ;;  %v11473_v8 = vpop.eup %11472 }
0x1dd1   : > { %11478 = vrcp.f32 %v6248_v27  ;;  %v6269_v26 = vmul.f32 %v11473_v8, %v15001_v20  ;;  %v6270_v34 = vmul.f32 %v11473_v8, %v15003_v10 }
0x1dd3   : > { %v11475_v51 = vpop.eup %11474 }
0x1dd4   : > { %v6271_v54 = vmul.f32 %v11475_v51, %v15005_v2  ;;  %v6272_v44 = vmul.f32 %v11475_v51, %v15009_v17 }
0x1dd5   : > { %v6251_v56 = vpop.xlane.xlu0 %6250 }
0x1dd6   : > { %v6285_v22 = vpack.c.bf16 %v6271_v54, %v6269_v26  ;;  %11480 = vrcp.f32 %v6251_v56  ;;  %v6286_v53 = vpack.c.bf16 %v6272_v44, %v6270_v34  ;;  %v16995_v26 = vld [vmem:[#allocation51_spill] sm:$0xff] }
0x1dd7   : > { %v6254_v49 = vpop.xlane.xlu1 %6253  ;;  %v16996_v34 = vld [vmem:[#allocation67_spill] sm:$0xff] }
0x1dd8   : > { %6325 = vmatprep.mubr.bf16.mxu1 %v6286_v53  ;;  %11482 = vrcp.f32 %v6254_v49  ;;  %v11477_v9 = vpop.eup %11476 }
0x1dd9   : > { %6326 = vmatmul.mubr.bf16.vlgmr.msra.gmra.mrb[32].mxu1 %v6285_v22  ;;  %v6273_v20 = vmul.f32 %v11477_v9, %v15013_v19  ;;  %v6274_v2 = vmul.f32 %v11477_v9, %v15015_v45  ;;  %v16997_v19 = vld [vmem:[#allocation54_spill] sm:$0xff] }
0x1dda   : > { %9924 = vmatpush3.bf16.msra.mxu1 %v16993_v47  ;;  %v16999_v47 = vld [vmem:[#allocation53_spill] sm:$0xff] }
0x1ddb   : > { %v11479_v27 = vpop.eup %11478  ;;  %9925 = vmatprep.subr.bf16.mxu1 %v16994_v14 }
0x1ddc   : > { %v6275_v10 = vmul.f32 %v11479_v27, %v15017_v37  ;;  %v6276_v17 = vmul.f32 %v11479_v27, %v15023_v15  ;;  %v16998_v15 = vld [vmem:[#allocation66_spill] sm:$0xff] }
0x1ddd   : > { %v6257_v8 = vpop.xlane.xlu0 %6256  ;;  %v17000_v27 = vld [vmem:[#allocation70_spill] sm:$0xff] }
0x1dde   : > { %v6287_v51 = vpack.c.bf16 %v6275_v10, %v6273_v20  ;;  %9926 = vmatpush3.bf16.msra.mxu1 %v16995_v26  ;;  %11484 = vrcp.f32 %v6257_v8  ;;  %v6288_v54 = vpack.c.bf16 %v6276_v17, %v6274_v2  ;;  %v17001_v2 = vld [vmem:[#allocation57_spill] sm:$0xff]  ;;  %v17003_v26 = vld [vmem:[#allocation56_spill] sm:$0xff] }
0x1ddf   : > { %9927 = vmatprep.subr.bf16.mxu1 %v16996_v34  ;;  %v6260_v44 = vpop.xlane.xlu1 %6259  ;;  %v17002_v17 = vld [vmem:[#allocation69_spill] sm:$0xff] }
0x1de0   : > { %v11481_v56 = vpop.eup %11480  ;;  %6333 = vmatprep.mubr.bf16.mxu1 %v6288_v54  ;;  %11486 = vrcp.f32 %v6260_v44  ;;  %v17004_v54 = vld [vmem:[#allocation73_spill] sm:$0xff]  ;;  %v17006_v44 = vld [vmem:[#allocation72_spill] sm:$0xff] }
0x1de1   : > { %6334 = vmatmul.mubr.bf16.gmra.mrb[36].mxu1 %v6287_v51  ;;  %v6277_v45 = vmul.f32 %v11481_v56, %v15029_v18  ;;  %v6278_v22 = vmul.f32 %v11481_v56, %v15031_v25  ;;  %v17005_v34 = vld [vmem:[#allocation61_spill] sm:$0xff] }
0x1de2   : > { %v11483_v14 = vpop.eup %11482  ;;  %9928 = vmatpush3.bf16.msra.mxu1 %v16997_v19 }
0x1de3   : > { %v6279_v37 = vmul.f32 %v11483_v14, %v11461_v59  ;;  %9929 = vmatprep.subr.bf16.mxu1 %v16998_v15  ;;  %v6280_v53 = vmul.f32 %v11483_v14, %v15035_v13 }
0x1de5   : > { %v6289_v49 = vpack.c.bf16 %v6279_v37, %v6277_v45  ;;  %v6290_v9 = vpack.c.bf16 %v6280_v53, %v6278_v22 }
0x1de6   : > { %9930 = vmatpush3.bf16.msra.mxu1 %v16999_v47 }
0x1de7   : > { %9931 = vmatprep.subr.bf16.mxu1 %v17000_v27  ;;  %6341 = vmatprep.mubr.bf16.mxu1 %v6290_v9 }
0x1de8   : > { %v11485_v20 = vpop.eup %11484 }
0x1de9   : > { %6342 = vmatmul.mubr.bf16.gmra.mrb[40].mxu1 %v6289_v49  ;;  %v6281_v18 = vmul.f32 %v11485_v20, %v15038_v7  ;;  %v6282_v25 = vmul.f32 %v11485_v20, %v15040_v55  ;;  %v17007_v7 = vld [vmem:[#allocation60_spill] sm:$0xff] }
0x1dea   : > { %v11487_v10 = vpop.eup %11486  ;;  %9932 = vmatpush3.bf16.msra.mxu1 %v17001_v2 }
0x1deb   : > { %v6283_v59 = vmul.f32 %v11487_v10, %v15042_v63  ;;  %9933 = vmatprep.subr.bf16.mxu1 %v17002_v17  ;;  %v6284_v13 = vmul.f32 %v11487_v10, %v15046_v42  ;;  %v17008_v63 = vld [vmem:[#allocation95_spill] sm:$0xff]  ;;  %v17009_v10 = vld [vmem:[#allocation80_spill] sm:$0xff] }
0x1ded   : > { %v6291_v8 = vpack.c.bf16 %v6283_v59, %v6281_v18  ;;  %v6292_v51 = vpack.c.bf16 %v6284_v13, %v6282_v25  ;;  %v17010_v59 = vld [vmem:[#allocation81_spill] sm:$0xff] }
0x1dee   : > { %9934 = vmatpush3.bf16.msra.mxu1 %v17003_v26  ;;  %v17012_v26 = vld [vmem:[#allocation83_spill] sm:$0xff] }
0x1def   : > { %9935 = vmatprep.subr.bf16.mxu1 %v17004_v54  ;;  %6349 = vmatprep.mubr.bf16.mxu1 %v6292_v51 }
0x1df1   : > { %6350 = vmatmul.mubr.bf16.gmra.mrb[44].mxu1 %v6291_v8  ;;  %v17011_v8 = vld [vmem:[#allocation82_spill] sm:$0xff] }
0x1df2   : > { %9936 = vmatpush3.bf16.msra.mxu1 %v17005_v34 }
0x1df3   : > { %9937 = vmatprep.subr.bf16.mxu1 %v17006_v44 }
0x1df6   : > { %9938 = vmatpush3.bf16.msra.mxu1 %v17007_v7 }
0x1df7   : > { %9963 = vmatprep.subr.bf16.mxu1 %v17008_v63 }
0x1eac   : > { %v9893_v56 = vpop.f32.mrb[32].mxu1 }
0x1ead   : > { %v9894_v55 = vpop.f32.mrb[33].mxu1 }
0x1eae   : > { %v9895_v14 = vadd.f32 %v9894_v55, %v9893_v56  ;;  %v9896_v42 = vpop.f32.mrb[34].mxu1 }
0x1eaf   : > { %v9897_v19 = vpop.f32.mrb[35].mxu1 }
0x1eb0   : > { %v9898_v45 = vadd.f32 %v9897_v19, %v9896_v42  ;;  %v17014_v42 = vld [vmem:[#allocation85_spill] sm:$0xff]  ;;  %v17015_v19 = vld [vmem:[#allocation86_spill] sm:$0xff] }
0x1eb2   : > { %v6358_v37 = vpack.c.bf16 %v9898_v45, %v9895_v14  ;;  %v17013_v14 = vld [vmem:[#allocation84_spill] sm:$0xff]  ;;  %v11824_v45 = vld [vmem:[#allocation10 + $0x10] sm:$0xff]  }
0x1eb4   : > { %v9899_v15 = vpop.f32.mrb[36].mxu1  ;;  %10411 = vmatprep.mubr.msk.bf16.mxu0 %vm1798_vm0, %v6358_v37  ;;  %v6734_v37 = vpop.permute.xlu0 %6733 }
0x1eb5   : > { %v9900_v22 = vpop.f32.mrb[37].mxu1 }
0x1eb6   : > { %v9901_v53 = vadd.f32 %v9900_v22, %v9899_v15  ;;  %v9902_v49 = vpop.f32.mrb[38].mxu1  ;;  %v11825_v15 = vld [vmem:[#allocation10 + $0x18] sm:$0xff]   ;;  %v15115_v22 = vld [vmem:[#allocation10] sm:$0xff]  }
0x1eb7   : > { %v9903_v9 = vpop.f32.mrb[39].mxu1  ;;  %17016 = vst [vmem:[#allocation65_spill] sm:$0xff] %v15115_v22 }
0x1eb8   : > { %v9904_v47 = vadd.f32 %v9903_v9, %v9902_v49  ;;  %v6740_v9 = vpop.permute.xlu0 %6739 }
0x1eba   : > { %v6359_v27 = vpack.c.bf16 %v9904_v47, %v9901_v53  ;;  %v6736_v53 = vpop.permute.xlu1 %6735 }
0x1ebc   : > { %v9905_v20 = vpop.f32.mrb[40].mxu1  ;;  %10412 = vmatmul.mubr.msk.bf16.vlgmr.msra.gmra.mrb[240].mxu0 %vm1798_vm0, %v6359_v27 }
0x1ebd   : > { %6460 = vmatpush1.bf16.msra.mxu0 %v17009_v10  ;;  %v9906_v2 = vpop.f32.mrb[41].mxu1 }
0x1ebe   : > { %v9907_v18 = vadd.f32 %v9906_v2, %v9905_v20  ;;  %6461 = vmatprep.subr.bf16.mxu0 %v17010_v59  ;;  %v9908_v17 = vpop.f32.mrb[42].mxu1  ;;  %v6738_v49 = vpop.permute.xlu1 %6737 }
0x1ebf   : > { %v9909_v25 = vpop.f32.mrb[43].mxu1 }
0x1ec0   : > { %v9910_v13 = vadd.f32 %v9909_v25, %v9908_v17 }
0x1ec1   : > { %6462 = vmatpush1.bf16.msra.mxu0 %v17011_v8 }
0x1ec2   : > { %v6360_v51 = vpack.c.bf16 %v9910_v13, %v9907_v18  ;;  %6753 = vmatprep.subr.bf16.mxu0 %v17012_v26 }
0x1ec4   : > { %v9911_v54 = vpop.f32.mrb[44].mxu1  ;;  %10415 = vmatprep.mubr.msk.bf16.mxu0 %vm1798_vm0, %v6360_v51 }
0x1ec5   : > { %v9912_v34 = vpop.f32.mrb[45].mxu1 }
0x1ec6   : > { %v9913_v44 = vadd.f32 %v9912_v34, %v9911_v54  ;;  %v9914_v7 = vpop.f32.mrb[46].mxu1 }
0x1ec7   : > { %v9915_v63 = vpop.f32.mrb[47].mxu1 }
0x1ec8   : > { %v9916_v56 = vadd.f32 %v9915_v63, %v9914_v7 }
0x1eca   : > { %v6361_v55 = vpack.c.bf16 %v9916_v56, %v9913_v44 }
0x1ecc   : > { %10416 = vmatmul.mubr.msk.bf16.gmra.mrb[244].mxu0 %vm1798_vm0, %v6361_v55 }
0x1ecd   : > { %6491 = vmatprep.mubr.bf16.mxu0 %v16949_v57 }
0x1ed4   : > { %9250 = vmatmul.mubr.msk.bf16.vlgmr.msra.gmra.mrb[8].mxu0 %vm1798_vm0, %v16990_v28 }
0x1ed5   : > { %6754 = vmatpush1.bf16.msra.mxu0 %v17013_v14  ;;  %6501 = vmatprep.mubr.bf16.mxu0 %v16949_v57 }
0x1ed6   : > { %6755 = vmatprep.subr.bf16.mxu0 %v17014_v42 }
0x1ed9   : > { %6756 = vmatpush1.bf16.msra.mxu0 %v17015_v19 }
0x1eda   : > { %10419 = vmatprep.subr.bf16.mxu0 %v11824_v45 }
0x1edc   : > { %9251 = vmatmul.mubr.msk.bf16.gmra.mrb[12].mxu0 %vm1798_vm0, %v16989_v16 }
0x1edd   : > { %6511 = vmatprep.mubr.bf16.mxu0 %v16949_v57 }
0x1ee4   : > { %9252 = vmatmul.mubr.msk.bf16.gmra.mrb[16].mxu0 %vm1798_vm0, %v16991_v21 }
0x1ee5   : > { %6521 = vmatprep.mubr.bf16.mxu0 %v16949_v57 }
0x1eec   : > { %9253 = vmatmul.mubr.msk.bf16.gmra.mrb[20].mxu0 %vm1798_vm0, %v16992_v32 }
0x1eed   : > { %6785 = vmatprep.mubr.bf16.mxu0 %v16949_v57 }
0x1ef4   : > { %9254 = vmatmul.mubr.msk.bf16.vlgmr.msra.gmra.mrb[24].mxu0 %vm1798_vm0, %v6734_v37 }
0x1ef5   : > { %6795 = vmatprep.mubr.bf16.mxu0 %v16949_v57  ;;  %10420 = vmatpush3.bf16.msra.mxu0 %v11824_v45 }
0x1ef6   : > { %10421 = vmatprep.subr.bf16.mxu0 %v11825_v15 }
0x1ef9   : > { %10422 = vmatpush3.bf16.msra.mxu0 %v11825_v15 }
0x1efa   : > { %10431 = vmatprep.subr.bf16.mxu0 %v15115_v22 }
0x1efc   : > { %9255 = vmatmul.mubr.msk.bf16.gmra.mrb[28].mxu0 %vm1798_vm0, %v6736_v53 }
0x1efd   : > { %6805 = vmatprep.mubr.bf16.mxu0 %v16949_v57 }
0x1f04   : > { %9256 = vmatmul.mubr.msk.bf16.gmra.mrb[32].mxu0 %vm1798_vm0, %v6738_v49 }
0x1f05   : > { %6815 = vmatprep.mubr.bf16.mxu0 %v16949_v57 }
0x1f0c   : > { %9257 = vmatmul.mubr.msk.bf16.gmra.mrb[36].mxu0 %vm1798_vm0, %v6740_v9 }
0x1f8f   : > { %v15123_v47 = vpop.f32.mrb[240].mxu0 }
0x1f90   : > { %17017 = vst [vmem:[#allocation71_spill] sm:$0xff] %v15123_v47  ;;  %v15125_v27 = vpop.f32.mrb[241].mxu0 }
0x1f91   : > { %17018 = vst [vmem:[#allocation74_spill] sm:$0xff] %v15125_v27  ;;  %v15127_v20 = vpop.f32.mrb[242].mxu0 }
0x1f92   : > { %17019 = vst [vmem:[#allocation99_spill] sm:$0xff] %v15127_v20  ;;  %v15129_v10 = vpop.f32.mrb[243].mxu0 }
0x1f93   : > { %17020 = vst [vmem:[#allocation64_spill] sm:$0xff] %v15129_v10 }
0x1f9f   : > { %v15131_v2 = vpop.f32.mrb[244].mxu0 }
0x1fa0   : > { %17021 = vst [vmem:[#allocation79_spill] sm:$0xff] %v15131_v2  ;;  %v15133_v18 = vpop.f32.mrb[245].mxu0 }
0x1fa1   : > { %17022 = vst [vmem:[#allocation76_spill] sm:$0xff] %v15133_v18  ;;  %v15135_v59 = vpop.f32.mrb[246].mxu0 }
0x1fa2   : > { %17023 = vst [vmem:[#allocation75_spill] sm:$0xff] %v15135_v59  ;;  %v15137_v17 = vpop.f32.mrb[247].mxu0 }
0x1fa3   : > { %17024 = vst [vmem:[#allocation77_spill] sm:$0xff] %v15137_v17 }
0x1fa7   : > { %v15139_v25 = vpop.f32.mrb[8].mxu0 }
0x1fa8   : > { %v15141_v13 = vpop.f32.mrb[9].mxu0 }
0x1fa9   : > { %v6532_v8 = vmax.f32 %v15139_v25, %v15141_v13  ;;  %v15145_v51 = vpop.f32.mrb[10].mxu0 }
0x1faa   : > { %v15147_v26 = vpop.f32.mrb[11].mxu0 }
0x1fab   : > { %v6535_v54 = vmax.f32 %v15145_v51, %v15147_v26  ;;  %6533 = vmax.xlane.f32.xlu1 %v6532_v8 }
0x1fad   : > { %6536 = vmax.xlane.f32.xlu0 %v6535_v54 }
0x1faf   : > { %v15151_v34 = vpop.f32.mrb[12].mxu0 }
0x1fb0   : > { %v15153_v44 = vpop.f32.mrb[13].mxu0 }
0x1fb1   : > { %v6538_v7 = vmax.f32 %v15151_v34, %v15153_v44  ;;  %v15157_v63 = vpop.f32.mrb[14].mxu0 }
0x1fb2   : > { %v15159_v56 = vpop.f32.mrb[15].mxu0 }
0x1fb3   : > { %v6541_v55 = vmax.f32 %v15157_v63, %v15159_v56  ;;  %6539 = vmax.xlane.f32.xlu0 %v6538_v7 }
0x1fb5   : > { %6542 = vmax.xlane.f32.xlu1 %v6541_v55 }
0x1fb7   : > { %v15163_v14 = vpop.f32.mrb[16].mxu0 }
0x1fb8   : > { %v15165_v42 = vpop.f32.mrb[17].mxu0 }
0x1fb9   : > { %v6544_v19 = vmax.f32 %v15163_v14, %v15165_v42  ;;  %v15169_v45 = vpop.f32.mrb[18].mxu0 }
0x1fba   : > { %v15171_v37 = vpop.f32.mrb[19].mxu0 }
0x1fbb   : > { %v6547_v15 = vmax.f32 %v15169_v45, %v15171_v37  ;;  %6545 = vmax.xlane.f32.xlu0 %v6544_v19 }
0x1fbd   : > { %6548 = vmax.xlane.f32.xlu1 %v6547_v15 }
0x1fbf   : > { %v15175_v53 = vpop.f32.mrb[20].mxu0 }
0x1fc0   : > { %v15177_v49 = vpop.f32.mrb[21].mxu0 }
0x1fc1   : > { %v6550_v9 = vmax.f32 %v15175_v53, %v15177_v49  ;;  %v15181_v8 = vpop.f32.mrb[22].mxu0 }
0x1fc2   : > { %v15183_v54 = vpop.f32.mrb[23].mxu0 }
0x1fc3   : > { %v6553_v7 = vmax.f32 %v15181_v8, %v15183_v54  ;;  %6551 = vmax.xlane.f32.xlu0 %v6550_v9 }
0x1fc5   : > { %6554 = vmax.xlane.f32.xlu1 %v6553_v7 }
0x1fc7   : > { %v15187_v55 = vpop.f32.mrb[24].mxu0 }
0x1fc8   : > { %v15189_v19 = vpop.f32.mrb[25].mxu0 }
0x1fc9   : > { %v6826_v15 = vmax.f32 %v15187_v55, %v15189_v19  ;;  %v15193_v2 = vpop.f32.mrb[26].mxu0 }
0x1fca   : > { %v15195_v59 = vpop.f32.mrb[27].mxu0 }
0x1fcb   : > { %v6829_v18 = vmax.f32 %v15193_v2, %v15195_v59  ;;  %6827 = vmax.xlane.f32.xlu0 %v6826_v15 }
0x1fcd   : > { %6830 = vmax.xlane.f32.xlu1 %v6829_v18 }
0x1fcf   : > { %v15199_v47 = vpop.f32.mrb[28].mxu0 }
0x1fd0   : > { %v15201_v9 = vpop.f32.mrb[29].mxu0 }
0x1fd1   : > { %v6832_v7 = vmax.f32 %v15199_v47, %v15201_v9  ;;  %v15205_v17 = vpop.f32.mrb[30].mxu0 }
0x1fd2   : > { %v15207_v20 = vpop.f32.mrb[31].mxu0 }
0x1fd3   : > { %v6835_v27 = vmax.f32 %v15205_v17, %v15207_v20  ;;  %6833 = vmax.xlane.f32.xlu0 %v6832_v7 }
0x1fd5   : > { %6836 = vmax.xlane.f32.xlu1 %v6835_v27 }
0x1fd7   : > { %v15211_v10 = vpop.f32.mrb[32].mxu0 }
0x1fd8   : > { %v15213_v15 = vpop.f32.mrb[33].mxu0 }
0x1fd9   : > { %v6838_v18 = vmax.f32 %v15211_v10, %v15213_v15  ;;  %v15217_v48 = vpop.f32.mrb[34].mxu0 }
0x1fda   : > { %v15219_v6 = vpop.f32.mrb[35].mxu0 }
0x1fdb   : > { %v6841_v50 = vmax.f32 %v15217_v48, %v15219_v6  ;;  %6839 = vmax.xlane.f32.xlu0 %v6838_v18 }
0x1fdd   : > { %6842 = vmax.xlane.f32.xlu1 %v6841_v50 }
0x1fdf   : > { %v15223_v22 = vpop.f32.mrb[36].mxu0 }
0x1fe0   : > { %v15225_v7 = vpop.f32.mrb[37].mxu0 }
0x1fe1   : > { %v6844_v27 = vmax.f32 %v15223_v22, %v15225_v7  ;;  %v15229_v36 = vpop.f32.mrb[38].mxu0 }
0x1fe2   : > { %v15231_v60 = vpop.f32.mrb[39].mxu0 }
0x1fe3   : > { %v6847_v24 = vmax.f32 %v15229_v36, %v15231_v60  ;;  %6845 = vmax.xlane.f32.xlu0 %v6844_v27 }
0x1fe5   : > { %6848 = vmax.xlane.f32.xlu1 %v6847_v24 }
0x2038   : > { %v6534_v43 = vpop.xlane.xlu1 %6533 }
0x2039   : > { %v6556_v18 = vsub.f32 %v15139_v25, %v6534_v43  ;;  %v6557_v50 = vsub.f32 %v15141_v13, %v6534_v43 }
0x203a   : > { %v6537_v3 = vpop.xlane.xlu0 %6536 }
0x203b   : > { %v6572_v35 = vmul.f32 1.442695, %v6556_v18  ;;  %v6574_v57 = vmul.f32 1.442695, %v6557_v50  ;;  %v6558_v46 = vsub.f32 %v15145_v51, %v6537_v3  ;;  %v6559_v30 = vsub.f32 %v15147_v26, %v6537_v3 }
0x203d   : > { %11488 = vpow2.f32 %v6572_v35  ;;  %v6576_v12 = vmul.f32 1.442695, %v6558_v46  ;;  %v6578_v62 = vmul.f32 1.442695, %v6559_v30 }
0x203e   : > { %11490 = vpow2.f32 %v6574_v57 }
0x203f   : > { %11492 = vpow2.f32 %v6576_v12 }
0x2040   : > { %11494 = vpow2.f32 %v6578_v62  ;;  %v6540_v27 = vpop.xlane.xlu0 %6539 }
0x2041   : > { %v6560_v24 = vsub.f32 %v15151_v34, %v6540_v27  ;;  %v6561_v25 = vsub.f32 %v15153_v44, %v6540_v27 }
0x2042   : > { %v6543_v11 = vpop.xlane.xlu1 %6542 }
0x2043   : > { %v6580_v43 = vmul.f32 1.442695, %v6560_v24  ;;  %v6582_v13 = vmul.f32 1.442695, %v6561_v25  ;;  %v6562_v18 = vsub.f32 %v15157_v63, %v6543_v11  ;;  %v6563_v51 = vsub.f32 %v15159_v56, %v6543_v11 }
0x2045   : > { %11496 = vpow2.f32 %v6580_v43  ;;  %v6584_v3 = vmul.f32 1.442695, %v6562_v18  ;;  %v6586_v35 = vmul.f32 1.442695, %v6563_v51 }
0x2046   : > { %11498 = vpow2.f32 %v6582_v13 }
0x2047   : > { %v15243_v30 = vpop.eup %11488  ;;  %11500 = vpow2.f32 %v6584_v3 }
0x2048   : > { %v15245_v62 = vpop.eup %11490  ;;  %11502 = vpow2.f32 %v6586_v35  ;;  %v6546_v12 = vpop.xlane.xlu0 %6545 }
0x2049   : > { %v15247_v46 = vpop.eup %11492  ;;  %v6564_v57 = vsub.f32 %v15163_v14, %v6546_v12  ;;  %v6565_v26 = vsub.f32 %v15165_v42, %v6546_v12  ;;  %v6604_v11 = vadd.f32 %v15245_v62, %v15243_v30 }
0x204a   : > { %v15253_v34 = vpop.eup %11494  ;;  %v6549_v44 = vpop.xlane.xlu1 %6548 }
0x204b   : > { %v6588_v63 = vmul.f32 1.442695, %v6564_v57  ;;  %v6590_v56 = vmul.f32 1.442695, %v6565_v26  ;;  %6605 = vadd.xlane.f32.xlu0 %v6604_v11  ;;  %v6566_v50 = vsub.f32 %v15169_v45, %v6549_v44  ;;  %v6567_v27 = vsub.f32 %v15171_v37, %v6549_v44 }
0x204c   : > { %v6607_v24 = vadd.f32 %v15253_v34, %v15247_v46 }
0x204d   : > { %11504 = vpow2.f32 %v6588_v63  ;;  %v6592_v14 = vmul.f32 1.442695, %v6566_v50  ;;  %v6594_v25 = vmul.f32 1.442695, %v6567_v27 }
0x204e   : > { %11506 = vpow2.f32 %v6590_v56  ;;  %6608 = vadd.xlane.f32.xlu1 %v6607_v24 }
0x204f   : > { %v15259_v42 = vpop.eup %11496  ;;  %11508 = vpow2.f32 %v6592_v14 }
0x2050   : > { %v15261_v43 = vpop.eup %11498  ;;  %11510 = vpow2.f32 %v6594_v25  ;;  %v6552_v13 = vpop.xlane.xlu0 %6551 }
0x2051   : > { %v15263_v18 = vpop.eup %11500  ;;  %v6568_v45 = vsub.f32 %v15175_v53, %v6552_v13  ;;  %v6569_v37 = vsub.f32 %v15177_v49, %v6552_v13  ;;  %v6610_v51 = vadd.f32 %v15261_v43, %v15259_v42 }
0x2052   : > { %v15269_v3 = vpop.eup %11502  ;;  %v6555_v35 = vpop.xlane.xlu1 %6554 }
0x2053   : > { %v6596_v12 = vmul.f32 1.442695, %v6568_v45  ;;  %v6598_v57 = vmul.f32 1.442695, %v6569_v37  ;;  %6611 = vadd.xlane.f32.xlu0 %v6610_v51  ;;  %v6570_v26 = vsub.f32 %v15181_v8, %v6555_v35  ;;  %v6571_v11 = vsub.f32 %v15183_v54, %v6555_v35 }
0x2054   : > { %v6613_v44 = vadd.f32 %v15269_v3, %v15263_v18 }
0x2055   : > { %11512 = vpow2.f32 %v6596_v12  ;;  %v6600_v53 = vmul.f32 1.442695, %v6570_v26  ;;  %v6602_v63 = vmul.f32 1.442695, %v6571_v11 }
0x2056   : > { %11514 = vpow2.f32 %v6598_v57  ;;  %6614 = vadd.xlane.f32.xlu1 %v6613_v44 }
0x2057   : > { %v15275_v49 = vpop.eup %11504  ;;  %11516 = vpow2.f32 %v6600_v53 }
0x2058   : > { %v15277_v56 = vpop.eup %11506  ;;  %11518 = vpow2.f32 %v6602_v63  ;;  %v6828_v50 = vpop.xlane.xlu0 %6827 }
0x2059   : > { %v15279_v27 = vpop.eup %11508  ;;  %v6850_v8 = vsub.f32 %v15187_v55, %v6828_v50  ;;  %v6851_v54 = vsub.f32 %v15189_v19, %v6828_v50  ;;  %v6616_v24 = vadd.f32 %v15277_v56, %v15275_v49 }
0x205a   : > { %v15285_v14 = vpop.eup %11510  ;;  %v6831_v25 = vpop.xlane.xlu1 %6830 }
0x205b   : > { %v6866_v13 = vmul.f32 1.442695, %v6850_v8  ;;  %v6868_v45 = vmul.f32 1.442695, %v6851_v54  ;;  %6617 = vadd.xlane.f32.xlu0 %v6616_v24  ;;  %v6852_v37 = vsub.f32 %v15193_v2, %v6831_v25  ;;  %v6853_v51 = vsub.f32 %v15195_v59, %v6831_v25 }
0x205c   : > { %v6619_v35 = vadd.f32 %v15285_v14, %v15279_v27 }
0x205d   : > { %11520 = vpow2.f32 %v6866_v13  ;;  %v6870_v55 = vmul.f32 1.442695, %v6852_v37  ;;  %v6872_v12 = vmul.f32 1.442695, %v6853_v51 }
0x205e   : > { %11522 = vpow2.f32 %v6868_v45  ;;  %6620 = vadd.xlane.f32.xlu1 %v6619_v35 }
0x205f   : > { %v15291_v19 = vpop.eup %11512  ;;  %11524 = vpow2.f32 %v6870_v55 }
0x2060   : > { %v15293_v57 = vpop.eup %11514  ;;  %11526 = vpow2.f32 %v6872_v12  ;;  %v6834_v26 = vpop.xlane.xlu0 %6833 }
0x2061   : > { %v15295_v11 = vpop.eup %11516  ;;  %v6854_v2 = vsub.f32 %v15199_v47, %v6834_v26  ;;  %v6855_v59 = vsub.f32 %v15201_v9, %v6834_v26  ;;  %v6622_v44 = vadd.f32 %v15293_v57, %v15291_v19 }
0x2062   : > { %v15301_v53 = vpop.eup %11518  ;;  %v6837_v63 = vpop.xlane.xlu1 %6836 }
0x2063   : > { %v6874_v50 = vmul.f32 1.442695, %v6854_v2  ;;  %v6876_v8 = vmul.f32 1.442695, %v6855_v59  ;;  %6623 = vadd.xlane.f32.xlu0 %v6622_v44  ;;  %v6856_v54 = vsub.f32 %v15205_v17, %v6837_v63  ;;  %v6857_v24 = vsub.f32 %v15207_v20, %v6837_v63 }
0x2064   : > { %v6625_v25 = vadd.f32 %v15301_v53, %v15295_v11 }
0x2065   : > { %11528 = vpow2.f32 %v6874_v50  ;;  %v6878_v47 = vmul.f32 1.442695, %v6856_v54  ;;  %v6880_v13 = vmul.f32 1.442695, %v6857_v24 }
0x2066   : > { %11530 = vpow2.f32 %v6876_v8  ;;  %6626 = vadd.xlane.f32.xlu1 %v6625_v25 }
0x2067   : > { %v15307_v9 = vpop.eup %11520  ;;  %11532 = vpow2.f32 %v6878_v47 }
0x2068   : > { %v15309_v45 = vpop.eup %11522  ;;  %11534 = vpow2.f32 %v6880_v13  ;;  %v6840_v37 = vpop.xlane.xlu0 %6839 }
0x2069   : > { %v15311_v51 = vpop.eup %11524  ;;  %v6858_v17 = vsub.f32 %v15211_v10, %v6840_v37  ;;  %v6859_v20 = vsub.f32 %v15213_v15, %v6840_v37  ;;  %v6898_v35 = vadd.f32 %v15309_v45, %v15307_v9 }
0x206a   : > { %v15317_v55 = vpop.eup %11526  ;;  %v6843_v12 = vpop.xlane.xlu1 %6842 }
0x206b   : > { %v6882_v26 = vmul.f32 1.442695, %v6858_v17  ;;  %v6884_v2 = vmul.f32 1.442695, %v6859_v20  ;;  %6899 = vadd.xlane.f32.xlu0 %v6898_v35  ;;  %v6860_v59 = vsub.f32 %v15217_v48, %v6843_v12  ;;  %v6861_v44 = vsub.f32 %v15219_v6, %v6843_v12 }
0x206c   : > { %v6901_v63 = vadd.f32 %v15317_v55, %v15311_v51 }
0x206d   : > { %11536 = vpow2.f32 %v6882_v26  ;;  %v6886_v10 = vmul.f32 1.442695, %v6860_v59  ;;  %v6888_v50 = vmul.f32 1.442695, %v6861_v44 }
0x206e   : > { %11538 = vpow2.f32 %v6884_v2  ;;  %6902 = vadd.xlane.f32.xlu1 %v6901_v63 }
0x206f   : > { %v15323_v15 = vpop.eup %11528  ;;  %11540 = vpow2.f32 %v6886_v10 }
0x2070   : > { %v15325_v8 = vpop.eup %11530  ;;  %11542 = vpow2.f32 %v6888_v50  ;;  %v6846_v54 = vpop.xlane.xlu0 %6845 }
0x2071   : > { %v15327_v24 = vpop.eup %11532  ;;  %v6862_v48 = vsub.f32 %v15223_v22, %v6846_v54  ;;  %v6863_v6 = vsub.f32 %v15225_v7, %v6846_v54  ;;  %v6904_v25 = vadd.f32 %v15325_v8, %v15323_v15 }
0x2072   : > { %v15333_v47 = vpop.eup %11534  ;;  %v6849_v13 = vpop.xlane.xlu1 %6848 }
0x2073   : > { %v6890_v37 = vmul.f32 1.442695, %v6862_v48  ;;  %v6892_v17 = vmul.f32 1.442695, %v6863_v6  ;;  %6905 = vadd.xlane.f32.xlu0 %v6904_v25  ;;  %v6864_v20 = vsub.f32 %v15229_v36, %v6849_v13  ;;  %v6865_v35 = vsub.f32 %v15231_v60, %v6849_v13 }
0x2074   : > { %v6907_v12 = vadd.f32 %v15333_v47, %v15327_v24 }
0x2075   : > { %11544 = vpow2.f32 %v6890_v37  ;;  %v6894_v22 = vmul.f32 1.442695, %v6864_v20  ;;  %v6896_v26 = vmul.f32 1.442695, %v6865_v35 }
0x2076   : > { %11546 = vpow2.f32 %v6892_v17  ;;  %6908 = vadd.xlane.f32.xlu1 %v6907_v12 }
0x2077   : > { %v15339_v7 = vpop.eup %11536  ;;  %11548 = vpow2.f32 %v6894_v22 }
0x2078   : > { %v15341_v2 = vpop.eup %11538  ;;  %11550 = vpow2.f32 %v6896_v26 }
0x2079   : > { %v15343_v59 = vpop.eup %11540  ;;  %v6910_v36 = vadd.f32 %v15341_v2, %v15339_v7 }
0x207a   : > { %v15347_v60 = vpop.eup %11542 }
0x207b   : > { %6911 = vadd.xlane.f32.xlu0 %v6910_v36  ;;  %v6913_v44 = vadd.f32 %v15347_v60, %v15343_v59 }
0x207d   : > { %6914 = vadd.xlane.f32.xlu1 %v6913_v44 }
0x207f   : > { %v15351_v63 = vpop.eup %11544 }
0x2080   : > { %v15353_v10 = vpop.eup %11546 }
0x2081   : > { %v15355_v50 = vpop.eup %11548  ;;  %v6916_v54 = vadd.f32 %v15353_v10, %v15351_v63 }
0x2082   : > { %v15359_v48 = vpop.eup %11550 }
0x2083   : > { %6917 = vadd.xlane.f32.xlu0 %v6916_v54  ;;  %v6919_v6 = vadd.f32 %v15359_v48, %v15355_v50 }
0x2085   : > { %6920 = vadd.xlane.f32.xlu1 %v6919_v6 }
0x2096   : > { %7179 = vrot.lane.b32.xlu1 %v16989_v16, %s12097_s23 }
0x2099   : > { %7177 = vrot.lane.b32.xlu0 %v16990_v28, %s12097_s23 }
0x209a   : > { %7181 = vrot.lane.b32.xlu1 %v16991_v21, %s12097_s23 }
0x209d   : > { %7183 = vrot.lane.b32.xlu0 %v16992_v32, %s12097_s23 }
0x20d8   : > { %v6606_v25 = vpop.xlane.xlu0 %6605 }
0x20d9   : > { %11552 = vrcp.f32 %v6606_v25 }
0x20db   : > { %v6609_v13 = vpop.xlane.xlu1 %6608 }
0x20dc   : > { %11554 = vrcp.f32 %v6609_v13 }
0x20e0   : > { %v6612_v37 = vpop.xlane.xlu0 %6611 }
0x20e1   : > { %11556 = vrcp.f32 %v6612_v37 }
0x20e3   : > { %v6615_v17 = vpop.xlane.xlu1 %6614  ;;  %v11553_v20 = vpop.eup %11552 }
0x20e4   : > { %11558 = vrcp.f32 %v6615_v17  ;;  %v6636_v12 = vmul.f32 %v11553_v20, %v15243_v30  ;;  %v6637_v26 = vmul.f32 %v11553_v20, %v15245_v62 }
0x20e6   : > { %v11555_v35 = vpop.eup %11554 }
0x20e7   : > { %v6638_v22 = vmul.f32 %v11555_v35, %v15247_v46  ;;  %v6639_v36 = vmul.f32 %v11555_v35, %v15253_v34 }
0x20e8   : > { %v6618_v44 = vpop.xlane.xlu0 %6617 }
0x20e9   : > { %v6652_v54 = vpack.c.bf16 %v6638_v22, %v6636_v12  ;;  %v6653_v6 = vpack.c.bf16 %v6639_v36, %v6637_v26  ;;  %11560 = vrcp.f32 %v6618_v44 }
0x20eb   : > { %6692 = vmatprep.mubr.bf16.mxu1 %v6653_v6  ;;  %v6621_v25 = vpop.xlane.xlu1 %6620  ;;  %v11557_v13 = vpop.eup %11556  ;;  %v17025_v6 = vld [vmem:[#allocation96_spill] sm:$0xff] }
0x20ec   : > { %11562 = vrcp.f32 %v6621_v25  ;;  %6693 = vmatmul.mubr.bf16.vlgmr.msra.gmra.mrb[48].mxu1 %v6652_v54  ;;  %v6640_v30 = vmul.f32 %v11557_v13, %v15259_v42  ;;  %v6641_v46 = vmul.f32 %v11557_v13, %v15261_v43  ;;  %v17027_v25 = vld [vmem:[#allocation87_spill] sm:$0xff] }
0x20ed   : > { %9964 = vmatpush3.bf16.msra.mxu1 %v13157_v41 }
0x20ee   : > { %v11559_v37 = vpop.eup %11558  ;;  %9965 = vmatprep.subr.bf16.mxu1 %v13161_v31 }
0x20ef   : > { %v6642_v62 = vmul.f32 %v11559_v37, %v15263_v18  ;;  %v6643_v34 = vmul.f32 %v11559_v37, %v15269_v3 }
0x20f0   : > { %v6624_v17 = vpop.xlane.xlu0 %6623 }
0x20f1   : > { %v6654_v20 = vpack.c.bf16 %v6642_v62, %v6640_v30  ;;  %9966 = vmatpush3.bf16.msra.mxu1 %v13159_v23  ;;  %v6655_v35 = vpack.c.bf16 %v6643_v34, %v6641_v46  ;;  %11564 = vrcp.f32 %v6624_v17  ;;  %v17028_v62 = vld [vmem:[#allocation89_spill] sm:$0xff]  ;;  %v17029_v34 = vld [vmem:[#allocation88_spill] sm:$0xff] }
0x20f2   : > { %9967 = vmatprep.subr.bf16.mxu1 %v16782_v1 }
0x20f3   : > { %6700 = vmatprep.mubr.bf16.mxu1 %v6655_v35  ;;  %v6627_v41 = vpop.xlane.xlu1 %6626  ;;  %v11561_v12 = vpop.eup %11560 }
0x20f4   : > { %11566 = vrcp.f32 %v6627_v41  ;;  %6701 = vmatmul.mubr.bf16.gmra.mrb[52].mxu1 %v6654_v20  ;;  %v6644_v42 = vmul.f32 %v11561_v12, %v15275_v49  ;;  %v6645_v23 = vmul.f32 %v11561_v12, %v15277_v56 }
0x20f5   : > { %9968 = vmatpush3.bf16.msra.mxu1 %v16783_v29 }
0x20f6   : > { %v11563_v31 = vpop.eup %11562  ;;  %9969 = vmatprep.subr.bf16.mxu1 %v16863_v61 }
0x20f7   : > { %v6646_v43 = vmul.f32 %v11563_v31, %v15279_v27  ;;  %v6647_v18 = vmul.f32 %v11563_v31, %v15285_v14 }
0x20f8   : > { %v6900_v3 = vpop.xlane.xlu0 %6899 }
0x20f9   : > { %v6656_v1 = vpack.c.bf16 %v6646_v43, %v6644_v42  ;;  %9970 = vmatpush3.bf16.msra.mxu1 %v16864_v33  ;;  %v6657_v22 = vpack.c.bf16 %v6647_v18, %v6645_v23  ;;  %11568 = vrcp.f32 %v6900_v3 }
0x20fa   : > { %9971 = vmatprep.subr.bf16.mxu1 %v16865_v0 }
0x20fb   : > { %6708 = vmatprep.mubr.bf16.mxu1 %v6657_v22  ;;  %v6903_v29 = vpop.xlane.xlu1 %6902  ;;  %v11565_v26 = vpop.eup %11564  ;;  %v17035_v22 = vld [vmem:[#allocation109_spill] sm:$0xff] }
0x20fc   : > { %11570 = vrcp.f32 %v6903_v29  ;;  %6709 = vmatmul.mubr.bf16.gmra.mrb[56].mxu1 %v6656_v1  ;;  %v6648_v49 = vmul.f32 %v11565_v26, %v15291_v19  ;;  %v6649_v33 = vmul.f32 %v11565_v26, %v15293_v57  ;;  %v17031_v1 = vld [vmem:[#allocation90_spill] sm:$0xff]  ;;  %v17036_v29 = vld [vmem:[#allocation111_spill] sm:$0xff] }
0x20fd   : > { %9972 = vmatpush3.bf16.msra.mxu1 %v16866_v4  ;;  %v17037_v26 = vld [vmem:[#allocation110_spill] sm:$0xff] }
0x20fe   : > { %v11567_v61 = vpop.eup %11566  ;;  %9973 = vmatprep.subr.bf16.mxu1 %v16867_v40 }
0x20ff   : > { %v6650_v56 = vmul.f32 %v11567_v61, %v15295_v11  ;;  %v6651_v27 = vmul.f32 %v11567_v61, %v15301_v53  ;;  %v17038_v61 = vld [vmem:[#allocation112_spill] sm:$0xff] }
0x2100   : > { %v6906_v14 = vpop.xlane.xlu0 %6905 }
0x2101   : > { %v6658_v0 = vpack.c.bf16 %v6650_v56, %v6648_v49  ;;  %9974 = vmatpush3.bf16.msra.mxu1 %v16868_v58  ;;  %v6659_v36 = vpack.c.bf16 %v6651_v27, %v6649_v33  ;;  %11572 = vrcp.f32 %v6906_v14  ;;  %v17039_v56 = vld [vmem:[#allocation113_spill] sm:$0xff]  ;;  %v17040_v33 = vld [vmem:[#allocation92_spill] sm:$0xff]  ;;  %v17041_v27 = vld [vmem:[#allocation114_spill] sm:$0xff] }
0x2102   : > { %9975 = vmatprep.subr.bf16.mxu1 %v16869_v39  ;;  %v17042_v14 = vld [vmem:[#allocation115_spill] sm:$0xff] }
0x2103   : > { %6716 = vmatprep.mubr.bf16.mxu1 %v6659_v36  ;;  %v6909_v4 = vpop.xlane.xlu1 %6908  ;;  %v11569_v44 = vpop.eup %11568  ;;  %v17043_v36 = vld [vmem:[#allocation116_spill] sm:$0xff] }
0x2104   : > { %11574 = vrcp.f32 %v6909_v4  ;;  %6717 = vmatmul.mubr.bf16.gmra.mrb[60].mxu1 %v6658_v0  ;;  %v6930_v19 = vmul.f32 %v11569_v44, %v15307_v9  ;;  %v6931_v58 = vmul.f32 %v11569_v44, %v15309_v45  ;;  %v17026_v9 = vld [vmem:[#allocation97_spill] sm:$0xff]  ;;  %v17045_v44 = vld [vmem:[#allocation118_spill] sm:$0xff] }
0x2105   : > { %9976 = vmatpush3.bf16.msra.mxu1 %v16870_v38  ;;  %v17044_v4 = vld [vmem:[#allocation117_spill] sm:$0xff] }
0x2106   : > { %v11571_v40 = vpop.eup %11570  ;;  %9977 = vmatprep.subr.bf16.mxu1 %v13376_v5 }
0x2107   : > { %v6932_v57 = vmul.f32 %v11571_v40, %v15311_v51  ;;  %v6933_v11 = vmul.f32 %v11571_v40, %v15317_v55  ;;  %v17046_v40 = vld [vmem:[#allocation119_spill] sm:$0xff] }
0x2108   : > { %v6912_v53 = vpop.xlane.xlu0 %6911 }
0x2109   : > { %v6946_v39 = vpack.c.bf16 %v6932_v57, %v6930_v19  ;;  %9978 = vmatpush3.bf16.msra.mxu1 %v13378_v52  ;;  %11576 = vrcp.f32 %v6912_v53  ;;  %v6947_v54 = vpack.c.bf16 %v6933_v11, %v6931_v58 }
0x210a   : > { %7197 = vmatprep.subr.bf16.mxu1 %v17025_v6  ;;  %v6915_v38 = vpop.xlane.xlu1 %6914 }
0x210b   : > { %6986 = vmatprep.mubr.bf16.mxu1 %v6947_v54  ;;  %11578 = vrcp.f32 %v6915_v38  ;;  %v11573_v5 = vpop.eup %11572 }
0x210c   : > { %6987 = vmatmul.mubr.bf16.vlgmr.msra.gmra.mrb[64].mxu1 %v6946_v39  ;;  %v6934_v45 = vmul.f32 %v11573_v5, %v15323_v15  ;;  %v6935_v52 = vmul.f32 %v11573_v5, %v15325_v8 }
0x210d   : > { %7198 = vmatpush1.bf16.msra.mxu1 %v17026_v9 }
0x210e   : > { %v11575_v51 = vpop.eup %11574  ;;  %7199 = vmatprep.subr.bf16.mxu1 %v17027_v25 }
0x210f   : > { %v6936_v55 = vmul.f32 %v11575_v51, %v15327_v24  ;;  %v6937_v13 = vmul.f32 %v11575_v51, %v15333_v47 }
0x2110   : > { %v6918_v37 = vpop.xlane.xlu0 %6917 }
0x2111   : > { %v6948_v30 = vpack.c.bf16 %v6936_v55, %v6934_v45  ;;  %7200 = vmatpush1.bf16.msra.mxu1 %v17028_v62  ;;  %11580 = vrcp.f32 %v6918_v37  ;;  %v6949_v46 = vpack.c.bf16 %v6937_v13, %v6935_v52 }
0x2112   : > { %10015 = vmatprep.subr.bf16.mxu1 %v17029_v34  ;;  %v6921_v17 = vpop.xlane.xlu1 %6920 }
0x2113   : > { %v11577_v20 = vpop.eup %11576  ;;  %6994 = vmatprep.mubr.bf16.mxu1 %v6949_v46  ;;  %11582 = vrcp.f32 %v6921_v17 }
0x2114   : > { %6995 = vmatmul.mubr.bf16.gmra.mrb[68].mxu1 %v6948_v30  ;;  %v6938_v24 = vmul.f32 %v11577_v20, %v15339_v7  ;;  %v6939_v47 = vmul.f32 %v11577_v20, %v15341_v2  ;;  %v17030_v2 = vmov 0  }
0x2115   : > { %v11579_v15 = vpop.eup %11578 }
0x2116   : > { %v6940_v8 = vmul.f32 %v11579_v15, %v15343_v59  ;;  %v6941_v35 = vmul.f32 %v11579_v15, %v15347_v60  ;;  %v7178_v60 = vpop.permute.xlu0 %7177 }
0x2118   : > { %v6950_v41 = vpack.c.bf16 %v6940_v8, %v6938_v24  ;;  %v6951_v12 = vpack.c.bf16 %v6941_v35, %v6939_v47 }
0x211a   : > { %7002 = vmatprep.mubr.bf16.mxu1 %v6951_v12  ;;  %v7184_v0 = vpop.permute.xlu0 %7183 }
0x211b   : > { %v11581_v31 = vpop.eup %11580 }
0x211c   : > { %7003 = vmatmul.mubr.bf16.gmra.mrb[72].mxu1 %v6950_v41  ;;  %v6942_v43 = vmul.f32 %v11581_v31, %v15351_v63  ;;  %v6943_v18 = vmul.f32 %v11581_v31, %v15353_v10  ;;  %v17032_v63 = vld [vmem:[#allocation107_spill] sm:$0xff]  ;;  %v17034_v10 = vld [vmem:[#allocation108_spill] sm:$0xff] }
0x211d   : > { %v11583_v42 = vpop.eup %11582 }
0x211e   : > { %v6944_v23 = vmul.f32 %v11583_v42, %v15355_v50  ;;  %v6945_v7 = vmul.f32 %v11583_v42, %v15359_v48  ;;  %v17033_v50 = vld [vmem:[#allocation106_spill] sm:$0xff]  ;;  %v7180_v48 = vpop.permute.xlu1 %7179 }
0x2120   : > { %v6952_v3 = vpack.c.bf16 %v6944_v23, %v6942_v43  ;;  %v6953_v59 = vpack.c.bf16 %v6945_v7, %v6943_v18 }
0x2122   : > { %7010 = vmatprep.mubr.bf16.mxu1 %v6953_v59  ;;  %v7182_v49 = vpop.permute.xlu1 %7181 }
0x2124   : > { %7011 = vmatmul.mubr.bf16.gmra.mrb[76].mxu1 %v6952_v3 }
0x2125   : > { %7229 = vmatprep.mubr.bf16.mxu1 %v17030_v2 }
0x212c   : > { %9266 = vmatmul.mubr.msk.bf16.vlgmr.msra.gmra.mrb[80].mxu1 %vm1798_vm0, %v7178_v60 }
0x212d   : > { %10016 = vmatpush3.bf16.msra.mxu1 %v17031_v1  ;;  %7239 = vmatprep.mubr.bf16.mxu1 %v17030_v2 }
0x212e   : > { %10017 = vmatprep.subr.bf16.mxu1 %v17032_v63 }
0x2131   : > { %10018 = vmatpush3.bf16.msra.mxu1 %v17033_v50 }
0x2132   : > { %10019 = vmatprep.subr.bf16.mxu1 %v17034_v10 }
0x2134   : > { %9267 = vmatmul.mubr.msk.bf16.gmra.mrb[84].mxu1 %vm1798_vm0, %v7180_v48  ;;  %v17047_v48 = vld [vmem:[#allocation65_spill] sm:$0xff] }
0x2135   : > { %10020 = vmatpush3.bf16.msra.mxu1 %v17035_v22  ;;  %7249 = vmatprep.mubr.bf16.mxu1 %v17030_v2 }
0x2136   : > { %10021 = vmatprep.subr.bf16.mxu1 %v17036_v29 }
0x2139   : > { %10022 = vmatpush3.bf16.msra.mxu1 %v17037_v26  ;;  %v11827_v26 = vld [vmem:[#allocation10 + $0x8] sm:$0xff]  }
0x213a   : > { %10023 = vmatprep.subr.bf16.mxu1 %v17038_v61 }
0x213c   : > { %9268 = vmatmul.mubr.msk.bf16.gmra.mrb[88].mxu1 %vm1798_vm0, %v7182_v49 }
0x213d   : > { %10024 = vmatpush3.bf16.msra.mxu1 %v17039_v56  ;;  %7259 = vmatprep.mubr.bf16.mxu1 %v17030_v2 }
0x213e   : > { %10025 = vmatprep.subr.bf16.mxu1 %v17040_v33  ;;  %v11828_v33 = vld [vmem:[#allocation10 + $0x20] sm:$0xff]  }
0x2141   : > { %10026 = vmatpush3.bf16.msra.mxu1 %v17041_v27 }
0x2142   : > { %10027 = vmatprep.subr.bf16.mxu1 %v17042_v14 }
0x2144   : > { %9269 = vmatmul.mubr.msk.bf16.gmra.mrb[92].mxu1 %vm1798_vm0, %v7184_v0 }
0x2145   : > { %10028 = vmatpush3.bf16.msra.mxu1 %v17043_v36 }
0x2146   : > { %10029 = vmatprep.subr.bf16.mxu1 %v17044_v4 }
0x2149   : > { %10030 = vmatpush3.bf16.msra.mxu1 %v17045_v44 }
0x214a   : > { %10061 = vmatprep.subr.bf16.mxu1 %v17046_v40 }
0x21bf   : > { %v9939_v19 = vpop.f32.mrb[48].mxu1 }
0x21c0   : > { %v9940_v57 = vpop.f32.mrb[49].mxu1 }
0x21c1   : > { %v15447_v58 = vadd.f32 %v9940_v57, %v9939_v19  ;;  %v9942_v11 = vpop.f32.mrb[50].mxu1 }
0x21c2   : > { %v9943_v53 = vpop.f32.mrb[51].mxu1 }
0x21c3   : > { %v15449_v39 = vadd.f32 %v9943_v53, %v9942_v11 }
0x21c5   : > { %v6725_v54 = vpack.c.bf16 %v15449_v39, %v15447_v58 }
0x21c7   : > { %v9945_v6 = vpop.f32.mrb[52].mxu1 }
0x21c8   : > { %v9946_v38 = vpop.f32.mrb[53].mxu1 }
0x21c9   : > { %v15453_v5 = vadd.f32 %v9946_v38, %v9945_v6  ;;  %v9948_v9 = vpop.f32.mrb[54].mxu1 }
0x21ca   : > { %v9949_v51 = vpop.f32.mrb[55].mxu1 }
0x21cb   : > { %v15455_v25 = vadd.f32 %v9949_v51, %v9948_v9  ;;  %v11829_v51 = vld [vmem:[#allocation10 + $0x28] sm:$0xff]  }
0x21cd   : > { %v6726_v45 = vpack.c.bf16 %v15455_v25, %v15453_v5 }
0x21cf   : > { %v9951_v55 = vpop.f32.mrb[56].mxu1 }
0x21d0   : > { %v9952_v52 = vpop.f32.mrb[57].mxu1 }
0x21d1   : > { %v15459_v13 = vadd.f32 %v9952_v52, %v9951_v55  ;;  %v9954_v37 = vpop.f32.mrb[58].mxu1  ;;  %v17048_v55 = vld [vmem:[#allocation91_spill] sm:$0xff] }
0x21d2   : > { %v9955_v30 = vpop.f32.mrb[59].mxu1 }
0x21d3   : > { %v9956_v62 = vadd.f32 %v9955_v30, %v9954_v37 }
0x21d5   : > { %v6727_v46 = vpack.c.bf16 %v9956_v62, %v15459_v13 }
0x21d7   : > { %v9957_v34 = vpop.f32.mrb[60].mxu1 }
0x21d8   : > { %v9958_v17 = vpop.f32.mrb[61].mxu1 }
0x21d9   : > { %v15462_v20 = vadd.f32 %v9958_v17, %v9957_v34  ;;  %v9960_v15 = vpop.f32.mrb[62].mxu1 }
0x21da   : > { %v9961_v24 = vpop.f32.mrb[63].mxu1 }
0x21db   : > { %v15464_v8 = vadd.f32 %v9961_v24, %v9960_v15 }
0x21dd   : > { %v6728_v47 = vpack.c.bf16 %v15464_v8, %v15462_v20 }
0x21df   : > { %v9979_v35 = vpop.f32.mrb[64].mxu1 }
0x21e0   : > { %v9980_v41 = vpop.f32.mrb[65].mxu1 }
0x21e1   : > { %v9981_v12 = vadd.f32 %v9980_v41, %v9979_v35  ;;  %v9982_v31 = vpop.f32.mrb[66].mxu1 }
0x21e2   : > { %v9983_v42 = vpop.f32.mrb[67].mxu1 }
0x21e3   : > { %v9984_v43 = vadd.f32 %v9983_v42, %v9982_v31 }
0x21e5   : > { %v7019_v23 = vpack.c.bf16 %v9984_v43, %v9981_v12 }
0x21e7   : > { %v9985_v18 = vpop.f32.mrb[68].mxu1  ;;  %10423 = vmatprep.mubr.msk.bf16.mxu0 %vm1798_vm0, %v7019_v23 }
0x21e8   : > { %v9986_v7 = vpop.f32.mrb[69].mxu1 }
0x21e9   : > { %v9987_v3 = vadd.f32 %v9986_v7, %v9985_v18  ;;  %v9988_v59 = vpop.f32.mrb[70].mxu1 }
0x21ea   : > { %v9989_v60 = vpop.f32.mrb[71].mxu1 }
0x21eb   : > { %v9990_v1 = vadd.f32 %v9989_v60, %v9988_v59 }
0x21ed   : > { %v7020_v63 = vpack.c.bf16 %v9990_v1, %v9987_v3 }
0x21ef   : > { %v9991_v50 = vpop.f32.mrb[72].mxu1  ;;  %10424 = vmatmul.mubr.msk.bf16.vlgmr.msra.gmra.mrb[40].mxu0 %vm1798_vm0, %v7020_v63 }
0x21f0   : > { %v9992_v10 = vpop.f32.mrb[73].mxu1  ;;  %10432 = vmatpush3.bf16.msra.mxu0 %v17047_v48 }
0x21f1   : > { %v9993_v22 = vadd.f32 %v9992_v10, %v9991_v50  ;;  %v9994_v29 = vpop.f32.mrb[74].mxu1  ;;  %10433 = vmatprep.subr.bf16.mxu0 %v11827_v26 }
0x21f2   : > { %v9995_v61 = vpop.f32.mrb[75].mxu1 }
0x21f3   : > { %v9996_v49 = vadd.f32 %v9995_v61, %v9994_v29 }
0x21f4   : > { %10434 = vmatpush3.bf16.msra.mxu0 %v11827_v26 }
0x21f5   : > { %v7021_v56 = vpack.c.bf16 %v9996_v49, %v9993_v22  ;;  %10443 = vmatprep.subr.bf16.mxu0 %v11828_v33 }
0x21f7   : > { %v9997_v27 = vpop.f32.mrb[76].mxu1  ;;  %10427 = vmatprep.mubr.msk.bf16.mxu0 %vm1798_vm0, %v7021_v56 }
0x21f8   : > { %v9998_v14 = vpop.f32.mrb[77].mxu1 }
0x21f9   : > { %v9999_v0 = vadd.f32 %v9998_v14, %v9997_v27  ;;  %v10000_v36 = vpop.f32.mrb[78].mxu1 }
0x21fa   : > { %v10001_v4 = vpop.f32.mrb[79].mxu1 }
0x21fb   : > { %v10002_v44 = vadd.f32 %v10001_v4, %v10000_v36 }
0x21fd   : > { %v7022_v40 = vpack.c.bf16 %v10002_v44, %v9999_v0 }
0x21ff   : > { %10428 = vmatmul.mubr.msk.bf16.gmra.mrb[44].mxu0 %vm1798_vm0, %v7022_v40  ;;  %v7231_v19 = vpop.f32.mrb[80].mxu1 }
0x2200   : > { %10435 = vmatprep.mubr.msk.bf16.mxu0 %vm1798_vm0, %v6725_v54  ;;  %v7233_v57 = vpop.f32.mrb[81].mxu1 }
0x2201   : > { %v7270_v58 = vmax.f32 %v7231_v19, %v7233_v57  ;;  %v7235_v11 = vpop.f32.mrb[82].mxu1 }
0x2202   : > { %v7237_v53 = vpop.f32.mrb[83].mxu1 }
0x2203   : > { %v7273_v39 = vmax.f32 %v7235_v11, %v7237_v53  ;;  %7271 = vmax.xlane.f32.xlu1 %v7270_v58 }
0x2205   : > { %7274 = vmax.xlane.f32.xlu0 %v7273_v39 }
0x2207   : > { %10436 = vmatmul.mubr.msk.bf16.vlgmr.msra.gmra.mrb[40].mxu0 %vm1798_vm0, %v6726_v45  ;;  %v7241_v6 = vpop.f32.mrb[84].mxu1 }
0x2208   : > { %10444 = vmatpush3.bf16.msra.mxu0 %v11828_v33  ;;  %10439 = vmatprep.mubr.msk.bf16.mxu0 %vm1798_vm0, %v6727_v46  ;;  %v7243_v38 = vpop.f32.mrb[85].mxu1 }
0x2209   : > { %v7276_v5 = vmax.f32 %v7241_v6, %v7243_v38  ;;  %v7245_v9 = vpop.f32.mrb[86].mxu1  ;;  %10445 = vmatprep.subr.bf16.mxu0 %v11829_v51 }
0x220a   : > { %v7247_v25 = vpop.f32.mrb[87].mxu1 }
0x220b   : > { %v7279_v54 = vmax.f32 %v7245_v9, %v7247_v25  ;;  %7277 = vmax.xlane.f32.xlu0 %v7276_v5 }
0x220c   : > { %10446 = vmatpush3.bf16.msra.mxu0 %v11829_v51 }
0x220d   : > { %7572 = vmatprep.subr.bf16.mxu0 %v17048_v55  ;;  %7280 = vmax.xlane.f32.xlu1 %v7279_v54 }
0x220f   : > { %10440 = vmatmul.mubr.msk.bf16.gmra.mrb[44].mxu0 %vm1798_vm0, %v6728_v47  ;;  %v7251_v45 = vpop.f32.mrb[88].mxu1 }
0x2210   : > { %v7253_v52 = vpop.f32.mrb[89].mxu1 }
0x2211   : > { %v7282_v13 = vmax.f32 %v7251_v45, %v7253_v52  ;;  %v7255_v37 = vpop.f32.mrb[90].mxu1 }
0x2212   : > { %v7257_v30 = vpop.f32.mrb[91].mxu1 }
0x2213   : > { %v7285_v62 = vmax.f32 %v7255_v37, %v7257_v30  ;;  %7283 = vmax.xlane.f32.xlu0 %v7282_v13 }
0x2215   : > { %7286 = vmax.xlane.f32.xlu1 %v7285_v62 }
0x2217   : > { %v15481_v46 = vpop.f32.mrb[92].mxu1 }
0x2218   : > { %v15483_v34 = vpop.f32.mrb[93].mxu1 }
0x2219   : > { %v7288_v17 = vmax.f32 %v15481_v46, %v15483_v34  ;;  %v15487_v15 = vpop.f32.mrb[94].mxu1 }
0x221a   : > { %v15489_v20 = vpop.f32.mrb[95].mxu1 }
0x221b   : > { %v7291_v24 = vmax.f32 %v15487_v15, %v15489_v20  ;;  %7289 = vmax.xlane.f32.xlu0 %v7288_v17 }
0x221d   : > { %7292 = vmax.xlane.f32.xlu1 %v7291_v24 }
0x2290   : > { %v7272_v8 = vpop.xlane.xlu1 %7271 }
0x2291   : > { %v7294_v47 = vsub.f32 %v7231_v19, %v7272_v8  ;;  %v7295_v35 = vsub.f32 %v7233_v57, %v7272_v8 }
0x2292   : > { %v7275_v41 = vpop.xlane.xlu0 %7274 }
0x2293   : > { %v7310_v12 = vmul.f32 1.442695, %v7294_v47  ;;  %v7312_v31 = vmul.f32 1.442695, %v7295_v35  ;;  %v7296_v42 = vsub.f32 %v7235_v11, %v7275_v41  ;;  %v7297_v43 = vsub.f32 %v7237_v53, %v7275_v41 }
0x2295   : > { %11584 = vpow2.f32 %v7310_v12  ;;  %v7314_v23 = vmul.f32 1.442695, %v7296_v42  ;;  %v7316_v18 = vmul.f32 1.442695, %v7297_v43 }
0x2296   : > { %11586 = vpow2.f32 %v7312_v31 }
0x2297   : > { %11588 = vpow2.f32 %v7314_v23 }
0x2298   : > { %11590 = vpow2.f32 %v7316_v18  ;;  %v7278_v7 = vpop.xlane.xlu0 %7277 }
0x2299   : > { %v7298_v3 = vsub.f32 %v7241_v6, %v7278_v7  ;;  %v7299_v59 = vsub.f32 %v7243_v38, %v7278_v7 }
0x229a   : > { %v7281_v60 = vpop.xlane.xlu1 %7280 }
0x229b   : > { %v7318_v1 = vmul.f32 1.442695, %v7298_v3  ;;  %v7320_v63 = vmul.f32 1.442695, %v7299_v59  ;;  %v7300_v50 = vsub.f32 %v7245_v9, %v7281_v60  ;;  %v7301_v10 = vsub.f32 %v7247_v25, %v7281_v60 }
0x229d   : > { %11592 = vpow2.f32 %v7318_v1  ;;  %v7322_v48 = vmul.f32 1.442695, %v7300_v50  ;;  %v7324_v22 = vmul.f32 1.442695, %v7301_v10  ;;  %v17049_v50 = vld [vmem:[#allocation120_spill] sm:$0xff] }
0x229e   : > { %11594 = vpow2.f32 %v7320_v63 }
0x229f   : > { %v15493_v29 = vpop.eup %11584  ;;  %11596 = vpow2.f32 %v7322_v48  ;;  %v17050_v48 = vld [vmem:[#allocation121_spill] sm:$0xff] }
0x22a0   : > { %v15495_v26 = vpop.eup %11586  ;;  %11598 = vpow2.f32 %v7324_v22  ;;  %v7284_v61 = vpop.xlane.xlu0 %7283 }
0x22a1   : > { %v15497_v49 = vpop.eup %11588  ;;  %v7302_v56 = vsub.f32 %v7251_v45, %v7284_v61  ;;  %v7303_v33 = vsub.f32 %v7253_v52, %v7284_v61  ;;  %v7342_v27 = vadd.f32 %v15495_v26, %v15493_v29 }
0x22a2   : > { %v15501_v14 = vpop.eup %11590  ;;  %v7287_v0 = vpop.xlane.xlu1 %7286 }
0x22a3   : > { %v7326_v36 = vmul.f32 1.442695, %v7302_v56  ;;  %v7328_v4 = vmul.f32 1.442695, %v7303_v33  ;;  %7343 = vadd.xlane.f32.xlu0 %v7342_v27  ;;  %v7304_v44 = vsub.f32 %v7255_v37, %v7287_v0  ;;  %v7305_v40 = vsub.f32 %v7257_v30, %v7287_v0  ;;  %v17051_v33 = vld [vmem:[#allocation122_spill] sm:$0xff] }
0x22a4   : > { %v7345_v19 = vadd.f32 %v15501_v14, %v15497_v49 }
0x22a5   : > { %11600 = vpow2.f32 %v7326_v36  ;;  %v7330_v57 = vmul.f32 1.442695, %v7304_v44  ;;  %v7332_v58 = vmul.f32 1.442695, %v7305_v40  ;;  %v17053_v44 = vld [vmem:[#allocation123_spill] sm:$0xff] }
0x22a6   : > { %11602 = vpow2.f32 %v7328_v4  ;;  %7346 = vadd.xlane.f32.xlu1 %v7345_v19 }
0x22a7   : > { %v15505_v11 = vpop.eup %11592  ;;  %11604 = vpow2.f32 %v7330_v57  ;;  %v17054_v57 = vld [vmem:[#allocation125_spill] sm:$0xff] }
0x22a8   : > { %v15507_v53 = vpop.eup %11594  ;;  %11606 = vpow2.f32 %v7332_v58  ;;  %v7290_v39 = vpop.xlane.xlu0 %7289 }
0x22a9   : > { %v15509_v6 = vpop.eup %11596  ;;  %v7306_v38 = vsub.f32 %v15481_v46, %v7290_v39  ;;  %v7307_v5 = vsub.f32 %v15483_v34, %v7290_v39  ;;  %v7348_v9 = vadd.f32 %v15507_v53, %v15505_v11 }
0x22aa   : > { %v15515_v51 = vpop.eup %11598  ;;  %v7293_v25 = vpop.xlane.xlu1 %7292 }
0x22ab   : > { %v7334_v54 = vmul.f32 1.442695, %v7306_v38  ;;  %v7336_v55 = vmul.f32 1.442695, %v7307_v5  ;;  %7349 = vadd.xlane.f32.xlu0 %v7348_v9  ;;  %v7308_v45 = vsub.f32 %v15487_v15, %v7293_v25  ;;  %v7309_v52 = vsub.f32 %v15489_v20, %v7293_v25  ;;  %v17056_v38 = vld [vmem:[#allocation127_spill] sm:$0xff] }
0x22ac   : > { %v7351_v13 = vadd.f32 %v15515_v51, %v15509_v6 }
0x22ad   : > { %11608 = vpow2.f32 %v7334_v54  ;;  %v7338_v37 = vmul.f32 1.442695, %v7308_v45  ;;  %v7340_v30 = vmul.f32 1.442695, %v7309_v52 }
0x22ae   : > { %11610 = vpow2.f32 %v7336_v55  ;;  %7352 = vadd.xlane.f32.xlu1 %v7351_v13  ;;  %v17058_v55 = vld [vmem:[#allocation130_spill] sm:$0xff] }
0x22af   : > { %v15521_v62 = vpop.eup %11600  ;;  %11612 = vpow2.f32 %v7338_v37 }
0x22b0   : > { %v15523_v46 = vpop.eup %11602  ;;  %11614 = vpow2.f32 %v7340_v30  ;;  %v17059_v30 = vld [vmem:[#allocation131_spill] sm:$0xff] }
0x22b1   : > { %v11605_v34 = vpop.eup %11604  ;;  %v7354_v17 = vadd.f32 %v15523_v46, %v15521_v62 }
0x22b2   : > { %v15527_v15 = vpop.eup %11606 }
0x22b3   : > { %7355 = vadd.xlane.f32.xlu0 %v7354_v17  ;;  %v7357_v20 = vadd.f32 %v15527_v15, %v11605_v34  ;;  %v17063_v17 = vld [vmem:[#allocation58_spill] sm:$0xff] }
0x22b5   : > { %7358 = vadd.xlane.f32.xlu1 %v7357_v20 }
0x22b7   : > { %v15530_v24 = vpop.eup %11608 }
0x22b8   : > { %v15532_v8 = vpop.eup %11610 }
0x22b9   : > { %v15534_v47 = vpop.eup %11612  ;;  %v7360_v35 = vadd.f32 %v15532_v8, %v15530_v24 }
0x22ba   : > { %v15538_v41 = vpop.eup %11614 }
0x22bb   : > { %7361 = vadd.xlane.f32.xlu0 %v7360_v35  ;;  %v7363_v12 = vadd.f32 %v15538_v41, %v15534_v47 }
0x22bd   : > { %7364 = vadd.xlane.f32.xlu1 %v7363_v12 }
0x22ce   : > { %7554 = vrot.lane.b32.xlu1 %v16989_v16, %s12098_s27 }
0x22d1   : > { %7552 = vrot.lane.b32.xlu0 %v16990_v28, %s12098_s27 }
0x22d2   : > { %7556 = vrot.lane.b32.xlu1 %v16991_v21, %s12098_s27 }
0x22d5   : > { %7558 = vrot.lane.b32.xlu0 %v16992_v32, %s12098_s27  ;;  %s17156_s27 = sld [smem:[#allocation142_spill]] }
0x22db   : > { %s16372_s12 = scalar_lea.hbm %s17156_s27, %s9298_s18 }
0x2330   : > { %v7344_v31 = vpop.xlane.xlu0 %7343 }
0x2331   : > { %11616 = vrcp.f32 %v7344_v31 }
0x2333   : > { %v7347_v42 = vpop.xlane.xlu1 %7346 }
0x2334   : > { %11618 = vrcp.f32 %v7347_v42 }
0x2338   : > { %v7350_v43 = vpop.xlane.xlu0 %7349 }
0x2339   : > { %11620 = vrcp.f32 %v7350_v43 }
0x233b   : > { %v7353_v23 = vpop.xlane.xlu1 %7352  ;;  %v11617_v18 = vpop.eup %11616 }
0x233c   : > { %11622 = vrcp.f32 %v7353_v23  ;;  %v7374_v16 = vmul.f32 %v11617_v18, %v15493_v29  ;;  %v7375_v3 = vmul.f32 %v11617_v18, %v15495_v26 }
0x233e   : > { %v11619_v7 = vpop.eup %11618 }
0x233f   : > { %v7376_v28 = vmul.f32 %v11619_v7, %v15497_v49  ;;  %v7377_v21 = vmul.f32 %v11619_v7, %v15501_v14  ;;  %v17052_v14 = vld [vmem:[#allocation124_spill] sm:$0xff] }
0x2340   : > { %v7356_v59 = vpop.xlane.xlu0 %7355 }
0x2341   : > { %v7390_v32 = vpack.c.bf16 %v7376_v28, %v7374_v16  ;;  %11624 = vrcp.f32 %v7356_v59  ;;  %v7391_v60 = vpack.c.bf16 %v7377_v21, %v7375_v3  ;;  %v17064_v28 = vld [vmem:[#allocation93_spill] sm:$0xff]  ;;  %v17065_v59 = vld [vmem:[#allocation94_spill] sm:$0xff] }
0x2342   : > { %v7359_v1 = vpop.xlane.xlu1 %7358 }
0x2343   : > { %7430 = vmatprep.mubr.bf16.mxu1 %v7391_v60  ;;  %11626 = vrcp.f32 %v7359_v1  ;;  %v11621_v63 = vpop.eup %11620 }
0x2344   : > { %7431 = vmatmul.mubr.bf16.vlgmr.msra.gmra.mrb[96].mxu1 %v7390_v32  ;;  %v7378_v22 = vmul.f32 %v11621_v63, %v15505_v11  ;;  %v7379_v26 = vmul.f32 %v11621_v63, %v15507_v53  ;;  %v17066_v63 = vld [vmem:[#allocation129_spill] sm:$0xff] }
0x2345   : > { %10062 = vmatpush3.bf16.msra.mxu1 %v17049_v50 }
0x2346   : > { %v11623_v10 = vpop.eup %11622  ;;  %10063 = vmatprep.subr.bf16.mxu1 %v17050_v48 }
0x2347   : > { %v7380_v29 = vmul.f32 %v11623_v10, %v15509_v6  ;;  %v7381_v61 = vmul.f32 %v11623_v10, %v15515_v51  ;;  %v17055_v6 = vld [vmem:[#allocation126_spill] sm:$0xff]  ;;  %v17057_v51 = vld [vmem:[#allocation128_spill] sm:$0xff]  ;;  %v11830_v10 = vld [vmem:[#allocation10 + $0x30] sm:$0xff]  }
0x2348   : > { %v7362_v49 = vpop.xlane.xlu0 %7361 }
0x2349   : > { %v7392_v56 = vpack.c.bf16 %v7380_v29, %v7378_v22  ;;  %10064 = vmatpush3.bf16.msra.mxu1 %v17051_v33  ;;  %11628 = vrcp.f32 %v7362_v49  ;;  %v7393_v27 = vpack.c.bf16 %v7381_v61, %v7379_v26 }
0x234a   : > { %10065 = vmatprep.subr.bf16.mxu1 %v17052_v14  ;;  %v7365_v0 = vpop.xlane.xlu1 %7364 }
0x234b   : > { %v11625_v36 = vpop.eup %11624  ;;  %7438 = vmatprep.mubr.bf16.mxu1 %v7393_v27  ;;  %11630 = vrcp.f32 %v7365_v0  ;;  %v11831_v27 = vld [vmem:[#allocation10 + $0x38] sm:$0xff]  }
0x234c   : > { %7439 = vmatmul.mubr.bf16.gmra.mrb[100].mxu1 %v7392_v56  ;;  %v7382_v40 = vmul.f32 %v11625_v36, %v15521_v62  ;;  %v7383_v58 = vmul.f32 %v11625_v36, %v15523_v46  ;;  %v17060_v62 = vld [vmem:[#allocation132_spill] sm:$0xff]  ;;  %v17061_v46 = vld [vmem:[#allocation133_spill] sm:$0xff]  ;;  %v7553_v33 = vpop.permute.xlu0 %7552 }
0x234d   : > { %v11627_v4 = vpop.eup %11626  ;;  %10066 = vmatpush3.bf16.msra.mxu1 %v17053_v44 }
0x234e   : > { %v7384_v19 = vmul.f32 %v11627_v4, %v11605_v34  ;;  %10067 = vmatprep.subr.bf16.mxu1 %v17054_v57  ;;  %v7385_v11 = vmul.f32 %v11627_v4, %v15527_v15  ;;  %v17062_v34 = vld [vmem:[#allocation55_spill] sm:$0xff]  ;;  %v7555_v14 = vpop.permute.xlu1 %7554 }
0x2350   : > { %v7394_v53 = vpack.c.bf16 %v7384_v19, %v7382_v40  ;;  %v7395_v39 = vpack.c.bf16 %v7385_v11, %v7383_v58  ;;  %v7559_v36 = vpop.permute.xlu0 %7558 }
0x2351   : > { %10068 = vmatpush3.bf16.msra.mxu1 %v17055_v6 }
0x2352   : > { %10069 = vmatprep.subr.bf16.mxu1 %v17056_v38  ;;  %7446 = vmatprep.mubr.bf16.mxu1 %v7395_v39  ;;  %v7557_v0 = vpop.permute.xlu1 %7556 }
0x2353   : > { %v11629_v5 = vpop.eup %11628 }
0x2354   : > { %7447 = vmatmul.mubr.bf16.gmra.mrb[104].mxu1 %v7394_v53  ;;  %v7386_v25 = vmul.f32 %v11629_v5, %v15530_v24  ;;  %v7387_v45 = vmul.f32 %v11629_v5, %v15532_v8 }
0x2355   : > { %v11631_v9 = vpop.eup %11630  ;;  %10070 = vmatpush3.bf16.msra.mxu1 %v17057_v51 }
0x2356   : > { %v7388_v54 = vmul.f32 %v11631_v9, %v15534_v47  ;;  %10071 = vmatprep.subr.bf16.mxu1 %v17058_v55  ;;  %v7389_v52 = vmul.f32 %v11631_v9, %v15538_v41 }
0x2358   : > { %v7396_v13 = vpack.c.bf16 %v7388_v54, %v7386_v25  ;;  %v7397_v37 = vpack.c.bf16 %v7389_v52, %v7387_v45 }
0x2359   : > { %10072 = vmatpush3.bf16.msra.mxu1 %v17059_v30 }
0x235a   : > { %10073 = vmatprep.subr.bf16.mxu1 %v17060_v62  ;;  %7454 = vmatprep.mubr.bf16.mxu1 %v7397_v37 }
0x235c   : > { %7455 = vmatmul.mubr.bf16.gmra.mrb[108].mxu1 %v7396_v13 }
0x235d   : > { %10074 = vmatpush3.bf16.msra.mxu1 %v17061_v46 }
0x235e   : > { %10075 = vmatprep.subr.bf16.mxu1 %v17062_v34 }
0x2361   : > { %10076 = vmatpush3.bf16.msra.mxu1 %v17063_v17 }
0x2417   : > { %v10031_v15 = vpop.f32.mrb[96].mxu1 }
0x2418   : > { %v10032_v20 = vpop.f32.mrb[97].mxu1 }
0x2419   : > { %v10033_v24 = vadd.f32 %v10032_v20, %v10031_v15  ;;  %v10034_v8 = vpop.f32.mrb[98].mxu1 }
0x241a   : > { %v10035_v47 = vpop.f32.mrb[99].mxu1 }
0x241b   : > { %v10036_v35 = vadd.f32 %v10035_v47, %v10034_v8 }
0x241d   : > { %v7463_v41 = vpack.c.bf16 %v10036_v35, %v10033_v24 }
0x241f   : > { %v10037_v12 = vpop.f32.mrb[100].mxu1  ;;  %10447 = vmatprep.mubr.msk.bf16.mxu0 %vm1798_vm0, %v7463_v41 }
0x2420   : > { %v10038_v31 = vpop.f32.mrb[101].mxu1 }
0x2421   : > { %v10039_v42 = vadd.f32 %v10038_v31, %v10037_v12  ;;  %v10040_v43 = vpop.f32.mrb[102].mxu1 }
0x2422   : > { %v10041_v23 = vpop.f32.mrb[103].mxu1 }
0x2423   : > { %v10042_v18 = vadd.f32 %v10041_v23, %v10040_v43 }
0x2425   : > { %v7464_v7 = vpack.c.bf16 %v10042_v18, %v10039_v42 }
0x2427   : > { %v10043_v16 = vpop.f32.mrb[104].mxu1  ;;  %10448 = vmatmul.mubr.msk.bf16.vlgmr.msra.gmra.mrb[40].mxu0 %vm1798_vm0, %v7464_v7 }
0x2428   : > { %7573 = vmatpush1.bf16.msra.mxu0 %v17064_v28  ;;  %v10044_v3 = vpop.f32.mrb[105].mxu1 }
0x2429   : > { %v10045_v21 = vadd.f32 %v10044_v3, %v10043_v16  ;;  %7574 = vmatprep.subr.bf16.mxu0 %v17065_v59  ;;  %v10046_v32 = vpop.f32.mrb[106].mxu1 }
0x242a   : > { %v10047_v60 = vpop.f32.mrb[107].mxu1 }
0x242b   : > { %v10048_v1 = vadd.f32 %v10047_v60, %v10046_v32 }
0x242c   : > { %7575 = vmatpush1.bf16.msra.mxu0 %v17066_v63 }
0x242d   : > { %v7465_v50 = vpack.c.bf16 %v10048_v1, %v10045_v21  ;;  %10455 = vmatprep.subr.bf16.mxu0 %v11830_v10 }
0x242f   : > { %v10049_v48 = vpop.f32.mrb[108].mxu1  ;;  %10451 = vmatprep.mubr.msk.bf16.mxu0 %vm1798_vm0, %v7465_v50 }
0x2430   : > { %v10050_v22 = vpop.f32.mrb[109].mxu1 }
0x2431   : > { %v10051_v29 = vadd.f32 %v10050_v22, %v10049_v48  ;;  %v10052_v26 = vpop.f32.mrb[110].mxu1 }
0x2432   : > { %v10053_v61 = vpop.f32.mrb[111].mxu1 }
0x2433   : > { %v10054_v49 = vadd.f32 %v10053_v61, %v10052_v26 }
0x2435   : > { %v7466_v56 = vpack.c.bf16 %v10054_v49, %v10051_v29 }
0x2437   : > { %10452 = vmatmul.mubr.msk.bf16.gmra.mrb[44].mxu0 %vm1798_vm0, %v7466_v56 }
0x2438   : > { %7604 = vmatprep.mubr.bf16.mxu0 %v17030_v2 }
0x243f   : > { %9274 = vmatmul.mubr.msk.bf16.vlgmr.msra.gmra.mrb[48].mxu0 %vm1798_vm0, %v7553_v33 }
0x2440   : > { %7614 = vmatprep.mubr.bf16.mxu0 %v17030_v2  ;;  %10456 = vmatpush3.bf16.msra.mxu0 %v11830_v10 }
0x2441   : > { %10457 = vmatprep.subr.bf16.mxu0 %v11831_v27 }
0x2444   : > { %10458 = vmatpush3.bf16.msra.mxu0 %v11831_v27 }
0x2447   : > { %9275 = vmatmul.mubr.msk.bf16.gmra.mrb[52].mxu0 %vm1798_vm0, %v7555_v14 }
0x2448   : > { %7624 = vmatprep.mubr.bf16.mxu0 %v17030_v2 }
0x244f   : > { %9276 = vmatmul.mubr.msk.bf16.gmra.mrb[56].mxu0 %vm1798_vm0, %v7557_v0 }
0x2450   : > { %7634 = vmatprep.mubr.bf16.mxu0 %v17030_v2 }
0x2457   : > { %9277 = vmatmul.mubr.msk.bf16.gmra.mrb[60].mxu0 %vm1798_vm0, %v7559_v36 }
0x2512   : > { %v7606_v4 = vpop.f32.mrb[48].mxu0 }
0x2513   : > { %v7608_v44 = vpop.f32.mrb[49].mxu0 }
0x2514   : > { %v7645_v40 = vmax.f32 %v7606_v4, %v7608_v44  ;;  %v7610_v19 = vpop.f32.mrb[50].mxu0 }
0x2515   : > { %v7612_v57 = vpop.f32.mrb[51].mxu0 }
0x2516   : > { %v7648_v58 = vmax.f32 %v7610_v19, %v7612_v57  ;;  %7646 = vmax.xlane.f32.xlu1 %v7645_v40 }
0x2518   : > { %7649 = vmax.xlane.f32.xlu0 %v7648_v58 }
0x251a   : > { %v7616_v11 = vpop.f32.mrb[52].mxu0 }
0x251b   : > { %v7618_v53 = vpop.f32.mrb[53].mxu0 }
0x251c   : > { %v7651_v39 = vmax.f32 %v7616_v11, %v7618_v53  ;;  %v7620_v6 = vpop.f32.mrb[54].mxu0 }
0x251d   : > { %v7622_v38 = vpop.f32.mrb[55].mxu0 }
0x251e   : > { %v7654_v5 = vmax.f32 %v7620_v6, %v7622_v38  ;;  %7652 = vmax.xlane.f32.xlu0 %v7651_v39 }
0x2520   : > { %7655 = vmax.xlane.f32.xlu1 %v7654_v5 }
0x2522   : > { %v7626_v2 = vpop.f32.mrb[56].mxu0 }
0x2523   : > { %v7628_v9 = vpop.f32.mrb[57].mxu0 }
0x2524   : > { %v7657_v51 = vmax.f32 %v7626_v2, %v7628_v9  ;;  %v7630_v25 = vpop.f32.mrb[58].mxu0 }
0x2525   : > { %v7632_v54 = vpop.f32.mrb[59].mxu0 }
0x2526   : > { %v7660_v55 = vmax.f32 %v7630_v25, %v7632_v54  ;;  %7658 = vmax.xlane.f32.xlu0 %v7657_v51 }
0x2528   : > { %7661 = vmax.xlane.f32.xlu1 %v7660_v55 }
0x252a   : > { %v15595_v45 = vpop.f32.mrb[60].mxu0 }
0x252b   : > { %v15597_v52 = vpop.f32.mrb[61].mxu0 }
0x252c   : > { %v7663_v13 = vmax.f32 %v15595_v45, %v15597_v52  ;;  %v15601_v37 = vpop.f32.mrb[62].mxu0 }
0x252d   : > { %v15603_v30 = vpop.f32.mrb[63].mxu0 }
0x252e   : > { %v7666_v62 = vmax.f32 %v15601_v37, %v15603_v30  ;;  %7664 = vmax.xlane.f32.xlu0 %v7663_v13 }
0x2530   : > { %7667 = vmax.xlane.f32.xlu1 %v7666_v62 }
0x25a3   : > { %v7647_v46 = vpop.xlane.xlu1 %7646 }
0x25a4   : > { %v7669_v34 = vsub.f32 %v7606_v4, %v7647_v46  ;;  %v7670_v17 = vsub.f32 %v7608_v44, %v7647_v46  ;;  %v15659_v46 = vld [vmem:[#allocation11] sm:$0xff]  }
0x25a5   : > { %v7650_v15 = vpop.xlane.xlu0 %7649  ;;  %10467 = vmatprep.subr.bf16.mxu1 %v15659_v46 }
0x25a6   : > { %v7685_v20 = vmul.f32 1.442695, %v7669_v34  ;;  %v7687_v24 = vmul.f32 1.442695, %v7670_v17  ;;  %v7671_v8 = vsub.f32 %v7610_v19, %v7650_v15  ;;  %v7672_v47 = vsub.f32 %v7612_v57, %v7650_v15  ;;  %v15665_v34 = vld [vmem:[%s16426_s7] ss:$0 sm:$0xff] }
0x25a7   : > { %v17067_v17 = vld [vmem:[#allocation59_spill] sm:$0xff] }
0x25a8   : > { %11632 = vpow2.f32 %v7685_v20  ;;  %v7689_v35 = vmul.f32 1.442695, %v7671_v8  ;;  %v7691_v41 = vmul.f32 1.442695, %v7672_v47  ;;  %v7936_v15 = vadd.f32 %v17067_v17, %v15665_v34  ;;  %v17068_v20 = vld [vmem:[#allocation62_spill] sm:$0xff]  ;;  %v17069_v8 = vld [vmem:[#allocation20_spill] sm:$0xff] }
0x25a9   : > { %11634 = vpow2.f32 %v7687_v24  ;;  %v7934_v24 = vadd.f32 %v15665_v34, %v17068_v20  ;;  %v17070_v47 = vmax.f32 %v17069_v8, 0.0  ;;  %v17084_v17 = vld [vmem:[#allocation139_spill] sm:$0xff] }
0x25aa   : > { %11636 = vpow2.f32 %v7689_v35 }
0x25ab   : > { %11638 = vpow2.f32 %v7691_v41  ;;  %v7653_v12 = vpop.xlane.xlu0 %7652  ;;  %v7968_v35 = vadd.f32 %v7936_v15, %v17070_v47  ;;  %v17071_v41 = vld [vmem:[#allocation19_spill] sm:$0xff]  ;;  %v7939_v15 = vadd.f32 %v15665_v34, %v17084_v17 }
0x25ac   : > { %v7673_v31 = vsub.f32 %v7616_v11, %v7653_v12  ;;  %v7674_v42 = vsub.f32 %v7618_v53, %v7653_v12  ;;  %v17072_v12 = vmax.f32 %v17071_v41, 0.0  ;;  %v17085_v47 = vld [vmem:[#allocation23_spill] sm:$0xff] }
0x25ad   : > { %v7656_v43 = vpop.xlane.xlu1 %7655  ;;  %v17086_v41 = vmax.f32 %v17085_v47, 0.0 }
0x25ae   : > { %v7693_v23 = vmul.f32 1.442695, %v7673_v31  ;;  %v7695_v18 = vmul.f32 1.442695, %v7674_v42  ;;  %v7675_v7 = vsub.f32 %v7620_v6, %v7656_v43  ;;  %v7676_v16 = vsub.f32 %v7622_v38, %v7656_v43  ;;  %v17073_v42 = vld [vmem:[#allocation134_spill] sm:$0xff] }
0x25af   : > { %v7966_v31 = vadd.f32 %v7934_v24, %v17072_v12  ;;  %v7937_v43 = vadd.f32 %v17073_v42, %v15665_v34  ;;  %v17087_v42 = vld [vmem:[#allocation25_spill] sm:$0xff] }
0x25b0   : > { %11640 = vpow2.f32 %v7693_v23  ;;  %v7697_v28 = vmul.f32 1.442695, %v7675_v7  ;;  %v7699_v3 = vmul.f32 1.442695, %v7676_v16  ;;  %v8032_v23 = vmul.f32 0.044715, %v7968_v35 }
0x25b1   : > { %11642 = vpow2.f32 %v7695_v18  ;;  %v17074_v18 = vld [vmem:[#allocation135_spill] sm:$0xff]  ;;  %v8030_v16 = vmul.f32 0.044715, %v7966_v31 }
0x25b2   : > { %v15607_v21 = vpop.eup %11632  ;;  %11644 = vpow2.f32 %v7697_v28  ;;  %v7935_v7 = vadd.f32 %v15665_v34, %v17074_v18  ;;  %v17075_v28 = vld [vmem:[#allocation21_spill] sm:$0xff] }
0x25b3   : > { %v15609_v59 = vpop.eup %11634  ;;  %11646 = vpow2.f32 %v7699_v3  ;;  %v7659_v32 = vpop.xlane.xlu0 %7658  ;;  %v17076_v3 = vmax.f32 %v17075_v28, 0.0 }
0x25b4   : > { %v15611_v60 = vpop.eup %11636  ;;  %v7677_v1 = vsub.f32 %v7626_v2, %v7659_v32  ;;  %v7678_v63 = vsub.f32 %v7628_v9, %v7659_v32  ;;  %v7717_v50 = vadd.f32 %v15609_v59, %v15607_v21 }
0x25b5   : > { %v15615_v10 = vpop.eup %11638  ;;  %v7662_v48 = vpop.xlane.xlu1 %7661  ;;  %v7969_v32 = vadd.f32 %v7937_v43, %v17076_v3  ;;  %v17088_v43 = vmax.f32 %v17087_v42, 0.0 }
0x25b6   : > { %v7701_v22 = vmul.f32 1.442695, %v7677_v1  ;;  %v7703_v29 = vmul.f32 1.442695, %v7678_v63  ;;  %7718 = vadd.xlane.f32.xlu0 %v7717_v50  ;;  %v7679_v26 = vsub.f32 %v7630_v25, %v7662_v48  ;;  %v7680_v61 = vsub.f32 %v7632_v54, %v7662_v48  ;;  %v17077_v63 = vld [vmem:[#allocation22_spill] sm:$0xff] }
0x25b7   : > { %v7720_v49 = vadd.f32 %v15615_v10, %v15611_v60  ;;  %v8064_v1 = vmul.f32 %v8032_v23, %v7968_v35  ;;  %v17078_v50 = vmax.f32 %v17077_v63, 0.0 }
0x25b8   : > { %11648 = vpow2.f32 %v7701_v22  ;;  %v7705_v56 = vmul.f32 1.442695, %v7679_v26  ;;  %v7707_v33 = vmul.f32 1.442695, %v7680_v61  ;;  %v8062_v22 = vmul.f32 %v8030_v16, %v7966_v31 }
0x25b9   : > { %11650 = vpow2.f32 %v7703_v29  ;;  %7721 = vadd.xlane.f32.xlu1 %v7720_v49  ;;  %v7967_v48 = vadd.f32 %v7935_v7, %v17078_v50  ;;  %v8033_v29 = vmul.f32 0.044715, %v7969_v32  ;;  %v8096_v26 = vmul.f32 %v8064_v1, %v7968_v35  ;;  %v17089_v7 = vld [vmem:[#allocation26_spill] sm:$0xff] }
0x25ba   : > { %v15619_v27 = vpop.eup %11640  ;;  %11652 = vpow2.f32 %v7705_v56  ;;  %v8094_v49 = vmul.f32 %v8062_v22, %v7966_v31  ;;  %v17090_v16 = vmax.f32 %v17089_v7, 0.0 }
0x25bb   : > { %v15621_v14 = vpop.eup %11642  ;;  %11654 = vpow2.f32 %v7707_v33  ;;  %v7665_v0 = vpop.xlane.xlu0 %7664  ;;  %v8031_v61 = vmul.f32 0.044715, %v7967_v48  ;;  %v8065_v56 = vmul.f32 %v8033_v29, %v7969_v32  ;;  %v8128_v33 = vadd.f32 %v8096_v26, %v7968_v35  ;;  %v17091_v26 = vld [vmem:[#allocation103_spill] sm:$0xff] }
0x25bc   : > { %v15623_v36 = vpop.eup %11644  ;;  %v7681_v4 = vsub.f32 %v15595_v45, %v7665_v0  ;;  %v7682_v44 = vsub.f32 %v15597_v52, %v7665_v0  ;;  %v7723_v40 = vadd.f32 %v15621_v14, %v15619_v27  ;;  %v15701_v28 = vadd.f32 %v7939_v15, %v17090_v16  ;;  %v17095_v15 = vld [vmem:[#allocation98_spill] sm:$0xff] }
0x25bd   : > { %v15629_v19 = vpop.eup %11646  ;;  %v7668_v57 = vpop.xlane.xlu1 %7667  ;;  %v8063_v0 = vmul.f32 %v8031_v61, %v7967_v48  ;;  %v7943_v61 = vadd.f32 %v15665_v34, %v17091_v26 }
0x25be   : > { %v7709_v58 = vmul.f32 1.442695, %v7681_v4  ;;  %v7711_v11 = vmul.f32 1.442695, %v7682_v44  ;;  %7724 = vadd.xlane.f32.xlu0 %v7723_v40  ;;  %v7683_v53 = vsub.f32 %v15601_v37, %v7668_v57  ;;  %v7684_v39 = vsub.f32 %v15603_v30, %v7668_v57  ;;  %v17079_v4 = vld [vmem:[#allocation136_spill] sm:$0xff] }
0x25bf   : > { %v7726_v6 = vadd.f32 %v15629_v19, %v15623_v36  ;;  %v7940_v44 = vadd.f32 %v17079_v4, %v15665_v34  ;;  %v8126_v40 = vadd.f32 %v8094_v49, %v7966_v31  ;;  %v8097_v57 = vmul.f32 %v8065_v56, %v7969_v32 }
0x25c0   : > { %11656 = vpow2.f32 %v7709_v58  ;;  %v7713_v38 = vmul.f32 1.442695, %v7683_v53  ;;  %v7715_v5 = vmul.f32 1.442695, %v7684_v39  ;;  %v8160_v58 = vmul.f32 0.7978846, %v8128_v33 }
0x25c1   : > { %11658 = vpow2.f32 %v7711_v11  ;;  %7727 = vadd.xlane.f32.xlu1 %v7726_v6  ;;  %v17080_v11 = vld [vmem:[#allocation24_spill] sm:$0xff]  ;;  %v8095_v6 = vmul.f32 %v8063_v0, %v7967_v48  ;;  %v8035_v29 = vmul.f32 0.044715, %v15701_v28  ;;  %v8000_v33 = vmul.f32 0.5, %v7968_v35 }
0x25c2   : > { %v15635_v2 = vpop.eup %11648  ;;  %11660 = vpow2.f32 %v7713_v38  ;;  %v17081_v53 = vmax.f32 %v17080_v11, 0.0  ;;  %v17082_v38 = vld [vmem:[#allocation137_spill] sm:$0xff] }
0x25c3   : > { %v15637_v9 = vpop.eup %11650  ;;  %11662 = vpow2.f32 %v7715_v5  ;;  %v7938_v5 = vadd.f32 %v15665_v34, %v17082_v38  ;;  %v8127_v8 = vadd.f32 %v8095_v6, %v7967_v48 }
0x25c4   : > { %v15639_v51 = vpop.eup %11652  ;;  %v7729_v25 = vadd.f32 %v15637_v9, %v15635_v2  ;;  %v7972_v39 = vadd.f32 %v7940_v44, %v17081_v53  ;;  %11664 = vtanh.f32 %v8160_v58  ;;  %v7998_v44 = vmul.f32 0.5, %v7966_v31  ;;  %v17092_v58 = vld [vmem:[#allocation100_spill] sm:$0xff]  ;;  %v17093_v53 = vld [vmem:[#allocation30_spill] sm:$0xff] }
0x25c5   : > { %v15643_v54 = vpop.eup %11654  ;;  %v7970_v12 = vadd.f32 %v7938_v5, %v17086_v41  ;;  %v8159_v63 = vmul.f32 0.7978846, %v8127_v8  ;;  %v7942_v11 = vadd.f32 %v15665_v34, %v17092_v58  ;;  %v17094_v6 = vmax.f32 %v17093_v53, 0.0  ;;  %v17103_v58 = vld [vmem:[#allocation68_spill] sm:$0xff] }
0x25c6   : > { %7730 = vadd.xlane.f32.xlu0 %v7729_v25  ;;  %v7732_v55 = vadd.f32 %v15643_v54, %v15639_v51  ;;  %v17083_v25 = vld [vmem:[#allocation138_spill] sm:$0xff]  ;;  %v8036_v20 = vmul.f32 0.044715, %v7972_v39 }
0x25c7   : > { %v8034_v50 = vmul.f32 0.044715, %v7970_v12  ;;  %v15713_v38 = vadd.f32 %v7943_v61, %v17094_v6  ;;  %v15721_v31 = vmul.f32 0.5, %v7970_v12  ;;  %v17099_v61 = vld [vmem:[#allocation28_spill] sm:$0xff] }
0x25c8   : > { %7733 = vadd.xlane.f32.xlu1 %v7732_v55  ;;  %v7941_v55 = vadd.f32 %v17083_v25, %v15665_v34  ;;  %v8068_v1 = vmul.f32 %v8036_v20, %v7972_v39  ;;  %v15715_v25 = vmul.f32 0.5, %v7969_v32  ;;  %v7944_v20 = vadd.f32 %v17095_v15, %v15665_v34 }
0x25c9   : > { %v8066_v0 = vmul.f32 %v8034_v50, %v7970_v12 }
0x25ca   : > { %v15647_v45 = vpop.eup %11656  ;;  %v15697_v23 = vadd.f32 %v7941_v55, %v17088_v43  ;;  %v8100_v49 = vmul.f32 %v8068_v1, %v7972_v39  ;;  %v15717_v55 = vmul.f32 0.5, %v7972_v39  ;;  %v17097_v43 = vld [vmem:[#allocation27_spill] sm:$0xff] }
0x25cb   : > { %v15649_v52 = vpop.eup %11658  ;;  %v8098_v42 = vmul.f32 %v8066_v0, %v7970_v12  ;;  %v17101_v0 = vld [vmem:[#allocation29_spill] sm:$0xff] }
0x25cc   : > { %v15651_v13 = vpop.eup %11660  ;;  %v7735_v37 = vadd.f32 %v15649_v52, %v15647_v45  ;;  %v8037_v22 = vmul.f32 0.044715, %v15697_v23  ;;  %v8132_v17 = vadd.f32 %v8100_v49, %v7972_v39  ;;  %v8039_v39 = vmul.f32 0.044715, %v15713_v38 }
0x25cd   : > { %v15655_v30 = vpop.eup %11662  ;;  %v17100_v49 = vmax.f32 %v17099_v61, 0.0 }
0x25ce   : > { %7736 = vadd.xlane.f32.xlu0 %v7735_v37  ;;  %v7738_v62 = vadd.f32 %v15655_v30, %v15651_v13  ;;  %v8158_v37 = vmul.f32 0.7978846, %v8126_v40  ;;  %v8069_v4 = vmul.f32 %v8037_v22, %v15697_v23  ;;  %v11665_v40 = vpop.eup %11664  ;;  %v8164_v26 = vmul.f32 0.7978846, %v8132_v17  ;;  %v10905_v17 = vld [vmem:[#allocation11 + $0x8] sm:$0xff]  }
0x25cf   : > { %v8224_v47 = vadd.f32 1.0, %v11665_v40  ;;  %v8071_v6 = vmul.f32 %v8039_v39, %v15713_v38 }
0x25d0   : > { %7739 = vadd.xlane.f32.xlu1 %v7738_v62  ;;  %v8129_v62 = vadd.f32 %v8097_v57, %v7969_v32  ;;  %11666 = vtanh.f32 %v8158_v37  ;;  %v8067_v57 = vmul.f32 %v8035_v29, %v15701_v28  ;;  %v15719_v37 = vmul.f32 0.5, %v7967_v48 }
0x25d1   : > { %v15728_v32 = vmul.f32 0.5, %v15697_v23  ;;  %v8101_v41 = vmul.f32 %v8069_v4, %v15697_v23  ;;  %v17102_v4 = vmax.f32 %v17101_v0, 0.0  ;;  %v8103_v61 = vmul.f32 %v8071_v6, %v15713_v38 }
0x25d2   : > { %v8161_v18 = vmul.f32 0.7978846, %v8129_v62 }
0x25da   : > { %v11667_v5 = vpop.eup %11666 }
0x25db   : > { %v8222_v16 = vadd.f32 1.0, %v11667_v5  ;;  %v17104_v5 = vld [vmem:[#allocation105_spill] sm:$0xff] }
0x2643   : > { %v7719_v24 = vpop.xlane.xlu0 %7718 }
0x2644   : > { %11668 = vrcp.f32 %v7719_v24  ;;  %v17096_v24 = vld [vmem:[#allocation101_spill] sm:$0xff] }
0x2645   : > { %v7945_v8 = vadd.f32 %v17096_v24, %v15665_v34 }
0x2646   : > { %v7722_v3 = vpop.xlane.xlu1 %7721 }
0x2647   : > { %11670 = vrcp.f32 %v7722_v3  ;;  %v8099_v3 = vmul.f32 %v8067_v57, %v15701_v28  ;;  %v15747_v40 = vadd.f32 %v7945_v8, %v17102_v4  ;;  %v7947_v57 = vadd.f32 %v15665_v34, %v17103_v58  ;;  %v17109_v4 = vld [vmem:[#allocation104_spill] sm:$0xff] }
0x2648   : > { %11672 = vtanh.f32 %v8161_v18  ;;  %v17098_v18 = vmax.f32 %v17097_v43, 0.0  ;;  %v15759_v8 = vmul.f32 0.5, %v15701_v28  ;;  %v7949_v58 = vadd.f32 %v17109_v4, %v15665_v34 }
0x2649   : > { %11674 = vtanh.f32 %v8159_v63  ;;  %v8131_v15 = vadd.f32 %v8099_v3, %v15701_v28  ;;  %v8041_v43 = vmul.f32 0.044715, %v15747_v40 }
0x264a   : > { %v15733_v7 = vadd.f32 %v7942_v11, %v17098_v18  ;;  %v17105_v18 = vld [vmem:[#allocation34_spill] sm:$0xff] }
0x264b   : > { %v7725_v56 = vpop.xlane.xlu0 %7724  ;;  %v17106_v39 = vmax.f32 %v17105_v18, 0.0  ;;  %v8073_v0 = vmul.f32 %v8041_v43, %v15747_v40 }
0x264c   : > { %11676 = vrcp.f32 %v7725_v56  ;;  %v15743_v56 = vadd.f32 %v7944_v20, %v17100_v49  ;;  %v15756_v20 = vmul.f32 %v8224_v47, %v8000_v33  ;;  %v15769_v47 = vmul.f32 %v8222_v16, %v7998_v44 }
0x264e   : > { %v7728_v35 = vpop.xlane.xlu1 %7727  ;;  %v11669_v62 = vpop.eup %11668 }
0x264f   : > { %11678 = vrcp.f32 %v7728_v35  ;;  %v7749_v1 = vmul.f32 %v11669_v62, %v15607_v21  ;;  %v7750_v50 = vmul.f32 %v11669_v62, %v15609_v59  ;;  %v8130_v59 = vadd.f32 %v8098_v42, %v7970_v12 }
0x2650   : > { %v7946_v35 = vadd.f32 %v15665_v34, %v17104_v5  ;;  %v8133_v42 = vadd.f32 %v8101_v41, %v15697_v23  ;;  %v17107_v23 = vld [vmem:[#allocation31_spill] sm:$0xff]  ;;  %v17111_v5 = vld [vmem:[#allocation102_spill] sm:$0xff] }
0x2651   : > { %v11671_v48 = vpop.eup %11670  ;;  %v8162_v28 = vmul.f32 0.7978846, %v8130_v59  ;;  %v17108_v41 = vmax.f32 %v17107_v23, 0.0 }
0x2652   : > { %v7751_v63 = vmul.f32 %v11671_v48, %v15611_v60  ;;  %v7752_v22 = vmul.f32 %v11671_v48, %v15615_v10  ;;  %v11673_v29 = vpop.eup %11672  ;;  %v8038_v10 = vmul.f32 0.044715, %v15733_v7  ;;  %v8040_v48 = vmul.f32 0.044715, %v15743_v56 }
0x2653   : > { %v7731_v21 = vpop.xlane.xlu0 %7730  ;;  %v11675_v53 = vpop.eup %11674  ;;  %v8225_v24 = vadd.f32 1.0, %v11673_v29  ;;  %v8163_v29 = vmul.f32 0.7978846, %v8131_v15  ;;  %v17112_v15 = vld [vmem:[#allocation33_spill] sm:$0xff] }
0x2654   : > { %v7765_v11 = vpack.c.bf16 %v7751_v63, %v7749_v1  ;;  %11680 = vrcp.f32 %v7731_v21  ;;  %v7766_v60 = vpack.c.bf16 %v7752_v22, %v7750_v50  ;;  %v15766_v1 = vadd.f32 %v7947_v57, %v17106_v39  ;;  %v10906_v22 = vld [vmem:[#allocation11 + $0x10] sm:$0xff]  }
0x2655   : > { %v7734_v62 = vpop.xlane.xlu1 %7733  ;;  %v8223_v33 = vadd.f32 1.0, %v11675_v53  ;;  %v8070_v63 = vmul.f32 %v8038_v10, %v15733_v7  ;;  %v15774_v50 = vadd.f32 %v7946_v35, %v17108_v41  ;;  %v8072_v49 = vmul.f32 %v8040_v48, %v15743_v56  ;;  %v10907_v53 = vld [vmem:[#allocation11 + $0x18] sm:$0xff]  }
0x2656   : > { %7805 = vmatprep.mubr.bf16.mxu1 %v7766_v60  ;;  %11682 = vrcp.f32 %v7734_v62  ;;  %v11677_v12 = vpop.eup %11676  ;;  %v8043_v57 = vmul.f32 0.044715, %v15766_v1  ;;  %v7948_v35 = vadd.f32 %v17111_v5, %v15665_v34  ;;  %v8105_v39 = vmul.f32 %v8073_v0, %v15747_v40 }
0x2657   : > { %7806 = vmatmul.mubr.bf16.vlgmr.msra.gmra.mrb[112].mxu1 %v7765_v11  ;;  %11684 = vtanh.f32 %v8164_v26  ;;  %v7753_v26 = vmul.f32 %v11677_v12, %v15619_v27  ;;  %v7754_v44 = vmul.f32 %v11677_v12, %v15621_v14  ;;  %v17110_v11 = vld [vmem:[#allocation64_spill] sm:$0xff]  ;;  %v15789_v14 = vmul.f32 %v8225_v24, %v15715_v25  ;;  %v17114_v12 = vld [vmem:[#allocation74_spill] sm:$0xff] }
0x2658   : > { %10468 = vmatpush3.bf16.msra.mxu1 %v15659_v46  ;;  %v7951_v60 = vadd.f32 %v15665_v34, %v17110_v11  ;;  %v8102_v10 = vmul.f32 %v8070_v63, %v15733_v7  ;;  %v8042_v62 = vmul.f32 0.044715, %v15774_v50  ;;  %v17113_v25 = vmax.f32 %v17112_v15, 0.0 }
0x2659   : > { %v11679_v3 = vpop.eup %11678  ;;  %10469 = vmatprep.subr.bf16.mxu1 %v10905_v17  ;;  %v15803_v48 = vmul.f32 %v8223_v33, %v15719_v37  ;;  %v8104_v18 = vmul.f32 %v8072_v49, %v15743_v56 }
0x265a   : > { %v7755_v46 = vmul.f32 %v11679_v3, %v15623_v36  ;;  %v7756_v16 = vmul.f32 %v11679_v3, %v15629_v19  ;;  %v8165_v19 = vmul.f32 0.7978846, %v8133_v42  ;;  %v15798_v24 = vadd.f32 %v7949_v58, %v17113_v25  ;;  %v17115_v3 = vld [vmem:[#allocation38_spill] sm:$0xff] }
0x265b   : > { %v7737_v21 = vpop.xlane.xlu0 %7736  ;;  %v7950_v42 = vadd.f32 %v15665_v34, %v17114_v12  ;;  %v17116_v63 = vmax.f32 %v17115_v3, 0.0  ;;  %v8074_v49 = vmul.f32 %v8042_v62, %v15774_v50  ;;  %v8286_v5 = vpack.c.bf16 %v15803_v48, %v15769_v47 }
0x265c   : > { %v7767_v27 = vpack.c.bf16 %v7755_v46, %v7753_v26  ;;  %11686 = vrcp.f32 %v7737_v21  ;;  %10470 = vmatpush3.bf16.msra.mxu1 %v10905_v17  ;;  %v7768_v36 = vpack.c.bf16 %v7756_v16, %v7754_v44  ;;  %v8135_v17 = vadd.f32 %v8103_v61, %v15713_v38  ;;  %v17117_v46 = vld [vmem:[#allocation32_spill] sm:$0xff] }
0x265d   : > { %v7740_v59 = vpop.xlane.xlu1 %7739  ;;  %10471 = vmatprep.subr.bf16.mxu1 %v10906_v22  ;;  %11688 = vtanh.f32 %v8162_v28  ;;  %v8075_v28 = vmul.f32 %v8043_v57, %v15766_v1  ;;  %v15810_v23 = vadd.f32 %v7951_v60, %v17116_v63  ;;  %v17118_v44 = vmax.f32 %v17117_v46, 0.0  ;;  %v17121_v57 = vld [vmem:[#allocation99_spill] sm:$0xff]  ;;  %v17122_v60 = vld [vmem:[#allocation77_spill] sm:$0xff] }
0x265e   : > { %v11681_v6 = vpop.eup %11680  ;;  %7813 = vmatprep.mubr.bf16.mxu1 %v7768_v36  ;;  %11690 = vrcp.f32 %v7740_v59  ;;  %v8167_v0 = vmul.f32 0.7978846, %v8135_v17  ;;  %v7953_v21 = vadd.f32 %v17121_v57, %v15665_v34  ;;  %v8136_v59 = vadd.f32 %v8104_v18, %v15743_v56  ;;  %v17123_v17 = vld [vmem:[#allocation71_spill] sm:$0xff] }
0x265f   : > { %7814 = vmatmul.mubr.bf16.gmra.mrb[116].mxu1 %v7767_v27  ;;  %11692 = vtanh.f32 %v8163_v29  ;;  %v7757_v41 = vmul.f32 %v11681_v6, %v15635_v2  ;;  %v7758_v37 = vmul.f32 %v11681_v6, %v15637_v9  ;;  %v10908_v29 = vld [vmem:[#allocation11 + $0x20] sm:$0xff]   ;;  %v15820_v16 = vadd.f32 %v7948_v35, %v17118_v44  ;;  %v10909_v6 = vld [vmem:[#allocation11 + $0x28] sm:$0xff]  }
0x2660   : > { %v11683_v43 = vpop.eup %11682  ;;  %10472 = vmatpush3.bf16.msra.mxu1 %v10906_v22  ;;  %v8134_v22 = vadd.f32 %v8102_v10, %v15733_v7  ;;  %v8045_v2 = vmul.f32 0.044715, %v15798_v24  ;;  %v8047_v11 = vmul.f32 0.044715, %v15810_v23  ;;  %v7955_v27 = vadd.f32 %v15665_v34, %v17122_v60 }
0x2661   : > { %v7759_v61 = vmul.f32 %v11683_v43, %v15639_v51  ;;  %10473 = vmatprep.subr.bf16.mxu1 %v10907_v53  ;;  %v7760_v33 = vmul.f32 %v11683_v43, %v15643_v54  ;;  %v15816_v26 = vpop.eup %11684  ;;  %v17119_v51 = vld [vmem:[#allocation35_spill] sm:$0xff]  ;;  %v8107_v36 = vmul.f32 %v8075_v28, %v15766_v1  ;;  %11694 = vtanh.f32 %v8165_v19  ;;  %v17124_v43 = vld [vmem:[#allocation76_spill] sm:$0xff]  ;;  %v17125_v28 = vld [vmem:[#allocation37_spill] sm:$0xff] }
0x2662   : > { %v17120_v4 = vmax.f32 %v17119_v51, 0.0  ;;  %v8137_v10 = vadd.f32 %v8105_v39, %v15747_v40  ;;  %v8044_v62 = vmul.f32 0.044715, %v15820_v16  ;;  %v7952_v15 = vadd.f32 %v17123_v17, %v15665_v34  ;;  %v10910_v51 = vld [vmem:[#allocation11 + $0x30] sm:$0xff]  }
0x2663   : > { %v7769_v9 = vpack.c.bf16 %v7759_v61, %v7757_v41  ;;  %v7770_v54 = vpack.c.bf16 %v7760_v33, %v7758_v37  ;;  %v8106_v25 = vmul.f32 %v8074_v49, %v15774_v50  ;;  %v8077_v12 = vmul.f32 %v8045_v2, %v15798_v24  ;;  %v17127_v61 = vld [vmem:[#allocation42_spill] sm:$0xff] }
0x2664   : > { %v15827_v58 = vadd.f32 %v7950_v42, %v17120_v4  ;;  %10474 = vmatpush3.bf16.msra.mxu1 %v10907_v53  ;;  %v8166_v53 = vmul.f32 0.7978846, %v8134_v22  ;;  %v7954_v18 = vadd.f32 %v15665_v34, %v17124_v43  ;;  %11696 = vtanh.f32 %v8167_v0 }
0x2665   : > { %7821 = vmatprep.mubr.bf16.mxu1 %v7770_v54  ;;  %10475 = vmatprep.subr.bf16.mxu1 %v10908_v29  ;;  %v17126_v3 = vmax.f32 %v17125_v28, 0.0  ;;  %v8079_v41 = vmul.f32 %v8047_v11, %v15810_v23  ;;  %v17128_v37 = vmax.f32 %v17127_v61, 0.0  ;;  %v8139_v46 = vadd.f32 %v8107_v36, %v15766_v1 }
0x2666   : > { %v11687_v35 = vpop.eup %11686  ;;  %v8046_v42 = vmul.f32 0.044715, %v15827_v58  ;;  %v8076_v4 = vmul.f32 %v8044_v62, %v15820_v16  ;;  %11698 = vtanh.f32 %v8166_v53  ;;  %v8168_v43 = vmul.f32 0.7978846, %v8136_v59 }
0x2667   : > { %v11689_v19 = vpop.eup %11688  ;;  %7822 = vmatmul.mubr.bf16.gmra.mrb[120].mxu1 %v7769_v9  ;;  %v15849_v63 = vadd.f32 %v7953_v21, %v17126_v3  ;;  %v15854_v33 = vadd.f32 %v7955_v27, %v17128_v37  ;;  %v7761_v49 = vmul.f32 %v11687_v35, %v15647_v45  ;;  %v7762_v0 = vmul.f32 %v11687_v35, %v15649_v52  ;;  %v17129_v9 = vld [vmem:[#allocation36_spill] sm:$0xff]  ;;  %v17131_v45 = vld [vmem:[#allocation39_spill] sm:$0xff] }
0x2668   : > { %v11691_v39 = vpop.eup %11690  ;;  %10476 = vmatpush3.bf16.msra.mxu1 %v10908_v29  ;;  %v17130_v54 = vmax.f32 %v17129_v9, 0.0  ;;  %v8138_v29 = vadd.f32 %v8106_v25, %v15774_v50  ;;  %v8078_v21 = vmul.f32 %v8046_v42, %v15827_v58  ;;  %v17132_v11 = vmax.f32 %v17131_v45, 0.0  ;;  %v17133_v35 = vld [vmem:[#allocation75_spill] sm:$0xff]  ;;  %v17137_v9 = vld [vmem:[#allocation40_spill] sm:$0xff] }
0x2669   : > { %v11693_v44 = vpop.eup %11692  ;;  %v7763_v22 = vmul.f32 %v11691_v39, %v15651_v13  ;;  %10477 = vmatprep.subr.bf16.mxu1 %v10909_v6  ;;  %v7764_v2 = vmul.f32 %v11691_v39, %v15655_v30  ;;  %v8169_v27 = vmul.f32 0.7978846, %v8137_v10  ;;  %v8109_v30 = vmul.f32 %v8077_v12, %v15798_v24 }
0x266a   : > { %v15864_v57 = vadd.f32 %v7952_v15, %v17130_v54  ;;  %v15870_v13 = vadd.f32 %v7954_v18, %v17132_v11  ;;  %v8049_v36 = vmul.f32 0.044715, %v15849_v63  ;;  %v7957_v62 = vadd.f32 %v17133_v35, %v15665_v34  ;;  %v10911_v15 = vld [vmem:[#allocation11 + $0x38] sm:$0xff]   ;;  %v17134_v18 = vld [vmem:[#allocation79_spill] sm:$0xff] }
0x266b   : > { %v7771_v60 = vpack.c.bf16 %v7763_v22, %v7761_v49  ;;  %v7772_v52 = vpack.c.bf16 %v7764_v2, %v7762_v0  ;;  %v8051_v17 = vmul.f32 0.044715, %v15854_v33  ;;  %v8227_v53 = vadd.f32 1.0, %v11693_v44  ;;  %v11695_v28 = vpop.eup %11694 }
0x266c   : > { %10478 = vmatpush3.bf16.msra.mxu1 %v10909_v6  ;;  %v8171_v25 = vmul.f32 0.7978846, %v8139_v46  ;;  %v8111_v42 = vmul.f32 %v8079_v41, %v15810_v23  ;;  %v8108_v10 = vmul.f32 %v8076_v4, %v15820_v16  ;;  %v8048_v12 = vmul.f32 0.044715, %v15864_v57  ;;  %v17135_v41 = vld [vmem:[#allocation41_spill] sm:$0xff] }
0x266d   : > { %7829 = vmatprep.mubr.bf16.mxu1 %v7772_v52  ;;  %10479 = vmatprep.subr.bf16.mxu1 %v10910_v51  ;;  %v7956_v39 = vadd.f32 %v17134_v18, %v15665_v34  ;;  %v8050_v6 = vmul.f32 0.044715, %v15870_v13  ;;  %v8226_v3 = vadd.f32 1.0, %v11689_v19  ;;  %v8170_v61 = vmul.f32 0.7978846, %v8138_v29 }
0x266e   : > { %v8110_v37 = vmul.f32 %v8078_v21, %v15827_v58  ;;  %11700 = vtanh.f32 %v8169_v27  ;;  %v8141_v46 = vadd.f32 %v8109_v30, %v15798_v24  ;;  %v8081_v59 = vmul.f32 %v8049_v36, %v15849_v63  ;;  %v11697_v34 = vpop.eup %11696 }
0x266f   : > { %7830 = vmatmul.mubr.bf16.gmra.mrb[124].mxu1 %v7771_v60  ;;  %v17136_v44 = vmax.f32 %v17135_v41, 0.0  ;;  %v8083_v22 = vmul.f32 %v8051_v17, %v15854_v33  ;;  %v15892_v19 = vmul.f32 %v8227_v53, %v15759_v8  ;;  %11702 = vtanh.f32 %v8171_v25 }
0x2670   : > { %10480 = vmatpush3.bf16.msra.mxu1 %v10910_v51  ;;  %10483 = vmatprep.mubr.bf16.mxu1 %v8286_v5  ;;  %v8143_v0 = vadd.f32 %v8111_v42, %v15810_v23  ;;  %11704 = vtanh.f32 %v8168_v43  ;;  %v8140_v2 = vadd.f32 %v8108_v10, %v15820_v16  ;;  %v8080_v4 = vmul.f32 %v8048_v12, %v15864_v57  ;;  %v11699_v21 = vpop.eup %11698 }
0x2671   : > { %v15888_v49 = vadd.f32 %v7957_v62, %v17136_v44  ;;  %10481 = vmatprep.subr.bf16.mxu1 %v10911_v15  ;;  %v17138_v54 = vmax.f32 %v17137_v9, 0.0  ;;  %v8082_v5 = vmul.f32 %v8050_v6, %v15870_v13  ;;  %v15903_v51 = vmul.f32 %v8226_v3, %v15721_v31 }
0x2672   : > { %11706 = vtanh.f32 %v8170_v61  ;;  %v8142_v8 = vadd.f32 %v8110_v37, %v15827_v58  ;;  %v8287_v45 = vpack.c.bf16 %v15789_v14, %v15756_v20  ;;  %v8173_v11 = vmul.f32 0.7978846, %v8141_v46 }
0x2673   : > { %v15899_v29 = vadd.f32 %v7956_v39, %v17138_v54  ;;  %v8113_v60 = vmul.f32 %v8081_v59, %v15849_v63  ;;  %v8053_v52 = vmul.f32 0.044715, %v15888_v49  ;;  %v8229_v27 = vadd.f32 1.0, %v11695_v28 }
0x2674   : > { %10482 = vmatpush3.bf16.msra.mxu1 %v10911_v15  ;;  %v8288_v30 = vpack.c.bf16 %v15892_v19, %v15903_v51  ;;  %v8175_v36 = vmul.f32 0.7978846, %v8143_v0  ;;  %v8115_v31 = vmul.f32 %v8083_v22, %v15854_v33  ;;  %v8172_v35 = vmul.f32 0.7978846, %v8140_v2 }
0x2675   : > { %v8112_v62 = vmul.f32 %v8080_v4, %v15864_v57  ;;  %v8052_v17 = vmul.f32 0.044715, %v15899_v29  ;;  %v8231_v53 = vadd.f32 1.0, %v11697_v34  ;;  %v8228_v25 = vadd.f32 1.0, %v15816_v26 }
0x2676   : > { %v8007_v42 = vmul.f32 0.5, %v15713_v38  ;;  %v8174_v43 = vmul.f32 0.7978846, %v8142_v8  ;;  %v8114_v15 = vmul.f32 %v8082_v5, %v15870_v13  ;;  %11708 = vtanh.f32 %v8173_v11 }
0x2677   : > { %10484 = vmatmul.mubr.bf16.vlgmr.msra.gmra.mrb[128].mxu1 %v8287_v45  ;;  %v8145_v10 = vadd.f32 %v8113_v60, %v15849_v63  ;;  %v8085_v12 = vmul.f32 %v8053_v52, %v15888_v49  ;;  %v8230_v18 = vadd.f32 1.0, %v11699_v21  ;;  %v15921_v39 = vmul.f32 %v8229_v27, %v15728_v32 }
0x2678   : > { %10487 = vmatprep.mubr.bf16.mxu1 %v8288_v30  ;;  %v8006_v28 = vmul.f32 0.5, %v15733_v7  ;;  %11710 = vtanh.f32 %v8175_v36  ;;  %v8147_v26 = vadd.f32 %v8115_v31, %v15854_v33  ;;  %v11701_v6 = vpop.eup %11700  ;;  %v8144_v38 = vadd.f32 %v8112_v62, %v15864_v57 }
0x2679   : > { %11712 = vtanh.f32 %v8172_v35  ;;  %v8084_v3 = vmul.f32 %v8052_v17, %v15899_v29  ;;  %v15927_v61 = vmul.f32 %v8231_v53, %v8007_v42  ;;  %v11703_v37 = vpop.eup %11702  ;;  %v15930_v46 = vmul.f32 %v8228_v25, %v15717_v55 }
0x267a   : > { %11714 = vtanh.f32 %v8174_v43  ;;  %v8146_v32 = vadd.f32 %v8114_v15, %v15870_v13  ;;  %v11705_v59 = vpop.eup %11704  ;;  %v8177_v7 = vmul.f32 0.7978846, %v8145_v10  ;;  %v8117_v41 = vmul.f32 %v8085_v12, %v15888_v49 }
0x267b   : > { %v15934_v44 = vmul.f32 %v8230_v18, %v8006_v28  ;;  %v8289_v22 = vpack.c.bf16 %v15921_v39, %v15930_v46  ;;  %v8233_v0 = vadd.f32 1.0, %v11701_v6  ;;  %v8179_v2 = vmul.f32 0.7978846, %v8147_v26 }
0x267c   : > { %v11707_v34 = vpop.eup %11706  ;;  %v8176_v4 = vmul.f32 0.7978846, %v8144_v38  ;;  %v8116_v9 = vmul.f32 %v8084_v3, %v15899_v29  ;;  %v8235_v54 = vadd.f32 1.0, %v11703_v37  ;;  %v8232_v5 = vadd.f32 1.0, %v11705_v59 }
0x267d   : > { %v8290_v55 = vpack.c.bf16 %v15927_v61, %v15934_v44  ;;  %v8009_v8 = vmul.f32 0.5, %v15747_v40  ;;  %v8178_v21 = vmul.f32 0.7978846, %v8146_v32  ;;  %11716 = vtanh.f32 %v8177_v7 }
0x267e   : > { %v8149_v45 = vadd.f32 %v8117_v41, %v15888_v49  ;;  %v8011_v11 = vmul.f32 0.5, %v15766_v1  ;;  %v8234_v60 = vadd.f32 1.0, %v11707_v34  ;;  %v8008_v52 = vmul.f32 0.5, %v15743_v56 }
0x267f   : > { %10488 = vmatmul.mubr.bf16.gmra.mrb[132].mxu1 %v8289_v22  ;;  %v15945_v27 = vmul.f32 %v8233_v0, %v8009_v8  ;;  %11718 = vtanh.f32 %v8179_v2  ;;  %v8148_v36 = vadd.f32 %v8116_v9, %v15899_v29  ;;  %v8010_v40 = vmul.f32 0.5, %v15774_v50 }
0x2680   : > { %10491 = vmatprep.mubr.bf16.mxu1 %v8290_v55  ;;  %v11709_v30 = vpop.eup %11708  ;;  %11720 = vtanh.f32 %v8176_v4  ;;  %v15949_v31 = vmul.f32 %v8235_v54, %v8011_v11  ;;  %v15951_v62 = vmul.f32 %v8232_v5, %v8008_v52  ;;  %v8181_v1 = vmul.f32 0.7978846, %v8149_v45 }
0x2681   : > { %11722 = vtanh.f32 %v8178_v21  ;;  %v15953_v53 = vmul.f32 %v8234_v60, %v8010_v40  ;;  %v8237_v42 = vadd.f32 1.0, %v11709_v30  ;;  %v8180_v43 = vmul.f32 0.7978846, %v8148_v36 }
0x2682   : > { %v11711_v35 = vpop.eup %11710  ;;  %v8291_v25 = vpack.c.bf16 %v15945_v27, %v15951_v62  ;;  %v8013_v12 = vmul.f32 0.5, %v15798_v24  ;;  %11724 = vtanh.f32 %v8181_v1  ;;  %v8015_v18 = vmul.f32 0.5, %v15810_v23 }
0x2683   : > { %v11713_v17 = vpop.eup %11712  ;;  %v8292_v15 = vpack.c.bf16 %v15949_v31, %v15953_v53  ;;  %v8239_v50 = vadd.f32 1.0, %v11711_v35  ;;  %v8012_v26 = vmul.f32 0.5, %v15820_v16  ;;  %11726 = vtanh.f32 %v8180_v43 }
0x2684   : > { %v11715_v56 = vpop.eup %11714  ;;  %v8236_v10 = vadd.f32 1.0, %v11713_v17  ;;  %v15962_v6 = vmul.f32 %v8237_v42, %v8013_v12  ;;  %v8014_v3 = vmul.f32 0.5, %v15827_v58  ;;  %v8017_v58 = vmul.f32 0.5, %v15849_v63 }
0x2685   : > { %v8238_v28 = vadd.f32 1.0, %v11715_v56  ;;  %v15965_v37 = vmul.f32 %v8239_v50, %v8015_v18  ;;  %v8019_v2 = vmul.f32 0.5, %v15854_v33  ;;  %v8016_v9 = vmul.f32 0.5, %v15864_v57 }
0x2686   : > { %v15967_v59 = vmul.f32 %v8236_v10, %v8012_v26  ;;  %v8018_v5 = vmul.f32 0.5, %v15870_v13  ;;  %v8021_v52 = vmul.f32 0.5, %v15888_v49  ;;  %v8020_v13 = vmul.f32 0.5, %v15899_v29 }
0x2687   : > { %10492 = vmatmul.mubr.bf16.gmra.mrb[136].mxu1 %v8291_v25  ;;  %v11717_v38 = vpop.eup %11716  ;;  %v15969_v7 = vmul.f32 %v8238_v28, %v8014_v3 }
0x2688   : > { %10495 = vmatprep.mubr.bf16.mxu1 %v8292_v15  ;;  %v8293_v23 = vpack.c.bf16 %v15962_v6, %v15967_v59  ;;  %v8241_v34 = vadd.f32 1.0, %v11717_v38 }
0x2689   : > { %v11719_v32 = vpop.eup %11718  ;;  %v8294_v16 = vpack.c.bf16 %v15965_v37, %v15969_v7 }
0x268a   : > { %v11721_v24 = vpop.eup %11720  ;;  %v8243_v22 = vadd.f32 1.0, %v11719_v32  ;;  %v15978_v55 = vmul.f32 %v8241_v34, %v8017_v58 }
0x268b   : > { %v11723_v41 = vpop.eup %11722  ;;  %v8240_v0 = vadd.f32 1.0, %v11721_v24 }
0x268c   : > { %v8242_v4 = vadd.f32 1.0, %v11723_v41  ;;  %v11725_v54 = vpop.eup %11724  ;;  %v15981_v8 = vmul.f32 %v8243_v22, %v8019_v2 }
0x268d   : > { %v15983_v21 = vmul.f32 %v8240_v0, %v8016_v9  ;;  %v11727_v45 = vpop.eup %11726  ;;  %v8245_v60 = vadd.f32 1.0, %v11725_v54 }
0x268e   : > { %v15985_v11 = vmul.f32 %v8242_v4, %v8018_v5  ;;  %v8244_v57 = vadd.f32 1.0, %v11727_v45  ;;  %v16005_v4 = vld [vmem:[%s17139_s24] ss:$0 sm:$0xff]  ;;  %s12009_s24 = scalar_lea.vmem %s12008_s22, 8192 }
0x268f   : > { %10496 = vmatmul.mubr.bf16.gmra.mrb[140].mxu1 %v8293_v23  ;;  %v8295_v63 = vpack.c.bf16 %v15978_v55, %v15983_v21  ;;  %v15993_v30 = vmul.f32 %v8245_v60, %v8021_v52  ;;  %p12011_p12 = scmp.lt.s32.totalorder %s12009_s24, %s12003_s17 }
0x2690   : > { %10499 = vmatprep.mubr.bf16.mxu1 %v8294_v16  ;;  %v8296_v33 = vpack.c.bf16 %v15981_v8, %v15985_v11  ;;  %v15995_v36 = vmul.f32 %v8244_v57, %v8020_v13 }
0x2691   : > { %p12012_p13 = por %p12011_p12, %p12010_p11 }
0x2692   : > { %v8297_v40 = vpack.c.bf16 %v15993_v30, %v15995_v36 }
0x2693   : > { %p12013_p8 = pnand %p12012_p13, %p12006_p1 }
0x2697   : > { %10500 = vmatmul.mubr.bf16.gmra.mrb[144].mxu1 %v8295_v63 }
0x2698   : > { %10503 = vmatprep.mubr.bf16.mxu1 %v8296_v33 }
0x269f   : > { %10504 = vmatmul.mubr.bf16.gmra.mrb[148].mxu1 %v8297_v40 }
0x272a   : > { %v10077_v35 = vpop.f32.mrb[112].mxu1 }
0x272b   : > { %v10078_v17 = vpop.f32.mrb[113].mxu1 }
0x272c   : > { %v10079_v1 = vadd.f32 %v10078_v17, %v10077_v35  ;;  %v10080_v56 = vpop.f32.mrb[114].mxu1 }
0x272d   : > { %v10081_v25 = vpop.f32.mrb[115].mxu1 }
0x272e   : > { %v10082_v42 = vadd.f32 %v10081_v25, %v10080_v56 }
0x2730   : > { %v7838_v43 = vpack.c.bf16 %v10082_v42, %v10079_v1 }
0x2732   : > { %v10083_v49 = vpop.f32.mrb[116].mxu1  ;;  %10459 = vmatprep.mubr.msk.bf16.mxu0 %vm1798_vm0, %v7838_v43 }
0x2733   : > { %v10084_v15 = vpop.f32.mrb[117].mxu1 }
0x2734   : > { %v10085_v29 = vadd.f32 %v10084_v15, %v10083_v49  ;;  %v10086_v50 = vpop.f32.mrb[118].mxu1 }
0x2735   : > { %v10087_v10 = vpop.f32.mrb[119].mxu1 }
0x2736   : > { %v10088_v12 = vadd.f32 %v10087_v10, %v10086_v50 }
0x2738   : > { %v7839_v18 = vpack.c.bf16 %v10088_v12, %v10085_v29 }
0x273a   : > { %v10089_v28 = vpop.f32.mrb[120].mxu1  ;;  %10460 = vmatmul.mubr.msk.bf16.vlgmr.msra.gmra.mrb[40].mxu0 %vm1798_vm0, %v7839_v18 }
0x273b   : > { %v10090_v26 = vpop.f32.mrb[121].mxu1 }
0x273c   : > { %v10091_v38 = vadd.f32 %v10090_v26, %v10089_v28  ;;  %v10092_v3 = vpop.f32.mrb[122].mxu1 }
0x273d   : > { %v10093_v32 = vpop.f32.mrb[123].mxu1 }
0x273e   : > { %v10094_v24 = vadd.f32 %v10093_v32, %v10092_v3 }
0x2740   : > { %v7840_v41 = vpack.c.bf16 %v10094_v24, %v10091_v38 }
0x2742   : > { %v10095_v23 = vpop.f32.mrb[124].mxu1  ;;  %10463 = vmatprep.mubr.msk.bf16.mxu0 %vm1798_vm0, %v7840_v41 }
0x2743   : > { %v10096_v34 = vpop.f32.mrb[125].mxu1 }
0x2744   : > { %v10097_v16 = vadd.f32 %v10096_v34, %v10095_v23  ;;  %v10098_v22 = vpop.f32.mrb[126].mxu1 }
0x2745   : > { %v10099_v0 = vpop.f32.mrb[127].mxu1 }
0x2746   : > { %v10100_v58 = vadd.f32 %v10099_v0, %v10098_v22 }
0x2748   : > { %v7841_v2 = vpack.c.bf16 %v10100_v58, %v10097_v16 }
0x274a   : > { %10464 = vmatmul.mubr.msk.bf16.gmra.mrb[44].mxu0 %vm1798_vm0, %v7841_v2  ;;  %v10485_v9 = vpop.f32.mrb[128].mxu1 }
0x274b   : > { %v8416_v54 = vadd.f32 %v10485_v9, %v16005_v4  ;;  %v8407_v5 = vpop.f32.mrb[129].mxu1 }
0x274c   : > { %v8408_v45 = vadd.f32 %v16005_v4, %v8407_v5  ;;  %v10486_v63 = vpop.f32.mrb[130].mxu1 }
0x274d   : > { %v16011_v60 = vadd.f32 %v8416_v54, %v15756_v20  ;;  %v8419_v33 = vadd.f32 %v10486_v63, %v16005_v4  ;;  %v8410_v57 = vpop.f32.mrb[131].mxu1 }
0x274e   : > { %v16015_v52 = vadd.f32 %v8408_v45, %v15769_v47  ;;  %v8411_v13 = vadd.f32 %v16005_v4, %v8410_v57 }
0x274f   : > { %v8600_v40 = vmul.f32 0.044715, %v16011_v60  ;;  %v16020_v35 = vadd.f32 %v8419_v33, %v15789_v14 }
0x2750   : > { %v8598_v17 = vmul.f32 0.044715, %v16015_v52  ;;  %v16024_v1 = vadd.f32 %v8411_v13, %v15803_v48 }
0x2751   : > { %v8632_v20 = vmul.f32 %v8600_v40, %v16011_v60  ;;  %v8601_v56 = vmul.f32 0.044715, %v16020_v35 }
0x2752   : > { %v8630_v25 = vmul.f32 %v8598_v17, %v16015_v52  ;;  %v8599_v47 = vmul.f32 0.044715, %v16024_v1  ;;  %v10489_v42 = vpop.f32.mrb[132].mxu1 }
0x2753   : > { %v8664_v43 = vmul.f32 %v8632_v20, %v16011_v60  ;;  %v8633_v49 = vmul.f32 %v8601_v56, %v16020_v35  ;;  %v8432_v14 = vadd.f32 %v10489_v42, %v16005_v4  ;;  %v8423_v15 = vpop.f32.mrb[133].mxu1 }
0x2754   : > { %v8662_v29 = vmul.f32 %v8630_v25, %v16015_v52  ;;  %v8631_v48 = vmul.f32 %v8599_v47, %v16024_v1  ;;  %v8424_v50 = vadd.f32 %v16005_v4, %v8423_v15  ;;  %v10490_v10 = vpop.f32.mrb[134].mxu1 }
0x2755   : > { %v8665_v12 = vmul.f32 %v8633_v49, %v16020_v35  ;;  %v16038_v18 = vadd.f32 %v8432_v14, %v15930_v46  ;;  %v8435_v28 = vadd.f32 %v10490_v10, %v16005_v4  ;;  %v8426_v26 = vpop.f32.mrb[135].mxu1  ;;  %v8696_v38 = vadd.f32 %v8664_v43, %v16011_v60 }
0x2756   : > { %v8663_v3 = vmul.f32 %v8631_v48, %v16024_v1  ;;  %v8538_v32 = vadd.f32 %v8424_v50, %v15903_v51  ;;  %v8427_v24 = vadd.f32 %v16005_v4, %v8426_v26  ;;  %v8694_v41 = vadd.f32 %v8662_v29, %v16015_v52 }
0x2757   : > { %v8604_v23 = vmul.f32 0.044715, %v16038_v18  ;;  %v16048_v34 = vadd.f32 %v8435_v28, %v15921_v39  ;;  %v8728_v46 = vmul.f32 0.7978846, %v8696_v38  ;;  %v8697_v51 = vadd.f32 %v8665_v12, %v16020_v35 }
0x2758   : > { %v8602_v16 = vmul.f32 0.044715, %v8538_v32  ;;  %v8539_v22 = vadd.f32 %v8427_v24, %v15892_v19  ;;  %v8726_v0 = vmul.f32 0.7978846, %v8694_v41  ;;  %v8695_v58 = vadd.f32 %v8663_v3, %v16024_v1 }
0x2759   : > { %v8636_v2 = vmul.f32 %v8604_v23, %v16038_v18  ;;  %v8605_v63 = vmul.f32 0.044715, %v16048_v34  ;;  %v8729_v25 = vmul.f32 0.7978846, %v8697_v51  ;;  %v8566_v28 = vmul.f32 0.5, %v16015_v52 }
0x275a   : > { %v8634_v9 = vmul.f32 %v8602_v16, %v8538_v32  ;;  %v8603_v54 = vmul.f32 0.044715, %v8539_v22  ;;  %v10493_v5 = vpop.f32.mrb[136].mxu1  ;;  %11728 = vtanh.f32 %v8726_v0  ;;  %v8727_v45 = vmul.f32 0.7978846, %v8695_v58 }
0x275b   : > { %v8448_v39 = vadd.f32 %v10493_v5, %v16005_v4  ;;  %v8439_v33 = vpop.f32.mrb[137].mxu1  ;;  %11730 = vtanh.f32 %v8728_v46  ;;  %v8668_v47 = vmul.f32 %v8636_v2, %v16038_v18  ;;  %v8637_v15 = vmul.f32 %v8605_v63, %v16048_v34 }
0x275c   : > { %v8666_v57 = vmul.f32 %v8634_v9, %v8538_v32  ;;  %v8635_v19 = vmul.f32 %v8603_v54, %v8539_v22  ;;  %v8440_v13 = vadd.f32 %v16005_v4, %v8439_v33  ;;  %v10494_v40 = vpop.f32.mrb[138].mxu1  ;;  %11732 = vtanh.f32 %v8727_v45 }
0x275d   : > { %v16058_v17 = vadd.f32 %v8448_v39, %v15951_v62  ;;  %v8451_v20 = vadd.f32 %v10494_v40, %v16005_v4  ;;  %v8442_v56 = vpop.f32.mrb[139].mxu1  ;;  %11734 = vtanh.f32 %v8729_v25  ;;  %v8700_v26 = vadd.f32 %v8668_v47, %v16038_v18 }
0x275e   : > { %v8667_v42 = vmul.f32 %v8635_v19, %v8539_v22  ;;  %v16063_v43 = vadd.f32 %v8440_v13, %v15934_v44  ;;  %v8698_v49 = vadd.f32 %v8666_v57, %v8538_v32  ;;  %v8443_v14 = vadd.f32 %v16005_v4, %v8442_v56 }
0x275f   : > { %v16068_v29 = vadd.f32 %v8451_v20, %v15945_v27  ;;  %v8608_v48 = vmul.f32 0.044715, %v16058_v17  ;;  %v8568_v44 = vmul.f32 0.5, %v16011_v60  ;;  %v8567_v24 = vmul.f32 0.5, %v16024_v1 }
0x2760   : > { %v8730_v62 = vmul.f32 0.7978846, %v8698_v49  ;;  %v8699_v50 = vadd.f32 %v8667_v42, %v8539_v22  ;;  %v8606_v10 = vmul.f32 0.044715, %v16063_v43  ;;  %v16076_v38 = vadd.f32 %v8443_v14, %v15927_v61 }
0x2761   : > { %v16081_v41 = vmul.f32 0.5, %v16020_v35  ;;  %v8669_v46 = vmul.f32 %v8637_v15, %v16048_v34  ;;  %v8609_v52 = vmul.f32 0.044715, %v16068_v29  ;;  %v16085_v60 = vmul.f32 0.5, %v8538_v32 }
0x2762   : > { %v10497_v12 = vpop.f32.mrb[140].mxu1  ;;  %11736 = vtanh.f32 %v8730_v62  ;;  %v8640_v61 = vmul.f32 %v8608_v48, %v16058_v17  ;;  %v8731_v1 = vmul.f32 0.7978846, %v8699_v50  ;;  %v8638_v35 = vmul.f32 %v8606_v10, %v16063_v43 }
0x2763   : > { %v8464_v27 = vadd.f32 %v10497_v12, %v16005_v4  ;;  %v8455_v3 = vpop.f32.mrb[141].mxu1  ;;  %v16093_v5 = vmul.f32 0.5, %v8539_v22  ;;  %v8732_v45 = vmul.f32 0.7978846, %v8700_v26  ;;  %v8607_v32 = vmul.f32 0.044715, %v16076_v38 }
0x2764   : > { %v11729_v23 = vpop.eup %11728  ;;  %v10498_v16 = vpop.f32.mrb[142].mxu1  ;;  %v8456_v58 = vadd.f32 %v16005_v4, %v8455_v3  ;;  %v8641_v57 = vmul.f32 %v8609_v52, %v16068_v29  ;;  %v16100_v40 = vmul.f32 0.5, %v16038_v18  ;;  %11738 = vtanh.f32 %v8731_v1 }
0x2765   : > { %v11731_v0 = vpop.eup %11730  ;;  %v8458_v2 = vpop.f32.mrb[143].mxu1  ;;  %v8790_v51 = vadd.f32 1.0, %v11729_v23  ;;  %v16091_v54 = vadd.f32 %v8464_v27, %v15967_v59  ;;  %v8467_v19 = vadd.f32 %v10498_v16, %v16005_v4  ;;  %v16103_v59 = vmul.f32 %v8640_v61, %v16058_v17 }
0x2766   : > { %v11733_v9 = vpop.eup %11732  ;;  %v8459_v63 = vadd.f32 %v16005_v4, %v8458_v2  ;;  %v8792_v13 = vadd.f32 1.0, %v11731_v0  ;;  %v16106_v22 = vadd.f32 %v8456_v58, %v15953_v53  ;;  %v16109_v20 = vmul.f32 0.5, %v16048_v34 }
0x2767   : > { %v8822_v39 = vmul.f32 %v8790_v51, %v8566_v28  ;;  %v8791_v33 = vadd.f32 1.0, %v11733_v9  ;;  %v8670_v56 = vmul.f32 %v8638_v35, %v16063_v43  ;;  %v8612_v25 = vmul.f32 0.044715, %v16091_v54  ;;  %v11735_v42 = vpop.eup %11734 }
0x2768   : > { %11740 = vtanh.f32 %v8732_v45  ;;  %v8701_v18 = vadd.f32 %v8669_v46, %v16048_v34  ;;  %v8639_v49 = vmul.f32 %v8607_v32, %v16076_v38  ;;  %v16116_v14 = vadd.f32 %v8459_v63, %v15949_v31 }
0x2769   : > { %8854 = vxpose.xlu0.b32.start [1/16] %v8822_v39, 128  ;;  %v8823_v62 = vmul.f32 %v8791_v33, %v8567_v24  ;;  %v16120_v48 = vmul.f32 %v8641_v57, %v16068_v29  ;;  %v16123_v50 = vadd.f32 %v8467_v19, %v15962_v6  ;;  %v8824_v34 = vmul.f32 %v8792_v13, %v8568_v44 }
0x276a   : > { %v10501_v47 = vpop.f32.mrb[144].mxu1  ;;  %v8610_v28 = vmul.f32 0.044715, %v16106_v22  ;;  %v8733_v3 = vmul.f32 0.7978846, %v8701_v18  ;;  %v8644_v23 = vmul.f32 %v8612_v25, %v16091_v54  ;;  %v8793_v52 = vadd.f32 1.0, %v11735_v42 }
0x276b   : > { %v8480_v53 = vadd.f32 %v10501_v47, %v16005_v4  ;;  %v8471_v15 = vpop.f32.mrb[145].mxu1  ;;  %v8611_v44 = vmul.f32 0.044715, %v16116_v14  ;;  %v8702_v0 = vadd.f32 %v8670_v56, %v16063_v43  ;;  %v8671_v61 = vmul.f32 %v8639_v49, %v16076_v38 }
0x276c   : > { %v8472_v10 = vadd.f32 %v16005_v4, %v8471_v15  ;;  %v10502_v12 = vpop.f32.mrb[146].mxu1  ;;  %v11737_v24 = vpop.eup %11736  ;;  %v8613_v58 = vmul.f32 0.044715, %v16123_v50  ;;  %v8642_v51 = vmul.f32 %v8610_v28, %v16106_v22  ;;  %11742 = vtanh.f32 %v8733_v3 }
0x276d   : > { %v16128_v26 = vadd.f32 %v8480_v53, %v15983_v21  ;;  %v8483_v31 = vadd.f32 %v10502_v12, %v16005_v4  ;;  %v8474_v27 = vpop.f32.mrb[147].mxu1  ;;  %8855 = vxpose.xlu0.b32.cont [2/16] %v8823_v62, 128  ;;  %v8794_v9 = vadd.f32 1.0, %v11737_v24  ;;  %v8825_v63 = vmul.f32 %v8793_v52, %v16081_v41 }
0x276e   : > { %v16133_v6 = vadd.f32 %v8472_v10, %v15969_v7  ;;  %v8475_v46 = vadd.f32 %v16005_v4, %v8474_v27  ;;  %v11739_v39 = vpop.eup %11738  ;;  %v8643_v33 = vmul.f32 %v8611_v44, %v16116_v14  ;;  %v8734_v13 = vmul.f32 0.7978846, %v8702_v0 }
0x276f   : > { %v8616_v16 = vmul.f32 0.044715, %v16128_v26  ;;  %v16139_v21 = vadd.f32 %v8483_v31, %v15978_v55  ;;  %v8703_v41 = vadd.f32 %v8671_v61, %v16076_v38  ;;  %v8826_v10 = vmul.f32 %v8794_v9, %v16085_v60 }
0x2770   : > { %v8614_v2 = vmul.f32 0.044715, %v16133_v6  ;;  %v16146_v7 = vadd.f32 %v8475_v46, %v15965_v37  ;;  %v16155_v37 = vmul.f32 %v8644_v23, %v16091_v54  ;;  %v8795_v27 = vadd.f32 1.0, %v11739_v39 }
0x2771   : > { %v8617_v1 = vmul.f32 0.044715, %v16139_v21  ;;  %8856 = vxpose.xlu0.b32.cont [3/16] %v8824_v34, 128  ;;  %v8648_v55 = vmul.f32 %v8616_v16, %v16128_v26  ;;  %11744 = vtanh.f32 %v8734_v13  ;;  %v8735_v46 = vmul.f32 0.7978846, %v8703_v41 }
0x2772   : > { %v8646_v35 = vmul.f32 %v8614_v2, %v16133_v6  ;;  %v8615_v45 = vmul.f32 0.044715, %v16146_v7  ;;  %v10505_v32 = vpop.f32.mrb[148].mxu1  ;;  %v11741_v56 = vpop.eup %11740  ;;  %v8645_v9 = vmul.f32 %v8613_v58, %v16123_v50  ;;  %v8704_v58 = vadd.f32 %v16103_v59, %v16058_v17 }
0x2773   : > { %v8496_v57 = vadd.f32 %v10505_v32, %v16005_v4  ;;  %v8487_v19 = vpop.f32.mrb[149].mxu1  ;;  %v8649_v49 = vmul.f32 %v8617_v1, %v16139_v21  ;;  %v8680_v12 = vmul.f32 %v8648_v55, %v16128_v26  ;;  %v8796_v3 = vadd.f32 1.0, %v11741_v56 }
0x2774   : > { %v8678_v25 = vmul.f32 %v8646_v35, %v16133_v6  ;;  %v8647_v47 = vmul.f32 %v8615_v45, %v16146_v7  ;;  %v8488_v18 = vadd.f32 %v16005_v4, %v8487_v19  ;;  %v10506_v42 = vpop.f32.mrb[150].mxu1  ;;  %11746 = vtanh.f32 %v8735_v46 }
0x2775   : > { %v16165_v53 = vadd.f32 %v8496_v57, %v15995_v36  ;;  %v8499_v15 = vadd.f32 %v10506_v42, %v16005_v4  ;;  %v8490_v62 = vpop.f32.mrb[151].mxu1  ;;  %8857 = vxpose.xlu0.b32.cont [4/16] %v8825_v63, 128  ;;  %v8681_v52 = vmul.f32 %v8649_v49, %v16139_v21  ;;  %v8674_v1 = vmul.f32 %v8642_v51, %v16106_v22 }
0x2776   : > { %v8679_v34 = vmul.f32 %v8647_v47, %v16146_v7  ;;  %v16172_v28 = vadd.f32 %v8488_v18, %v15985_v11  ;;  %v8491_v31 = vadd.f32 %v16005_v4, %v8490_v62  ;;  %v8710_v36 = vadd.f32 %v8678_v25, %v16133_v6 }
0x2777   : > { %v8620_v11 = vmul.f32 0.044715, %v16165_v53  ;;  %v16184_v44 = vadd.f32 %v8499_v15, %v15993_v30  ;;  %v8827_v55 = vmul.f32 %v8795_v27, %v16093_v5  ;;  %v8712_v45 = vadd.f32 %v8680_v12, %v16128_v26 }
0x2778   : > { %v8618_v24 = vmul.f32 0.044715, %v16172_v28  ;;  %v16178_v23 = vadd.f32 %v8491_v31, %v15981_v8  ;;  %v8711_v60 = vadd.f32 %v8679_v34, %v16146_v7  ;;  %v8742_v16 = vmul.f32 0.7978846, %v8710_v36  ;;  %v11743_v8 = vpop.eup %11742 }
0x2779   : > { %8858 = vxpose.xlu0.b32.cont [5/16] %v8826_v10, 128  ;;  %v8675_v32 = vmul.f32 %v8643_v33, %v16116_v14  ;;  %v8652_v63 = vmul.f32 %v8620_v11, %v16165_v53  ;;  %v8621_v39 = vmul.f32 0.044715, %v16184_v44  ;;  %v8828_v5 = vmul.f32 %v8796_v3, %v16100_v40 }
0x277a   : > { %v8650_v0 = vmul.f32 %v8618_v24, %v16172_v28  ;;  %v8619_v61 = vmul.f32 0.044715, %v16178_v23  ;;  %v8743_v2 = vmul.f32 0.7978846, %v8711_v60  ;;  %11748 = vtanh.f32 %v8742_v16 }
0x277b   : > { %v8797_v51 = vadd.f32 1.0, %v11743_v8  ;;  %v8744_v57 = vmul.f32 0.7978846, %v8712_v45  ;;  %v8713_v19 = vadd.f32 %v8681_v52, %v16139_v21  ;;  %v8736_v56 = vmul.f32 0.7978846, %v8704_v58  ;;  %v11745_v42 = vpop.eup %11744 }
0x277c   : > { %v8682_v35 = vmul.f32 %v8650_v0, %v16172_v28  ;;  %v8651_v30 = vmul.f32 %v8619_v61, %v16178_v23  ;;  %11750 = vtanh.f32 %v8743_v2  ;;  %v8705_v33 = vadd.f32 %v16120_v48, %v16068_v29 }
0x277d   : > { %8859 = vxpose.xlu0.b32.cont [6/16] %v8827_v55, 128  ;;  %v8574_v47 = vmul.f32 0.5, %v16063_v43  ;;  %11752 = vtanh.f32 %v8744_v57  ;;  %v8745_v18 = vmul.f32 0.7978846, %v8713_v19  ;;  %v8706_v59 = vadd.f32 %v8674_v1, %v16106_v22 }
0x277e   : > { %v8683_v13 = vmul.f32 %v8651_v30, %v16178_v23  ;;  %v8714_v25 = vadd.f32 %v8682_v35, %v16172_v28  ;;  %v8684_v40 = vmul.f32 %v8652_v63, %v16165_v53  ;;  %v8653_v41 = vmul.f32 %v8621_v39, %v16184_v44  ;;  %v11747_v34 = vpop.eup %11746 }
0x277f   : > { %11754 = vtanh.f32 %v8736_v56  ;;  %v8737_v49 = vmul.f32 0.7978846, %v8705_v33  ;;  %v8829_v15 = vmul.f32 %v8797_v51, %v16109_v20  ;;  %v8798_v62 = vadd.f32 1.0, %v11745_v42 }
0x2780   : > { %11756 = vtanh.f32 %v8745_v18  ;;  %v8738_v48 = vmul.f32 0.7978846, %v8706_v59  ;;  %v8746_v10 = vmul.f32 0.7978846, %v8714_v25  ;;  %v8715_v43 = vadd.f32 %v8683_v13, %v16178_v23 }
0x2781   : > { %8860 = vxpose.xlu0.b32.cont [7/16] %v8828_v5, 128  ;;  %11758 = vtanh.f32 %v8737_v49  ;;  %v8707_v12 = vadd.f32 %v8675_v32, %v16116_v14  ;;  %v8677_v27 = vmul.f32 %v8645_v9, %v16123_v50  ;;  %v8685_v3 = vmul.f32 %v8653_v41, %v16184_v44 }
0x2782   : > { %v8582_v36 = vmul.f32 0.5, %v16133_v6  ;;  %v8830_v24 = vmul.f32 %v8798_v62, %v8574_v47  ;;  %11760 = vtanh.f32 %v8738_v48  ;;  %v8708_v52 = vadd.f32 %v16155_v37, %v16091_v54 }
0x2783   : > { %v8739_v46 = vmul.f32 0.7978846, %v8707_v12  ;;  %v8799_v11 = vadd.f32 1.0, %v11747_v34  ;;  %11762 = vtanh.f32 %v8746_v10  ;;  %v8747_v16 = vmul.f32 0.7978846, %v8715_v43 }
0x2784   : > { %v11749_v31 = vpop.eup %11748  ;;  %v8716_v0 = vadd.f32 %v8684_v40, %v16165_v53  ;;  %v8575_v8 = vmul.f32 0.5, %v16076_v38  ;;  %v8583_v6 = vmul.f32 0.5, %v16146_v7  ;;  %v8740_v9 = vmul.f32 0.7978846, %v8708_v52 }
0x2785   : > { %8861 = vxpose.xlu0.b32.cont [8/16] %v8829_v15, 128  ;;  %v8806_v60 = vadd.f32 1.0, %v11749_v31  ;;  %11764 = vtanh.f32 %v8739_v46  ;;  %v8709_v55 = vadd.f32 %v8677_v27, %v16123_v50  ;;  %v8717_v45 = vadd.f32 %v8685_v3, %v16184_v44 }
0x2786   : > { %v11751_v20 = vpop.eup %11750  ;;  %v8831_v37 = vmul.f32 %v8799_v11, %v8575_v8  ;;  %11766 = vtanh.f32 %v8747_v16  ;;  %v8748_v30 = vmul.f32 0.7978846, %v8716_v0  ;;  %v8576_v38 = vmul.f32 0.5, %v16058_v17 }
0x2787   : > { %v8838_v61 = vmul.f32 %v8806_v60, %v8582_v36  ;;  %v8807_v2 = vadd.f32 1.0, %v11751_v20  ;;  %v11753_v1 = vpop.eup %11752  ;;  %v8584_v7 = vmul.f32 0.5, %v16128_v26  ;;  %11768 = vtanh.f32 %v8740_v9  ;;  %v17140_v9 = vld [vmem:[#allocation44_spill] sm:$0xff] }
0x2788   : > { %v8808_v39 = vadd.f32 1.0, %v11753_v1  ;;  %v8741_v51 = vmul.f32 0.7978846, %v8709_v55  ;;  %11770 = vtanh.f32 %v8748_v30  ;;  %v8749_v13 = vmul.f32 0.7978846, %v8717_v45 }
0x2789   : > { %8862 = vxpose.xlu0.b32.cont [9/16] %v8830_v24, 128  ;;  %8886 = vxpose.xlu1.b32.start [1/16] %v8838_v61, 128  ;;  %v11755_v35 = vpop.eup %11754  ;;  %v8839_v63 = vmul.f32 %v8807_v2, %v8583_v6  ;;  %v8577_v18 = vmul.f32 0.5, %v16068_v29  ;;  %v8585_v59 = vmul.f32 0.5, %v16139_v21  ;;  %v8578_v15 = vmul.f32 0.5, %v16106_v22 }
0x278a   : > { %v11757_v32 = vpop.eup %11756  ;;  %v8800_v58 = vadd.f32 1.0, %v11755_v35  ;;  %v8840_v33 = vmul.f32 %v8808_v39, %v8584_v7  ;;  %11772 = vtanh.f32 %v8741_v51  ;;  %v8586_v62 = vmul.f32 0.5, %v16172_v28  ;;  %v17144_v39 = vld [vmem:[#allocation45_spill] sm:$0xff]  ;;  %v17146_v7 = vld [vmem:[#allocation46_spill] sm:$0xff] }
0x278b   : > { %v11759_v5 = vpop.eup %11758  ;;  %v8809_v25 = vadd.f32 1.0, %v11757_v32  ;;  %11774 = vtanh.f32 %v8749_v13  ;;  %v8579_v34 = vmul.f32 0.5, %v16116_v14  ;;  %v8587_v31 = vmul.f32 0.5, %v16178_v23 }
0x278c   : > { %v8832_v57 = vmul.f32 %v8800_v58, %v8576_v38  ;;  %v8801_v19 = vadd.f32 1.0, %v11759_v5  ;;  %v11761_v56 = vpop.eup %11760  ;;  %v8580_v28 = vmul.f32 0.5, %v16091_v54  ;;  %v8588_v60 = vmul.f32 0.5, %v16165_v53  ;;  %v11832_v54 = vld [vmem:[%s16426_s7] ss:$0 sm:$0xff] }
0x278d   : > { %8863 = vxpose.xlu0.b32.cont [10/16] %v8831_v37, 128  ;;  %8887 = vxpose.xlu1.b32.cont [2/16] %v8839_v63, 128  ;;  %v11763_v47 = vpop.eup %11762  ;;  %v8802_v42 = vadd.f32 1.0, %v11761_v56  ;;  %v8841_v40 = vmul.f32 %v8809_v25, %v8585_v59  ;;  %v8581_v14 = vmul.f32 0.5, %v16123_v50  ;;  %v8589_v23 = vmul.f32 0.5, %v16184_v44  ;;  %v17142_v44 = vld [vmem:[#allocation43_spill] sm:$0xff] }
0x278e   : > { %v8833_v17 = vmul.f32 %v8801_v19, %v8577_v18  ;;  %v8810_v41 = vadd.f32 1.0, %v11763_v47  ;;  %v17141_v55 = vmax.f32 %v17140_v9, 0.0  ;;  %v17143_v30 = vmax.f32 %v17142_v44, 0.0 }
0x278f   : > { %v11765_v26 = vpop.eup %11764  ;;  %v8834_v48 = vmul.f32 %v8802_v42, %v8578_v15  ;;  %v17145_v58 = vmax.f32 %v17144_v39, 0.0  ;;  %v17147_v51 = vmax.f32 %v17146_v7, 0.0 }
0x2790   : > { %v11767_v49 = vpop.eup %11766  ;;  %v8803_v10 = vadd.f32 1.0, %v11765_v26  ;;  %v8842_v43 = vmul.f32 %v8810_v41, %v8586_v62 }
0x2791   : > { %8864 = vxpose.xlu0.b32.cont [11/16] %v8832_v57, 128  ;;  %8888 = vxpose.xlu1.b32.cont [3/16] %v8840_v33, 128  ;;  %v11769_v29 = vpop.eup %11768  ;;  %v8811_v12 = vadd.f32 1.0, %v11767_v49 }
0x2792   : > { %v11771_v21 = vpop.eup %11770  ;;  %v8835_v27 = vmul.f32 %v8803_v10, %v8579_v34  ;;  %v8804_v3 = vadd.f32 1.0, %v11769_v29 }
0x2793   : > { %v8843_v24 = vmul.f32 %v8811_v12, %v8587_v31  ;;  %v8812_v22 = vadd.f32 1.0, %v11771_v21  ;;  %v17148_v31 = vld [vmem:[#allocation48_spill] sm:$0xff] }
0x2794   : > { %v11773_v36 = vpop.eup %11772  ;;  %v8836_v46 = vmul.f32 %v8804_v3, %v8580_v28 }
0x2795   : > { %8865 = vxpose.xlu0.b32.cont [12/16] %v8833_v17, 128  ;;  %8889 = vxpose.xlu1.b32.cont [4/16] %v8841_v40, 128  ;;  %v11775_v20 = vpop.eup %11774  ;;  %v8805_v52 = vadd.f32 1.0, %v11773_v36  ;;  %v8844_v11 = vmul.f32 %v8812_v22, %v8588_v60  ;;  %v17150_v22 = vld [vmem:[#allocation47_spill] sm:$0xff] }
0x2796   : > { %v8813_v16 = vadd.f32 1.0, %v11775_v20  ;;  %v17151_v20 = vmax.f32 %v17150_v22, 0.0 }
0x2797   : > { %v8837_v0 = vmul.f32 %v8805_v52, %v8581_v14  ;;  %v17152_v52 = vld [vmem:[#allocation49_spill] sm:$0xff] }
0x2798   : > { %v8845_v61 = vmul.f32 %v8813_v16, %v8589_v23  ;;  %v17154_v23 = vld [vmem:[#allocation50_spill] sm:$0xff] }
0x2799   : > { %8866 = vxpose.xlu0.b32.cont [13/16] %v8834_v48, 128  ;;  %8890 = vxpose.xlu1.b32.cont [5/16] %v8842_v43, 128 }
0x279d   : > { %8867 = vxpose.xlu0.b32.cont [14/16] %v8835_v27, 128  ;;  %8891 = vxpose.xlu1.b32.cont [6/16] %v8843_v24, 128  ;;  %v17149_v27 = vmax.f32 %v17148_v31, 0.0 }
0x27a1   : > { %8868 = vxpose.xlu0.b32.cont [15/16] %v8836_v46, 128  ;;  %8892 = vxpose.xlu1.b32.cont [7/16] %v8844_v11, 128  ;;  %v17153_v11 = vmax.f32 %v17152_v52, 0.0 }
0x27a5   : > { %8869 = vxpose.xlu0.b32.end [16/16] %v8837_v0, 128  ;;  %8893 = vxpose.xlu1.b32.cont [8/16] %v8845_v61, 128  ;;  %v17155_v0 = vmax.f32 %v17154_v23, 0.0 }
0x27e9   : > { %v8870_v52 = vpop.trf.xlu0 }
0x27ea   : > { %8918 = vst [vmem:[%s16268_s10] sm:$0xff] %v8870_v52 }
0x280d   : > { %v10461_v2 = vpop.f32.mrb[40].mxu0 }
0x280e   : > { %v7960_v53 = vadd.f32 %v11832_v54, %v10461_v2  ;;  %v7888_v8 = vpop.f32.mrb[41].mxu0 }
0x280f   : > { %v7958_v1 = vadd.f32 %v11832_v54, %v7888_v8  ;;  %v10462_v6 = vpop.f32.mrb[42].mxu0 }
0x2810   : > { %v16239_v35 = vadd.f32 %v7960_v53, %v17141_v55  ;;  %v7961_v50 = vadd.f32 %v11832_v54, %v10462_v6  ;;  %v7891_v37 = vpop.f32.mrb[43].mxu0 }
0x2811   : > { %v7990_v45 = vadd.f32 %v7958_v1, %v17143_v30  ;;  %v7959_v32 = vadd.f32 %v11832_v54, %v7891_v37 }
0x2812   : > { %v8056_v63 = vmul.f32 0.044715, %v16239_v35  ;;  %v7993_v5 = vadd.f32 %v7961_v50, %v17145_v58 }
0x2813   : > { %v8054_v38 = vmul.f32 0.044715, %v7990_v45  ;;  %v7991_v57 = vadd.f32 %v7959_v32, %v17147_v51  ;;  %v8022_v44 = vmul.f32 0.5, %v7990_v45 }
0x2814   : > { %v8088_v19 = vmul.f32 %v8056_v63, %v16239_v35  ;;  %v8057_v13 = vmul.f32 0.044715, %v7993_v5  ;;  %v8025_v32 = vmul.f32 0.5, %v7993_v5 }
0x2815   : > { %v8086_v56 = vmul.f32 %v8054_v38, %v7990_v45  ;;  %v8055_v33 = vmul.f32 0.044715, %v7991_v57 }
0x2816   : > { %v8120_v25 = vmul.f32 %v8088_v19, %v16239_v35  ;;  %v8089_v47 = vmul.f32 %v8057_v13, %v7993_v5 }
0x2817   : > { %v8087_v18 = vmul.f32 %v8055_v33, %v7991_v57  ;;  %v8118_v59 = vmul.f32 %v8086_v56, %v7990_v45 }
0x2818   : > { %v8152_v17 = vadd.f32 %v8120_v25, %v16239_v35  ;;  %v8121_v42 = vmul.f32 %v8089_v47, %v7993_v5  ;;  %v8023_v25 = vmul.f32 0.5, %v7991_v57 }
0x2819   : > { %v8119_v26 = vmul.f32 %v8087_v18, %v7991_v57  ;;  %v8150_v40 = vadd.f32 %v8118_v59, %v7990_v45  ;;  %v8024_v18 = vmul.f32 0.5, %v16239_v35 }
0x281a   : > { %v8184_v41 = vmul.f32 0.7978846, %v8152_v17  ;;  %v8153_v49 = vadd.f32 %v8121_v42, %v7993_v5 }
0x281b   : > { %v8151_v15 = vadd.f32 %v8119_v26, %v7991_v57  ;;  %v8182_v62 = vmul.f32 0.7978846, %v8150_v40 }
0x281c   : > { %11776 = vtanh.f32 %v8184_v41  ;;  %v8185_v48 = vmul.f32 0.7978846, %v8153_v49 }
0x281d   : > { %v10465_v10 = vpop.f32.mrb[44].mxu0  ;;  %v8183_v29 = vmul.f32 0.7978846, %v8151_v15  ;;  %11778 = vtanh.f32 %v8182_v62 }
0x281e   : > { %11780 = vtanh.f32 %v8185_v48  ;;  %v7964_v43 = vadd.f32 %v11832_v54, %v10465_v10  ;;  %v7904_v12 = vpop.f32.mrb[45].mxu0 }
0x281f   : > { %v7962_v21 = vadd.f32 %v11832_v54, %v7904_v12  ;;  %v10466_v34 = vpop.f32.mrb[46].mxu0  ;;  %11782 = vtanh.f32 %v8183_v29 }
0x2820   : > { %v7996_v3 = vadd.f32 %v7964_v43, %v17149_v27  ;;  %v7965_v36 = vadd.f32 %v11832_v54, %v10466_v34  ;;  %v7907_v24 = vpop.f32.mrb[47].mxu0 }
0x2821   : > { %v7994_v28 = vadd.f32 %v7962_v21, %v17151_v20  ;;  %v7963_v60 = vadd.f32 %v11832_v54, %v7907_v24 }
0x2822   : > { %v8060_v46 = vmul.f32 0.044715, %v7996_v3  ;;  %v7997_v16 = vadd.f32 %v7965_v36, %v17153_v11  ;;  %v8028_v27 = vmul.f32 0.5, %v7996_v3 }
0x2823   : > { %v8058_v14 = vmul.f32 0.044715, %v7994_v28  ;;  %v7995_v61 = vadd.f32 %v7963_v60, %v17155_v0  ;;  %v8026_v21 = vmul.f32 0.5, %v7994_v28 }
0x2824   : > { %v8092_v2 = vmul.f32 %v8060_v46, %v7996_v3  ;;  %v8061_v53 = vmul.f32 0.044715, %v7997_v16  ;;  %v8029_v43 = vmul.f32 0.5, %v7997_v16 }
0x2825   : > { %v8090_v8 = vmul.f32 %v8058_v14, %v7994_v28  ;;  %v8059_v1 = vmul.f32 0.044715, %v7995_v61  ;;  %v8027_v34 = vmul.f32 0.5, %v7995_v61 }
0x2826   : > { %v11777_v6 = vpop.eup %11776  ;;  %v8124_v9 = vmul.f32 %v8092_v2, %v7996_v3  ;;  %v8093_v55 = vmul.f32 %v8061_v53, %v7997_v16 }
0x2827   : > { %v11779_v50 = vpop.eup %11778  ;;  %v8091_v37 = vmul.f32 %v8059_v1, %v7995_v61  ;;  %v8122_v30 = vmul.f32 %v8090_v8, %v7994_v28  ;;  %v8248_v7 = vadd.f32 1.0, %v11777_v6 }
0x2828   : > { %v11781_v54 = vpop.eup %11780  ;;  %v8156_v63 = vadd.f32 %v8124_v9, %v7996_v3  ;;  %v8125_v39 = vmul.f32 %v8093_v55, %v7997_v16  ;;  %v8246_v58 = vadd.f32 1.0, %v11779_v50 }
0x2829   : > { %v11783_v38 = vpop.eup %11782  ;;  %v8249_v51 = vadd.f32 1.0, %v11781_v54  ;;  %v8123_v19 = vmul.f32 %v8091_v37, %v7995_v61  ;;  %v8154_v13 = vadd.f32 %v8122_v30, %v7994_v28  ;;  %v8280_v40 = vmul.f32 %v8248_v7, %v8024_v18  ;;  %v8871_v28 = vpop.trf.xlu0 }
0x282a   : > { %v8188_v56 = vmul.f32 0.7978846, %v8156_v63  ;;  %v8157_v33 = vadd.f32 %v8125_v39, %v7997_v16  ;;  %v8247_v47 = vadd.f32 1.0, %v11783_v38  ;;  %v8278_v5 = vmul.f32 %v8246_v58, %v8022_v44  ;;  %8920 = vst [vmem:[%s16268_s10 + $0x10] sm:$0xff] %v8871_v28 }
0x282b   : > { %v8281_v59 = vmul.f32 %v8249_v51, %v8025_v32  ;;  %v8155_v17 = vadd.f32 %v8123_v19, %v7995_v61  ;;  %v8186_v45 = vmul.f32 0.7978846, %v8154_v13 }
0x282c   : > { %11784 = vtanh.f32 %v8188_v56  ;;  %v8189_v42 = vmul.f32 0.7978846, %v8157_v33  ;;  %v8279_v26 = vmul.f32 %v8247_v47, %v8023_v25 }
0x282d   : > { %v8187_v41 = vmul.f32 0.7978846, %v8155_v17  ;;  %11786 = vtanh.f32 %v8186_v45  ;;  %v8299_v15 = vpack.c.bf16 %v8281_v59, %v8280_v40  ;;  %v8872_v1 = vpop.trf.xlu0 }
0x282e   : > { %11788 = vtanh.f32 %v8189_v42  ;;  %v8298_v49 = vpack.c.bf16 %v8279_v26, %v8278_v5  ;;  %8922 = vst [vmem:[%s16268_s10 + $0x20] sm:$0xff] %v8872_v1 }
0x282f   : > { %11790 = vtanh.f32 %v8187_v41 }
0x2830   : > { %10507 = vmatprep.mubr.bf16.mxu1 %v8298_v49 }
0x2831   : > { %10508 = vmatmul.mubr.bf16.gmra.mrb[152].mxu1 %v8299_v15  ;;  %v8873_v32 = vpop.trf.xlu0 }
0x2832   : > { %8924 = vst [vmem:[%s16268_s10 + $0x30] sm:$0xff] %v8873_v32 }
0x2835   : > { %v8874_v56 = vpop.trf.xlu0 }
0x2836   : > { %v11785_v57 = vpop.eup %11784  ;;  %8926 = vst [vmem:[%s16268_s10 + $0x40] sm:$0xff] %v8874_v56 }
0x2837   : > { %v11787_v62 = vpop.eup %11786  ;;  %v8252_v29 = vadd.f32 1.0, %v11785_v57 }
0x2838   : > { %v11789_v48 = vpop.eup %11788  ;;  %v8250_v35 = vadd.f32 1.0, %v11787_v62 }
0x2839   : > { %v11791_v10 = vpop.eup %11790  ;;  %v8253_v12 = vadd.f32 1.0, %v11789_v48  ;;  %v8284_v20 = vmul.f32 %v8252_v29, %v8028_v27  ;;  %v8875_v45 = vpop.trf.xlu0 }
0x283a   : > { %v8251_v31 = vadd.f32 1.0, %v11791_v10  ;;  %v8282_v24 = vmul.f32 %v8250_v35, %v8026_v21  ;;  %8928 = vst [vmem:[%s16268_s10 + $0x50] sm:$0xff] %v8875_v45 }
0x283b   : > { %v16260_v36 = vmul.f32 %v8253_v12, %v8029_v43 }
0x283c   : > { %v16262_v22 = vmul.f32 %v8251_v31, %v8027_v34 }
0x283d   : > { %v8301_v46 = vpack.c.bf16 %v16260_v36, %v8284_v20  ;;  %v8876_v35 = vpop.trf.xlu0 }
0x283e   : > { %v8300_v60 = vpack.c.bf16 %v16262_v22, %v8282_v24  ;;  %8930 = vst [vmem:[%s16268_s10 + $0x60] sm:$0xff] %v8876_v35 }
0x2840   : > { %10511 = vmatprep.mubr.bf16.mxu1 %v8300_v60 }
0x2841   : > { %10512 = vmatmul.mubr.bf16.gmra.mrb[156].mxu1 %v8301_v46  ;;  %v8877_v27 = vpop.trf.xlu0 }
0x2842   : > { %8932 = vst [vmem:[%s16268_s10 + $0x70] sm:$0xff] %v8877_v27 }
0x2904   : > { %v10509_v3 = vpop.f32.mrb[152].mxu1 }
0x2905   : > { %v8512_v11 = vadd.f32 %v10509_v3, %v16005_v4  ;;  %v8503_v16 = vpop.f32.mrb[153].mxu1 }
0x2906   : > { %v8504_v14 = vadd.f32 %v16005_v4, %v8503_v16  ;;  %v10510_v23 = vpop.f32.mrb[154].mxu1 }
0x2907   : > { %v16274_v0 = vadd.f32 %v8512_v11, %v8280_v40  ;;  %v8515_v61 = vadd.f32 %v10510_v23, %v16005_v4  ;;  %v8506_v2 = vpop.f32.mrb[155].mxu1  ;;  %v8878_v23 = vpop.trf.xlu0 }
0x2908   : > { %v16277_v53 = vadd.f32 %v8504_v14, %v8278_v5  ;;  %v8507_v8 = vadd.f32 %v16005_v4, %v8506_v2  ;;  %8934 = vst [vmem:[%s16268_s10 + $0x80] sm:$0xff] %v8878_v23 }
0x2909   : > { %v8624_v6 = vmul.f32 0.044715, %v16274_v0  ;;  %v16281_v9 = vadd.f32 %v8515_v61, %v8281_v59 }
0x290a   : > { %v8622_v55 = vmul.f32 0.044715, %v16277_v53  ;;  %v16285_v50 = vadd.f32 %v8507_v8, %v8279_v26  ;;  %v8590_v46 = vmul.f32 0.5, %v16277_v53 }
0x290b   : > { %v8656_v37 = vmul.f32 %v8624_v6, %v16274_v0  ;;  %v8625_v44 = vmul.f32 0.044715, %v16281_v9 }
0x290c   : > { %v8654_v30 = vmul.f32 %v8622_v55, %v16277_v53  ;;  %v8623_v54 = vmul.f32 0.044715, %v16285_v50 }
0x290d   : > { %v8688_v63 = vmul.f32 %v8656_v37, %v16274_v0  ;;  %v8657_v39 = vmul.f32 %v8625_v44, %v16281_v9 }
0x290e   : > { %v8686_v58 = vmul.f32 %v8654_v30, %v16277_v53  ;;  %v8655_v38 = vmul.f32 %v8623_v54, %v16285_v50  ;;  %v8879_v30 = vpop.trf.xlu0 }
0x290f   : > { %v8689_v7 = vmul.f32 %v8657_v39, %v16281_v9  ;;  %v8720_v13 = vadd.f32 %v8688_v63, %v16274_v0  ;;  %8936 = vst [vmem:[%s16268_s10 + $0x90] sm:$0xff] %v8879_v30  ;;  %v8592_v39 = vmul.f32 0.5, %v16274_v0 }
0x2910   : > { %v8687_v51 = vmul.f32 %v8655_v38, %v16285_v50  ;;  %v8718_v19 = vadd.f32 %v8686_v58, %v16277_v53  ;;  %v8591_v53 = vmul.f32 0.5, %v16285_v50 }
0x2911   : > { %v8752_v59 = vmul.f32 0.7978846, %v8720_v13  ;;  %v8721_v17 = vadd.f32 %v8689_v7, %v16281_v9 }
0x2912   : > { %v8750_v33 = vmul.f32 0.7978846, %v8718_v19  ;;  %v8719_v25 = vadd.f32 %v8687_v51, %v16285_v50  ;;  %v8880_v38 = vpop.trf.xlu0  ;;  %v8593_v51 = vmul.f32 0.5, %v16281_v9 }
0x2913   : > { %v8753_v48 = vmul.f32 0.7978846, %v8721_v17  ;;  %8938 = vst [vmem:[%s16268_s10 + $0xa0] sm:$0xff] %v8880_v38 }
0x2914   : > { %v10513_v47 = vpop.f32.mrb[156].mxu1  ;;  %11792 = vtanh.f32 %v8750_v33  ;;  %v8751_v18 = vmul.f32 0.7978846, %v8719_v25 }
0x2915   : > { %v8528_v42 = vadd.f32 %v10513_v47, %v16005_v4  ;;  %v8519_v5 = vpop.f32.mrb[157].mxu1 }
0x2916   : > { %v8520_v26 = vadd.f32 %v16005_v4, %v8519_v5  ;;  %v10514_v40 = vpop.f32.mrb[158].mxu1  ;;  %11794 = vtanh.f32 %v8751_v18  ;;  %v8881_v19 = vpop.trf.xlu0 }
0x2917   : > { %v16306_v41 = vadd.f32 %v8528_v42, %v8284_v20  ;;  %v8531_v49 = vadd.f32 %v10514_v40, %v16005_v4  ;;  %v8522_v15 = vpop.f32.mrb[159].mxu1  ;;  %11796 = vtanh.f32 %v8752_v59  ;;  %8940 = vst [vmem:[%s16268_s10 + $0xb0] sm:$0xff] %v8881_v19 }
0x2918   : > { %v16309_v57 = vadd.f32 %v8520_v26, %v8282_v24  ;;  %v8523_v62 = vadd.f32 %v16005_v4, %v8522_v15  ;;  %11798 = vtanh.f32 %v8753_v48 }
0x2919   : > { %v8628_v10 = vmul.f32 0.044715, %v16306_v41  ;;  %v16314_v29 = vadd.f32 %v8531_v49, %v16260_v36  ;;  %v8596_v40 = vmul.f32 0.5, %v16306_v41 }
0x291a   : > { %v8626_v43 = vmul.f32 0.044715, %v16309_v57  ;;  %v16319_v12 = vadd.f32 %v8523_v62, %v16262_v22  ;;  %v8594_v33 = vmul.f32 0.5, %v16309_v57  ;;  %v8882_v47 = vpop.trf.xlu0 }
0x291b   : > { %v8660_v21 = vmul.f32 %v8628_v10, %v16306_v41  ;;  %v8629_v34 = vmul.f32 0.044715, %v16314_v29  ;;  %8942 = vst [vmem:[%s16268_s10 + $0xc0] sm:$0xff] %v8882_v47  ;;  %v8597_v62 = vmul.f32 0.5, %v16314_v29 }
0x291c   : > { %v8658_v4 = vmul.f32 %v8626_v43, %v16309_v57  ;;  %v8627_v31 = vmul.f32 0.044715, %v16319_v12  ;;  %v8595_v9 = vmul.f32 0.5, %v16319_v12 }
0x291d   : > { %v8692_v24 = vmul.f32 %v8660_v21, %v16306_v41  ;;  %v8661_v36 = vmul.f32 %v8629_v34, %v16314_v29 }
0x291e   : > { %v11793_v20 = vpop.eup %11792  ;;  %v8690_v22 = vmul.f32 %v8658_v4, %v16309_v57  ;;  %v8659_v60 = vmul.f32 %v8627_v31, %v16319_v12  ;;  %v8883_v45 = vpop.trf.xlu0 }
0x291f   : > { %v8814_v52 = vadd.f32 1.0, %v11793_v20  ;;  %v8693_v28 = vmul.f32 %v8661_v36, %v16314_v29  ;;  %v8724_v14 = vadd.f32 %v8692_v24, %v16306_v41  ;;  %8944 = vst [vmem:[%s16268_s10 + $0xd0] sm:$0xff] %v8883_v45 }
0x2920   : > { %v11795_v3 = vpop.eup %11794  ;;  %v8691_v11 = vmul.f32 %v8659_v60, %v16319_v12  ;;  %v8722_v16 = vadd.f32 %v8690_v22, %v16309_v57 }
0x2921   : > { %v8846_v61 = vmul.f32 %v8814_v52, %v8590_v46  ;;  %v8815_v2 = vadd.f32 1.0, %v11795_v3  ;;  %v11797_v8 = vpop.eup %11796  ;;  %v8756_v37 = vmul.f32 0.7978846, %v8724_v14  ;;  %v8725_v44 = vadd.f32 %v8693_v28, %v16314_v29 }
0x2922   : > { %v8754_v1 = vmul.f32 0.7978846, %v8722_v16  ;;  %v8723_v6 = vadd.f32 %v8691_v11, %v16319_v12  ;;  %v8816_v32 = vadd.f32 1.0, %v11797_v8  ;;  %v11799_v63 = vpop.eup %11798  ;;  %v8884_v49 = vpop.trf.xlu0 }
0x2923   : > { %8894 = vxpose.xlu1.b32.cont [9/16] %v8846_v61, 128  ;;  %v8847_v54 = vmul.f32 %v8815_v2, %v8591_v53  ;;  %v8757_v58 = vmul.f32 0.7978846, %v8725_v44  ;;  %v8817_v7 = vadd.f32 1.0, %v11799_v63  ;;  %8946 = vst [vmem:[%s16268_s10 + $0xe0] sm:$0xff] %v8884_v49 }
0x2924   : > { %11800 = vtanh.f32 %v8754_v1  ;;  %v8755_v55 = vmul.f32 0.7978846, %v8723_v6  ;;  %v8848_v50 = vmul.f32 %v8816_v32, %v8592_v39 }
0x2925   : > { %v8849_v13 = vmul.f32 %v8817_v7, %v8593_v51 }
0x2926   : > { %11802 = vtanh.f32 %v8755_v55  ;;  %v8885_v48 = vpop.trf.xlu0 }
0x2927   : > { %8895 = vxpose.xlu1.b32.cont [10/16] %v8847_v54, 128  ;;  %11804 = vtanh.f32 %v8756_v37  ;;  %8948 = vst [vmem:[%s16268_s10 + $0xf0] sm:$0xff] %v8885_v48 }
0x2928   : > { %11806 = vtanh.f32 %v8757_v58 }
0x292b   : > { %8896 = vxpose.xlu1.b32.cont [11/16] %v8848_v50, 128 }
0x292e   : > { %v11801_v56 = vpop.eup %11800 }
0x292f   : > { %8897 = vxpose.xlu1.b32.cont [12/16] %v8849_v13, 128  ;;  %v8818_v0 = vadd.f32 1.0, %v11801_v56 }
0x2930   : > { %v11803_v25 = vpop.eup %11802 }
0x2931   : > { %v8850_v18 = vmul.f32 %v8818_v0, %v8594_v33  ;;  %v8819_v59 = vadd.f32 1.0, %v11803_v25  ;;  %v11805_v17 = vpop.eup %11804 }
0x2932   : > { %v8820_v5 = vadd.f32 1.0, %v11805_v17  ;;  %v11807_v26 = vpop.eup %11806 }
0x2933   : > { %8898 = vxpose.xlu1.b32.cont [13/16] %v8850_v18, 128  ;;  %v8851_v42 = vmul.f32 %v8819_v59, %v8595_v9  ;;  %v8821_v57 = vadd.f32 1.0, %v11807_v26 }
0x2934   : > { %v8852_v15 = vmul.f32 %v8820_v5, %v8596_v40 }
0x2935   : > { %v8853_v35 = vmul.f32 %v8821_v57, %v8597_v62 }
0x2937   : > { %8899 = vxpose.xlu1.b32.cont [14/16] %v8851_v42, 128 }
0x293b   : > { %8900 = vxpose.xlu1.b32.cont [15/16] %v8852_v15, 128 }
0x293f   : > { %8901 = vxpose.xlu1.b32.end [16/16] %v8853_v35, 128 }
0x2983   : > { %v8902_v10 = vpop.trf.xlu1 }
0x2984   : > { %8919 = vst [vmem:[%s16268_s10 + $0x8] sm:$0xff] %v8902_v10 }
0x2987   : > { %v8903_v41 = vpop.trf.xlu1 }
0x2988   : > { %8921 = vst [vmem:[%s16268_s10 + $0x18] sm:$0xff] %v8903_v41 }
0x298b   : > { %v8904_v43 = vpop.trf.xlu1 }
0x298c   : > { %8923 = vst [vmem:[%s16268_s10 + $0x28] sm:$0xff] %v8904_v43 }
0x298f   : > { %v8905_v12 = vpop.trf.xlu1 }
0x2990   : > { %8925 = vst [vmem:[%s16268_s10 + $0x38] sm:$0xff] %v8905_v12 }
0x2993   : > { %v8906_v29 = vpop.trf.xlu1 }
0x2994   : > { %8927 = vst [vmem:[%s16268_s10 + $0x48] sm:$0xff] %v8906_v29 }
0x2997   : > { %v8907_v21 = vpop.trf.xlu1 }
0x2998   : > { %8929 = vst [vmem:[%s16268_s10 + $0x58] sm:$0xff] %v8907_v21 }
0x299b   : > { %v8908_v34 = vpop.trf.xlu1 }
0x299c   : > { %8931 = vst [vmem:[%s16268_s10 + $0x68] sm:$0xff] %v8908_v34 }
0x299f   : > { %v8909_v4 = vpop.trf.xlu1 }
0x29a0   : > { %8933 = vst [vmem:[%s16268_s10 + $0x78] sm:$0xff] %v8909_v4 }
0x29a3   : > { %v8910_v31 = vpop.trf.xlu1 }
0x29a4   : > { %8935 = vst [vmem:[%s16268_s10 + $0x88] sm:$0xff] %v8910_v31 }
0x29a7   : > { %v8911_v27 = vpop.trf.xlu1 }
0x29a8   : > { %8937 = vst [vmem:[%s16268_s10 + $0x98] sm:$0xff] %v8911_v27 }
0x29ab   : > { %v8912_v24 = vpop.trf.xlu1 }
0x29ac   : > { %8939 = vst [vmem:[%s16268_s10 + $0xa8] sm:$0xff] %v8912_v24 }
0x29af   : > { %v8913_v36 = vpop.trf.xlu1 }
0x29b0   : > { %8941 = vst [vmem:[%s16268_s10 + $0xb8] sm:$0xff] %v8913_v36 }
0x29b3   : > { %v8914_v20 = vpop.trf.xlu1 }
0x29b4   : > { %8943 = vst [vmem:[%s16268_s10 + $0xc8] sm:$0xff] %v8914_v20 }
0x29b7   : > { %v8915_v22 = vpop.trf.xlu1 }
0x29b8   : > { %8945 = vst [vmem:[%s16268_s10 + $0xd8] sm:$0xff] %v8915_v22 }
0x29bb   : > { %v8916_v60 = vpop.trf.xlu1 }
0x29bc   : > { %8947 = vst [vmem:[%s16268_s10 + $0xe8] sm:$0xff] %v8916_v60 }
0x29bf   : > { %v8917_v46 = vpop.trf.xlu1 }
0x29c0   : > { %8949 = vst [vmem:[%s16268_s10 + $0xf8] sm:$0xff] %v8917_v46 }
0x29c1   : > { %12016 = shalt.err (!%p12013_p8)
}
0x29c2   : > { %s12017_s20 = scalar_lea.hbm %s16372_s12, 4096  ;;  %s12021_s18 = scalar_lea.hbm %s17156_s27, 8192 }
0x29c3   : > { %p12018_p6 = scmp.ne.s32.totalorder %s16372_s12, %s12017_s20  ;;  %p12022_p3 = scmp.lt.u32.totalorder %s16372_s12, %s17156_s27 }
0x29c4   : > { %p12023_p0 = scmp.lt.u32.totalorder %s12021_s18, %s12017_s20  ;;  %p12025_p2 = scmp.lt.u32.totalorder %s12017_s20, %s16372_s12 }
0x29c5   : > { %p12019_p9 = pnand %p12018_p6, %p17157_p7 }
0x29c6   : > { %p12024_p5 = por %p12023_p0, %p12022_p3 }
0x29c7   : > { %p12020_p4 = pneg %p12019_p9 }
0x29c8   : > { %p12026_p10 = por %p12025_p2, %p12024_p5 }
0x29ca   : > { %p12027_p1 = pnand %p12026_p10, %p12020_p4 }
0x29cc   : > { %12030 = shalt.err (!%p12027_p1)
}
0x29cd   : > { %s12100_s17 = smov 256   ;;  %s12101_s19 = smov 16  }
0x29ce   : > { %10649 = dma.vmem_to_hbm [thread:$0]  (%p17157_p7), %s16374_s28, 4096, %s16372_s12, %s8951_s1, %s12100_s17, %s12100_s17, %s12101_s19  }
0x29cf PF: > { %s8979_s22 = sand.u32 1, %s12069_s13   ;;  %p17158_p11 = scmp.ne.s32.totalorder %s16685_s30, 0 }
0x29d0   : > { %p17159_p12 = scmp.ge.s32.totalorder %s12081_s16, 2  ;;  %s8980_s24 = scalar_lea.sflag [#allocation4], %s8979_s22 }
0x29d2   : > { %p10672_p13 = pnand %p17159_p12, %p17158_p11 }
0x29d4   : > { %12064 = dma.done.wait (!%p10672_p13), %s8980_s24, 4096  }
0x29d5   : > { %12066 = vsyncadd (!%p10672_p13), %s8980_s24, 4294963200  ;;  %p26_p8 = scmp.ge.s32.totalorder %s12323_s11, 4   ;;  %s17160_s13 = smov %s12073_s14 }
0x29d6   : > { %s17161_s14 = smov %s12077_s15  ;;  %s17162_s15 = smov %s12335_s9 }
0x29d7   : > { %s17163_s16 = smov %s12323_s11  ;;  %28 = sbr.rel (!%p26_p8) target bundleno = 12 (0xc), region = 125 }
0x29de   :  { %8985 = vsyncpa [#allocation3], 1 }
0x29df   :  { %8987 = vsyncpa [#allocation3 + $0x1], 1 }
0x29e0   :  { %8988 = vsyncpa [#allocation6], 1 }
0x29e1   :  { %8989 = vsyncpa [#allocation9], 1 }
0x29e2   :  { %8990 = vsyncpa [#allocation12], 1 }
0x29e3   :  { %8991 = vsyncpa [#allocation4], 1 }
0x29e4   :  { %8993 = vsyncpa [#allocation4 + $0x1], 1 }

</bundles_post_ra>
